<compile_context>
chip_gen: v7x
topology: tpu7x:2x2x1
jax: 0.10.0
libtpu: 0.0.40
codegen_flags: <defaults>
</compile_context>

<pallas_src>
import functools

import jax
import jax.numpy as jnp
import numpy as np
from jax import lax
from jax.experimental import pallas as pl
from jax.experimental.pallas import tpu as pltpu


_M_CAP = 1024        # target max MXU M rows per grid step
_TCO_CAP = 256       # output-channel tile (multiple of 128)
_GROUP_CIN = 96      # Cin >= this -> 3 row-group matmuls (K = 3*Cin)


def _round_up(x, m):
    return ((x + m - 1) // m) * m


def _vmem_capacity_bytes():
    try:
        return int(pltpu.get_tpu_info().vmem_capacity_bytes)
    except Exception:
        return 64 * 1024 * 1024


def _conv3x3_kernel(x_ref, w_ref, scale_ref, shift_ref, o_ref, *scratch,
                    tH, W, Cin, relu, grouped, manual_dma):
    """One grid step (n, c, h): output rows [h*tH, h*tH+tH) x Cout tile c.

    x_ref:     whole-rows mode: (nb, tH+2, W+2, Cin) bf16 VMEM block
               row-tiled mode:  (N, Hp+2, W+2, Cin)  bf16 HBM ref (pl.ANY)
    w_ref:     (3, 3*Cin, tCo) or (9*Cin, tCo) bf16 weight tile
    scale_ref: (1, tCo) f32 fused-BN scale
    shift_ref: (1, tCo) f32 fused-BN shift (conv bias folded in)
    o_ref:     (nb, tH, W, tCo)
    scratch:   row-tiled mode only: [xwin (2, tH+2, W+2, Cin), sem DMA(2,)]
    """
    if manual_dma:
        xwin, sem = scratch
        n = pl.program_id(0)
        h = pl.program_id(2)
        n_h = pl.num_programs(2)

        def start_copy(hh, slot):
            pltpu.make_async_copy(
                x_ref.at[n, pl.ds(hh * tH, tH + 2)],
                xwin.at[slot], sem.at[slot]).start()

        def wait_copy(slot):
            pltpu.make_async_copy(
                x_ref.at[n, pl.ds(0, tH + 2)],
                xwin.at[slot], sem.at[slot]).wait()

        slot = h & 1

        @pl.when(h == 0)             # prime the pipeline for this (n, c) sweep
        def _():
            start_copy(0, 0)

        @pl.when(h + 1 < n_h)        # prefetch next halo window
        def _():
            start_copy(h + 1, 1 - slot)

        wait_copy(slot)
        xw = xwin[slot]                                   # (tH+2, W+2, Cin)
    else:
        xw = x_ref[...]                                   # (nb, tH+2, W+2, Cin)

    if grouped:
        # 3 matmuls with K = 3*Cin (fills the 256-deep MXU on v6e/v7x),
        # value-chain accumulation (no per-tap f32 VMEM read-modify-write).
        y = None
        for kh in range(3):
            rows = xw[..., kh:kh + tH, :, :]              # (..., tH, W+2, Cin)
            g = jnp.concatenate(
                [rows[..., 0:W, :], rows[..., 1:W + 1, :], rows[..., 2:W + 2, :]],
                axis=-1).reshape(-1, 3 * Cin)
            d = jnp.dot(g, w_ref[kh], preferred_element_type=jnp.float32)
            y = d if y is None else y + d
    else:
        # Small Cin: single im2col matmul with K = 9*Cin.
        cols = [xw[..., kh:kh + tH, kw:kw + W, :]
                for kh in range(3) for kw in range(3)]
        patches = jnp.concatenate(cols, axis=-1).reshape(-1, 9 * Cin)
        y = jnp.dot(patches, w_ref[...], preferred_element_type=jnp.float32)

    # f32 epilogue: fused BN affine (+ folded conv bias) and optional ReLU.
    y = y * scale_ref[...] + shift_ref[...]
    if relu:
        y = jnp.maximum(y, 0.0)
    o_ref[...] = y.reshape(o_ref.shape).astype(o_ref.dtype)


def pack_conv3x3(w_hwio, b, bn_scale=None, bn_shift=None):
    """One-time host-side packing: fold the conv bias into the (BN) affine
    shift, pad Cout to a multiple of 128 (lane-dense stores), cast to bf16 and
    reshape the weights into the kernel's matmul layout."""
    Cin, Cout = w_hwio.shape[2], w_hwio.shape[3]
    scale = (jnp.ones((Cout,), jnp.float32) if bn_scale is None
             else bn_scale.astype(jnp.float32))
    shift = (jnp.zeros((Cout,), jnp.float32) if bn_shift is None
             else bn_shift.astype(jnp.float32))
    # (conv + b) * s + t == conv * s + (t + b * s)
    shift = shift + b.astype(jnp.float32) * scale

    co_pad = _round_up(Cout, 128)
    if co_pad != Cout:
        w_hwio = jnp.pad(w_hwio, ((0, 0), (0, 0), (0, 0), (0, co_pad - Cout)))
        scale = jnp.pad(scale, (0, co_pad - Cout))
        shift = jnp.pad(shift, (0, co_pad - Cout))

    grouped = Cin >= _GROUP_CIN
    w_bf = w_hwio.astype(jnp.bfloat16)
    w_k = (w_bf.reshape(3, 3 * Cin, co_pad) if grouped
           else w_bf.reshape(9 * Cin, co_pad))
    return dict(w=w_k, scale=scale.reshape(1, co_pad),
                shift=shift.reshape(1, co_pad),
                cin=Cin, cout=Cout, co_pad=co_pad, grouped=grouped)


def conv3x3(x_nhwc, p, relu=False, out_dtype=jnp.bfloat16):
    """3x3 stride-1 SAME conv (NHWC) with fused BN affine + bias (+ ReLU)."""
    N, H, W, Cin = x_nhwc.shape
    assert Cin == p["cin"], (Cin, p["cin"])
    co_pad, grouped = p["co_pad"], p["grouped"]

    # ---- tiling -------------------------------------------------------------
    if H * W <= _M_CAP:
        # Small spatial (ViT feature maps): whole rows per step, fold several
        # images into the matmul M dimension, auto-pipelined BlockSpec.
        tH, manual = H, False
        nb = 1
        for cand in range(min(N, max(1, _M_CAP // (H * W))), 0, -1):
            if N % cand == 0:
                nb = cand
                break
    else:
        # Large spatial: row tiles with a manually double-buffered halo DMA.
        tH, manual, nb = max(1, _M_CAP // W), True, 1
        if tH >= 8:
            tH -= tH % 8
        tH = min(tH, H)
    n_h = -(-H // tH)
    Hp = n_h * tH
    tCo = co_pad if co_pad <= _TCO_CAP else _TCO_CAP
    if co_pad % tCo != 0:
        tCo = 128
    n_co = co_pad // tCo
    grid = (N // nb, n_co, n_h)

    # ---- SAME padding once in HBM (no in-kernel full-image rebuild) ---------
    xp = jnp.pad(x_nhwc.astype(jnp.bfloat16),
                 ((0, 0), (1, Hp - H + 1), (1, 1), (0, 0)))

    if grouped:
        w_spec = pl.BlockSpec((3, 3 * Cin, tCo), lambda n, c, h: (0, 0, c))
    else:
        w_spec = pl.BlockSpec((9 * Cin, tCo), lambda n, c, h: (0, c))

    if manual:
        x_spec = pl.BlockSpec(memory_space=pl.ANY)
        scratch = [pltpu.VMEM((2, tH + 2, W + 2, Cin), jnp.bfloat16),
                   pltpu.SemaphoreType.DMA((2,))]
        x_bytes = 2 * (tH + 2) * (W + 2) * Cin * 2
    else:
        x_spec = pl.BlockSpec((nb, H + 2, W + 2, Cin),
                              lambda n, c, h: (n, 0, 0, 0))
        scratch = []
        x_bytes = 2 * nb * (H + 2) * (W + 2) * Cin * 2     # double-buffered

    # ---- VMEM budget from the actual resident blocks + device capacity ------
    M = nb * tH * W
    est = (x_bytes
           + 2 * 9 * Cin * tCo * 2                          # weight tile (dbuf)
           + 2 * 2 * tCo * 4                                # scale / shift
           + 2 * M * tCo * jnp.dtype(out_dtype).itemsize    # out tile (dbuf)
           + M * tCo * 4                                    # f32 result chain
           + M * (3 if grouped else 9) * Cin * 2            # patch staging
           + (2 << 20))                                     # headroom
    vmem_limit = int(min(max(2 * est, 32 << 20),
                         int(0.85 * _vmem_capacity_bytes())))

    kernel = functools.partial(_conv3x3_kernel, tH=tH, W=W, Cin=Cin,
                               relu=relu, grouped=grouped, manual_dma=manual)
    out = pl.pallas_call(
        kernel,
        out_shape=jax.ShapeDtypeStruct((N, Hp, W, co_pad), out_dtype),
        grid=grid,
        in_specs=[x_spec, w_spec,
                  pl.BlockSpec((1, tCo), lambda n, c, h: (0, c)),
                  pl.BlockSpec((1, tCo), lambda n, c, h: (0, c))],
        out_specs=pl.BlockSpec((nb, tH, W, tCo), lambda n, c, h: (n, h, 0, c)),
        scratch_shapes=scratch,
        compiler_params=pltpu.CompilerParams(
            dimension_semantics=("parallel", "parallel", "arbitrary"),
            vmem_limit_bytes=vmem_limit),
    )(xp, p["w"], p["scale"], p["shift"])

    if Hp != H:
        out = out[:, :H]
    if co_pad != p["cout"]:
        out = out[..., :p["cout"]]
    return out


def pixel_shuffle_nhwc(x, p):
    """PyTorch PixelShuffle semantics in NHWC: channel c*p*p + i*p + j."""
    N, H, W, Cpp = x.shape
    C = Cpp // (p * p)
    x = x.reshape(N, H, W, C, p, p)
    x = jnp.transpose(x, (0, 1, 4, 2, 5, 3))     # N, H, i, W, j, C
    return x.reshape(N, H * p, W * p, C)


def pack_fcn_head_params(raw):
    """One-time weight prepacking for the whole head."""
    return {
        "c1": pack_conv3x3(raw["w1"], raw["b1"], raw["s1"], raw["t1"]),
        "c2": pack_conv3x3(raw["w2"], raw["b2"], raw["s2"], raw["t2"]),
        "c_ps": pack_conv3x3(raw["w_ps"], raw["b_ps"]),
        "c_out": pack_conv3x3(raw["w_out"], raw["b_out"]),
    }


def fcn_head_forward(x_nchw, packed, patch_size):
    """FCNHead.forward: conv+bn+relu, conv+bn+relu, conv_ps, pixel_shuffle, conv_out."""
    x = jnp.transpose(x_nchw, (0, 2, 3, 1)).astype(jnp.bfloat16)    # NCHW->NHWC
    x = conv3x3(x, packed["c1"], relu=True)
    x = conv3x3(x, packed["c2"], relu=True)
    x = conv3x3(x, packed["c_ps"])
    # TODO(synk): pixel-shuffle is kept as an XLA relayout rather than being
    # fused into the conv_ps epilogue (in-kernel 5-D transpose is avoided).
    x = pixel_shuffle_nhwc(x, patch_size)
    x = conv3x3(x, packed["c_out"])              # bf16 out: lean final writeback
    return jnp.transpose(x, (0, 3, 1, 2)).astype(jnp.float32)       # NHWC->NCHW


# -----------------------------------------------------------------------------
# Pure-JAX reference with matching precision (bf16 matmul inputs, f32 accum,
# bf16 intermediate activations) for the correctness check.
# -----------------------------------------------------------------------------
def _conv_ref(x, w, b, scale=None, shift=None, relu=False):
    y = lax.conv_general_dilated(
        x.astype(jnp.bfloat16), w.astype(jnp.bfloat16),
        window_strides=(1, 1), padding="SAME",
        dimension_numbers=("NHWC", "HWIO", "NHWC"),
        preferred_element_type=jnp.float32)
    s = jnp.ones_like(b) if scale is None else scale
    t = (jnp.zeros_like(b) if shift is None else shift) + b * s
    y = y * s + t
    if relu:
        y = jnp.maximum(y, 0.0)
    return y


def fcn_head_reference(x_nchw, raw, patch_size):
    x = jnp.transpose(x_nchw, (0, 2, 3, 1))
    x = _conv_ref(x, raw["w1"], raw["b1"], raw["s1"], raw["t1"],
                  True).astype(jnp.bfloat16)
    x = _conv_ref(x, raw["w2"], raw["b2"], raw["s2"], raw["t2"],
                  True).astype(jnp.bfloat16)
    x = _conv_ref(x, raw["w_ps"], raw["b_ps"]).astype(jnp.bfloat16)
    x = pixel_shuffle_nhwc(x, patch_size)
    x = _conv_ref(x, raw["w_out"], raw["b_out"]).astype(jnp.bfloat16)
    return jnp.transpose(x, (0, 3, 1, 2)).astype(jnp.float32)


if __name__ == "__main__":
    # Small, FCNHead-consistent shapes. hidden_dim=128 exercises both the
    # grouped (Cin >= 96) and im2col (Cin < 96) paths; batch folding is
    # exercised because H*W is small.
    N = 2
    enc_dim = 8
    H = W = 8
    hidden_dim = 128
    patch_size = 2
    channel_out = 8
    num_classes = 3
    eps = 1e-5

    key = jax.random.PRNGKey(0)
    ks = jax.random.split(key, 24)

    def rnd(k, shape, s=0.1):
        return jax.random.normal(k, shape, jnp.float32) * s

    # Conv weights in HWIO (3, 3, Cin, Cout); BN fused into scale/shift.
    raw = {}
    raw["w1"] = rnd(ks[0], (3, 3, enc_dim, hidden_dim))
    raw["b1"] = rnd(ks[1], (hidden_dim,))
    gamma1 = 1.0 + rnd(ks[2], (hidden_dim,))
    beta1 = rnd(ks[3], (hidden_dim,))
    mean1 = rnd(ks[4], (hidden_dim,))
    var1 = jnp.abs(rnd(ks[5], (hidden_dim,))) + 1.0
    raw["s1"] = gamma1 / jnp.sqrt(var1 + eps)
    raw["t1"] = beta1 - mean1 * raw["s1"]

    raw["w2"] = rnd(ks[6], (3, 3, hidden_dim, hidden_dim))
    raw["b2"] = rnd(ks[7], (hidden_dim,))
    gamma2 = 1.0 + rnd(ks[8], (hidden_dim,))
    beta2 = rnd(ks[9], (hidden_dim,))
    mean2 = rnd(ks[10], (hidden_dim,))
    var2 = jnp.abs(rnd(ks[11], (hidden_dim,))) + 1.0
    raw["s2"] = gamma2 / jnp.sqrt(var2 + eps)
    raw["t2"] = beta2 - mean2 * raw["s2"]

    c_ps = channel_out * patch_size * patch_size
    raw["w_ps"] = rnd(ks[12], (3, 3, hidden_dim, c_ps))
    raw["b_ps"] = rnd(ks[13], (c_ps,))
    raw["w_out"] = rnd(ks[14], (3, 3, channel_out, num_classes))
    raw["b_out"] = rnd(ks[15], (num_classes,))

    # TODO(synk): BatchNorm is implemented in inference form (running stats
    # fused to per-channel scale/shift); training-mode batch statistics are
    # not computed in-kernel.

    packed = pack_fcn_head_params(raw)           # one-time weight prepacking
    x = jax.random.normal(ks[16], (N, enc_dim, H, W), jnp.float32)

    fwd = jax.jit(lambda xx: fcn_head_forward(xx, packed, patch_size))
    out = jax.block_until_ready(fwd(x))
    ref = jax.block_until_ready(fcn_head_reference(x, raw, patch_size))

    assert out.shape == (N, num_classes, H * patch_size, W * patch_size), out.shape
    np.testing.assert_allclose(np.asarray(out, np.float32),
                               np.asarray(ref, np.float32),
                               rtol=2e-2, atol=2e-2)

    # Also exercise the large-spatial row-tiled path (manual double-buffered
    # halo DMA) on a single conv and check it against lax.conv.
    Hb, Wb, Cb = 48, 32, 128
    xb = jax.random.normal(ks[17], (1, Hb, Wb, Cb), jnp.float32) * 0.1
    wb = rnd(ks[18], (3, 3, Cb, Cb))
    bb = rnd(ks[19], (Cb,))
    pb = pack_conv3x3(wb, bb)
    got = jax.block_until_ready(
        jax.jit(lambda xx: conv3x3(xx, pb, relu=True))(xb))
    refb = _conv_ref(xb, wb, bb, relu=True).astype(jnp.bfloat16)
    np.testing.assert_allclose(np.asarray(got, np.float32),
                               np.asarray(refb, np.float32),
                               rtol=2e-2, atol=2e-2)

    print("KERNEL_OK")
</pallas_src>

<mosaic_0001>
module attributes {stable_mosaic.version = 11 : i64} {
  func.func @_conv3x3_kernel(%arg0: i32, %arg1: i32, %arg2: i32, %arg3: memref<2x10x10x8xbf16, #tpu.memory_space<vmem>>, %arg4: memref<72x128xbf16, #tpu.memory_space<vmem>>, %arg5: memref<1x128xf32, #tpu.memory_space<vmem>>, %arg6: memref<1x128xf32, #tpu.memory_space<vmem>>, %arg7: memref<2x8x8x128xbf16, #tpu.memory_space<vmem>>) attributes {dimension_semantics = [#tpu.dimension_semantics<parallel>, #tpu.dimension_semantics<parallel>, #tpu.dimension_semantics<arbitrary>], iteration_bounds = array<i64: 1, 1, 1>, scalar_prefetch = 0 : i64, scratch_operands = 0 : i64, tpu.core_type = #tpu.core_type<tc>, window_params = [{transform_indices = @transform_0, window_bounds = array<i64: 2, 10, 10, 8>}, {transform_indices = @transform_1, window_bounds = array<i64: 72, 128>}, {transform_indices = @transform_2, window_bounds = array<i64: 1, 128>}, {transform_indices = @transform_3, window_bounds = array<i64: 1, 128>}, {transform_indices = @transform_4, window_bounds = array<i64: 2, 8, 8, 128>}]} {
    %c0 = arith.constant 0 : index
    %c0_0 = arith.constant 0 : index
    %c0_1 = arith.constant 0 : index
    %c0_2 = arith.constant 0 : index
    %0 = vector.load %arg3[%c0, %c0_0, %c0_1, %c0_2] : memref<2x10x10x8xbf16, #tpu.memory_space<vmem>>, vector<2x10x10x8xbf16>
    %1 = vector.extract_strided_slice %0 {offsets = [0, 0, 0, 0], sizes = [2, 8, 8, 8], strides = [1, 1, 1, 1]} : vector<2x10x10x8xbf16> to vector<2x8x8x8xbf16>
    %2 = vector.extract_strided_slice %0 {offsets = [0, 0, 1, 0], sizes = [2, 8, 8, 8], strides = [1, 1, 1, 1]} : vector<2x10x10x8xbf16> to vector<2x8x8x8xbf16>
    %3 = vector.extract_strided_slice %0 {offsets = [0, 0, 2, 0], sizes = [2, 8, 8, 8], strides = [1, 1, 1, 1]} : vector<2x10x10x8xbf16> to vector<2x8x8x8xbf16>
    %4 = vector.extract_strided_slice %0 {offsets = [0, 1, 0, 0], sizes = [2, 8, 8, 8], strides = [1, 1, 1, 1]} : vector<2x10x10x8xbf16> to vector<2x8x8x8xbf16>
    %5 = vector.extract_strided_slice %0 {offsets = [0, 1, 1, 0], sizes = [2, 8, 8, 8], strides = [1, 1, 1, 1]} : vector<2x10x10x8xbf16> to vector<2x8x8x8xbf16>
    %6 = vector.extract_strided_slice %0 {offsets = [0, 1, 2, 0], sizes = [2, 8, 8, 8], strides = [1, 1, 1, 1]} : vector<2x10x10x8xbf16> to vector<2x8x8x8xbf16>
    %7 = vector.extract_strided_slice %0 {offsets = [0, 2, 0, 0], sizes = [2, 8, 8, 8], strides = [1, 1, 1, 1]} : vector<2x10x10x8xbf16> to vector<2x8x8x8xbf16>
    %8 = vector.extract_strided_slice %0 {offsets = [0, 2, 1, 0], sizes = [2, 8, 8, 8], strides = [1, 1, 1, 1]} : vector<2x10x10x8xbf16> to vector<2x8x8x8xbf16>
    %9 = vector.extract_strided_slice %0 {offsets = [0, 2, 2, 0], sizes = [2, 8, 8, 8], strides = [1, 1, 1, 1]} : vector<2x10x10x8xbf16> to vector<2x8x8x8xbf16>
    %10 = tpu.concatenate %1, %2, %3, %4, %5, %6, %7, %8, %9 in 3 : vector<2x8x8x8xbf16>, vector<2x8x8x8xbf16>, vector<2x8x8x8xbf16>, vector<2x8x8x8xbf16>, vector<2x8x8x8xbf16>, vector<2x8x8x8xbf16>, vector<2x8x8x8xbf16>, vector<2x8x8x8xbf16>, vector<2x8x8x8xbf16> -> vector<2x8x8x72xbf16>
    %11 = vector.shape_cast %10 : vector<2x8x8x72xbf16> to vector<128x72xbf16>
    %c0_3 = arith.constant 0 : index
    %c0_4 = arith.constant 0 : index
    %12 = vector.load %arg4[%c0_3, %c0_4] : memref<72x128xbf16, #tpu.memory_space<vmem>>, vector<72x128xbf16>
    %cst = arith.constant dense<0.000000e+00> : vector<128x128xf32>
    %13 = tpu.matmul %11, %12, %cst {dimension_numbers = #tpu.dot_dimension_numbers<[1], [0], [0], [1], [0, 0, 1, 1], [], []>} : vector<128x72xbf16>, vector<72x128xbf16>, vector<128x128xf32> -> vector<128x128xf32>
    %c0_5 = arith.constant 0 : index
    %c0_6 = arith.constant 0 : index
    %14 = vector.load %arg5[%c0_5, %c0_6] : memref<1x128xf32, #tpu.memory_space<vmem>>, vector<1x128xf32>
    %15 = vector.broadcast %14 : vector<1x128xf32> to vector<128x128xf32>
    %16 = arith.mulf %13, %15 : vector<128x128xf32>
    %c0_7 = arith.constant 0 : index
    %c0_8 = arith.constant 0 : index
    %17 = vector.load %arg6[%c0_7, %c0_8] : memref<1x128xf32, #tpu.memory_space<vmem>>, vector<1x128xf32>
    %18 = vector.broadcast %17 : vector<1x128xf32> to vector<128x128xf32>
    %19 = arith.addf %16, %18 : vector<128x128xf32>
    %cst_9 = arith.constant 0.000000e+00 : f32
    %20 = vector.broadcast %cst_9 : f32 to vector<128x128xf32>
    %21 = arith.maximumf %19, %20 : vector<128x128xf32>
    %22 = vector.shape_cast %21 : vector<128x128xf32> to vector<2x8x8x128xf32>
    %23 = arith.truncf %22 : vector<2x8x8x128xf32> to vector<2x8x8x128xbf16>
    %c0_10 = arith.constant 0 : index
    %c0_11 = arith.constant 0 : index
    %c0_12 = arith.constant 0 : index
    %c0_13 = arith.constant 0 : index
    %24 = vector.load %arg7[%c0_10, %c0_11, %c0_12, %c0_13] : memref<2x8x8x128xbf16, #tpu.memory_space<vmem>>, vector<2x8x8x128xbf16>
    tpu.vector_store %arg7[%c0_10, %c0_11, %c0_12, %c0_13], %23 {strides = array<i32>} : memref<2x8x8x128xbf16, #tpu.memory_space<vmem>>, vector<2x8x8x128xbf16>,
    return
  }
  func.func @transform_0(%arg0: i32, %arg1: i32, %arg2: i32) -> (i32, i32, i32, i32) {
    %c0_i32 = arith.constant 0 : i32
    %c0_i32_0 = arith.constant 0 : i32
    %c0_i32_1 = arith.constant 0 : i32
    %c0_i32_2 = arith.constant 0 : i32
    return %arg0, %c0_i32, %c0_i32_0, %c0_i32_1 : i32, i32, i32, i32
  }
  func.func @transform_1(%arg0: i32, %arg1: i32, %arg2: i32) -> (i32, i32) {
    %c0_i32 = arith.constant 0 : i32
    %c0_i32_0 = arith.constant 0 : i32
    return %c0_i32, %arg1 : i32, i32
  }
  func.func @transform_2(%arg0: i32, %arg1: i32, %arg2: i32) -> (i32, i32) {
    %c0_i32 = arith.constant 0 : i32
    %c0_i32_0 = arith.constant 0 : i32
    return %c0_i32, %arg1 : i32, i32
  }
  func.func @transform_3(%arg0: i32, %arg1: i32, %arg2: i32) -> (i32, i32) {
    %c0_i32 = arith.constant 0 : i32
    %c0_i32_0 = arith.constant 0 : i32
    return %c0_i32, %arg1 : i32, i32
  }
  func.func @transform_4(%arg0: i32, %arg1: i32, %arg2: i32) -> (i32, i32, i32, i32) {
    %c0_i32 = arith.constant 0 : i32
    %c0_i32_0 = arith.constant 0 : i32
    return %arg0, %arg2, %c0_i32, %arg1 : i32, i32, i32, i32
  }
}

module attributes {stable_mosaic.version = 11 : i64} {
  func.func @_conv3x3_kernel(%arg0: i32, %arg1: i32, %arg2: i32, %arg3: memref<2x10x10x128xbf16, #tpu.memory_space<vmem>>, %arg4: memref<3x384x128xbf16, #tpu.memory_space<vmem>>, %arg5: memref<1x128xf32, #tpu.memory_space<vmem>>, %arg6: memref<1x128xf32, #tpu.memory_space<vmem>>, %arg7: memref<2x8x8x128xbf16, #tpu.memory_space<vmem>>) attributes {dimension_semantics = [#tpu.dimension_semantics<parallel>, #tpu.dimension_semantics<parallel>, #tpu.dimension_semantics<arbitrary>], iteration_bounds = array<i64: 1, 1, 1>, scalar_prefetch = 0 : i64, scratch_operands = 0 : i64, tpu.core_type = #tpu.core_type<tc>, window_params = [{transform_indices = @transform_0, window_bounds = array<i64: 2, 10, 10, 128>}, {transform_indices = @transform_1, window_bounds = array<i64: 3, 384, 128>}, {transform_indices = @transform_2, window_bounds = array<i64: 1, 128>}, {transform_indices = @transform_3, window_bounds = array<i64: 1, 128>}, {transform_indices = @transform_4, window_bounds = array<i64: 2, 8, 8, 128>}]} {
    %c0 = arith.constant 0 : index
    %c0_0 = arith.constant 0 : index
    %c0_1 = arith.constant 0 : index
    %c0_2 = arith.constant 0 : index
    %0 = vector.load %arg3[%c0, %c0_0, %c0_1, %c0_2] : memref<2x10x10x128xbf16, #tpu.memory_space<vmem>>, vector<2x10x10x128xbf16>
    %1 = vector.extract_strided_slice %0 {offsets = [0, 0, 0, 0], sizes = [2, 8, 10, 128], strides = [1, 1, 1, 1]} : vector<2x10x10x128xbf16> to vector<2x8x10x128xbf16>
    %2 = vector.extract_strided_slice %1 {offsets = [0, 0, 0, 0], sizes = [2, 8, 8, 128], strides = [1, 1, 1, 1]} : vector<2x8x10x128xbf16> to vector<2x8x8x128xbf16>
    %3 = vector.extract_strided_slice %1 {offsets = [0, 0, 1, 0], sizes = [2, 8, 8, 128], strides = [1, 1, 1, 1]} : vector<2x8x10x128xbf16> to vector<2x8x8x128xbf16>
    %4 = vector.extract_strided_slice %1 {offsets = [0, 0, 2, 0], sizes = [2, 8, 8, 128], strides = [1, 1, 1, 1]} : vector<2x8x10x128xbf16> to vector<2x8x8x128xbf16>
    %5 = tpu.concatenate %2, %3, %4 in 3 : vector<2x8x8x128xbf16>, vector<2x8x8x128xbf16>, vector<2x8x8x128xbf16> -> vector<2x8x8x384xbf16>
    %6 = vector.shape_cast %5 : vector<2x8x8x384xbf16> to vector<128x384xbf16>
    %c0_3 = arith.constant 0 : index
    %c0_4 = arith.constant 0 : index
    %c0_5 = arith.constant 0 : index
    %7 = vector.load %arg4[%c0_3, %c0_4, %c0_5] : memref<3x384x128xbf16, #tpu.memory_space<vmem>>, vector<1x384x128xbf16>
    %8 = vector.shape_cast %7 : vector<1x384x128xbf16> to vector<384x128xbf16>
    %cst = arith.constant dense<0.000000e+00> : vector<128x128xf32>
    %9 = tpu.matmul %6, %8, %cst {dimension_numbers = #tpu.dot_dimension_numbers<[1], [0], [0], [1], [0, 0, 1, 1], [], []>} : vector<128x384xbf16>, vector<384x128xbf16>, vector<128x128xf32> -> vector<128x128xf32>
    %10 = vector.extract_strided_slice %0 {offsets = [0, 1, 0, 0], sizes = [2, 8, 10, 128], strides = [1, 1, 1, 1]} : vector<2x10x10x128xbf16> to vector<2x8x10x128xbf16>
    %11 = vector.extract_strided_slice %10 {offsets = [0, 0, 0, 0], sizes = [2, 8, 8, 128], strides = [1, 1, 1, 1]} : vector<2x8x10x128xbf16> to vector<2x8x8x128xbf16>
    %12 = vector.extract_strided_slice %10 {offsets = [0, 0, 1, 0], sizes = [2, 8, 8, 128], strides = [1, 1, 1, 1]} : vector<2x8x10x128xbf16> to vector<2x8x8x128xbf16>
    %13 = vector.extract_strided_slice %10 {offsets = [0, 0, 2, 0], sizes = [2, 8, 8, 128], strides = [1, 1, 1, 1]} : vector<2x8x10x128xbf16> to vector<2x8x8x128xbf16>
    %14 = tpu.concatenate %11, %12, %13 in 3 : vector<2x8x8x128xbf16>, vector<2x8x8x128xbf16>, vector<2x8x8x128xbf16> -> vector<2x8x8x384xbf16>
    %15 = vector.shape_cast %14 : vector<2x8x8x384xbf16> to vector<128x384xbf16>
    %c1 = arith.constant 1 : index
    %c0_6 = arith.constant 0 : index
    %c0_7 = arith.constant 0 : index
    %16 = vector.load %arg4[%c1, %c0_6, %c0_7] : memref<3x384x128xbf16, #tpu.memory_space<vmem>>, vector<1x384x128xbf16>
    %17 = vector.shape_cast %16 : vector<1x384x128xbf16> to vector<384x128xbf16>
    %cst_8 = arith.constant dense<0.000000e+00> : vector<128x128xf32>
    %18 = tpu.matmul %15, %17, %cst_8 {dimension_numbers = #tpu.dot_dimension_numbers<[1], [0], [0], [1], [0, 0, 1, 1], [], []>} : vector<128x384xbf16>, vector<384x128xbf16>, vector<128x128xf32> -> vector<128x128xf32>
    %19 = arith.addf %9, %18 : vector<128x128xf32>
    %20 = vector.extract_strided_slice %0 {offsets = [0, 2, 0, 0], sizes = [2, 8, 10, 128], strides = [1, 1, 1, 1]} : vector<2x10x10x128xbf16> to vector<2x8x10x128xbf16>
    %21 = vector.extract_strided_slice %20 {offsets = [0, 0, 0, 0], sizes = [2, 8, 8, 128], strides = [1, 1, 1, 1]} : vector<2x8x10x128xbf16> to vector<2x8x8x128xbf16>
    %22 = vector.extract_strided_slice %20 {offsets = [0, 0, 1, 0], sizes = [2, 8, 8, 128], strides = [1, 1, 1, 1]} : vector<2x8x10x128xbf16> to vector<2x8x8x128xbf16>
    %23 = vector.extract_strided_slice %20 {offsets = [0, 0, 2, 0], sizes = [2, 8, 8, 128], strides = [1, 1, 1, 1]} : vector<2x8x10x128xbf16> to vector<2x8x8x128xbf16>
    %24 = tpu.concatenate %21, %22, %23 in 3 : vector<2x8x8x128xbf16>, vector<2x8x8x128xbf16>, vector<2x8x8x128xbf16> -> vector<2x8x8x384xbf16>
    %25 = vector.shape_cast %24 : vector<2x8x8x384xbf16> to vector<128x384xbf16>
    %c2 = arith.constant 2 : index
    %c0_9 = arith.constant 0 : index
    %c0_10 = arith.constant 0 : index
    %26 = vector.load %arg4[%c2, %c0_9, %c0_10] : memref<3x384x128xbf16, #tpu.memory_space<vmem>>, vector<1x384x128xbf16>
    %27 = vector.shape_cast %26 : vector<1x384x128xbf16> to vector<384x128xbf16>
    %cst_11 = arith.constant dense<0.000000e+00> : vector<128x128xf32>
    %28 = tpu.matmul %25, %27, %cst_11 {dimension_numbers = #tpu.dot_dimension_numbers<[1], [0], [0], [1], [0, 0, 1, 1], [], []>} : vector<128x384xbf16>, vector<384x128xbf16>, vector<128x128xf32> -> vector<128x128xf32>
    %29 = arith.addf %19, %28 : vector<128x128xf32>
    %c0_12 = arith.constant 0 : index
    %c0_13 = arith.constant 0 : index
    %30 = vector.load %arg5[%c0_12, %c0_13] : memref<1x128xf32, #tpu.memory_space<vmem>>, vector<1x128xf32>
    %31 = vector.broadcast %30 : vector<1x128xf32> to vector<128x128xf32>
    %32 = arith.mulf %29, %31 : vector<128x128xf32>
    %c0_14 = arith.constant 0 : index
    %c0_15 = arith.constant 0 : index
    %33 = vector.load %arg6[%c0_14, %c0_15] : memref<1x128xf32, #tpu.memory_space<vmem>>, vector<1x128xf32>
    %34 = vector.broadcast %33 : vector<1x128xf32> to vector<128x128xf32>
    %35 = arith.addf %32, %34 : vector<128x128xf32>
    %36 = vector.shape_cast %35 : vector<128x128xf32> to vector<2x8x8x128xf32>
    %37 = arith.truncf %36 : vector<2x8x8x128xf32> to vector<2x8x8x128xbf16>
    %c0_16 = arith.constant 0 : index
    %c0_17 = arith.constant 0 : index
    %c0_18 = arith.constant 0 : index
    %c0_19 = arith.constant 0 : index
    %38 = vector.load %arg7[%c0_16, %c0_17, %c0_18, %c0_19] : memref<2x8x8x128xbf16, #tpu.memory_space<vmem>>, vector<2x8x8x128xbf16>
    tpu.vector_store %arg7[%c0_16, %c0_17, %c0_18, %c0_19], %37 {strides = array<i32>} : memref<2x8x8x128xbf16, #tpu.memory_space<vmem>>, vector<2x8x8x128xbf16>,
    return
  }
  func.func @transform_0(%arg0: i32, %arg1: i32, %arg2: i32) -> (i32, i32, i32, i32) {
    %c0_i32 = arith.constant 0 : i32
    %c0_i32_0 = arith.constant 0 : i32
    %c0_i32_1 = arith.constant 0 : i32
    %c0_i32_2 = arith.constant 0 : i32
    return %arg0, %c0_i32, %c0_i32_0, %c0_i32_1 : i32, i32, i32, i32
  }
  func.func @transform_1(%arg0: i32, %arg1: i32, %arg2: i32) -> (i32, i32, i32) {
    %c0_i32 = arith.constant 0 : i32
    %c0_i32_0 = arith.constant 0 : i32
    %c0_i32_1 = arith.constant 0 : i32
    return %c0_i32, %c0_i32_0, %arg1 : i32, i32, i32
  }
  func.func @transform_2(%arg0: i32, %arg1: i32, %arg2: i32) -> (i32, i32) {
    %c0_i32 = arith.constant 0 : i32
    %c0_i32_0 = arith.constant 0 : i32
    return %c0_i32, %arg1 : i32, i32
  }
  func.func @transform_3(%arg0: i32, %arg1: i32, %arg2: i32) -> (i32, i32) {
    %c0_i32 = arith.constant 0 : i32
    %c0_i32_0 = arith.constant 0 : i32
    return %c0_i32, %arg1 : i32, i32
  }
  func.func @transform_4(%arg0: i32, %arg1: i32, %arg2: i32) -> (i32, i32, i32, i32) {
    %c0_i32 = arith.constant 0 : i32
    %c0_i32_0 = arith.constant 0 : i32
    return %arg0, %arg2, %c0_i32, %arg1 : i32, i32, i32, i32
  }
}

module attributes {stable_mosaic.version = 11 : i64} {
  func.func @_conv3x3_kernel(%arg0: i32, %arg1: i32, %arg2: i32, %arg3: memref<2x10x10x128xbf16, #tpu.memory_space<vmem>>, %arg4: memref<3x384x128xbf16, #tpu.memory_space<vmem>>, %arg5: memref<1x128xf32, #tpu.memory_space<vmem>>, %arg6: memref<1x128xf32, #tpu.memory_space<vmem>>, %arg7: memref<2x8x8x128xbf16, #tpu.memory_space<vmem>>) attributes {dimension_semantics = [#tpu.dimension_semantics<parallel>, #tpu.dimension_semantics<parallel>, #tpu.dimension_semantics<arbitrary>], iteration_bounds = array<i64: 1, 1, 1>, scalar_prefetch = 0 : i64, scratch_operands = 0 : i64, tpu.core_type = #tpu.core_type<tc>, window_params = [{transform_indices = @transform_0, window_bounds = array<i64: 2, 10, 10, 128>}, {transform_indices = @transform_1, window_bounds = array<i64: 3, 384, 128>}, {transform_indices = @transform_2, window_bounds = array<i64: 1, 128>}, {transform_indices = @transform_3, window_bounds = array<i64: 1, 128>}, {transform_indices = @transform_4, window_bounds = array<i64: 2, 8, 8, 128>}]} {
    %c0 = arith.constant 0 : index
    %c0_0 = arith.constant 0 : index
    %c0_1 = arith.constant 0 : index
    %c0_2 = arith.constant 0 : index
    %0 = vector.load %arg3[%c0, %c0_0, %c0_1, %c0_2] : memref<2x10x10x128xbf16, #tpu.memory_space<vmem>>, vector<2x10x10x128xbf16>
    %1 = vector.extract_strided_slice %0 {offsets = [0, 0, 0, 0], sizes = [2, 8, 10, 128], strides = [1, 1, 1, 1]} : vector<2x10x10x128xbf16> to vector<2x8x10x128xbf16>
    %2 = vector.extract_strided_slice %1 {offsets = [0, 0, 0, 0], sizes = [2, 8, 8, 128], strides = [1, 1, 1, 1]} : vector<2x8x10x128xbf16> to vector<2x8x8x128xbf16>
    %3 = vector.extract_strided_slice %1 {offsets = [0, 0, 1, 0], sizes = [2, 8, 8, 128], strides = [1, 1, 1, 1]} : vector<2x8x10x128xbf16> to vector<2x8x8x128xbf16>
    %4 = vector.extract_strided_slice %1 {offsets = [0, 0, 2, 0], sizes = [2, 8, 8, 128], strides = [1, 1, 1, 1]} : vector<2x8x10x128xbf16> to vector<2x8x8x128xbf16>
    %5 = tpu.concatenate %2, %3, %4 in 3 : vector<2x8x8x128xbf16>, vector<2x8x8x128xbf16>, vector<2x8x8x128xbf16> -> vector<2x8x8x384xbf16>
    %6 = vector.shape_cast %5 : vector<2x8x8x384xbf16> to vector<128x384xbf16>
    %c0_3 = arith.constant 0 : index
    %c0_4 = arith.constant 0 : index
    %c0_5 = arith.constant 0 : index
    %7 = vector.load %arg4[%c0_3, %c0_4, %c0_5] : memref<3x384x128xbf16, #tpu.memory_space<vmem>>, vector<1x384x128xbf16>
    %8 = vector.shape_cast %7 : vector<1x384x128xbf16> to vector<384x128xbf16>
    %cst = arith.constant dense<0.000000e+00> : vector<128x128xf32>
    %9 = tpu.matmul %6, %8, %cst {dimension_numbers = #tpu.dot_dimension_numbers<[1], [0], [0], [1], [0, 0, 1, 1], [], []>} : vector<128x384xbf16>, vector<384x128xbf16>, vector<128x128xf32> -> vector<128x128xf32>
    %10 = vector.extract_strided_slice %0 {offsets = [0, 1, 0, 0], sizes = [2, 8, 10, 128], strides = [1, 1, 1, 1]} : vector<2x10x10x128xbf16> to vector<2x8x10x128xbf16>
    %11 = vector.extract_strided_slice %10 {offsets = [0, 0, 0, 0], sizes = [2, 8, 8, 128], strides = [1, 1, 1, 1]} : vector<2x8x10x128xbf16> to vector<2x8x8x128xbf16>
    %12 = vector.extract_strided_slice %10 {offsets = [0, 0, 1, 0], sizes = [2, 8, 8, 128], strides = [1, 1, 1, 1]} : vector<2x8x10x128xbf16> to vector<2x8x8x128xbf16>
    %13 = vector.extract_strided_slice %10 {offsets = [0, 0, 2, 0], sizes = [2, 8, 8, 128], strides = [1, 1, 1, 1]} : vector<2x8x10x128xbf16> to vector<2x8x8x128xbf16>
    %14 = tpu.concatenate %11, %12, %13 in 3 : vector<2x8x8x128xbf16>, vector<2x8x8x128xbf16>, vector<2x8x8x128xbf16> -> vector<2x8x8x384xbf16>
    %15 = vector.shape_cast %14 : vector<2x8x8x384xbf16> to vector<128x384xbf16>
    %c1 = arith.constant 1 : index
    %c0_6 = arith.constant 0 : index
    %c0_7 = arith.constant 0 : index
    %16 = vector.load %arg4[%c1, %c0_6, %c0_7] : memref<3x384x128xbf16, #tpu.memory_space<vmem>>, vector<1x384x128xbf16>
    %17 = vector.shape_cast %16 : vector<1x384x128xbf16> to vector<384x128xbf16>
    %cst_8 = arith.constant dense<0.000000e+00> : vector<128x128xf32>
    %18 = tpu.matmul %15, %17, %cst_8 {dimension_numbers = #tpu.dot_dimension_numbers<[1], [0], [0], [1], [0, 0, 1, 1], [], []>} : vector<128x384xbf16>, vector<384x128xbf16>, vector<128x128xf32> -> vector<128x128xf32>
    %19 = arith.addf %9, %18 : vector<128x128xf32>
    %20 = vector.extract_strided_slice %0 {offsets = [0, 2, 0, 0], sizes = [2, 8, 10, 128], strides = [1, 1, 1, 1]} : vector<2x10x10x128xbf16> to vector<2x8x10x128xbf16>
    %21 = vector.extract_strided_slice %20 {offsets = [0, 0, 0, 0], sizes = [2, 8, 8, 128], strides = [1, 1, 1, 1]} : vector<2x8x10x128xbf16> to vector<2x8x8x128xbf16>
    %22 = vector.extract_strided_slice %20 {offsets = [0, 0, 1, 0], sizes = [2, 8, 8, 128], strides = [1, 1, 1, 1]} : vector<2x8x10x128xbf16> to vector<2x8x8x128xbf16>
    %23 = vector.extract_strided_slice %20 {offsets = [0, 0, 2, 0], sizes = [2, 8, 8, 128], strides = [1, 1, 1, 1]} : vector<2x8x10x128xbf16> to vector<2x8x8x128xbf16>
    %24 = tpu.concatenate %21, %22, %23 in 3 : vector<2x8x8x128xbf16>, vector<2x8x8x128xbf16>, vector<2x8x8x128xbf16> -> vector<2x8x8x384xbf16>
    %25 = vector.shape_cast %24 : vector<2x8x8x384xbf16> to vector<128x384xbf16>
    %c2 = arith.constant 2 : index
    %c0_9 = arith.constant 0 : index
    %c0_10 = arith.constant 0 : index
    %26 = vector.load %arg4[%c2, %c0_9, %c0_10] : memref<3x384x128xbf16, #tpu.memory_space<vmem>>, vector<1x384x128xbf16>
    %27 = vector.shape_cast %26 : vector<1x384x128xbf16> to vector<384x128xbf16>
    %cst_11 = arith.constant dense<0.000000e+00> : vector<128x128xf32>
    %28 = tpu.matmul %25, %27, %cst_11 {dimension_numbers = #tpu.dot_dimension_numbers<[1], [0], [0], [1], [0, 0, 1, 1], [], []>} : vector<128x384xbf16>, vector<384x128xbf16>, vector<128x128xf32> -> vector<128x128xf32>
    %29 = arith.addf %19, %28 : vector<128x128xf32>
    %c0_12 = arith.constant 0 : index
    %c0_13 = arith.constant 0 : index
    %30 = vector.load %arg5[%c0_12, %c0_13] : memref<1x128xf32, #tpu.memory_space<vmem>>, vector<1x128xf32>
    %31 = vector.broadcast %30 : vector<1x128xf32> to vector<128x128xf32>
    %32 = arith.mulf %29, %31 : vector<128x128xf32>
    %c0_14 = arith.constant 0 : index
    %c0_15 = arith.constant 0 : index
    %33 = vector.load %arg6[%c0_14, %c0_15] : memref<1x128xf32, #tpu.memory_space<vmem>>, vector<1x128xf32>
    %34 = vector.broadcast %33 : vector<1x128xf32> to vector<128x128xf32>
    %35 = arith.addf %32, %34 : vector<128x128xf32>
    %cst_16 = arith.constant 0.000000e+00 : f32
    %36 = vector.broadcast %cst_16 : f32 to vector<128x128xf32>
    %37 = arith.maximumf %35, %36 : vector<128x128xf32>
    %38 = vector.shape_cast %37 : vector<128x128xf32> to vector<2x8x8x128xf32>
    %39 = arith.truncf %38 : vector<2x8x8x128xf32> to vector<2x8x8x128xbf16>
    %c0_17 = arith.constant 0 : index
    %c0_18 = arith.constant 0 : index
    %c0_19 = arith.constant 0 : index
    %c0_20 = arith.constant 0 : index
    %40 = vector.load %arg7[%c0_17, %c0_18, %c0_19, %c0_20] : memref<2x8x8x128xbf16, #tpu.memory_space<vmem>>, vector<2x8x8x128xbf16>
    tpu.vector_store %arg7[%c0_17, %c0_18, %c0_19, %c0_20], %39 {strides = array<i32>} : memref<2x8x8x128xbf16, #tpu.memory_space<vmem>>, vector<2x8x8x128xbf16>,
    return
  }
  func.func @transform_0(%arg0: i32, %arg1: i32, %arg2: i32) -> (i32, i32, i32, i32) {
    %c0_i32 = arith.constant 0 : i32
    %c0_i32_0 = arith.constant 0 : i32
    %c0_i32_1 = arith.constant 0 : i32
    %c0_i32_2 = arith.constant 0 : i32
    return %arg0, %c0_i32, %c0_i32_0, %c0_i32_1 : i32, i32, i32, i32
  }
  func.func @transform_1(%arg0: i32, %arg1: i32, %arg2: i32) -> (i32, i32, i32) {
    %c0_i32 = arith.constant 0 : i32
    %c0_i32_0 = arith.constant 0 : i32
    %c0_i32_1 = arith.constant 0 : i32
    return %c0_i32, %c0_i32_0, %arg1 : i32, i32, i32
  }
  func.func @transform_2(%arg0: i32, %arg1: i32, %arg2: i32) -> (i32, i32) {
    %c0_i32 = arith.constant 0 : i32
    %c0_i32_0 = arith.constant 0 : i32
    return %c0_i32, %arg1 : i32, i32
  }
  func.func @transform_3(%arg0: i32, %arg1: i32, %arg2: i32) -> (i32, i32) {
    %c0_i32 = arith.constant 0 : i32
    %c0_i32_0 = arith.constant 0 : i32
    return %c0_i32, %arg1 : i32, i32
  }
  func.func @transform_4(%arg0: i32, %arg1: i32, %arg2: i32) -> (i32, i32, i32, i32) {
    %c0_i32 = arith.constant 0 : i32
    %c0_i32_0 = arith.constant 0 : i32
    return %arg0, %arg2, %c0_i32, %arg1 : i32, i32, i32, i32
  }
}

module attributes {stable_mosaic.version = 11 : i64} {
  func.func @_conv3x3_kernel(%arg0: i32, %arg1: i32, %arg2: i32, %arg3: memref<2x18x18x8xbf16, #tpu.memory_space<vmem>>, %arg4: memref<72x128xbf16, #tpu.memory_space<vmem>>, %arg5: memref<1x128xf32, #tpu.memory_space<vmem>>, %arg6: memref<1x128xf32, #tpu.memory_space<vmem>>, %arg7: memref<2x16x16x128xbf16, #tpu.memory_space<vmem>>) attributes {dimension_semantics = [#tpu.dimension_semantics<parallel>, #tpu.dimension_semantics<parallel>, #tpu.dimension_semantics<arbitrary>], iteration_bounds = array<i64: 1, 1, 1>, scalar_prefetch = 0 : i64, scratch_operands = 0 : i64, tpu.core_type = #tpu.core_type<tc>, window_params = [{transform_indices = @transform_0, window_bounds = array<i64: 2, 18, 18, 8>}, {transform_indices = @transform_1, window_bounds = array<i64: 72, 128>}, {transform_indices = @transform_2, window_bounds = array<i64: 1, 128>}, {transform_indices = @transform_3, window_bounds = array<i64: 1, 128>}, {transform_indices = @transform_4, window_bounds = array<i64: 2, 16, 16, 128>}]} {
    %c0 = arith.constant 0 : index
    %c0_0 = arith.constant 0 : index
    %c0_1 = arith.constant 0 : index
    %c0_2 = arith.constant 0 : index
    %0 = vector.load %arg3[%c0, %c0_0, %c0_1, %c0_2] : memref<2x18x18x8xbf16, #tpu.memory_space<vmem>>, vector<2x18x18x8xbf16>
    %1 = vector.extract_strided_slice %0 {offsets = [0, 0, 0, 0], sizes = [2, 16, 16, 8], strides = [1, 1, 1, 1]} : vector<2x18x18x8xbf16> to vector<2x16x16x8xbf16>
    %2 = vector.extract_strided_slice %0 {offsets = [0, 0, 1, 0], sizes = [2, 16, 16, 8], strides = [1, 1, 1, 1]} : vector<2x18x18x8xbf16> to vector<2x16x16x8xbf16>
    %3 = vector.extract_strided_slice %0 {offsets = [0, 0, 2, 0], sizes = [2, 16, 16, 8], strides = [1, 1, 1, 1]} : vector<2x18x18x8xbf16> to vector<2x16x16x8xbf16>
    %4 = vector.extract_strided_slice %0 {offsets = [0, 1, 0, 0], sizes = [2, 16, 16, 8], strides = [1, 1, 1, 1]} : vector<2x18x18x8xbf16> to vector<2x16x16x8xbf16>
    %5 = vector.extract_strided_slice %0 {offsets = [0, 1, 1, 0], sizes = [2, 16, 16, 8], strides = [1, 1, 1, 1]} : vector<2x18x18x8xbf16> to vector<2x16x16x8xbf16>
    %6 = vector.extract_strided_slice %0 {offsets = [0, 1, 2, 0], sizes = [2, 16, 16, 8], strides = [1, 1, 1, 1]} : vector<2x18x18x8xbf16> to vector<2x16x16x8xbf16>
    %7 = vector.extract_strided_slice %0 {offsets = [0, 2, 0, 0], sizes = [2, 16, 16, 8], strides = [1, 1, 1, 1]} : vector<2x18x18x8xbf16> to vector<2x16x16x8xbf16>
    %8 = vector.extract_strided_slice %0 {offsets = [0, 2, 1, 0], sizes = [2, 16, 16, 8], strides = [1, 1, 1, 1]} : vector<2x18x18x8xbf16> to vector<2x16x16x8xbf16>
    %9 = vector.extract_strided_slice %0 {offsets = [0, 2, 2, 0], sizes = [2, 16, 16, 8], strides = [1, 1, 1, 1]} : vector<2x18x18x8xbf16> to vector<2x16x16x8xbf16>
    %10 = tpu.concatenate %1, %2, %3, %4, %5, %6, %7, %8, %9 in 3 : vector<2x16x16x8xbf16>, vector<2x16x16x8xbf16>, vector<2x16x16x8xbf16>, vector<2x16x16x8xbf16>, vector<2x16x16x8xbf16>, vector<2x16x16x8xbf16>, vector<2x16x16x8xbf16>, vector<2x16x16x8xbf16>, vector<2x16x16x8xbf16> -> vector<2x16x16x72xbf16>
    %11 = vector.shape_cast %10 : vector<2x16x16x72xbf16> to vector<512x72xbf16>
    %c0_3 = arith.constant 0 : index
    %c0_4 = arith.constant 0 : index
    %12 = vector.load %arg4[%c0_3, %c0_4] : memref<72x128xbf16, #tpu.memory_space<vmem>>, vector<72x128xbf16>
    %cst = arith.constant dense<0.000000e+00> : vector<512x128xf32>
    %13 = tpu.matmul %11, %12, %cst {dimension_numbers = #tpu.dot_dimension_numbers<[1], [0], [0], [1], [0, 0, 1, 1], [], []>} : vector<512x72xbf16>, vector<72x128xbf16>, vector<512x128xf32> -> vector<512x128xf32>
    %c0_5 = arith.constant 0 : index
    %c0_6 = arith.constant 0 : index
    %14 = vector.load %arg5[%c0_5, %c0_6] : memref<1x128xf32, #tpu.memory_space<vmem>>, vector<1x128xf32>
    %15 = vector.broadcast %14 : vector<1x128xf32> to vector<512x128xf32>
    %16 = arith.mulf %13, %15 : vector<512x128xf32>
    %c0_7 = arith.constant 0 : index
    %c0_8 = arith.constant 0 : index
    %17 = vector.load %arg6[%c0_7, %c0_8] : memref<1x128xf32, #tpu.memory_space<vmem>>, vector<1x128xf32>
    %18 = vector.broadcast %17 : vector<1x128xf32> to vector<512x128xf32>
    %19 = arith.addf %16, %18 : vector<512x128xf32>
    %20 = vector.shape_cast %19 : vector<512x128xf32> to vector<2x16x16x128xf32>
    %21 = arith.truncf %20 : vector<2x16x16x128xf32> to vector<2x16x16x128xbf16>
    %c0_9 = arith.constant 0 : index
    %c0_10 = arith.constant 0 : index
    %c0_11 = arith.constant 0 : index
    %c0_12 = arith.constant 0 : index
    %22 = vector.load %arg7[%c0_9, %c0_10, %c0_11, %c0_12] : memref<2x16x16x128xbf16, #tpu.memory_space<vmem>>, vector<2x16x16x128xbf16>
    tpu.vector_store %arg7[%c0_9, %c0_10, %c0_11, %c0_12], %21 {strides = array<i32>} : memref<2x16x16x128xbf16, #tpu.memory_space<vmem>>, vector<2x16x16x128xbf16>,
    return
  }
  func.func @transform_0(%arg0: i32, %arg1: i32, %arg2: i32) -> (i32, i32, i32, i32) {
    %c0_i32 = arith.constant 0 : i32
    %c0_i32_0 = arith.constant 0 : i32
    %c0_i32_1 = arith.constant 0 : i32
    %c0_i32_2 = arith.constant 0 : i32
    return %arg0, %c0_i32, %c0_i32_0, %c0_i32_1 : i32, i32, i32, i32
  }
  func.func @transform_1(%arg0: i32, %arg1: i32, %arg2: i32) -> (i32, i32) {
    %c0_i32 = arith.constant 0 : i32
    %c0_i32_0 = arith.constant 0 : i32
    return %c0_i32, %arg1 : i32, i32
  }
  func.func @transform_2(%arg0: i32, %arg1: i32, %arg2: i32) -> (i32, i32) {
    %c0_i32 = arith.constant 0 : i32
    %c0_i32_0 = arith.constant 0 : i32
    return %c0_i32, %arg1 : i32, i32
  }
  func.func @transform_3(%arg0: i32, %arg1: i32, %arg2: i32) -> (i32, i32) {
    %c0_i32 = arith.constant 0 : i32
    %c0_i32_0 = arith.constant 0 : i32
    return %c0_i32, %arg1 : i32, i32
  }
  func.func @transform_4(%arg0: i32, %arg1: i32, %arg2: i32) -> (i32, i32, i32, i32) {
    %c0_i32 = arith.constant 0 : i32
    %c0_i32_0 = arith.constant 0 : i32
    return %arg0, %arg2, %c0_i32, %arg1 : i32, i32, i32, i32
  }
}

</mosaic_0001>

<bundles_post_ra>
// kernel: _lambda_.4
= control target key start
LH: loop header
LB: loop body
LE: loop exit
PB: predicated region body
PF: predicated region fallthrough
CT: control target
= control target key end

     0   :  { %9 = vsyncpa [#allocation3], 0  ;;  %s2500_s0 = inlined_call_operand.vmem [shape: bf16[2,10,10,8], index: 0, kind: input, shape index: {}]   ;;  %s2501_s1 = inlined_call_operand.hbm [shape: bf16[72,128], index: 1, kind: input, shape index: {}]   ;;  %s2502_s2 = inlined_call_operand.hbm [shape: f32[1,128], index: 2, kind: input, shape index: {}]   ;;  %s2503_s3 = inlined_call_operand.hbm [shape: f32[1,128], index: 3, kind: input, shape index: {}]   ;;  %s2504_s4 = inlined_call_operand.vmem [shape: bf16[2,8,8,128], index: 4, kind: output, shape index: {}]  }
   0x1   :  { %10 = vsyncpa [#allocation5], 0  ;;  %s1495_s15 = smov [#allocation4]   ;;  %s1496_s17 = smov [#allocation2]  }
   0x2   :  { %s31_s16 = sshll.u32 %s1495_s15, 4  ;;  %s18_s18 = sshll.u32 %s1496_s17, 4  ;;  %s32_s16 = int_to_ptr.vmem [resolvable:$true] %s31_s16  ;;  %s1532_s18 = int_to_ptr.vmem [resolvable:$true] %s18_s18 }
   0x3   :  { %s1425_s21 = scalar_lea.hbm %s2502_s2, 16 }
   0x4   :  { %p1426_p0 = scmp.ne.s32.totalorder %s2502_s2, %s1425_s21  ;;  %p1429_p1 = scmp.lt.u32.totalorder %s1425_s21, %s2502_s2 }
   0x6   :  { %p1431_p2 = pnand %p1429_p1, %p1426_p0 }
   0x8   :  { %1434 = shalt.err (!%p1431_p2)
}
   0x9   :  { %s1435_s26 = scalar_lea.vmem %s32_s16, 16  ;;  %s1439_s27 = scalar_lea.vmem %s32_s16, 32 }
   0xa   :  { %p1436_p3 = scmp.ne.s32.totalorder %s32_s16, %s1435_s26  ;;  %p1440_p4 = scmp.lt.s32.totalorder %s32_s16, %s32_s16 }
   0xb   :  { %p1441_p5 = scmp.lt.s32.totalorder %s1439_s27, %s1435_s26 }
   0xd   :  { %p1442_p6 = por %p1441_p5, %p1440_p4 }
   0xf   :  { %p1443_p7 = pnand %p1442_p6, %p1436_p3 }
  0x11   :  { %1446 = shalt.err (!%p1443_p7)
}
  0x12   :  { %34 = dma.hbm_to_vmem [thread:$0]  %s2502_s2, 16, %s32_s16, [#allocation5]  }
  0x13   :  { %s1447_s6 = scalar_lea.hbm %s2501_s1, 576 }
  0x14   :  { %p1448_p8 = scmp.ne.s32.totalorder %s2501_s1, %s1447_s6  ;;  %p1451_p9 = scmp.lt.u32.totalorder %s1447_s6, %s2501_s1 }
  0x16   :  { %p1453_p10 = pnand %p1451_p9, %p1448_p8 }
  0x18   :  { %1456 = shalt.err (!%p1453_p10)
}
  0x19   :  { %s1457_s11 = scalar_lea.vmem %s1532_s18, 576  ;;  %p1462_p12 = scmp.lt.s32.totalorder %s1532_s18, %s1532_s18 }
  0x1a   :  { %p1458_p11 = scmp.ne.s32.totalorder %s1532_s18, %s1457_s11  ;;  %p1463_p13 = scmp.lt.s32.totalorder %s1457_s11, %s1457_s11 }
  0x1c   :  { %p1464_p0 = por %p1463_p13, %p1462_p12 }
  0x1e   :  { %p1465_p1 = pnand %p1464_p0, %p1458_p11 }
  0x20   :  { %1468 = shalt.err (!%p1465_p1)
}
  0x21   :  { %s1497_s2 = smov 64   ;;  %s1498_s12 = smov 4  }
  0x22   :  { %24 = dma.hbm_to_vmem [thread:$0]  %s2501_s1, 576, %s1532_s18, [#allocation3], %s1497_s2, %s1497_s2, %s1498_s12  }
  0x23   :  { %s1499_s15 = smov [#allocation6]   ;;  %s1469_s20 = scalar_lea.hbm %s2503_s3, 16 }
  0x24   :  { %s41_s16 = sshll.u32 %s1499_s15, 4  ;;  %p1470_p2 = scmp.ne.s32.totalorder %s2503_s3, %s1469_s20  ;;  %s42_s16 = int_to_ptr.vmem [resolvable:$true] %s41_s16 }
  0x25   :  { %p1473_p3 = scmp.lt.u32.totalorder %s1469_s20, %s2503_s3 }
  0x27   :  { %p1475_p4 = pnand %p1473_p3, %p1470_p2 }
  0x29   :  { %1478 = shalt.err (!%p1475_p4)
}
  0x2a   :  { %s1479_s25 = scalar_lea.vmem %s42_s16, 16  ;;  %s1483_s1 = scalar_lea.vmem %s42_s16, 32 }
  0x2b   :  { %p1480_p5 = scmp.ne.s32.totalorder %s42_s16, %s1479_s25  ;;  %p1484_p6 = scmp.lt.s32.totalorder %s42_s16, %s42_s16 }
  0x2c   :  { %p1485_p7 = scmp.lt.s32.totalorder %s1483_s1, %s1479_s25 }
  0x2e   :  { %p1486_p8 = por %p1485_p7, %p1484_p6 }
  0x30   :  { %p1487_p9 = pnand %p1486_p8, %p1480_p5 }
  0x32   :  { %1490 = shalt.err (!%p1487_p9)
}
  0x33   :  { %44 = dma.hbm_to_vmem [thread:$0]  %s2503_s3, 16, %s42_s16, [#allocation5]  }
  0x34   :  { %1491 = dma.done.wait [#allocation3], 576  }
  0x35   :  { %1492 = vsyncadd [#allocation3], 4294966720 }
  0x36   :  { %1493 = dma.done.wait [#allocation5], 32  }
  0x37   :  { %1494 = vsyncadd [#allocation5], 4294967264  ;;  %v1580_v0 = vld [vmem:[%s2500_s0 + $0x8] sm:$0xf]  ;;  %v58_v1 = vld [vmem:[%s2500_s0 + $0xc] sm:$0x1] }
  0x38   :  { %v1588_v2 = vld [vmem:[%s2500_s0] sm:$0xf]  ;;  %v1591_v3 = vcombine.low %v1580_v0, %v58_v1  ;;  %v56_v4 = vld [vmem:[%s2500_s0 + $0x4] sm:$0x1]  ;;  %v1599_v5 = vld [vmem:[%s2500_s0 + $0x50] sm:$0xf] }
  0x39   :  { %v76_v6 = vld [vmem:[%s2500_s0 + $0x54] sm:$0x1]  ;;  %v1211_v7 = vcombine.low %v1588_v2, %v56_v4  ;;  %v1611_v9 = vld [vmem:[%s2500_s0 + $0x58] sm:$0xf]  ;;  %v78_v10 = vld [vmem:[%s2500_s0 + $0x5c] sm:$0x1]  ;;  %v1227_v4 = vcombine.low %v1580_v0, %v1580_v0 }
  0x3a   :  { %v1606_v8 = vcombine.low %v1599_v5, %v76_v6  ;;  %v320_v11 = vrot.slane %v1591_v3, 1  ;;  %v1618_v12 = vcombine.low %v1611_v9, %v78_v10  ;;  %v185_v13 = vshll.u32 %v1591_v3, 16  ;;  %v1624_v14 = vld [vmem:[%s2500_s0 + $0x18] sm:$0xf]  ;;  %v62_v15 = vld [vmem:[%s2500_s0 + $0x1c] sm:$0x1] }
  0x3b   :  { %v319_v16 = vrot.slane %v1211_v7, 1  ;;  %v183_v19 = vshrl.u32 %v1591_v3, 16  ;;  %v1635_v20 = vld [vmem:[%s2500_s0 + $0x10] sm:$0xf]  ;;  %s1500_s23 = smov 16   ;;  %v176_v21 = vshrl.u32 %v1211_v7, 16  ;;  %v1214_v28 = vcombine.low %v1624_v14, %v62_v15 }
  0x3c   :  { %v232_v17 = vshrl.u32 %v1606_v8, 16  ;;  %v234_v18 = vshll.u32 %v1606_v8, 16  ;;  %337 = vrot.lane.b32.xlu1 %v320_v11, %s1500_s23  ;;  %v178_v22 = vshll.u32 %v1211_v7, 16  ;;  %v239_v23 = vshrl.u32 %v1618_v12, 16  ;;  %v60_v25 = vld [vmem:[%s2500_s0 + $0x14] sm:$0x1] }
  0x3d   :  { %v241_v24 = vshll.u32 %v1618_v12, 16  ;;  %335 = vrot.lane.b32.xlu0 %v319_v16, %s1500_s23  ;;  %v187_v27 = vrot.slane %v185_v13, 1  ;;  %v1213_v29 = vcombine.low %v1635_v20, %v60_v25  ;;  %v1651_v30 = vld [vmem:[%s2500_s0 + $0x68] sm:$0xf]  ;;  %v82_v31 = vld [vmem:[%s2500_s0 + $0x6c] sm:$0x1]  ;;  %v1228_v1 = vcombine.low %v1635_v20, %v1635_v20 }
  0x3e   :  { %v236_v26 = vrot.slane %v234_v18, 1  ;;  %v180_v32 = vrot.slane %v178_v22, 1  ;;  %v1222_v34 = vcombine.low %v1651_v30, %v82_v31  ;;  %v1660_v35 = vld [vmem:[%s2500_s0 + $0x60] sm:$0xf]  ;;  %v80_v36 = vld [vmem:[%s2500_s0 + $0x64] sm:$0x1]  ;;  %v1235_v7 = vcombine.low %v1611_v9, %v1611_v9 }
  0x3f   :  { %v243_v33 = vrot.slane %v241_v24, 1  ;;  %2522 = vst [vmem:[#allocation9_spill] sm:$0xff] %v1660_v35  ;;  %v199_v38 = vshll.u32 %v1214_v28, 16  ;;  %v197_v40 = vshrl.u32 %v1214_v28, 16  ;;  %v192_v41 = vshll.u32 %v1213_v29, 16  ;;  %s1501_s6 = smov 8  }
  0x40   :  { %v237_v37 = vor.u32 %v236_v26, %v232_v17  ;;  %v181_v39 = vor.u32 %v180_v32, %v176_v21  ;;  %v255_v44 = vshll.u32 %v1222_v34, 16  ;;  %v1221_v45 = vcombine.low %v1660_v35, %v80_v36  ;;  %s1502_s3 = smov 24   ;;  %v1736_v15 = vld [vmem:[%s2500_s0 + $0x70] sm:$0xf]  ;;  %v84_v18 = vld [vmem:[%s2500_s0 + $0x74] sm:$0x1] }
  0x41   :  { %v1666_v42 = vor.u32 %v243_v33, %v239_v23  ;;  %v201_v43 = vrot.slane %v199_v38, 1  ;;  %v188_v46 = vor.u32 %v187_v27, %v183_v19  ;;  %v190_v47 = vshrl.u32 %v1213_v29, 16  ;;  %2524 = vst [vmem:[#allocation11_spill] sm:$0xff] %v1736_v15  ;;  %s1503_s15 = smov 32   ;;  %s1504_s16 = smov 40  }
  0x42   :  { %303 = vrot.lane.b32.xlu1 %v237_v37, %s1501_s6  ;;  %287 = vrot.lane.b32.xlu0 %v181_v39, %s1501_s6  ;;  %v194_v48 = vrot.slane %v192_v41, 1  ;;  %v248_v49 = vshll.u32 %v1221_v45, 16  ;;  %v253_v51 = vshrl.u32 %v1222_v34, 16  ;;  %v257_v52 = vrot.slane %v255_v44, 1  ;;  %s1505_s17 = smov 48   ;;  %s1506_s26 = smov 56  }
  0x43   :  { %v1672_v50 = vor.u32 %v201_v43, %v197_v40  ;;  %v246_v54 = vshrl.u32 %v1221_v45, 16  ;;  %v328_v58 = vrot.slane %v1618_v12, 1  ;;  %v327_v59 = vrot.slane %v1606_v8, 1  ;;  %v1722_v8 = vld [vmem:[%s2500_s0 + $0x20] sm:$0xf] }
  0x44   :  { %v1675_v53 = vor.u32 %v194_v48, %v190_v47  ;;  %v250_v55 = vrot.slane %v248_v49, 1  ;;  %v1679_v56 = vor.u32 %v257_v52, %v253_v51  ;;  %v1692_v60 = vrot.slane %v1214_v28, 1  ;;  %2523 = vst [vmem:[#allocation10_spill] sm:$0xff] %v1722_v8  ;;  %v64_v12 = vld [vmem:[%s2500_s0 + $0x24] sm:$0x1]  ;;  %v1421_v48 = vld [vmem:[#allocation2 + $0x8] sm:$0xff]  }
  0x45   :  { %v1695_v61 = vrot.slane %v1213_v29, 1  ;;  %v1699_v62 = vrot.slane %v1222_v34, 1  ;;  %v1703_v63 = vrot.slane %v1221_v45, 1  ;;  %v1236_v6 = vcombine.low %v1660_v35, %v1660_v35  ;;  %v1795_v3 = vld [vmem:[%s2500_s0 + $0x28] sm:$0xf]  ;;  %v1420_v44 = vld [vmem:[#allocation2] sm:$0xff]  }
  0x46   :  { %305 = vrot.lane.b32.xlu1 %v1666_v42, %s1501_s6  ;;  %289 = vrot.lane.b32.xlu0 %v188_v46, %s1501_s6  ;;  %v1683_v57 = vor.u32 %v250_v55, %v246_v54  ;;  %v1230_v10 = vcombine.low %v1722_v8, %v1722_v8  ;;  %v1229_v13 = vcombine.low %v1624_v14, %v1624_v14  ;;  %v66_v33 = vld [vmem:[%s2500_s0 + $0x2c] sm:$0x1]  ;;  %v1809_v34 = vld [vmem:[%s2500_s0 + $0x78] sm:$0xf]  ;;  %vm1010_vm0 = vcmask 1043456  }
  0x47   :  { %v1215_v16 = vcombine.low %v1722_v8, %v64_v12  ;;  %v1238_v17 = vcombine.low %v1736_v15, %v1736_v15  ;;  %v1237_v19 = vcombine.low %v1651_v30, %v1651_v30  ;;  %v1223_v21 = vcombine.low %v1736_v15, %v84_v18  ;;  %2525 = vst [vmem:[#allocation12_spill] sm:$0xff] %v1795_v3  ;;  %v86_v38 = vld [vmem:[%s2500_s0 + $0x7c] sm:$0x1] }
  0x48   :  { %2526 = vst [vmem:[#allocation13_spill] sm:$0xff] %v1809_v34  ;;  %v1812_v36 = vcombine.low %v1795_v3, %v66_v33  ;;  %v1818_v37 = vcombine.low %v1809_v34, %v1809_v34  ;;  %v1825_v39 = vcombine.low %v1809_v34, %v86_v38  ;;  %1332 = vmatprep.subr.bf16.mxu0 %v1420_v44  ;;  %v1423_v51 = vld [vmem:[#allocation2 + $0x18] sm:$0xff]   ;;  %vm629_vm1 = vcmask 64512  }
  0x49   :  { %v206_v22 = vshll.u32 %v1215_v16, 16  ;;  %v204_v23 = vshrl.u32 %v1215_v16, 16  ;;  %v262_v25 = vshll.u32 %v1223_v21, 16  ;;  %v260_v27 = vshrl.u32 %v1223_v21, 16  ;;  %1358 = vmatprep.subr.bf16.mxu1 %v1420_v44  ;;  %1333 = vmatpush3.bf16.msra.mxu0 %v1420_v44 }
  0x4a   :  { %293 = vrot.lane.b32.xlu1 %v1672_v50, %s1501_s6  ;;  %291 = vrot.lane.b32.xlu0 %v1675_v53, %s1501_s6  ;;  %v1777_v31 = vrot.slane %v1215_v16, 1  ;;  %v1782_v32 = vrot.slane %v1223_v21, 1  ;;  %v213_v40 = vshll.u32 %v1812_v36, 16  ;;  %v211_v41 = vshrl.u32 %v1812_v36, 16 }
  0x4b   :  { %v208_v24 = vrot.slane %v206_v22, 1  ;;  %v264_v28 = vrot.slane %v262_v25, 1  ;;  %v269_v43 = vshll.u32 %v1825_v39, 16  ;;  %1363 = vmatpush3.bf16.msra.mxu1 %v1420_v44  ;;  %1334 = vmatprep.subr.bf16.mxu0 %v1421_v48  ;;  %vm678_vm2 = vcmask 130048  }
  0x4c   :  { %1359 = vmatprep.subr.bf16.mxu1 %v1421_v48  ;;  %vm711_vm3 = vcmask 195584   ;;  %vm744_vm4 = vcmask 261120   ;;  %vm777_vm5 = vcmask 326656   ;;  %vm810_vm6 = vcmask 392192  }
  0x4d   :  { %v1756_v26 = vor.u32 %v208_v24, %v204_v23  ;;  %v1762_v29 = vor.u32 %v264_v28, %v260_v27  ;;  %v271_v47 = vrot.slane %v269_v43, 1  ;;  %1335 = vmatpush3.bf16.msra.mxu0 %v1421_v48  ;;  %v1928_v23 = vrot.slane %v1825_v39, 1 }
  0x4e   :  { %309 = vrot.lane.b32.xlu1 %v1679_v56, %s1501_s6  ;;  %307 = vrot.lane.b32.xlu0 %v1683_v57, %s1501_s6  ;;  %vm843_vm7 = vcmask 457728   ;;  %vm876_vm8 = vcmask 523264   ;;  %vm985_vm9 = vcmask 588800  }
  0x4f   :  { %1364 = vmatpush3.bf16.msra.mxu1 %v1421_v48 }
  0x52   :  { %353 = vrot.lane.b32.xlu1 %v328_v58, %s1500_s23  ;;  %351 = vrot.lane.b32.xlu0 %v327_v59, %s1500_s23  ;;  %v1879_v59 = vld [vmem:[%s2500_s0 + $0x30] sm:$0xf] }
  0x53   :  { %2528 = vst [vmem:[#allocation15_spill] sm:$0xff] %v1879_v59 }
  0x56   :  { %341 = vrot.lane.b32.xlu1 %v1692_v60, %s1500_s23  ;;  %339 = vrot.lane.b32.xlu0 %v1695_v61, %s1500_s23 }
  0x5a   :  { %357 = vrot.lane.b32.xlu1 %v1699_v62, %s1500_s23  ;;  %355 = vrot.lane.b32.xlu0 %v1703_v63, %s1500_s23 }
  0x5e   :  { %389 = vrot.lane.b32.xlu1 %v1228_v1, %s1502_s3  ;;  %387 = vrot.lane.b32.xlu0 %v1227_v4, %s1502_s3  ;;  %v90_v4 = vld [vmem:[%s2500_s0 + $0x8c] sm:$0x1] }
  0x62   :  { %405 = vrot.lane.b32.xlu1 %v1236_v6, %s1502_s3  ;;  %403 = vrot.lane.b32.xlu0 %v1235_v7, %s1502_s3  ;;  %v1905_v7 = vld [vmem:[%s2500_s0 + $0x80] sm:$0xf] }
  0x63   :  { %2530 = vst [vmem:[#allocation17_spill] sm:$0xff] %v1905_v7 }
  0x66   :  { %393 = vrot.lane.b32.xlu1 %v1230_v10, %s1502_s3  ;;  %391 = vrot.lane.b32.xlu0 %v1229_v13, %s1502_s3 }
  0x6a   :  { %409 = vrot.lane.b32.xlu1 %v1238_v17, %s1502_s3  ;;  %407 = vrot.lane.b32.xlu0 %v1237_v19, %s1502_s3 }
  0x6e   :  { %441 = vrot.lane.b32.xlu1 %v1675_v53, %s1503_s15  ;;  %439 = vrot.lane.b32.xlu0 %v188_v46, %s1503_s15  ;;  %v267_v46 = vshrl.u32 %v1825_v39, 16 }
  0x70   :  { %v1846_v49 = vor.u32 %v271_v47, %v267_v46 }
  0x72   :  { %457 = vrot.lane.b32.xlu1 %v1683_v57, %s1503_s15  ;;  %455 = vrot.lane.b32.xlu0 %v1666_v42, %s1503_s15  ;;  %v215_v42 = vrot.slane %v213_v40, 1 }
  0x74   :  { %v1839_v45 = vor.u32 %v215_v42, %v211_v41 }
  0x76   :  { %445 = vrot.lane.b32.xlu1 %v1756_v26, %s1503_s15  ;;  %443 = vrot.lane.b32.xlu0 %v1672_v50, %s1503_s15 }
  0x7a   :  { %461 = vrot.lane.b32.xlu1 %v1762_v29, %s1503_s15  ;;  %459 = vrot.lane.b32.xlu0 %v1679_v56, %s1503_s15 }
  0x7e   :  { %475 = vrot.lane.b32.xlu1 %v1695_v61, %s1504_s16  ;;  %473 = vrot.lane.b32.xlu0 %v320_v11, %s1504_s16  ;;  %v1800_v11 = vcombine.low %v1795_v3, %v1795_v3 }
  0x82   :  { %491 = vrot.lane.b32.xlu1 %v1703_v63, %s1504_s16  ;;  %489 = vrot.lane.b32.xlu0 %v328_v58, %s1504_s16 }
  0x86   :  { %479 = vrot.lane.b32.xlu1 %v1777_v31, %s1504_s16  ;;  %477 = vrot.lane.b32.xlu0 %v1692_v60, %s1504_s16 }
  0x8a   :  { %495 = vrot.lane.b32.xlu1 %v1782_v32, %s1504_s16  ;;  %493 = vrot.lane.b32.xlu0 %v1699_v62, %s1504_s16 }
  0x8e   :  { %513 = vrot.lane.b32.xlu1 %v1229_v13, %s1505_s17  ;;  %511 = vrot.lane.b32.xlu0 %v1228_v1, %s1505_s17  ;;  %v1895_v1 = vld [vmem:[%s2500_s0 + $0x88] sm:$0xf]  ;;  %v1915_v13 = vrot.slane %v1812_v36, 1 }
  0x8f   :  { %2529 = vst [vmem:[#allocation16_spill] sm:$0xff] %v1895_v1 }
  0x92   :  { %529 = vrot.lane.b32.xlu1 %v1237_v19, %s1505_s17  ;;  %527 = vrot.lane.b32.xlu0 %v1236_v6, %s1505_s17 }
  0x96   :  { %517 = vrot.lane.b32.xlu1 %v1800_v11, %s1505_s17  ;;  %515 = vrot.lane.b32.xlu0 %v1230_v10, %s1505_s17  ;;  %v88_v10 = vld [vmem:[%s2500_s0 + $0x84] sm:$0x1] }
  0x97   :  { %v1225_v19 = vcombine.low %v1905_v7, %v88_v10 }
  0x99   :  { %v274_v42 = vshrl.u32 %v1225_v19, 16 }
  0x9a   :  { %533 = vrot.lane.b32.xlu1 %v1818_v37, %s1505_s17  ;;  %531 = vrot.lane.b32.xlu0 %v1238_v17, %s1505_s17  ;;  %v1226_v17 = vcombine.low %v1895_v1, %v90_v4 }
  0x9c   :  { %v281_v39 = vshrl.u32 %v1226_v17, 16 }
  0x9e   :  { %565 = vrot.lane.b32.xlu1 %v1672_v50, %s1506_s26  ;;  %563 = vrot.lane.b32.xlu0 %v1675_v53, %s1506_s26  ;;  %v1422_v50 = vld [vmem:[#allocation2 + $0x10] sm:$0xff]   ;;  %v1424_v53 = vld [vmem:[#allocation2 + $0x20] ss:$0 sps:$4 sm:$0xff]  }
  0x9f   :  { %1336 = vmatprep.subr.bf16.mxu0 %v1422_v50  ;;  %1360 = vmatprep.subr.bf16.mxu1 %v1422_v50  ;;  %v1012_v55 = vsel %vm1010_vm0, %v1424_v53, 0 }
  0xa0   :  { %1337 = vmatpush3.bf16.msra.mxu0 %v1422_v50  ;;  %1365 = vmatpush3.bf16.msra.mxu1 %v1422_v50 }
  0xa1   :  { %1338 = vmatprep.subr.bf16.mxu0 %v1423_v51  ;;  %1361 = vmatprep.subr.bf16.mxu1 %v1423_v51 }
  0xa2   :  { %581 = vrot.lane.b32.xlu1 %v1679_v56, %s1506_s26  ;;  %579 = vrot.lane.b32.xlu0 %v1683_v57, %s1506_s26  ;;  %v1869_v56 = vld [vmem:[%s2500_s0 + $0x38] sm:$0xf]  ;;  %v70_v57 = vld [vmem:[%s2500_s0 + $0x3c] sm:$0x1] }
  0xa3   :  { %2527 = vst [vmem:[#allocation14_spill] sm:$0xff] %v1869_v56 }
  0xa4   :  { %1339 = vmatpush3.bf16.msra.mxu0 %v1423_v51  ;;  %1366 = vmatpush3.bf16.msra.mxu1 %v1423_v51 }
  0xa5   :  { %1368 = vmatprep.subr.msk.bf16.mxu0 %vm1010_vm0, %v1424_v53  ;;  %1369 = vmatprep.subr.msk.bf16.mxu1 %vm1010_vm0, %v1424_v53 }
  0xa6   :  { %569 = vrot.lane.b32.xlu1 %v1839_v45, %s1506_s26  ;;  %567 = vrot.lane.b32.xlu0 %v1756_v26, %s1506_s26 }
  0xa8   :  { %1341 = vmatpush3.bf16.msra.mxu0 %v1012_v55  ;;  %1367 = vmatpush3.bf16.msra.mxu1 %v1012_v55 }
  0xaa   :  { %585 = vrot.lane.b32.xlu1 %v1846_v49, %s1506_s26  ;;  %583 = vrot.lane.b32.xlu0 %v1762_v29, %s1506_s26 }
  0xae   :  { %599 = vrot.lane.b32.xlu1 %v1692_v60, %s1497_s2  ;;  %597 = vrot.lane.b32.xlu0 %v1695_v61, %s1497_s2  ;;  %v1858_v52 = vpop.permute.xlu1 %337  ;;  %v68_v60 = vld [vmem:[%s2500_s0 + $0x34] sm:$0x1] }
  0xaf   :  { %v1860_v54 = vpop.permute.xlu0 %335 }
  0xb2   :  { %615 = vrot.lane.b32.xlu1 %v1699_v62, %s1497_s2  ;;  %613 = vrot.lane.b32.xlu0 %v1703_v63, %s1497_s2  ;;  %v1218_v62 = vcombine.low %v1869_v56, %v70_v57  ;;  %v1217_v63 = vcombine.low %v1879_v59, %v68_v60 }
  0xb4   :  { %v1874_v58 = vpop.permute.xlu1 %303  ;;  %v1884_v61 = vpop.permute.xlu0 %287  ;;  %v227_v16 = vshll.u32 %v1218_v62, 16  ;;  %v220_v18 = vshll.u32 %v1217_v63, 16  ;;  %v225_v24 = vshrl.u32 %v1218_v62, 16  ;;  %v218_v27 = vshrl.u32 %v1217_v63, 16 }
  0xb5   :  { %v1978_v4 = vrot.slane %v1218_v62, 1  ;;  %v1982_v10 = vrot.slane %v1217_v63, 1 }
  0xb6   :  { %297 = vrot.lane.b32.xlu1 %v1839_v45, %s1501_s6  ;;  %295 = vrot.lane.b32.xlu0 %v1756_v26, %s1501_s6  ;;  %v229_v25 = vrot.slane %v227_v16, 1  ;;  %v283_v26 = vshll.u32 %v1226_v17, 16  ;;  %v222_v28 = vrot.slane %v220_v18, 1 }
  0xb7   :  { %2534 = vst [vmem:[#allocation21_spill] sm:$0xff] %v1978_v4  ;;  %2535 = vst [vmem:[#allocation22_spill] sm:$0xff] %v1982_v10 }
  0xb8   :  { %v1900_v6 = vpop.permute.xlu1 %305  ;;  %v1910_v12 = vpop.permute.xlu0 %289  ;;  %v1938_v38 = vor.u32 %v229_v25, %v225_v24  ;;  %v285_v40 = vrot.slane %v283_v26, 1  ;;  %v1942_v41 = vor.u32 %v222_v28, %v218_v27  ;;  %v1994_v24 = vrot.slane %v1225_v19, 1  ;;  %v71_v26 = vld [vmem:[%s2500_s0 + $0x40] sm:$0xf] }
  0xba   :  { %313 = vrot.lane.b32.xlu1 %v1846_v49, %s1501_s6  ;;  %311 = vrot.lane.b32.xlu0 %v1762_v29, %s1501_s6  ;;  %v276_v29 = vshll.u32 %v1225_v19, 16  ;;  %v1950_v47 = vor.u32 %v285_v40, %v281_v39  ;;  %2537 = vst [vmem:[#allocation24_spill] sm:$0xff] %v1994_v24  ;;  %v2016_v19 = vcombine.low %v1905_v7, %v1905_v7  ;;  %v91_v40 = vld [vmem:[%s2500_s0 + $0x90] sm:$0xf] }
  0xbb   :  { %v1233_v39 = vcombine.low %v1869_v56, %v1869_v56  ;;  %v1241_v56 = vcombine.low %v1895_v1, %v1895_v1 }
  0xbc   :  { %v1921_v21 = vpop.permute.xlu1 %293  ;;  %v1923_v22 = vpop.permute.xlu0 %291  ;;  %v278_v43 = vrot.slane %v276_v29, 1  ;;  %v2029_v29 = vcombine.low %v71_v26, %v71_v26 }
  0xbe   :  { %603 = vrot.lane.b32.xlu1 %v1915_v13, %s1497_s2  ;;  %601 = vrot.lane.b32.xlu0 %v1777_v31, %s1497_s2  ;;  %v1954_v48 = vor.u32 %v278_v43, %v274_v42 }
  0xc0   :  { %v1932_v33 = vpop.permute.xlu1 %309  ;;  %v1934_v36 = vpop.permute.xlu0 %307 }
  0xc1   :  { %2531 = vst [vmem:[#allocation18_spill] sm:$0xff] %v1934_v36 }
  0xc2   :  { %619 = vrot.lane.b32.xlu1 %v1928_v23, %s1497_s2  ;;  %617 = vrot.lane.b32.xlu0 %v1782_v32, %s1497_s2 }
  0xc4   :  { %v1944_v44 = vpop.permute.xlu1 %353  ;;  %v1946_v46 = vpop.permute.xlu0 %351 }
  0xc6   :  { %301 = vrot.lane.b32.xlu1 %v1938_v38, %s1501_s6  ;;  %299 = vrot.lane.b32.xlu0 %v1942_v41, %s1501_s6 }
  0xc8   :  { %v1956_v50 = vpop.permute.xlu1 %341  ;;  %v1958_v51 = vpop.permute.xlu0 %339 }
  0xca   :  { %317 = vrot.lane.b32.xlu1 %v1950_v47, %s1501_s6  ;;  %315 = vrot.lane.b32.xlu0 %v1954_v48, %s1501_s6 }
  0xcc   :  { %v1964_v53 = vpop.permute.xlu1 %357  ;;  %v1966_v55 = vpop.permute.xlu0 %355 }
  0xcd   :  { %2532 = vst [vmem:[#allocation19_spill] sm:$0xff] %v1964_v53  ;;  %2533 = vst [vmem:[#allocation20_spill] sm:$0xff] %v1966_v55 }
  0xce   :  { %345 = vrot.lane.b32.xlu1 %v1915_v13, %s1500_s23  ;;  %343 = vrot.lane.b32.xlu0 %v1777_v31, %s1500_s23  ;;  %v1990_v31 = vrot.slane %v1226_v17, 1 }
  0xd0   :  { %v1972_v57 = vpop.permute.xlu1 %389  ;;  %v1974_v60 = vpop.permute.xlu0 %387  ;;  %2536 = vst [vmem:[#allocation23_spill] sm:$0xff] %v1990_v31 }
  0xd2   :  { %361 = vrot.lane.b32.xlu1 %v1928_v23, %s1500_s23  ;;  %359 = vrot.lane.b32.xlu0 %v1782_v32, %s1500_s23  ;;  %v2004_v32 = vcombine.low %v1879_v59, %v1879_v59  ;;  %v92_v59 = vld [vmem:[%s2500_s0 + $0x94] sm:$0x1] }
  0xd4   :  { %v1984_v16 = vpop.permute.xlu1 %405  ;;  %v1986_v18 = vpop.permute.xlu0 %403 }
  0xd6   :  { %349 = vrot.lane.b32.xlu1 %v1978_v4, %s1500_s23  ;;  %347 = vrot.lane.b32.xlu0 %v1982_v10, %s1500_s23 }
  0xd8   :  { %v1996_v62 = vpop.permute.xlu1 %393  ;;  %v1998_v25 = vpop.permute.xlu0 %391 }
  0xda   :  { %365 = vrot.lane.b32.xlu1 %v1990_v31, %s1500_s23  ;;  %363 = vrot.lane.b32.xlu0 %v1994_v24, %s1500_s23 }
  0xdc   :  { %v2008_v63 = vpop.permute.xlu1 %409  ;;  %v2010_v17 = vpop.permute.xlu0 %407 }
  0xdd   :  { %2538 = vst [vmem:[#allocation25_spill] sm:$0xff] %v2008_v63  ;;  %2539 = vst [vmem:[#allocation26_spill] sm:$0xff] %v2010_v17 }
  0xde   :  { %397 = vrot.lane.b32.xlu1 %v2004_v32, %s1502_s3  ;;  %395 = vrot.lane.b32.xlu0 %v1800_v11, %s1502_s3  ;;  %v72_v11 = vld [vmem:[%s2500_s0 + $0x44] sm:$0x1] }
  0xdf   :  { %v2045_v7 = vcombine.low %v71_v26, %v72_v11  ;;  %v2061_v26 = vcombine.low %v91_v40, %v92_v59 }
  0xe0   :  { %v2023_v27 = vpop.permute.xlu1 %441  ;;  %v2025_v28 = vpop.permute.xlu0 %439 }
  0xe1   :  { %2540 = vst [vmem:[#allocation27_spill] sm:$0xff] %v2045_v7  ;;  %2541 = vst [vmem:[#allocation28_spill] sm:$0xff] %v2061_v26  ;;  %v428_v11 = vshll.u32 %v2045_v7, 16  ;;  %v426_v1 = vshrl.u32 %v2045_v7, 16  ;;  %v435_v59 = vshll.u32 %v2061_v26, 16 }
  0xe2   :  { %413 = vrot.lane.b32.xlu1 %v2016_v19, %s1502_s3  ;;  %411 = vrot.lane.b32.xlu0 %v1818_v37, %s1502_s3  ;;  %v2049_v37 = vcombine.low %v91_v40, %v91_v40 }
  0xe3   :  { %v430_v17 = vrot.slane %v428_v11, 1  ;;  %v437_v55 = vrot.slane %v435_v59, 1 }
  0xe4   :  { %v2041_v42 = vpop.permute.xlu1 %457  ;;  %v2043_v43 = vpop.permute.xlu0 %455 }
  0xe6   :  { %401 = vrot.lane.b32.xlu1 %v2029_v29, %s1502_s3  ;;  %399 = vrot.lane.b32.xlu0 %v1233_v39, %s1502_s3 }
  0xe8   :  { %v2057_v15 = vpop.permute.xlu1 %445  ;;  %v2059_v34 = vpop.permute.xlu0 %443 }
  0xea   :  { %417 = vrot.lane.b32.xlu1 %v2049_v37, %s1502_s3  ;;  %415 = vrot.lane.b32.xlu0 %v1241_v56, %s1502_s3 }
  0xec   :  { %v2067_v8 = vpop.permute.xlu1 %461  ;;  %v2069_v3 = vpop.permute.xlu0 %459 }
  0xed   :  { %2542 = vst [vmem:[#allocation29_spill] sm:$0xff] %v2067_v8  ;;  %2543 = vst [vmem:[#allocation30_spill] sm:$0xff] %v2069_v3  ;;  %v2083_v8 = vor.u32 %v430_v17, %v426_v1  ;;  %v433_v3 = vshrl.u32 %v2061_v26, 16 }
  0xee   :  { %449 = vrot.lane.b32.xlu1 %v1942_v41, %s1503_s15  ;;  %447 = vrot.lane.b32.xlu0 %v1839_v45, %s1503_s15 }
  0xef   :  { %v2094_v45 = vor.u32 %v437_v55, %v433_v3 }
  0xf0   :  { %v2077_v40 = vpop.permute.xlu1 %475  ;;  %v2079_v63 = vpop.permute.xlu0 %473 }
  0xf2   :  { %465 = vrot.lane.b32.xlu1 %v1954_v48, %s1503_s15  ;;  %463 = vrot.lane.b32.xlu0 %v1846_v49, %s1503_s15 }
  0xf4   :  { %v2088_v11 = vpop.permute.xlu1 %491  ;;  %v2090_v53 = vpop.permute.xlu0 %489 }
  0xf6   :  { %453 = vrot.lane.b32.xlu1 %v2083_v8, %s1503_s15  ;;  %451 = vrot.lane.b32.xlu0 %v1938_v38, %s1503_s15 }
  0xf8   :  { %v2098_v1 = vpop.permute.xlu1 %479  ;;  %v2100_v17 = vpop.permute.xlu0 %477 }
  0xf9   :  { %2544 = vst [vmem:[#allocation31_spill] sm:$0xff] %v2098_v1  ;;  %2545 = vst [vmem:[#allocation32_spill] sm:$0xff] %v2100_v17  ;;  %v2516_v17 = vrot.slane %v2045_v7, 1 }
  0xfa   :  { %469 = vrot.lane.b32.xlu1 %v2094_v45, %s1503_s15  ;;  %467 = vrot.lane.b32.xlu0 %v1950_v47, %s1503_s15 }
  0xfc   :  { %v2106_v49 = vpop.permute.xlu1 %495  ;;  %v2108_v59 = vpop.permute.xlu0 %493 }
  0xfd   :  { %2546 = vst [vmem:[#allocation33_spill] sm:$0xff] %v2106_v49  ;;  %2547 = vst [vmem:[#allocation34_spill] sm:$0xff] %v2108_v59 }
  0xfe   :  { %483 = vrot.lane.b32.xlu1 %v1982_v10, %s1504_s16  ;;  %481 = vrot.lane.b32.xlu0 %v1915_v13, %s1504_s16  ;;  %v2517_v13 = vrot.slane %v2061_v26, 1 }
 0x100   :  { %v2114_v3 = vpop.permute.xlu1 %513  ;;  %v2116_v55 = vpop.permute.xlu0 %511 }
 0x102   :  { %499 = vrot.lane.b32.xlu1 %v1994_v24, %s1504_s16  ;;  %497 = vrot.lane.b32.xlu0 %v1928_v23, %s1504_s16 }
 0x104   :  { %v2123_v49 = vpop.permute.xlu1 %529  ;;  %v2125_v59 = vpop.permute.xlu0 %527 }
 0x106   :  { %487 = vrot.lane.b32.xlu1 %v2516_v17, %s1504_s16  ;;  %485 = vrot.lane.b32.xlu0 %v1978_v4, %s1504_s16  ;;  %v74_v17 = vld [vmem:[%s2500_s0 + $0x4c] sm:$0x1] }
 0x108   :  { %v2133_v10 = vpop.permute.xlu1 %517  ;;  %v2135_v24 = vpop.permute.xlu0 %515 }
 0x109   :  { %2548 = vst [vmem:[#allocation35_spill] sm:$0xff] %v2133_v10  ;;  %2549 = vst [vmem:[#allocation36_spill] sm:$0xff] %v2135_v24 }
 0x10a   :  { %503 = vrot.lane.b32.xlu1 %v2517_v13, %s1504_s16  ;;  %501 = vrot.lane.b32.xlu0 %v1990_v31, %s1504_s16  ;;  %v73_v13 = vld [vmem:[%s2500_s0 + $0x48] sm:$0xf] }
 0x10b   :  { %v2155_v31 = vcombine.low %v73_v13, %v74_v17 }
 0x10c   :  { %v2142_v23 = vpop.permute.xlu1 %533  ;;  %v2144_v7 = vpop.permute.xlu0 %531 }
 0x10d   :  { %2550 = vst [vmem:[#allocation37_spill] sm:$0xff] %v2142_v23  ;;  %2551 = vst [vmem:[#allocation38_spill] sm:$0xff] %v2144_v7  ;;  %v1245_v7 = vcombine.low %v73_v13, %v73_v13  ;;  %v552_v10 = vshll.u32 %v2155_v31, 16  ;;  %v550_v4 = vshrl.u32 %v2155_v31, 16 }
 0x10e   :  { %521 = vrot.lane.b32.xlu1 %v1233_v39, %s1505_s17  ;;  %519 = vrot.lane.b32.xlu0 %v2004_v32, %s1505_s17  ;;  %v93_v39 = vld [vmem:[%s2500_s0 + $0x98] sm:$0xf] }
 0x10f   :  { %v1246_v17 = vcombine.low %v93_v39, %v93_v39  ;;  %v554_v1 = vrot.slane %v552_v10, 1 }
 0x110   :  { %v566_v26 = vpop.permute.xlu1 %565  ;;  %v564_v24 = vpop.permute.xlu0 %563 }
 0x112   :  { %537 = vrot.lane.b32.xlu1 %v1241_v56, %s1505_s17  ;;  %535 = vrot.lane.b32.xlu0 %v2016_v19, %s1505_s17  ;;  %v94_v56 = vld [vmem:[%s2500_s0 + $0x9c] sm:$0x1]  ;;  %v635_v19 = vsel %vm629_vm1, %v1580_v0, %v1910_v12 }
 0x113   :  { %v2184_v36 = vcombine.low %v93_v39, %v94_v56  ;;  %v682_v0 = vsel %vm678_vm2, %v635_v19, %v1858_v52  ;;  %v555_v39 = vor.u32 %v554_v1, %v550_v4  ;;  %v656_v4 = vsel %vm629_vm1, %v1599_v5, %v1874_v58 }
 0x114   :  { %v2163_v23 = vpop.permute.xlu1 %581  ;;  %v2165_v32 = vpop.permute.xlu0 %579 }
 0x116   :  { %525 = vrot.lane.b32.xlu1 %v1245_v7, %s1505_s17  ;;  %523 = vrot.lane.b32.xlu0 %v2029_v29, %s1505_s17  ;;  %v632_v7 = vsel %vm629_vm1, %v1588_v2, %v1884_v61  ;;  %v715_v2 = vsel %vm711_vm3, %v682_v0, %v1972_v57  ;;  %v659_v57 = vsel %vm629_vm1, %v1611_v9, %v1900_v6 }
 0x117   :  { %v680_v61 = vsel %vm678_vm2, %v632_v7, %v1860_v54  ;;  %v748_v52 = vsel %vm744_vm4, %v715_v2, %v2023_v27  ;;  %v698_v27 = vsel %vm678_vm2, %v659_v57, %v1944_v44  ;;  %v638_v0 = vsel %vm629_vm1, %v1635_v20, %v1923_v22  ;;  %v2557_v57 = vld [vmem:[#allocation32_spill] sm:$0xff] }
 0x118   :  { %v2177_v13 = vpop.permute.xlu1 %569  ;;  %v2182_v35 = vpop.permute.xlu0 %567  ;;  %v713_v10 = vsel %vm711_vm3, %v680_v61, %v1974_v60  ;;  %v781_v56 = vsel %vm777_vm5, %v748_v52, %v2077_v40  ;;  %v557_v60 = vshrl.u32 %v2184_v36, 16  ;;  %v665_v22 = vsel %vm629_vm1, %v1651_v30, %v1932_v33  ;;  %v2554_v52 = vld [vmem:[#allocation18_spill] sm:$0xff]  ;;  %v2558_v30 = vld [vmem:[#allocation35_spill] sm:$0xff] }
 0x119   :  { %v746_v54 = vsel %vm744_vm4, %v713_v10, %v2025_v28  ;;  %v814_v6 = vsel %vm810_vm6, %v781_v56, %v2114_v3  ;;  %v731_v28 = vsel %vm711_vm3, %v698_v27, %v1984_v16  ;;  %v2560_v56 = vld [vmem:[#allocation20_spill] sm:$0xff] }
 0x11a   :  { %541 = vrot.lane.b32.xlu1 %v1246_v17, %s1505_s17  ;;  %539 = vrot.lane.b32.xlu0 %v2049_v37, %s1505_s17  ;;  %v559_v37 = vshll.u32 %v2184_v36, 16  ;;  %v779_v9 = vsel %vm777_vm5, %v746_v54, %v2079_v63  ;;  %v847_v58 = vsel %vm843_vm7, %v814_v6, %v566_v26  ;;  %v764_v40 = vsel %vm744_vm4, %v731_v28, %v2041_v42 }
 0x11b   :  { %v812_v5 = vsel %vm810_vm6, %v779_v9, %v2116_v55  ;;  %v797_v3 = vsel %vm777_vm5, %v764_v40, %v2088_v11  ;;  %v2562_v9 = vld [vmem:[#allocation36_spill] sm:$0xff] }
 0x11c   :  { %v2196_v12 = vpop.permute.xlu1 %585  ;;  %v2202_v29 = vpop.permute.xlu0 %583 }
 0x11e   :  { %573 = vrot.lane.b32.xlu1 %v1938_v38, %s1506_s26  ;;  %571 = vrot.lane.b32.xlu0 %v1942_v41, %s1506_s26  ;;  %v696_v38 = vsel %vm678_vm2, %v656_v4, %v1946_v46  ;;  %v845_v41 = vsel %vm843_vm7, %v812_v5, %v564_v24  ;;  %v830_v24 = vsel %vm810_vm6, %v797_v3, %v2123_v49  ;;  %v2561_v4 = vld [vmem:[#allocation25_spill] sm:$0xff]  ;;  %v2563_v5 = vld [vmem:[#allocation26_spill] sm:$0xff] }
 0x11f   :  { %v729_v63 = vsel %vm711_vm3, %v696_v38, %v1986_v18  ;;  %v561_v18 = vrot.slane %v559_v37, 1  ;;  %v863_v11 = vsel %vm843_vm7, %v830_v24, %v2163_v23  ;;  %v2556_v37 = vld [vmem:[#allocation19_spill] sm:$0xff]  ;;  %v2566_v3 = vld [vmem:[#allocation33_spill] sm:$0xff]  ;;  %v2568_v24 = vld [vmem:[#allocation34_spill] sm:$0xff] }
 0x120   :  { %v600_v44 = vpop.permute.xlu1 %599  ;;  %v598_v46 = vpop.permute.xlu0 %597  ;;  %v762_v16 = vsel %vm744_vm4, %v729_v63, %v2043_v43 }
 0x121   :  { %v880_v1 = vsel %vm876_vm8, %v847_v58, %v600_v44  ;;  %v878_v26 = vsel %vm876_vm8, %v845_v41, %v598_v46  ;;  %v795_v42 = vsel %vm777_vm5, %v762_v16, %v2090_v53  ;;  %v2564_v44 = vld [vmem:[#allocation29_spill] sm:$0xff]  ;;  %v2565_v46 = vld [vmem:[#allocation30_spill] sm:$0xff] }
 0x122   :  { %589 = vrot.lane.b32.xlu1 %v1950_v47, %s1506_s26  ;;  %587 = vrot.lane.b32.xlu0 %v1954_v48, %s1506_s26  ;;  %v1249_v55 = vcombine.low %v878_v26, %v880_v1  ;;  %v828_v43 = vsel %vm810_vm6, %v795_v42, %v2125_v59  ;;  %v562_v48 = vor.u32 %v561_v18, %v557_v60  ;;  %v2567_v18 = vld [vmem:[#allocation23_spill] sm:$0xff]  ;;  %v595_v42 = vrot.slane %v2155_v31, 1 }
 0x123   :  { %v861_v47 = vsel %vm843_vm7, %v828_v43, %v2165_v32  ;;  %v641_v32 = vsel %vm629_vm1, %v1624_v14, %v1921_v21 }
 0x124   :  { %v616_v17 = vpop.permute.xlu1 %615  ;;  %1342 = vmatprep.mubr.msk.bf16.mxu0 %vm985_vm9, %v1249_v55  ;;  %v614_v53 = vpop.permute.xlu0 %613  ;;  %v686_v2 = vsel %vm678_vm2, %v641_v32, %v1956_v50 }
 0x125   :  { %v896_v19 = vsel %vm876_vm8, %v863_v11, %v616_v17  ;;  %v894_v49 = vsel %vm876_vm8, %v861_v47, %v614_v53  ;;  %v719_v61 = vsel %vm711_vm3, %v686_v2, %v1996_v62  ;;  %v2553_v62 = vld [vmem:[#allocation21_spill] sm:$0xff]  ;;  %v2570_v17 = vld [vmem:[#allocation24_spill] sm:$0xff]  ;;  %v2571_v47 = vld [vmem:[#allocation38_spill] sm:$0xff] }
 0x126   :  { %577 = vrot.lane.b32.xlu1 %v555_v39, %s1506_s26  ;;  %575 = vrot.lane.b32.xlu0 %v2083_v8, %s1506_s26  ;;  %v1253_v59 = vcombine.low %v894_v49, %v896_v19  ;;  %v684_v8 = vsel %vm678_vm2, %v638_v0, %v1958_v51  ;;  %v752_v21 = vsel %vm744_vm4, %v719_v61, %v2057_v15  ;;  %v2555_v39 = vld [vmem:[#allocation9_spill] sm:$0xff]  ;;  %v596_v0 = vrot.slane %v2184_v36, 1 }
 0x127   :  { %v717_v14 = vsel %vm711_vm3, %v684_v8, %v1998_v25  ;;  %v662_v25 = vsel %vm629_vm1, %v2555_v39, %v2554_v52  ;;  %v702_v15 = vsel %vm678_vm2, %v665_v22, %v2556_v37  ;;  %v2572_v8 = vld [vmem:[#allocation27_spill] sm:$0xff] }
 0x128   :  { %v298_v7 = vpop.permute.xlu1 %297  ;;  %1350 = vmatprep.mubr.msk.bf16.mxu1 %vm985_vm9, %v1253_v59  ;;  %v296_v23 = vpop.permute.xlu0 %295  ;;  %v750_v50 = vsel %vm744_vm4, %v717_v14, %v2059_v34  ;;  %v2559_v34 = vld [vmem:[#allocation22_spill] sm:$0xff]  ;;  %v700_v60 = vsel %vm678_vm2, %v662_v25, %v2560_v56  ;;  %v735_v27 = vsel %vm711_vm3, %v702_v15, %v2561_v4  ;;  %v2573_v61 = vrot.slane %v2572_v8, 1  ;;  %v2574_v14 = vld [vmem:[#allocation28_spill] sm:$0xff]  ;;  %v2578_v15 = vld [vmem:[#allocation13_spill] sm:$0xff] }
 0x129   :  { %v783_v54 = vsel %vm777_vm5, %v750_v50, %v2557_v57  ;;  %v733_v58 = vsel %vm711_vm3, %v700_v60, %v2563_v5  ;;  %v768_v63 = vsel %vm744_vm4, %v735_v27, %v2564_v44  ;;  %v2580_v60 = vld [vmem:[#allocation14_spill] sm:$0xff]  ;;  %v2581_v27 = vld [vmem:[#allocation15_spill] sm:$0xff] }
 0x12a   :  { %593 = vrot.lane.b32.xlu1 %v562_v48, %s1506_s26  ;;  %591 = vrot.lane.b32.xlu0 %v2094_v45, %s1506_s26  ;;  %v2552_v45 = vld [vmem:[#allocation31_spill] sm:$0xff]  ;;  %v816_v6 = vsel %vm810_vm6, %v783_v54, %v2562_v9  ;;  %v766_v16 = vsel %vm744_vm4, %v733_v58, %v2565_v46  ;;  %v801_v26 = vsel %vm777_vm5, %v768_v63, %v2566_v3  ;;  %v2583_v58 = vld [vmem:[#allocation17_spill] sm:$0xff] }
 0x12b   :  { %v785_v51 = vsel %vm777_vm5, %v752_v21, %v2552_v45  ;;  %v849_v40 = vsel %vm843_vm7, %v816_v6, %v2182_v35  ;;  %v799_v55 = vsel %vm777_vm5, %v766_v16, %v2568_v24  ;;  %v2569_v35 = vld [vmem:[#allocation37_spill] sm:$0xff]  ;;  %v2575_v21 = vrot.slane %v2574_v14, 1  ;;  %v2576_v45 = vld [vmem:[#allocation12_spill] sm:$0xff] }
 0x12c   :  { %v314_v10 = vpop.permute.xlu1 %313  ;;  %v312_v20 = vpop.permute.xlu0 %311  ;;  %v818_v33 = vsel %vm810_vm6, %v785_v51, %v2558_v30  ;;  %v834_v43 = vsel %vm810_vm6, %v801_v26, %v2569_v35  ;;  %v832_v19 = vsel %vm810_vm6, %v799_v55, %v2571_v47  ;;  %v647_v36 = vsel %vm629_vm1, %v2576_v45, %v298_v7  ;;  %v2579_v30 = vld [vmem:[#allocation11_spill] sm:$0xff] }
 0x12d   :  { %v851_v38 = vsel %vm843_vm7, %v818_v33, %v2177_v13  ;;  %v867_v53 = vsel %vm843_vm7, %v834_v43, %v2196_v12  ;;  %v865_v31 = vsel %vm843_vm7, %v832_v19, %v2202_v29  ;;  %v671_v57 = vsel %vm629_vm1, %v2578_v15, %v314_v10 }
 0x12e   :  { %607 = vrot.lane.b32.xlu1 %v2553_v62, %s1497_s2  ;;  %605 = vrot.lane.b32.xlu0 %v2559_v34, %s1497_s2  ;;  %v2577_v62 = vld [vmem:[#allocation10_spill] sm:$0xff]  ;;  %v668_v33 = vsel %vm629_vm1, %v2579_v30, %v312_v20 }
 0x12f   :  { %v644_v52 = vsel %vm629_vm1, %v2577_v62, %v296_v23 }
 0x130   :  { %v604_v28 = vpop.permute.xlu1 %603  ;;  %v602_v1 = vpop.permute.xlu0 %601 }
 0x131   :  { %v884_v41 = vsel %vm876_vm8, %v851_v38, %v604_v28  ;;  %v882_v13 = vsel %vm876_vm8, %v849_v40, %v602_v1  ;;  %v2582_v28 = vld [vmem:[#allocation16_spill] sm:$0xff] }
 0x132   :  { %623 = vrot.lane.b32.xlu1 %v2567_v18, %s1497_s2  ;;  %v1250_v11 = vcombine.low %v882_v13, %v884_v41  ;;  %621 = vrot.lane.b32.xlu0 %v2570_v17, %s1497_s2 }
 0x134   :  { %v620_v49 = vpop.permute.xlu1 %619  ;;  %1343 = vmatmul.mubr.msk.bf16.vlgmr.msra.gmra.mrb[0].mxu0 %vm985_vm9, %v1250_v11  ;;  %v618_v59 = vpop.permute.xlu0 %617 }
 0x135   :  { %v900_v48 = vsel %vm876_vm8, %v867_v53, %v620_v49  ;;  %v898_v32 = vsel %vm876_vm8, %v865_v31, %v618_v59 }
 0x136   :  { %611 = vrot.lane.b32.xlu1 %v595_v42, %s1497_s2  ;;  %v1254_v2 = vcombine.low %v898_v32, %v900_v48  ;;  %609 = vrot.lane.b32.xlu0 %v2573_v61, %s1497_s2 }
 0x138   :  { %v302_v12 = vpop.permute.xlu1 %301  ;;  %1351 = vmatmul.mubr.msk.bf16.vlgmr.msra.gmra.mrb[0].mxu1 %vm985_vm9, %v1254_v2  ;;  %v300_v29 = vpop.permute.xlu0 %299 }
 0x139   :  { %v653_v23 = vsel %vm629_vm1, %v2580_v60, %v302_v12  ;;  %v650_v9 = vsel %vm629_vm1, %v2581_v27, %v300_v29 }
 0x13a   :  { %627 = vrot.lane.b32.xlu1 %v596_v0, %s1497_s2  ;;  %625 = vrot.lane.b32.xlu0 %v2575_v21, %s1497_s2 }
 0x13c   :  { %v318_v22 = vpop.permute.xlu1 %317  ;;  %v316_v50 = vpop.permute.xlu0 %315 }
 0x13d   :  { %v677_v20 = vsel %vm629_vm1, %v2582_v28, %v318_v22  ;;  %v674_v44 = vsel %vm629_vm1, %v2583_v58, %v316_v50 }
 0x140   :  { %v346_v51 = vpop.permute.xlu1 %345  ;;  %v344_v25 = vpop.permute.xlu0 %343 }
 0x141   :  { %v690_v39 = vsel %vm678_vm2, %v647_v36, %v346_v51  ;;  %v688_v37 = vsel %vm678_vm2, %v644_v52, %v344_v25 }
 0x144   :  { %v362_v54 = vpop.permute.xlu1 %361  ;;  %v360_v56 = vpop.permute.xlu0 %359 }
 0x145   :  { %v706_v34 = vsel %vm678_vm2, %v671_v57, %v362_v54  ;;  %v704_v7 = vsel %vm678_vm2, %v668_v33, %v360_v56 }
 0x148   :  { %v350_v4 = vpop.permute.xlu1 %349  ;;  %v348_v38 = vpop.permute.xlu0 %347 }
 0x149   :  { %v694_v6 = vsel %vm678_vm2, %v653_v23, %v350_v4  ;;  %v692_v10 = vsel %vm678_vm2, %v650_v9, %v348_v38 }
 0x14c   :  { %v366_v5 = vpop.permute.xlu1 %365  ;;  %v364_v40 = vpop.permute.xlu0 %363 }
 0x14d   :  { %v710_v63 = vsel %vm678_vm2, %v677_v20, %v366_v5  ;;  %v708_v41 = vsel %vm678_vm2, %v674_v44, %v364_v40 }
 0x150   :  { %v398_v1 = vpop.permute.xlu1 %397  ;;  %v396_v16 = vpop.permute.xlu0 %395 }
 0x151   :  { %v723_v46 = vsel %vm711_vm3, %v690_v39, %v398_v1  ;;  %v721_v3 = vsel %vm711_vm3, %v688_v37, %v396_v16 }
 0x154   :  { %v414_v26 = vpop.permute.xlu1 %413  ;;  %v412_v18 = vpop.permute.xlu0 %411 }
 0x155   :  { %v739_v13 = vsel %vm711_vm3, %v706_v34, %v414_v26  ;;  %v737_v42 = vsel %vm711_vm3, %v704_v7, %v412_v18 }
 0x158   :  { %v402_v24 = vpop.permute.xlu1 %401  ;;  %v400_v35 = vpop.permute.xlu0 %399 }
 0x159   :  { %v727_v55 = vsel %vm711_vm3, %v694_v6, %v402_v24  ;;  %v2382_v43 = vsel %vm711_vm3, %v692_v10, %v400_v35 }
 0x15c   :  { %v418_v11 = vpop.permute.xlu1 %417  ;;  %v416_v47 = vpop.permute.xlu0 %415 }
 0x15d   :  { %v2385_v17 = vsel %vm711_vm3, %v710_v63, %v418_v11  ;;  %v2388_v19 = vsel %vm711_vm3, %v708_v41, %v416_v47 }
 0x160   :  { %v450_v53 = vpop.permute.xlu1 %449  ;;  %v448_v49 = vpop.permute.xlu0 %447 }
 0x161   :  { %v756_v7 = vsel %vm744_vm4, %v723_v46, %v450_v53  ;;  %v754_v23 = vsel %vm744_vm4, %v721_v3, %v448_v49 }
 0x164   :  { %v466_v31 = vpop.permute.xlu1 %465  ;;  %v464_v48 = vpop.permute.xlu0 %463 }
 0x165   :  { %v772_v28 = vsel %vm744_vm4, %v739_v13, %v466_v31  ;;  %v770_v44 = vsel %vm744_vm4, %v737_v42, %v464_v48 }
 0x168   :  { %v454_v59 = vpop.permute.xlu1 %453  ;;  %v452_v32 = vpop.permute.xlu0 %451 }
 0x169   :  { %v760_v13 = vsel %vm744_vm4, %v727_v55, %v454_v59  ;;  %v758_v35 = vsel %vm744_vm4, %v2382_v43, %v452_v32 }
 0x16c   :  { %v470_v0 = vpop.permute.xlu1 %469  ;;  %v2390_v2 = vpop.permute.xlu0 %467 }
 0x170   :  { %v484_v8 = vpop.permute.xlu1 %483  ;;  %v482_v61 = vpop.permute.xlu0 %481 }
 0x171   :  { %v789_v4 = vsel %vm777_vm5, %v756_v7, %v484_v8  ;;  %v787_v27 = vsel %vm777_vm5, %v754_v23, %v482_v61  ;;  %v776_v8 = vsel %vm744_vm4, %v2385_v17, %v470_v0 }
 0x174   :  { %v500_v12 = vpop.permute.xlu1 %499  ;;  %v498_v29 = vpop.permute.xlu0 %497 }
 0x175   :  { %v805_v63 = vsel %vm777_vm5, %v772_v28, %v500_v12  ;;  %v803_v41 = vsel %vm777_vm5, %v770_v44, %v498_v29  ;;  %v774_v12 = vsel %vm744_vm4, %v2388_v19, %v2390_v2 }
 0x178   :  { %v488_v14 = vpop.permute.xlu1 %487  ;;  %v486_v21 = vpop.permute.xlu0 %485 }
 0x179   :  { %v793_v11 = vsel %vm777_vm5, %v760_v13, %v488_v14  ;;  %v791_v53 = vsel %vm777_vm5, %v758_v35, %v486_v21 }
 0x17c   :  { %v504_v22 = vpop.permute.xlu1 %503  ;;  %v502_v50 = vpop.permute.xlu0 %501 }
 0x17d   :  { %v809_v29 = vsel %vm777_vm5, %v776_v8, %v504_v22  ;;  %v807_v21 = vsel %vm777_vm5, %v774_v12, %v502_v50  ;;  %v2440_v50 = vld [vmem:[#allocation4] ss:$0 sm:$0xff] }
 0x180   :  { %v522_v45 = vpop.permute.xlu1 %521  ;;  %v520_v36 = vpop.permute.xlu0 %519 }
 0x181   :  { %v822_v9 = vsel %vm810_vm6, %v789_v4, %v522_v45  ;;  %v820_v6 = vsel %vm810_vm6, %v787_v27, %v520_v36 }
 0x184   :  { %v538_v51 = vpop.permute.xlu1 %537  ;;  %v536_v62 = vpop.permute.xlu0 %535 }
 0x185   :  { %v838_v1 = vsel %vm810_vm6, %v805_v63, %v538_v51  ;;  %v836_v16 = vsel %vm810_vm6, %v803_v41, %v536_v62 }
 0x188   :  { %v526_v52 = vpop.permute.xlu1 %525  ;;  %v524_v39 = vpop.permute.xlu0 %523 }
 0x189   :  { %v826_v49 = vsel %vm810_vm6, %v793_v11, %v526_v52  ;;  %v824_v55 = vsel %vm810_vm6, %v791_v53, %v524_v39 }
 0x18c   :  { %v542_v25 = vpop.permute.xlu1 %541  ;;  %v540_v37 = vpop.permute.xlu0 %539 }
 0x18d   :  { %v842_v45 = vsel %vm810_vm6, %v809_v29, %v542_v25  ;;  %v840_v0 = vsel %vm810_vm6, %v807_v21, %v540_v37  ;;  %v2442_v25 = vld [vmem:[#allocation6] ss:$0 sm:$0xff] }
 0x190   :  { %v574_v15 = vpop.permute.xlu1 %573  ;;  %v572_v57 = vpop.permute.xlu0 %571 }
 0x191   :  { %v855_v38 = vsel %vm843_vm7, %v822_v9, %v574_v15  ;;  %v853_v20 = vsel %vm843_vm7, %v820_v6, %v572_v57 }
 0x194   :  { %v590_v54 = vpop.permute.xlu1 %589  ;;  %v588_v30 = vpop.permute.xlu0 %587 }
 0x195   :  { %v871_v3 = vsel %vm843_vm7, %v838_v1, %v590_v54  ;;  %v869_v18 = vsel %vm843_vm7, %v836_v16, %v588_v30 }
 0x198   :  { %v578_v33 = vpop.permute.xlu1 %577  ;;  %v576_v34 = vpop.permute.xlu0 %575 }
 0x199   :  { %v859_v48 = vsel %vm843_vm7, %v826_v49, %v578_v33  ;;  %v857_v61 = vsel %vm843_vm7, %v824_v55, %v576_v34 }
 0x19c   :  { %v594_v56 = vpop.permute.xlu1 %593  ;;  %v592_v60 = vpop.permute.xlu0 %591 }
 0x19d   :  { %v875_v36 = vsel %vm843_vm7, %v842_v45, %v594_v56  ;;  %v873_v62 = vsel %vm843_vm7, %v840_v0, %v592_v60 }
 0x1a0   :  { %v608_v10 = vpop.permute.xlu1 %607  ;;  %v606_v58 = vpop.permute.xlu0 %605 }
 0x1a1   :  { %v888_v5 = vsel %vm876_vm8, %v855_v38, %v608_v10  ;;  %v886_v40 = vsel %vm876_vm8, %v853_v20, %v606_v58 }
 0x1a2   :  { %v1251_v46 = vcombine.low %v886_v40, %v888_v5 }
 0x1a4   :  { %v624_v26 = vpop.permute.xlu1 %623  ;;  %1346 = vmatprep.mubr.msk.bf16.mxu0 %vm985_vm9, %v1251_v46  ;;  %v622_v24 = vpop.permute.xlu0 %621 }
 0x1a5   :  { %v904_v42 = vsel %vm876_vm8, %v871_v3, %v624_v26  ;;  %v902_v47 = vsel %vm876_vm8, %v869_v18, %v622_v24 }
 0x1a6   :  { %v1255_v31 = vcombine.low %v902_v47, %v904_v42 }
 0x1a8   :  { %v612_v59 = vpop.permute.xlu1 %611  ;;  %1354 = vmatprep.mubr.msk.bf16.mxu1 %vm985_vm9, %v1255_v31  ;;  %v610_v32 = vpop.permute.xlu0 %609 }
 0x1a9   :  { %v892_v43 = vsel %vm876_vm8, %v859_v48, %v612_v59  ;;  %v890_v14 = vsel %vm876_vm8, %v857_v61, %v610_v32 }
 0x1aa   :  { %v1252_v17 = vcombine.low %v890_v14, %v892_v43 }
 0x1ac   :  { %v628_v51 = vpop.permute.xlu1 %627  ;;  %1347 = vmatmul.mubr.msk.bf16.gmra.mrb[4].mxu0 %vm985_vm9, %v1252_v17  ;;  %v626_v19 = vpop.permute.xlu0 %625 }
 0x1ad   :  { %v908_v52 = vsel %vm876_vm8, %v875_v36, %v628_v51  ;;  %v906_v2 = vsel %vm876_vm8, %v873_v62, %v626_v19 }
 0x1ae   :  { %v1256_v22 = vcombine.low %v906_v2, %v908_v52 }
 0x1b0   :  { %1355 = vmatmul.mubr.msk.bf16.gmra.mrb[4].mxu1 %vm985_vm9, %v1256_v22 }
 0x207   :  { %v1344_v39 = vpop.f32.mrb[0].mxu0 }
 0x208   :  { %v1120_v37 = vmul.f32 %v1344_v39, %v2440_v50  ;;  %v1048_v15 = vpop.f32.mrb[1].mxu0 }
 0x209   :  { %v1118_v57 = vmul.f32 %v2440_v50, %v1048_v15  ;;  %v1345_v54 = vpop.f32.mrb[2].mxu0 }
 0x20a   :  { %v1143_v30 = vadd.f32 %v2442_v25, %v1120_v37  ;;  %v1121_v33 = vmul.f32 %v1345_v54, %v2440_v50  ;;  %v1051_v34 = vpop.f32.mrb[3].mxu0 }
 0x20b   :  { %v1141_v56 = vadd.f32 %v2442_v25, %v1118_v57  ;;  %v1119_v7 = vmul.f32 %v2440_v50, %v1051_v34  ;;  %v1352_v60 = vpop.f32.mrb[0].mxu1 }
 0x20c   :  { %v1144_v23 = vadd.f32 %v2442_v25, %v1121_v33  ;;  %v1128_v4 = vmul.f32 %v1352_v60, %v2440_v50  ;;  %v1080_v27 = vpop.f32.mrb[1].mxu1  ;;  %v1159_v10 = vmax.f32 %v1143_v30, 0.0 }
 0x20d   :  { %v1142_v9 = vadd.f32 %v2442_v25, %v1119_v7  ;;  %v1126_v6 = vmul.f32 %v2440_v50, %v1080_v27  ;;  %v1353_v38 = vpop.f32.mrb[2].mxu1  ;;  %v1157_v44 = vmax.f32 %v1141_v56, 0.0 }
 0x20e   :  { %v1160_v28 = vmax.f32 %v1144_v23, 0.0  ;;  %v1151_v20 = vadd.f32 %v2442_v25, %v1128_v4  ;;  %v1129_v5 = vmul.f32 %v1353_v38, %v2440_v50  ;;  %v1083_v58 = vpop.f32.mrb[3].mxu1 }
 0x20f   :  { %v1158_v63 = vmax.f32 %v1142_v9, 0.0  ;;  %v1149_v40 = vadd.f32 %v2442_v25, %v1126_v6  ;;  %v1127_v41 = vmul.f32 %v2440_v50, %v1083_v58 }
 0x210   :  { %v1280_v1 = vpack.c.bf16 %v1160_v28, %v1159_v10  ;;  %v1152_v46 = vadd.f32 %v2442_v25, %v1129_v5  ;;  %v1167_v26 = vmax.f32 %v1151_v20, 0.0 }
 0x211   :  { %v1275_v16 = vpack.c.bf16 %v1158_v63, %v1157_v44  ;;  %v1150_v3 = vadd.f32 %v2442_v25, %v1127_v41  ;;  %v1165_v18 = vmax.f32 %v1149_v40, 0.0 }
 0x212   :  { %1312 = vst [vmem:[%s2504_s4 + $0x8] sm:$0xff] %v1280_v1   ;;  %v1168_v13 = vmax.f32 %v1152_v46, 0.0 }
 0x213   :  { %1276 = vst [vmem:[%s2504_s4] sm:$0xff] %v1275_v16   ;;  %v1166_v42 = vmax.f32 %v1150_v3, 0.0 }
 0x214   :  { %v1300_v24 = vpack.c.bf16 %v1168_v13, %v1167_v26 }
 0x215   :  { %v1295_v35 = vpack.c.bf16 %v1166_v42, %v1165_v18 }
 0x216   :  { %1316 = vst [vmem:[%s2504_s4 + $0x28] sm:$0xff] %v1300_v24  }
 0x217   :  { %1315 = vst [vmem:[%s2504_s4 + $0x20] sm:$0xff] %v1295_v35  }
 0x27f   :  { %v1348_v11 = vpop.f32.mrb[4].mxu0 }
 0x280   :  { %v1124_v47 = vmul.f32 %v1348_v11, %v2440_v50  ;;  %v1064_v53 = vpop.f32.mrb[5].mxu0 }
 0x281   :  { %v1122_v49 = vmul.f32 %v2440_v50, %v1064_v53  ;;  %v1349_v31 = vpop.f32.mrb[6].mxu0 }
 0x282   :  { %v1147_v55 = vadd.f32 %v2442_v25, %v1124_v47  ;;  %v1125_v48 = vmul.f32 %v1349_v31, %v2440_v50  ;;  %v1067_v59 = vpop.f32.mrb[7].mxu0 }
 0x283   :  { %v1145_v8 = vadd.f32 %v2442_v25, %v1122_v49  ;;  %v1123_v61 = vmul.f32 %v2440_v50, %v1067_v59  ;;  %v1356_v43 = vpop.f32.mrb[4].mxu1 }
 0x284   :  { %v1148_v32 = vadd.f32 %v2442_v25, %v1125_v48  ;;  %v1132_v12 = vmul.f32 %v1356_v43, %v2440_v50  ;;  %v1096_v29 = vpop.f32.mrb[5].mxu1  ;;  %v1163_v17 = vmax.f32 %v1147_v55, 0.0 }
 0x285   :  { %v1146_v14 = vadd.f32 %v2442_v25, %v1123_v61  ;;  %v1130_v21 = vmul.f32 %v2440_v50, %v1096_v29  ;;  %v1357_v45 = vpop.f32.mrb[6].mxu1  ;;  %v1161_v52 = vmax.f32 %v1145_v8, 0.0 }
 0x286   :  { %v1164_v0 = vmax.f32 %v1148_v32, 0.0  ;;  %v1155_v36 = vadd.f32 %v2442_v25, %v1132_v12  ;;  %v1133_v51 = vmul.f32 %v1357_v45, %v2440_v50  ;;  %v1099_v62 = vpop.f32.mrb[7].mxu1 }
 0x287   :  { %v1162_v19 = vmax.f32 %v1146_v14, 0.0  ;;  %v1153_v2 = vadd.f32 %v2442_v25, %v1130_v21  ;;  %v1131_v22 = vmul.f32 %v2440_v50, %v1099_v62 }
 0x288   :  { %v1290_v39 = vpack.c.bf16 %v1164_v0, %v1163_v17  ;;  %v1156_v37 = vadd.f32 %v2442_v25, %v1133_v51  ;;  %v1171_v54 = vmax.f32 %v1155_v36, 0.0 }
 0x289   :  { %v1285_v15 = vpack.c.bf16 %v1162_v19, %v1161_v52  ;;  %v1154_v57 = vadd.f32 %v2442_v25, %v1131_v22  ;;  %v1169_v33 = vmax.f32 %v1153_v2, 0.0 }
 0x28a   :  { %1314 = vst [vmem:[%s2504_s4 + $0x18] sm:$0xff] %v1290_v39   ;;  %v1172_v30 = vmax.f32 %v1156_v37, 0.0 }
 0x28b   :  { %1313 = vst [vmem:[%s2504_s4 + $0x10] sm:$0xff] %v1285_v15   ;;  %v1170_v34 = vmax.f32 %v1154_v57, 0.0 }
 0x28c   :  { %v1310_v56 = vpack.c.bf16 %v1172_v30, %v1171_v54 }
 0x28d   :  { %v1305_v50 = vpack.c.bf16 %v1170_v34, %v1169_v33 }
 0x28e   :  { %1318 = vst [vmem:[%s2504_s4 + $0x38] sm:$0xff] %v1310_v56  }
 0x28f   :  { %1317 = vst [vmem:[%s2504_s4 + $0x30] sm:$0xff] %v1305_v50  }
 0x290   :  { %1209 = vsyncpa [#allocation3], 1 }
 0x291   :  { %1210 = vsyncpa [#allocation5], 1 }

// kernel: _lambda_.6
= control target key start
LH: loop header
LB: loop body
LE: loop exit
PB: predicated region body
PF: predicated region fallthrough
CT: control target
= control target key end

     0   :  { %s3362_s1 = inlined_call_operand.vmem [shape: bf16[3,384,128], index: 1, kind: input, shape index: {}]   ;;  %s3363_s0 = inlined_call_operand.vmem [shape: bf16[2,10,10,128], index: 0, kind: input, shape index: {}]   ;;  %s3364_s2 = inlined_call_operand.vmem [shape: f32[1,128], index: 2, kind: input, shape index: {}]   ;;  %s3365_s3 = inlined_call_operand.vmem [shape: f32[1,128], index: 3, kind: input, shape index: {}]   ;;  %s3366_s4 = inlined_call_operand.vmem [shape: bf16[2,8,8,128], index: 4, kind: output, shape index: {}]  }
   0x1   :  { %v2447_v0 = vld [vmem:[%s3362_s1 + $0x100] sm:$0xff]   ;;  %v2450_v3 = vld [vmem:[%s3362_s1 + $0x108] sm:$0xff]   ;;  %v2453_v6 = vld [vmem:[%s3362_s1 + $0x110] sm:$0xff]  }
   0x2   :  { %v2448_v1 = vld [vmem:[%s3362_s1 + $0x140] sm:$0xff]   ;;  %2015 = vmatprep.subr.bf16.mxu0 %v2447_v0  ;;  %v2451_v4 = vld [vmem:[%s3362_s1 + $0x148] sm:$0xff]   ;;  %v2454_v7 = vld [vmem:[%s3362_s1 + $0x150] sm:$0xff]  }
   0x3   :  { %v2449_v2 = vld [vmem:[%s3362_s1 + $0xc0] sm:$0xff]   ;;  %2255 = vmatprep.subr.bf16.mxu1 %v2448_v1  ;;  %v2452_v5 = vld [vmem:[%s3362_s1 + $0xc8] sm:$0xff]   ;;  %v2455_v8 = vld [vmem:[%s3362_s1 + $0xd0] sm:$0xff]  }
   0x4   :  { %2016 = vmatpush3.bf16.msra.mxu0 %v2449_v2  ;;  %2256 = vmatpush3.bf16.msra.mxu1 %v2448_v1  ;;  %v2456_v9 = vld [vmem:[%s3362_s1 + $0x118] sm:$0xff]   ;;  %v2459_v12 = vld [vmem:[%s3362_s1 + $0x120] sm:$0xff]   ;;  %v2462_v15 = vld [vmem:[%s3362_s1 + $0x128] sm:$0xff]  }
   0x5   :  { %2017 = vmatprep.subr.bf16.mxu0 %v2450_v3  ;;  %2257 = vmatprep.subr.bf16.mxu1 %v2451_v4  ;;  %v2457_v10 = vld [vmem:[%s3362_s1 + $0x158] sm:$0xff]   ;;  %v2460_v13 = vld [vmem:[%s3362_s1 + $0x160] sm:$0xff]   ;;  %v2463_v16 = vld [vmem:[%s3362_s1 + $0x168] sm:$0xff]  }
   0x6   :  { %v2458_v11 = vld [vmem:[%s3362_s1 + $0xd8] sm:$0xff]   ;;  %v2461_v14 = vld [vmem:[%s3362_s1 + $0xe0] sm:$0xff]   ;;  %v2464_v17 = vld [vmem:[%s3362_s1 + $0xe8] sm:$0xff]  }
   0x7   :  { %v2465_v18 = vld [vmem:[%s3362_s1 + $0x130] sm:$0xff]   ;;  %v2468_v21 = vld [vmem:[%s3362_s1 + $0x138] sm:$0xff]   ;;  %v2654_v23 = vld [vmem:[%s3363_s0 + $0x8] sm:$0xf] }
   0x8   :  { %2018 = vmatpush3.bf16.msra.mxu0 %v2452_v5  ;;  %2258 = vmatpush3.bf16.msra.mxu1 %v2451_v4  ;;  %v2466_v19 = vld [vmem:[%s3362_s1 + $0x170] sm:$0xff]   ;;  %v2469_v22 = vld [vmem:[%s3362_s1 + $0x178] sm:$0xff]   ;;  %v21_v24 = vld [vmem:[%s3363_s0 + $0xc] sm:$0x1] }
   0x9   :  { %2019 = vmatprep.subr.bf16.mxu0 %v2453_v6  ;;  %2259 = vmatprep.subr.bf16.mxu1 %v2454_v7  ;;  %v2467_v20 = vld [vmem:[%s3362_s1 + $0xf0] sm:$0xff]   ;;  %v2668_v27 = vcombine.low %v2654_v23, %v21_v24  ;;  %v2673_v28 = vld [vmem:[%s3363_s0 + $0x18] sm:$0xf]  ;;  %v25_v29 = vld [vmem:[%s3363_s0 + $0x1c] sm:$0x1] }
   0xa   :  { %v2662_v25 = vld [vmem:[%s3363_s0 + $0x10] sm:$0xf]  ;;  %v23_v26 = vld [vmem:[%s3363_s0 + $0x14] sm:$0x1]  ;;  %v1727_v31 = vcombine.low %v2673_v28, %v25_v29  ;;  %v2683_v32 = vld [vmem:[%s3363_s0 + $0x20] sm:$0xf] }
   0xb   :  { %v1726_v30 = vcombine.low %v2662_v25, %v23_v26  ;;  %v27_v33 = vld [vmem:[%s3363_s0 + $0x24] sm:$0x1]  ;;  %v2470_v34 = vld [vmem:[%s3362_s1 + $0xf8] sm:$0xff]   ;;  %v146_v35 = vshrl.u32 %v2668_v27, 16  ;;  %v148_v36 = vshll.u32 %v2668_v27, 16  ;;  %v251_v37 = vrot.slane %v2668_v27, 1 }
   0xc   :  { %2020 = vmatpush3.bf16.msra.mxu0 %v2455_v8  ;;  %2260 = vmatpush3.bf16.msra.mxu1 %v2454_v7  ;;  %v2695_v38 = vcombine.low %v2683_v32, %v27_v33  ;;  %v253_v42 = vrot.slane %v1727_v31, 1  ;;  %v2476_v45 = vld [vmem:[%s3362_s1 + $0x40] sm:$0xff]   ;;  %v1790_v54 = vcombine.low %v2654_v23, %v2662_v25  ;;  %v2480_v56 = vld [vmem:[%s3362_s1 + $0x48] sm:$0xff]   ;;  %v160_v57 = vshrl.u32 %v1727_v31, 16  ;;  %v2741_v1 = vld [vmem:[%s3363_s0 + $0x30] sm:$0xf] }
   0xd   :  { %2021 = vmatprep.subr.bf16.mxu0 %v2456_v9  ;;  %2261 = vmatprep.subr.bf16.mxu1 %v2457_v10  ;;  %v153_v39 = vshrl.u32 %v1726_v30, 16  ;;  %v155_v40 = vshll.u32 %v1726_v30, 16  ;;  %v252_v41 = vrot.slane %v1726_v30, 1  ;;  %v150_v43 = vrot.slane %v148_v36, 1  ;;  %v2477_v46 = vld [vmem:[%s3362_s1 + $0x1c0] sm:$0xff]   ;;  %v2481_v62 = vld [vmem:[%s3362_s1 + $0x8] sm:$0xff]  }
   0xe   :  { %v254_v44 = vrot.slane %v2695_v38, 1  ;;  %v2478_v50 = vld [vmem:[%s3362_s1] sm:$0xff]   ;;  %v162_v58 = vshll.u32 %v1727_v31, 16  ;;  %v167_v59 = vshrl.u32 %v2695_v38, 16  ;;  %v169_v60 = vshll.u32 %v2695_v38, 16  ;;  %v2490_v29 = vld [vmem:[%s3362_s1 + $0x188] sm:$0xff]  }
   0xf   :  { %v157_v47 = vrot.slane %v155_v40, 1  ;;  %v1792_v48 = vcombine.low %v251_v37, %v252_v41  ;;  %v2706_v49 = vcombine.low %v252_v41, %v253_v42  ;;  %v2711_v51 = vor.u32 %v150_v43, %v146_v35  ;;  %v2479_v55 = vld [vmem:[%s3362_s1 + $0x180] sm:$0xff]   ;;  %v2733_v63 = vld [vmem:[%s3363_s0 + $0x28] sm:$0xf]  ;;  %v29_v0 = vld [vmem:[%s3363_s0 + $0x2c] sm:$0x1] }
  0x10   :  { %2022 = vmatpush3.bf16.msra.mxu0 %v2458_v11  ;;  %2262 = vmatpush3.bf16.msra.mxu1 %v2457_v10  ;;  %v1795_v52 = vcombine.low %v253_v42, %v254_v44  ;;  %v164_v2 = vrot.slane %v162_v58, 1  ;;  %v171_v3 = vrot.slane %v169_v60, 1  ;;  %v31_v4 = vld [vmem:[%s3363_s0 + $0x34] sm:$0x1]  ;;  %v1729_v5 = vcombine.low %v2733_v63, %v29_v0  ;;  %v2750_v6 = vld [vmem:[%s3363_s0 + $0x38] sm:$0xf] }
  0x11   :  { %2023 = vmatprep.subr.bf16.mxu0 %v2459_v12  ;;  %2263 = vmatprep.subr.bf16.mxu1 %v2460_v13  ;;  %v2713_v53 = vor.u32 %v157_v47, %v153_v39  ;;  %v1730_v7 = vcombine.low %v2741_v1, %v31_v4  ;;  %v33_v8 = vld [vmem:[%s3363_s0 + $0x3c] sm:$0x1]  ;;  %v2759_v9 = vld [vmem:[%s3363_s0 + $0x40] sm:$0xf]  ;;  %v35_v10 = vld [vmem:[%s3363_s0 + $0x44] sm:$0x1]  ;;  %v1793_v30 = vcombine.low %v2673_v28, %v2683_v32 }
  0x12   :  { %2271 = vmatprep.mubr.bf16.mxu1 %v1792_v48  ;;  %v2764_v11 = vor.u32 %v164_v2, %v160_v57  ;;  %v2766_v12 = vor.u32 %v171_v3, %v167_v59  ;;  %v2491_v31 = vld [vmem:[%s3362_s1 + $0x58] sm:$0xff]   ;;  %v174_v35 = vshrl.u32 %v1729_v5, 16  ;;  %v176_v36 = vshll.u32 %v1729_v5, 16  ;;  %v2843_v57 = vld [vmem:[%s3363_s0 + $0x70] sm:$0xf]  ;;  %v2498_v60 = vld [vmem:[%s3362_s1 + $0x60] sm:$0xff]  }
  0x13   :  { %v1791_v61 = vcombine.low %v2711_v51, %v2713_v53  ;;  %v181_v38 = vshrl.u32 %v1730_v7, 16  ;;  %v183_v39 = vshll.u32 %v1730_v7, 16  ;;  %v2804_v40 = vld [vmem:[%s3363_s0 + $0x58] sm:$0xf]  ;;  %v41_v41 = vld [vmem:[%s3363_s0 + $0x5c] sm:$0x1] }
  0x14   :  { %2024 = vmatpush3.bf16.msra.mxu0 %v2461_v14  ;;  %2264 = vmatpush3.bf16.msra.mxu1 %v2460_v13  ;;  %v255_v13 = vrot.slane %v1729_v5, 1  ;;  %v2769_v14 = vcombine.low %v2750_v6, %v33_v8  ;;  %v2492_v42 = vld [vmem:[%s3362_s1 + $0x18] sm:$0xff]   ;;  %v178_v43 = vrot.slane %v176_v36, 1  ;;  %v47_v58 = vld [vmem:[%s3363_s0 + $0x74] sm:$0x1]  ;;  %v2500_v5 = vld [vmem:[%s3362_s1 + $0x20] sm:$0xff]  }
  0x15   :  { %2025 = vmatprep.subr.bf16.mxu0 %v2462_v15  ;;  %2265 = vmatprep.subr.bf16.mxu1 %v2463_v16  ;;  %v2487_v15 = vld [vmem:[%s3362_s1 + $0x50] sm:$0xff]   ;;  %v185_v47 = vrot.slane %v183_v39, 1  ;;  %v2862_v2 = vcombine.low %v2843_v57, %v47_v58 }
  0x16   :  { %649 = vmatprep.mubr.bf16.mxu0 %v1791_v61  ;;  %v2501_v3 = vld [vmem:[%s3362_s1 + $0x190] sm:$0xff]  }
  0x18   :  { %2026 = vmatpush3.bf16.msra.mxu0 %v2464_v17  ;;  %2266 = vmatpush3.bf16.msra.mxu1 %v2463_v16  ;;  %v256_v16 = vrot.slane %v1730_v7, 1  ;;  %v2775_v17 = vcombine.low %v2759_v9, %v35_v10  ;;  %v1796_v10 = vcombine.low %v2733_v63, %v2741_v1 }
  0x19   :  { %2027 = vmatprep.subr.bf16.mxu0 %v2465_v18  ;;  %2267 = vmatprep.subr.bf16.mxu1 %v2466_v19  ;;  %v2488_v18 = vld [vmem:[%s3362_s1 + $0x1c8] sm:$0xff]  }
  0x1a   :  { %v1798_v24 = vcombine.low %v255_v13, %v256_v16  ;;  %v3368_v26 = vrot.slane %v2775_v17, 1 }
  0x1c   :  { %2028 = vmatpush3.bf16.msra.mxu0 %v2467_v20  ;;  %2268 = vmatpush3.bf16.msra.mxu1 %v2466_v19  ;;  %v1794_v19 = vcombine.low %v2764_v11, %v2766_v12  ;;  %v257_v20 = vrot.slane %v2769_v14, 1 }
  0x1d   :  { %2029 = vmatprep.subr.bf16.mxu0 %v2468_v21  ;;  %2269 = vmatprep.subr.bf16.mxu1 %v2469_v22  ;;  %v2489_v21 = vld [vmem:[%s3362_s1 + $0x10] sm:$0xff]  }
  0x1e   :  { %v2797_v33 = vcombine.low %v256_v16, %v257_v20 }
  0x20   :  { %2030 = vmatpush3.bf16.msra.mxu0 %v2470_v34  ;;  %2270 = vmatpush3.bf16.msra.mxu1 %v2469_v22  ;;  %v2786_v22 = vcombine.low %v254_v44, %v255_v13  ;;  %v1801_v34 = vcombine.low %v257_v20, %v3368_v26  ;;  %v2815_v44 = vld [vmem:[%s3363_s0 + $0x60] sm:$0xf]  ;;  %v262_v13 = vrot.slane %v2862_v2, 1  ;;  %v188_v20 = vshrl.u32 %v2769_v14, 16 }
  0x21   :  { %2095 = vmatprep.subr.bf16.mxu1 %v2476_v45  ;;  %2175 = vmatprep.subr.bf16.mxu0 %v2477_v46  ;;  %v43_v45 = vld [vmem:[%s3363_s0 + $0x64] sm:$0x1]  ;;  %v2821_v46 = vcombine.low %v2804_v40, %v41_v41 }
  0x22   :  { %v2824_v48 = vcombine.low %v2815_v44, %v43_v45  ;;  %v2927_v45 = vld [vmem:[%s3363_s0 + $0x90] sm:$0xf] }
  0x23   :  { %2272 = vmatmul.mubr.bf16.vlgmr.msra.gmra.mrb[0].mxu1 %v1795_v52  ;;  %650 = vmatmul.mubr.bf16.vlgmr.msra.gmra.mrb[0].mxu0 %v1790_v54  ;;  %v45_v52 = vld [vmem:[%s3363_s0 + $0x6c] sm:$0x1]  ;;  %v2499_v54 = vld [vmem:[%s3362_s1 + $0x1d0] sm:$0xff]  }
  0x24   :  { %2096 = vmatpush3.bf16.msra.mxu1 %v2478_v50  ;;  %2176 = vmatpush3.bf16.msra.mxu0 %v2479_v55  ;;  %v2829_v50 = vld [vmem:[%s3363_s0 + $0x68] sm:$0xf]  ;;  %v2837_v55 = vor.u32 %v178_v43, %v174_v35  ;;  %v260_v0 = vrot.slane %v2824_v48, 1  ;;  %v53_v43 = vld [vmem:[%s3363_s0 + $0x8c] sm:$0x1] }
  0x25   :  { %2097 = vmatprep.subr.bf16.mxu1 %v2480_v56  ;;  %2177 = vmatprep.subr.bf16.mxu0 %v2488_v18  ;;  %v259_v56 = vrot.slane %v2821_v46, 1  ;;  %v2849_v59 = vcombine.low %v2829_v50, %v45_v52  ;;  %v2856_v61 = vcombine.low %v2815_v44, %v2829_v50 }
  0x26   :  { %657 = vmatprep.mubr.bf16.mxu0 %v1794_v19  ;;  %2275 = vmatprep.mubr.bf16.mxu1 %v1798_v24  ;;  %v2503_v19 = vld [vmem:[%s3362_s1 + $0x28] sm:$0xff]   ;;  %v357_v24 = vshrl.u32 %v2775_v17, 16 }
  0x27   :  { %v261_v4 = vrot.slane %v2849_v59, 1  ;;  %v1804_v8 = vcombine.low %v259_v56, %v260_v0 }
  0x28   :  { %2098 = vmatpush3.bf16.msra.mxu1 %v2481_v62  ;;  %2178 = vmatpush3.bf16.msra.mxu0 %v2490_v29  ;;  %v2858_v62 = vor.u32 %v185_v47, %v181_v38  ;;  %v359_v29 = vshll.u32 %v2775_v17, 16  ;;  %v55_v47 = vld [vmem:[%s3363_s0 + $0x94] sm:$0x1] }
  0x29   :  { %2099 = vmatprep.subr.bf16.mxu1 %v2487_v15  ;;  %2179 = vmatprep.subr.bf16.mxu0 %v2499_v54  ;;  %v2502_v15 = vld [vmem:[%s3362_s1 + $0x68] sm:$0xff]   ;;  %v2881_v16 = vcombine.low %v260_v0, %v261_v4  ;;  %v1807_v18 = vcombine.low %v261_v4, %v262_v13  ;;  %v2509_v4 = vld [vmem:[%s3362_s1 + $0x70] sm:$0xff]  }
  0x2a   :  { %v1797_v7 = vcombine.low %v2837_v55, %v2858_v62  ;;  %v361_v38 = vrot.slane %v359_v29, 1 }
  0x2b   :  { %2276 = vmatmul.mubr.bf16.gmra.mrb[4].mxu1 %v1801_v34  ;;  %658 = vmatmul.mubr.bf16.gmra.mrb[4].mxu0 %v1793_v30  ;;  %v2893_v30 = vld [vmem:[%s3363_s0 + $0x78] sm:$0xf]  ;;  %v2901_v34 = vld [vmem:[%s3363_s0 + $0x80] sm:$0xf] }
  0x2c   :  { %2100 = vmatpush3.bf16.msra.mxu1 %v2489_v21  ;;  %2180 = vmatpush3.bf16.msra.mxu0 %v2501_v3  ;;  %v190_v21 = vshll.u32 %v2769_v14, 16  ;;  %v51_v14 = vld [vmem:[%s3363_s0 + $0x84] sm:$0x1]  ;;  %v2908_v35 = vcombine.low %v2843_v57, %v2893_v30 }
  0x2d   :  { %2101 = vmatprep.subr.bf16.mxu1 %v2491_v31  ;;  %665 = vmatprep.mubr.bf16.mxu0 %v1797_v7  ;;  %v49_v31 = vld [vmem:[%s3363_s0 + $0x7c] sm:$0x1]  ;;  %v2914_v41 = vcombine.low %v2901_v34, %v51_v14  ;;  %v1799_v7 = vcombine.low %v2750_v6, %v2759_v9  ;;  %v202_v14 = vshrl.u32 %v2821_v46, 16 }
  0x2e   :  { %2279 = vmatprep.mubr.bf16.mxu1 %v1804_v8  ;;  %v192_v36 = vrot.slane %v190_v21, 1  ;;  %v2911_v39 = vcombine.low %v2893_v30, %v49_v31 }
  0x2f   :  { %v264_v3 = vrot.slane %v2914_v41, 1 }
  0x30   :  { %2102 = vmatpush3.bf16.msra.mxu1 %v2492_v42  ;;  %v2919_v42 = vld [vmem:[%s3363_s0 + $0x88] sm:$0xf]  ;;  %v2939_v58 = vor.u32 %v192_v36, %v188_v20  ;;  %v263_v0 = vrot.slane %v2911_v39, 1 }
  0x31   :  { %2103 = vmatprep.subr.bf16.mxu1 %v2498_v60  ;;  %v2933_v52 = vcombine.low %v2919_v42, %v53_v43  ;;  %v2937_v54 = vcombine.low %v2901_v34, %v2919_v42  ;;  %v2941_v60 = vor.u32 %v361_v38, %v357_v24  ;;  %v2512_v24 = vld [vmem:[%s3362_s1 + $0x198] sm:$0xff]   ;;  %v209_v43 = vshrl.u32 %v2824_v48, 16 }
  0x32   :  { %v1810_v20 = vcombine.low %v263_v0, %v264_v3  ;;  %v2966_v29 = vcombine.low %v262_v13, %v263_v0  ;;  %v2514_v38 = vld [vmem:[%s3362_s1 + $0x38] sm:$0xff]   ;;  %v204_v13 = vshll.u32 %v2821_v46, 16  ;;  %v18_v0 = vld [vmem:[%s3363_s0] sm:$0xf] }
  0x33   :  { %666 = vmatmul.mubr.bf16.gmra.mrb[8].mxu0 %v1796_v10  ;;  %2280 = vmatmul.mubr.bf16.gmra.mrb[8].mxu1 %v1807_v18  ;;  %v265_v8 = vrot.slane %v2933_v52, 1  ;;  %v2955_v10 = vcombine.low %v2927_v45, %v55_v47  ;;  %v1800_v18 = vcombine.low %v2939_v58, %v2941_v60  ;;  %v211_v47 = vshll.u32 %v2824_v48, 16  ;;  %v2518_v48 = vld [vmem:[%s3362_s1 + $0x80] sm:$0xff]  }
  0x34   :  { %2104 = vmatpush3.bf16.msra.mxu1 %v2500_v5  ;;  %v2510_v5 = vld [vmem:[%s3362_s1 + $0x1d8] sm:$0xff]   ;;  %2283 = vmatprep.mubr.bf16.mxu1 %v1810_v20 }
  0x35   :  { %2105 = vmatprep.subr.bf16.mxu1 %v2502_v15  ;;  %v2511_v15 = vld [vmem:[%s3362_s1 + $0x30] sm:$0xff]   ;;  %2181 = vmatprep.subr.bf16.mxu0 %v2510_v5  ;;  %v3367_v21 = vrot.slane %v2955_v10, 1  ;;  %v2968_v31 = vcombine.low %v264_v3, %v265_v8  ;;  %v19_v3 = vld [vmem:[%s3363_s0 + $0x4] sm:$0x1]  ;;  %v213_v5 = vrot.slane %v211_v47, 1  ;;  %v218_v47 = vshll.u32 %v2849_v59, 16 }
  0x36   :  { %673 = vmatprep.mubr.bf16.mxu0 %v1800_v18  ;;  %2182 = vmatpush3.bf16.msra.mxu0 %v2512_v24 }
  0x37   :  { %v1813_v36 = vcombine.low %v265_v8, %v3367_v21  ;;  %v2519_v8 = vld [vmem:[%s3362_s1 + $0x1e0] sm:$0xff]   ;;  %v3000_v20 = vor.u32 %v213_v5, %v209_v43  ;;  %v220_v5 = vrot.slane %v218_v47, 1  ;;  %v230_v21 = vshrl.u32 %v2911_v39, 16 }
  0x38   :  { %2106 = vmatpush3.bf16.msra.mxu1 %v2503_v19  ;;  %v2513_v19 = vld [vmem:[%s3362_s1 + $0x78] sm:$0xff]   ;;  %2183 = vmatprep.subr.bf16.mxu0 %v2519_v8 }
  0x39   :  { %2107 = vmatprep.subr.bf16.mxu1 %v2509_v4  ;;  %v206_v4 = vrot.slane %v204_v13, 1  ;;  %v216_v13 = vshrl.u32 %v2849_v59, 16  ;;  %v1838_v59 = vcombine.low %v18_v0, %v2654_v23  ;;  %v237_v23 = vshrl.u32 %v2914_v41, 16 }
  0x3b   :  { %674 = vmatmul.mubr.bf16.gmra.mrb[12].mxu0 %v1799_v7  ;;  %2284 = vmatmul.mubr.bf16.gmra.mrb[12].mxu1 %v1813_v36  ;;  %v2988_v7 = vcombine.low %v18_v0, %v19_v3  ;;  %v2998_v18 = vor.u32 %v206_v4, %v202_v14  ;;  %v2520_v36 = vld [vmem:[%s3362_s1 + $0x1a0] sm:$0xff]   ;;  %v225_v14 = vshll.u32 %v2862_v2, 16  ;;  %v2524_v4 = vld [vmem:[%s3362_s1 + $0x1e8] sm:$0xff]   ;;  %v239_v0 = vshll.u32 %v2914_v41, 16  ;;  %v2530_v41 = vld [vmem:[%s3362_s1 + $0x1b0] sm:$0xff]  }
  0x3c   :  { %2108 = vmatpush3.bf16.msra.mxu1 %v2511_v15  ;;  %v1802_v15 = vcombine.low %v2804_v40, %v2815_v44  ;;  %v223_v44 = vshrl.u32 %v2862_v2, 16  ;;  %2184 = vmatpush3.bf16.msra.mxu0 %v2520_v36  ;;  %v2525_v2 = vld [vmem:[%s3362_s1 + $0x1a8] sm:$0xff]   ;;  %v3022_v36 = vor.u32 %v220_v5, %v216_v13  ;;  %v366_v5 = vshll.u32 %v2955_v10, 16 }
  0x3d   :  { %2109 = vmatprep.subr.bf16.mxu1 %v2513_v19  ;;  %v139_v24 = vshrl.u32 %v2988_v7, 16  ;;  %v141_v19 = vshll.u32 %v2988_v7, 16  ;;  %v1803_v43 = vcombine.low %v2998_v18, %v3000_v20  ;;  %2185 = vmatprep.subr.bf16.mxu0 %v2524_v4  ;;  %v2528_v4 = vld [vmem:[%s3362_s1 + $0x90] sm:$0xff]  }
  0x3f   :  { %v143_v3 = vrot.slane %v141_v19, 1  ;;  %681 = vmatprep.mubr.bf16.mxu0 %v1803_v43  ;;  %v232_v19 = vshll.u32 %v2911_v39, 16  ;;  %v1805_v43 = vcombine.low %v2829_v50, %v2843_v57  ;;  %v368_v57 = vrot.slane %v366_v5, 1 }
  0x40   :  { %2110 = vmatpush3.bf16.msra.mxu1 %v2514_v38  ;;  %v227_v38 = vrot.slane %v225_v14, 1  ;;  %v3034_v14 = vcombine.low %v2713_v53, %v2764_v11  ;;  %2186 = vmatpush3.bf16.msra.mxu0 %v2525_v2  ;;  %v244_v53 = vshrl.u32 %v2933_v52, 16  ;;  %v246_v11 = vshll.u32 %v2933_v52, 16 }
  0x41   :  { %2287 = vmatprep.subr.bf16.mxu1 %v2518_v48  ;;  %v144_v8 = vor.u32 %v143_v3, %v139_v24  ;;  %v2523_v24 = vld [vmem:[%s3362_s1 + $0x88] sm:$0xff]   ;;  %v234_v39 = vrot.slane %v232_v19, 1  ;;  %v1841_v2 = vcombine.low %v2662_v25, %v2673_v28  ;;  %v1845_v19 = vcombine.low %v2766_v12, %v2837_v55  ;;  %v2533_v25 = vld [vmem:[%s3362_s1 + $0x98] sm:$0xff]  }
  0x42   :  { %v3024_v26 = vor.u32 %v227_v38, %v223_v44  ;;  %v241_v44 = vrot.slane %v239_v0, 1  ;;  %v248_v52 = vrot.slane %v246_v11, 1  ;;  %v364_v38 = vshrl.u32 %v2955_v10, 16  ;;  %v2548_v11 = vld [vmem:[%s3362_s1 + $0xb8] sm:$0xff]  }
  0x43   :  { %682 = vmatmul.mubr.bf16.gmra.mrb[16].mxu0 %v1802_v15  ;;  %v1839_v47 = vcombine.low %v144_v8, %v2711_v51  ;;  %v2529_v15 = vld [vmem:[%s3362_s1 + $0x1f0] sm:$0xff]   ;;  %v3044_v51 = vor.u32 %v234_v39, %v230_v21  ;;  %v2534_v21 = vld [vmem:[%s3362_s1 + $0x1f8] sm:$0xff]   ;;  %v1808_v28 = vcombine.low %v2893_v30, %v2901_v34  ;;  %v1848_v30 = vcombine.low %v2858_v62, %v2939_v58  ;;  %v37_v58 = vld [vmem:[%s3363_s0 + $0x4c] sm:$0x1] }
  0x44   :  { %v1806_v13 = vcombine.low %v3022_v36, %v3024_v26  ;;  %2187 = vmatprep.subr.bf16.mxu0 %v2529_v15  ;;  %v3050_v3 = vor.u32 %v241_v44, %v237_v23  ;;  %v2535_v8 = vld [vmem:[%s3362_s1 + $0x1b8] sm:$0xff]   ;;  %v3081_v23 = vld [vmem:[%s3362_s1 + $0x200] sm:$0xff]   ;;  %v3083_v0 = vor.u32 %v248_v52, %v244_v53  ;;  %v1844_v15 = vcombine.low %v2683_v32, %v2733_v63  ;;  %v2541_v44 = vld [vmem:[%s3362_s1 + $0xa8] sm:$0xff]  }
  0x45   :  { %1035 = vmatprep.mubr.bf16.mxu1 %v1839_v47  ;;  %2188 = vmatpush3.bf16.msra.mxu0 %v2530_v41  ;;  %v3085_v47 = vor.u32 %v368_v57, %v364_v38  ;;  %v1811_v41 = vcombine.low %v2919_v42, %v2927_v45  ;;  %v2544_v32 = vld [vmem:[%s3362_s1 + $0xb0] sm:$0xff]   ;;  %v1847_v63 = vcombine.low %v2741_v1, %v2750_v6  ;;  %v36_v42 = vld [vmem:[%s3363_s0 + $0x48] sm:$0xf]  ;;  %v2551_v52 = vld [vmem:[%s3362_s1 + $0x220] sm:$0xff]   ;;  %v250_v57 = vrot.slane %v2988_v7, 1 }
  0x46   :  { %1036 = vmatmul.mubr.bf16.vlgmr.msra.gmra.mrb[16].mxu1 %v1838_v59  ;;  %689 = vmatprep.mubr.bf16.mxu0 %v1806_v13  ;;  %v1809_v50 = vcombine.low %v3044_v51, %v3050_v3  ;;  %v3069_v59 = vld [vmem:[%s3363_s0 + $0x50] sm:$0xf]  ;;  %v3128_v1 = vcombine.low %v36_v42, %v37_v58  ;;  %v3133_v6 = vld [vmem:[%s3362_s1 + $0x208] sm:$0xff]   ;;  %v1857_v5 = vcombine.low %v3024_v26, %v3044_v51 }
  0x47   :  { %2288 = vmatpush3.bf16.msra.mxu1 %v2518_v48  ;;  %1043 = vmatprep.mubr.bf16.mxu1 %v3034_v14  ;;  %v39_v48 = vld [vmem:[%s3363_s0 + $0x54] sm:$0x1]  ;;  %v1812_v12 = vcombine.low %v3083_v0, %v3085_v47  ;;  %v2552_v26 = vld [vmem:[%s3362_s1 + $0x228] sm:$0xff]   ;;  %v1860_v51 = vcombine.low %v3050_v3, %v3083_v0  ;;  %v2556_v3 = vld [vmem:[%s3362_s1 + $0x238] sm:$0xff]  }
  0x48   :  { %2289 = vmatprep.subr.bf16.mxu1 %v2523_v24  ;;  %2189 = vmatprep.subr.bf16.mxu0 %v2534_v21  ;;  %v3088_v39 = vcombine.low %v3069_v59, %v39_v48 }
  0x49   :  { %2190 = vmatpush3.bf16.msra.mxu0 %v2535_v8  ;;  %v1840_v8 = vcombine.low %v250_v57, %v251_v37 }
  0x4a   :  { %2319 = vmatprep.subr.bf16.mxu0 %v3081_v23  ;;  %v197_v55 = vshll.u32 %v3088_v39, 16  ;;  %v195_v34 = vshrl.u32 %v3088_v39, 16  ;;  %v258_v37 = vrot.slane %v3088_v39, 1 }
  0x4b   :  { %690 = vmatmul.mubr.bf16.gmra.mrb[20].mxu0 %v1805_v43  ;;  %2290 = vmatpush3.bf16.msra.mxu1 %v2523_v24  ;;  %v2538_v24 = vld [vmem:[%s3362_s1 + $0xa0] sm:$0xff]   ;;  %v1210_v43 = vshll.u32 %v3128_v1, 16 }
  0x4c   :  { %697 = vmatprep.mubr.bf16.mxu0 %v1809_v50  ;;  %2291 = vmatprep.subr.bf16.mxu1 %v2528_v4  ;;  %v199_v13 = vrot.slane %v197_v55, 1  ;;  %v2553_v50 = vld [vmem:[%s3362_s1 + $0x230] sm:$0xff]  }
  0x4e   :  { %1044 = vmatmul.mubr.bf16.gmra.mrb[20].mxu1 %v1841_v2  ;;  %v200_v53 = vor.u32 %v199_v13, %v195_v34 }
  0x4f   :  { %1051 = vmatprep.mubr.bf16.mxu1 %v1845_v19  ;;  %2292 = vmatpush3.bf16.msra.mxu1 %v2528_v4  ;;  %v3145_v4 = vld [vmem:[%s3362_s1 + $0x210] sm:$0xff]  }
  0x50   :  { %2293 = vmatprep.subr.bf16.mxu1 %v2533_v25  ;;  %v1851_v62 = vcombine.low %v200_v53, %v2998_v18  ;;  %v1850_v18 = vcombine.low %v3069_v59, %v2804_v40  ;;  %v1208_v40 = vshrl.u32 %v3128_v1, 16  ;;  %v56_v59 = vld [vmem:[%s3363_s0 + $0x98] sm:$0xf] }
  0x51   :  { %v1939_v46 = vcombine.low %v2927_v45, %v56_v59 }
  0x53   :  { %698 = vmatmul.mubr.bf16.gmra.mrb[24].mxu0 %v1808_v28  ;;  %2294 = vmatpush3.bf16.msra.mxu1 %v2533_v25 }
  0x54   :  { %705 = vmatprep.mubr.bf16.mxu0 %v1812_v12  ;;  %2295 = vmatprep.subr.bf16.mxu1 %v2538_v24 }
  0x56   :  { %1052 = vmatmul.mubr.bf16.gmra.mrb[24].mxu1 %v1844_v15 }
  0x57   :  { %1059 = vmatprep.mubr.bf16.mxu1 %v1848_v30  ;;  %2296 = vmatpush3.bf16.msra.mxu1 %v2538_v24 }
  0x58   :  { %2297 = vmatprep.subr.bf16.mxu1 %v2541_v44 }
  0x5b   :  { %706 = vmatmul.mubr.bf16.gmra.mrb[28].mxu0 %v1811_v41  ;;  %2298 = vmatpush3.bf16.msra.mxu1 %v2541_v44 }
  0x5c   :  { %1464 = vmatprep.mubr.bf16.mxu0 %v3034_v14  ;;  %2299 = vmatprep.subr.bf16.mxu1 %v2544_v32  ;;  %v1854_v14 = vcombine.low %v3000_v20, %v3022_v36  ;;  %v1212_v20 = vrot.slane %v1210_v43, 1  ;;  %v2550_v36 = vld [vmem:[%s3362_s1 + $0x218] sm:$0xff]  }
  0x5e   :  { %1060 = vmatmul.mubr.bf16.gmra.mrb[28].mxu1 %v1847_v63  ;;  %v1213_v21 = vor.u32 %v1212_v20, %v1208_v40 }
  0x5f   :  { %1067 = vmatprep.mubr.bf16.mxu1 %v1851_v62  ;;  %2300 = vmatpush3.bf16.msra.mxu1 %v2544_v32 }
  0x60   :  { %2301 = vmatprep.subr.bf16.mxu1 %v2548_v11  ;;  %v1937_v38 = vcombine.low %v2941_v60, %v1213_v21  ;;  %v1936_v60 = vcombine.low %v2759_v9, %v36_v42  ;;  %v57_v9 = vld [vmem:[%s3363_s0 + $0x9c] sm:$0x1] }
  0x61   :  { %v1887_v7 = vcombine.low %v56_v59, %v57_v9 }
  0x63   :  { %1465 = vmatmul.mubr.bf16.vlgmr.msra.gmra.mrb[32].mxu0 %v1841_v2  ;;  %2302 = vmatpush3.bf16.msra.mxu1 %v2548_v11  ;;  %v1217_v27 = vshll.u32 %v1887_v7, 16  ;;  %v1215_v48 = vshrl.u32 %v1887_v7, 16 }
  0x64   :  { %2320 = vmatpush3.bf16.msra.mxu0 %v3081_v23  ;;  %1472 = vmatprep.mubr.bf16.mxu0 %v1845_v19 }
  0x65   :  { %2321 = vmatprep.subr.bf16.mxu0 %v3133_v6  ;;  %2351 = vmatprep.subr.bf16.mxu1 %v3081_v23  ;;  %v1219_v2 = vrot.slane %v1217_v27, 1 }
  0x66   :  { %1068 = vmatmul.mubr.bf16.gmra.mrb[32].mxu1 %v1850_v18 }
  0x67   :  { %1075 = vmatprep.mubr.bf16.mxu1 %v1854_v14  ;;  %v1220_v19 = vor.u32 %v1219_v2, %v1215_v48 }
  0x68   :  { %2322 = vmatpush3.bf16.msra.mxu0 %v3133_v6 }
  0x69   :  { %2323 = vmatprep.subr.bf16.mxu0 %v3145_v4 }
  0x6b   :  { %1473 = vmatmul.mubr.bf16.gmra.mrb[36].mxu0 %v1844_v15 }
  0x6c   :  { %1480 = vmatprep.mubr.bf16.mxu0 %v1848_v30  ;;  %2324 = vmatpush3.bf16.msra.mxu0 %v3145_v4 }
  0x6d   :  { %2325 = vmatprep.subr.bf16.mxu0 %v2550_v36 }
  0x6e   :  { %1076 = vmatmul.mubr.bf16.gmra.mrb[36].mxu1 %v2856_v61 }
  0x6f   :  { %1083 = vmatprep.mubr.bf16.mxu1 %v1857_v5 }
  0x70   :  { %2326 = vmatpush3.bf16.msra.mxu0 %v2550_v36 }
  0x71   :  { %2327 = vmatprep.subr.bf16.mxu0 %v2551_v52 }
  0x73   :  { %1481 = vmatmul.mubr.bf16.gmra.mrb[40].mxu0 %v1847_v63 }
  0x74   :  { %1488 = vmatprep.mubr.bf16.mxu0 %v1937_v38  ;;  %2328 = vmatpush3.bf16.msra.mxu0 %v2551_v52 }
  0x75   :  { %2329 = vmatprep.subr.bf16.mxu0 %v2552_v26 }
  0x76   :  { %1084 = vmatmul.mubr.bf16.gmra.mrb[40].mxu1 %v2908_v35 }
  0x77   :  { %1091 = vmatprep.mubr.bf16.mxu1 %v1860_v51 }
  0x78   :  { %2330 = vmatpush3.bf16.msra.mxu0 %v2552_v26 }
  0x79   :  { %2331 = vmatprep.subr.bf16.mxu0 %v2553_v50 }
  0x7b   :  { %1489 = vmatmul.mubr.bf16.gmra.mrb[44].mxu0 %v1936_v60 }
  0x7c   :  { %1496 = vmatprep.mubr.bf16.mxu0 %v1854_v14  ;;  %2332 = vmatpush3.bf16.msra.mxu0 %v2553_v50 }
  0x7d   :  { %2333 = vmatprep.subr.bf16.mxu0 %v2556_v3 }
  0x7e   :  { %1092 = vmatmul.mubr.bf16.gmra.mrb[44].mxu1 %v2937_v54 }
  0x7f   :  { %2303 = vmatprep.mubr.bf16.mxu1 %v1840_v8 }
  0x80   :  { %2334 = vmatpush3.bf16.msra.mxu0 %v2556_v3 }
  0x83   :  { %1497 = vmatmul.mubr.bf16.gmra.mrb[48].mxu0 %v2856_v61  ;;  %v1852_v61 = vcombine.low %v258_v37, %v259_v56  ;;  %v1221_v56 = vrot.slane %v3128_v1, 1 }
  0x84   :  { %1504 = vmatprep.mubr.bf16.mxu0 %v1857_v5 }
  0x86   :  { %2304 = vmatmul.mubr.bf16.vlgmr.msra.gmra.mrb[0].mxu1 %v2706_v49 }
  0x87   :  { %2359 = vmatpush3.bf16.msra.mxu1 %v3081_v23  ;;  %2307 = vmatprep.mubr.bf16.mxu1 %v2786_v22  ;;  %v1940_v23 = vcombine.low %v3085_v47, %v1220_v19 }
  0x88   :  { %2352 = vmatprep.subr.bf16.mxu1 %v3133_v6 }
  0x8b   :  { %1505 = vmatmul.mubr.bf16.gmra.mrb[52].mxu0 %v2908_v35  ;;  %2360 = vmatpush3.bf16.msra.mxu1 %v3133_v6  ;;  %v3369_v35 = vrot.slane %v2775_v17, 1 }
  0x8c   :  { %1512 = vmatprep.mubr.bf16.mxu0 %v1860_v51  ;;  %2353 = vmatprep.subr.bf16.mxu1 %v3145_v4 }
  0x8d   :  { %v1938_v45 = vcombine.low %v3369_v35, %v1221_v56 }
  0x8e   :  { %2308 = vmatmul.mubr.bf16.gmra.mrb[4].mxu1 %v2797_v33 }
  0x8f   :  { %2361 = vmatpush3.bf16.msra.mxu1 %v3145_v4  ;;  %2311 = vmatprep.mubr.bf16.mxu1 %v1852_v61 }
  0x90   :  { %2354 = vmatprep.subr.bf16.mxu1 %v2550_v36 }
  0x93   :  { %1513 = vmatmul.mubr.bf16.gmra.mrb[56].mxu0 %v2937_v54  ;;  %2362 = vmatpush3.bf16.msra.mxu1 %v2550_v36  ;;  %v3370_v54 = vrot.slane %v2955_v10, 1 }
  0x94   :  { %1520 = vmatprep.mubr.bf16.mxu0 %v1940_v23  ;;  %2355 = vmatprep.subr.bf16.mxu1 %v2551_v52 }
  0x96   :  { %2312 = vmatmul.mubr.bf16.gmra.mrb[8].mxu1 %v2881_v16 }
  0x97   :  { %2363 = vmatpush3.bf16.msra.mxu1 %v2551_v52  ;;  %2315 = vmatprep.mubr.bf16.mxu1 %v2966_v29 }
  0x98   :  { %2356 = vmatprep.subr.bf16.mxu1 %v2552_v26 }
  0x9b   :  { %1521 = vmatmul.mubr.bf16.gmra.mrb[60].mxu0 %v1939_v46  ;;  %2364 = vmatpush3.bf16.msra.mxu1 %v2552_v26 }
  0x9c   :  { %2335 = vmatprep.mubr.bf16.mxu0 %v2706_v49  ;;  %2357 = vmatprep.subr.bf16.mxu1 %v2553_v50  ;;  %v1222_v49 = vrot.slane %v1887_v7, 1 }
  0x9e   :  { %2316 = vmatmul.mubr.bf16.gmra.mrb[12].mxu1 %v2968_v31 }
  0x9f   :  { %2365 = vmatpush3.bf16.msra.mxu1 %v2553_v50  ;;  %2343 = vmatprep.mubr.bf16.mxu1 %v2881_v16  ;;  %v1941_v16 = vcombine.low %v3370_v54, %v1222_v49 }
  0xa0   :  { %2358 = vmatprep.subr.bf16.mxu1 %v2556_v3 }
  0xa3   :  { %2336 = vmatmul.mubr.bf16.vlgmr.msra.gmra.mrb[64].mxu0 %v2786_v22  ;;  %2366 = vmatpush3.bf16.msra.mxu1 %v2556_v3 }
  0xa4   :  { %2339 = vmatprep.mubr.bf16.mxu0 %v2797_v33 }
  0xa6   :  { %2344 = vmatmul.mubr.bf16.vlgmr.msra.gmra.mrb[8].mxu1 %v2966_v29 }
  0xa7   :  { %2347 = vmatprep.mubr.bf16.mxu1 %v2968_v31 }
  0xab   :  { %2340 = vmatmul.mubr.bf16.gmra.mrb[68].mxu0 %v1938_v45 }
  0xae   :  { %2348 = vmatmul.mubr.bf16.gmra.mrb[12].mxu1 %v1941_v16 }
  0xf6   :  { %v2031_v0 = vpop.f32.mrb[0].mxu0 }
  0xf7   :  { %v2032_v22 = vpop.f32.mrb[1].mxu0 }
  0xf8   :  { %v2033_v47 = vadd.f32 %v2032_v22, %v2031_v0  ;;  %v2034_v39 = vpop.f32.mrb[2].mxu0 }
  0xf9   :  { %v2035_v25 = vpop.f32.mrb[3].mxu0 }
  0xfa   :  { %v2036_v28 = vadd.f32 %v2035_v25, %v2034_v39 }
  0xfe   :  { %v2037_v33 = vpop.f32.mrb[4].mxu0 }
  0xff   :  { %v2038_v12 = vpop.f32.mrb[5].mxu0 }
 0x100   :  { %v2039_v29 = vadd.f32 %v2038_v12, %v2037_v33  ;;  %v2040_v55 = vpop.f32.mrb[6].mxu0 }
 0x101   :  { %v2041_v17 = vpop.f32.mrb[7].mxu0 }
 0x102   :  { %v2042_v24 = vadd.f32 %v2041_v17, %v2040_v55 }
 0x106   :  { %v2043_v15 = vpop.f32.mrb[8].mxu0 }
 0x107   :  { %v2044_v30 = vpop.f32.mrb[9].mxu0 }
 0x108   :  { %v2045_v31 = vadd.f32 %v2044_v30, %v2043_v15  ;;  %v2046_v34 = vpop.f32.mrb[10].mxu0 }
 0x109   :  { %v2047_v13 = vpop.f32.mrb[11].mxu0 }
 0x10a   :  { %v2048_v10 = vadd.f32 %v2047_v13, %v2046_v34 }
 0x10e   :  { %v2049_v44 = vpop.f32.mrb[12].mxu0 }
 0x10f   :  { %v2050_v41 = vpop.f32.mrb[13].mxu0 }
 0x110   :  { %v2051_v53 = vadd.f32 %v2050_v41, %v2049_v44  ;;  %v2052_v32 = vpop.f32.mrb[14].mxu0 }
 0x111   :  { %v2053_v63 = vpop.f32.mrb[15].mxu0 }
 0x112   :  { %v2054_v62 = vadd.f32 %v2053_v63, %v2052_v32 }
 0x116   :  { %v2055_v42 = vpop.f32.mrb[16].mxu0 }
 0x117   :  { %v2056_v58 = vpop.f32.mrb[17].mxu0 }
 0x118   :  { %v3215_v11 = vadd.f32 %v2056_v58, %v2055_v42  ;;  %v2058_v1 = vpop.f32.mrb[18].mxu0 }
 0x119   :  { %v2059_v6 = vpop.f32.mrb[19].mxu0  ;;  %v2111_v18 = vpop.f32.mrb[16].mxu1 }
 0x11a   :  { %v3217_v14 = vadd.f32 %v2059_v6, %v2058_v1  ;;  %v2112_v43 = vpop.f32.mrb[17].mxu1 }
 0x11b   :  { %v2113_v4 = vadd.f32 %v2112_v43, %v2111_v18  ;;  %v2114_v40 = vpop.f32.mrb[18].mxu1 }
 0x11c   :  { %v2115_v20 = vpop.f32.mrb[19].mxu1 }
 0x11d   :  { %v2116_v36 = vadd.f32 %v2115_v20, %v2114_v40  ;;  %v3219_v21 = vadd.f32 %v2113_v4, %v2033_v47 }
 0x11e   :  { %v2061_v5 = vpop.f32.mrb[20].mxu0 }
 0x11f   :  { %v2062_v52 = vpop.f32.mrb[21].mxu0  ;;  %v3223_v51 = vadd.f32 %v2116_v36, %v2036_v28 }
 0x120   :  { %v3221_v38 = vadd.f32 %v2062_v52, %v2061_v5  ;;  %v2064_v26 = vpop.f32.mrb[22].mxu0 }
 0x121   :  { %v2065_v50 = vpop.f32.mrb[23].mxu0  ;;  %v2117_v60 = vpop.f32.mrb[20].mxu1 }
 0x122   :  { %v3225_v57 = vadd.f32 %v2065_v50, %v2064_v26  ;;  %v2118_v3 = vpop.f32.mrb[21].mxu1 }
 0x123   :  { %v2119_v8 = vadd.f32 %v2118_v3, %v2117_v60  ;;  %v2120_v59 = vpop.f32.mrb[22].mxu1 }
 0x124   :  { %v2121_v9 = vpop.f32.mrb[23].mxu1 }
 0x125   :  { %v2122_v7 = vadd.f32 %v2121_v9, %v2120_v59  ;;  %v3227_v37 = vadd.f32 %v2119_v8, %v2039_v29 }
 0x126   :  { %v2067_v27 = vpop.f32.mrb[24].mxu0 }
 0x127   :  { %v2068_v48 = vpop.f32.mrb[25].mxu0  ;;  %v3231_v19 = vadd.f32 %v2122_v7, %v2042_v24 }
 0x128   :  { %v3229_v2 = vadd.f32 %v2068_v48, %v2067_v27  ;;  %v2070_v61 = vpop.f32.mrb[26].mxu0 }
 0x129   :  { %v2071_v23 = vpop.f32.mrb[27].mxu0  ;;  %v2123_v46 = vpop.f32.mrb[24].mxu1 }
 0x12a   :  { %v3233_v56 = vadd.f32 %v2071_v23, %v2070_v61  ;;  %v2124_v35 = vpop.f32.mrb[25].mxu1 }
 0x12b   :  { %v2125_v45 = vadd.f32 %v2124_v35, %v2123_v46  ;;  %v2126_v49 = vpop.f32.mrb[26].mxu1 }
 0x12c   :  { %v2127_v54 = vpop.f32.mrb[27].mxu1 }
 0x12d   :  { %v2128_v16 = vadd.f32 %v2127_v54, %v2126_v49  ;;  %v3235_v22 = vadd.f32 %v2125_v45, %v2045_v31 }
 0x12e   :  { %v2073_v0 = vpop.f32.mrb[28].mxu0 }
 0x12f   :  { %v2074_v47 = vpop.f32.mrb[29].mxu0  ;;  %v3239_v28 = vadd.f32 %v2128_v16, %v2048_v10 }
 0x130   :  { %v3237_v39 = vadd.f32 %v2074_v47, %v2073_v0  ;;  %v2076_v25 = vpop.f32.mrb[30].mxu0 }
 0x131   :  { %v2077_v33 = vpop.f32.mrb[31].mxu0  ;;  %v2129_v12 = vpop.f32.mrb[28].mxu1 }
 0x132   :  { %v3241_v29 = vadd.f32 %v2077_v33, %v2076_v25  ;;  %v2130_v55 = vpop.f32.mrb[29].mxu1 }
 0x133   :  { %v2131_v17 = vadd.f32 %v2130_v55, %v2129_v12  ;;  %v2132_v24 = vpop.f32.mrb[30].mxu1 }
 0x134   :  { %v2133_v15 = vpop.f32.mrb[31].mxu1 }
 0x135   :  { %v2134_v30 = vadd.f32 %v2133_v15, %v2132_v24  ;;  %v3243_v13 = vadd.f32 %v2131_v17, %v2051_v53 }
 0x136   :  { %v2191_v34 = vpop.f32.mrb[32].mxu0 }
 0x137   :  { %v2192_v31 = vpop.f32.mrb[33].mxu0  ;;  %v3247_v32 = vadd.f32 %v2134_v30, %v2054_v62 }
 0x138   :  { %v3245_v44 = vadd.f32 %v2192_v31, %v2191_v34  ;;  %v2194_v41 = vpop.f32.mrb[34].mxu0 }
 0x139   :  { %v2195_v10 = vpop.f32.mrb[35].mxu0  ;;  %v2135_v63 = vpop.f32.mrb[32].mxu1 }
 0x13a   :  { %v3249_v42 = vadd.f32 %v2195_v10, %v2194_v41  ;;  %v2136_v58 = vpop.f32.mrb[33].mxu1 }
 0x13b   :  { %v2137_v1 = vadd.f32 %v2136_v58, %v2135_v63  ;;  %v2138_v6 = vpop.f32.mrb[34].mxu1 }
 0x13c   :  { %v2139_v18 = vpop.f32.mrb[35].mxu1 }
 0x13d   :  { %v2402_v43 = vadd.f32 %v2137_v1, %v3215_v11  ;;  %v2140_v4 = vadd.f32 %v2139_v18, %v2138_v6 }
 0x13e   :  { %v2197_v40 = vpop.f32.mrb[36].mxu0 }
 0x13f   :  { %v2198_v53 = vpop.f32.mrb[37].mxu0  ;;  %v2408_v20 = vadd.f32 %v2140_v4, %v3217_v14 }
 0x140   :  { %v2199_v36 = vadd.f32 %v2198_v53, %v2197_v40  ;;  %v2200_v5 = vpop.f32.mrb[38].mxu0 }
 0x141   :  { %v2201_v52 = vpop.f32.mrb[39].mxu0  ;;  %v2141_v62 = vpop.f32.mrb[36].mxu1 }
 0x142   :  { %v2202_v26 = vadd.f32 %v2201_v52, %v2200_v5  ;;  %v2142_v50 = vpop.f32.mrb[37].mxu1 }
 0x143   :  { %v2143_v60 = vadd.f32 %v2142_v50, %v2141_v62  ;;  %v2144_v3 = vpop.f32.mrb[38].mxu1 }
 0x144   :  { %v2145_v8 = vpop.f32.mrb[39].mxu1 }
 0x145   :  { %v2399_v59 = vadd.f32 %v2143_v60, %v3221_v38  ;;  %v2146_v9 = vadd.f32 %v2145_v8, %v2144_v3 }
 0x146   :  { %v2203_v7 = vpop.f32.mrb[40].mxu0 }
 0x147   :  { %v2204_v27 = vpop.f32.mrb[41].mxu0  ;;  %v2405_v11 = vadd.f32 %v2146_v9, %v3225_v57 }
 0x148   :  { %v3255_v48 = vadd.f32 %v2204_v27, %v2203_v7  ;;  %v2206_v61 = vpop.f32.mrb[42].mxu0 }
 0x149   :  { %v2207_v14 = vpop.f32.mrb[43].mxu0  ;;  %v2147_v23 = vpop.f32.mrb[40].mxu1 }
 0x14a   :  { %v3257_v46 = vadd.f32 %v2207_v14, %v2206_v61  ;;  %v2148_v35 = vpop.f32.mrb[41].mxu1 }
 0x14b   :  { %v2149_v45 = vadd.f32 %v2148_v35, %v2147_v23  ;;  %v2150_v49 = vpop.f32.mrb[42].mxu1 }
 0x14c   :  { %v2151_v54 = vpop.f32.mrb[43].mxu1 }
 0x14d   :  { %v3260_v16 = vadd.f32 %v2149_v45, %v3229_v2  ;;  %v2152_v38 = vadd.f32 %v2151_v54, %v2150_v49 }
 0x14e   :  { %v2209_v0 = vpop.f32.mrb[44].mxu0 }
 0x14f   :  { %v2210_v47 = vpop.f32.mrb[45].mxu0  ;;  %v2420_v25 = vadd.f32 %v2152_v38, %v3233_v56 }
 0x150   :  { %v2211_v57 = vadd.f32 %v2210_v47, %v2209_v0  ;;  %v2212_v33 = vpop.f32.mrb[46].mxu0 }
 0x151   :  { %v2213_v12 = vpop.f32.mrb[47].mxu0  ;;  %v2153_v55 = vpop.f32.mrb[44].mxu1 }
 0x152   :  { %v2214_v17 = vadd.f32 %v2213_v12, %v2212_v33  ;;  %v2154_v24 = vpop.f32.mrb[45].mxu1 }
 0x153   :  { %v2155_v15 = vadd.f32 %v2154_v24, %v2153_v55  ;;  %v2156_v30 = vpop.f32.mrb[46].mxu1 }
 0x154   :  { %v2157_v34 = vpop.f32.mrb[47].mxu1 }
 0x155   :  { %v2411_v31 = vadd.f32 %v2155_v15, %v3237_v39  ;;  %v2158_v41 = vadd.f32 %v2157_v34, %v2156_v30 }
 0x156   :  { %v2215_v10 = vpop.f32.mrb[48].mxu0 }
 0x157   :  { %v2216_v2 = vpop.f32.mrb[49].mxu0  ;;  %v2417_v63 = vadd.f32 %v2158_v41, %v3241_v29 }
 0x158   :  { %v2217_v58 = vadd.f32 %v2216_v2, %v2215_v10  ;;  %v2218_v1 = vpop.f32.mrb[50].mxu0 }
 0x159   :  { %v2219_v6 = vpop.f32.mrb[51].mxu0  ;;  %v2305_v56 = vpop.f32.mrb[0].mxu1 }
 0x15a   :  { %v2220_v18 = vadd.f32 %v2219_v6, %v2218_v1  ;;  %v3265_v4 = vadd.f32 %v2402_v43, %v2217_v58  ;;  %v2368_v40 = vadd.f32 %v3227_v37, %v2305_v56  ;;  %v1134_v53 = vpop.f32.mrb[1].mxu1 }
 0x15b   :  { %v2372_v5 = vadd.f32 %v3219_v21, %v1134_v53  ;;  %v2306_v52 = vpop.f32.mrb[2].mxu1 }
 0x15c   :  { %v3269_v62 = vadd.f32 %v2408_v20, %v2220_v18  ;;  %v2376_v39 = vadd.f32 %v3231_v19, %v2306_v52  ;;  %v1137_v50 = vpop.f32.mrb[3].mxu1  ;;  %v2369_v60 = vadd.f32 %v2368_v40, %v2199_v36 }
 0x15d   :  { %v2380_v29 = vadd.f32 %v3223_v51, %v1137_v50  ;;  %v2373_v8 = vadd.f32 %v2372_v5, %v3245_v44 }
 0x15e   :  { %v2221_v3 = vpop.f32.mrb[52].mxu0  ;;  %v2377_v43 = vadd.f32 %v2376_v39, %v2202_v26 }
 0x15f   :  { %v2222_v9 = vpop.f32.mrb[53].mxu0  ;;  %v2381_v37 = vadd.f32 %v2380_v29, %v3249_v42 }
 0x160   :  { %v2223_v7 = vadd.f32 %v2222_v9, %v2221_v3  ;;  %v2224_v27 = vpop.f32.mrb[54].mxu0 }
 0x161   :  { %v2225_v61 = vpop.f32.mrb[55].mxu0  ;;  %v2309_v21 = vpop.f32.mrb[4].mxu1 }
 0x162   :  { %v2226_v14 = vadd.f32 %v2225_v61, %v2224_v27  ;;  %v2400_v20 = vadd.f32 %v2399_v59, %v2223_v7  ;;  %v2384_v23 = vadd.f32 %v3243_v13, %v2309_v21  ;;  %v1150_v19 = vpop.f32.mrb[5].mxu1 }
 0x163   :  { %v2388_v36 = vadd.f32 %v3235_v22, %v1150_v19  ;;  %v2310_v35 = vpop.f32.mrb[6].mxu1 }
 0x164   :  { %v2406_v51 = vadd.f32 %v2405_v11, %v2226_v14  ;;  %v2392_v45 = vadd.f32 %v3247_v32, %v2310_v35  ;;  %v1153_v44 = vpop.f32.mrb[7].mxu1  ;;  %v2385_v49 = vadd.f32 %v2384_v23, %v2211_v57 }
 0x165   :  { %v2396_v26 = vadd.f32 %v3239_v28, %v1153_v44  ;;  %v2389_v42 = vadd.f32 %v2388_v36, %v3255_v48 }
 0x166   :  { %v2227_v54 = vpop.f32.mrb[56].mxu0  ;;  %v2393_v0 = vadd.f32 %v2392_v45, %v2214_v17 }
 0x167   :  { %v2228_v38 = vpop.f32.mrb[57].mxu0  ;;  %v3281_v13 = vadd.f32 %v2396_v26, %v3257_v46  ;;  %v3293_v46 = vld [vmem:[%s3364_s2] ss:$0 sm:$0xff] }
 0x168   :  { %v2229_v47 = vadd.f32 %v2228_v38, %v2227_v54  ;;  %v2230_v59 = vpop.f32.mrb[58].mxu0 }
 0x169   :  { %v2231_v33 = vpop.f32.mrb[59].mxu0 }
 0x16a   :  { %v2232_v22 = vadd.f32 %v2231_v33, %v2230_v59  ;;  %v3284_v11 = vadd.f32 %v3260_v16, %v2229_v47 }
 0x16c   :  { %v3286_v32 = vadd.f32 %v2420_v25, %v2232_v22 }
 0x16e   :  { %v2233_v57 = vpop.f32.mrb[60].mxu0 }
 0x16f   :  { %v2234_v12 = vpop.f32.mrb[61].mxu0 }
 0x170   :  { %v2235_v28 = vadd.f32 %v2234_v12, %v2233_v57  ;;  %v2236_v55 = vpop.f32.mrb[62].mxu0 }
 0x171   :  { %v2237_v24 = vpop.f32.mrb[63].mxu0 }
 0x172   :  { %v2238_v48 = vadd.f32 %v2237_v24, %v2236_v55  ;;  %v2412_v15 = vadd.f32 %v2411_v31, %v2235_v28  ;;  %v3299_v31 = vld [vmem:[%s3365_s3] ss:$0 sm:$0xff] }
 0x174   :  { %v3288_v17 = vadd.f32 %v2417_v63, %v2238_v48 }
 0x176   :  { %v2337_v30 = vpop.f32.mrb[64].mxu0 }
 0x177   :  { %v2370_v34 = vadd.f32 %v2369_v60, %v2337_v30  ;;  %v1563_v16 = vpop.f32.mrb[65].mxu0 }
 0x178   :  { %v2374_v41 = vadd.f32 %v2373_v8, %v1563_v16  ;;  %v2338_v25 = vpop.f32.mrb[66].mxu0 }
 0x179   :  { %v1651_v10 = vmul.f32 %v2370_v34, %v3293_v46  ;;  %v2378_v2 = vadd.f32 %v2377_v43, %v2338_v25  ;;  %v1566_v58 = vpop.f32.mrb[67].mxu0  ;;  %v2345_v63 = vpop.f32.mrb[8].mxu1 }
 0x17a   :  { %v1649_v1 = vmul.f32 %v2374_v41, %v3293_v46  ;;  %v2382_v6 = vadd.f32 %v2381_v37, %v1566_v58  ;;  %v2401_v56 = vadd.f32 %v2400_v20, %v2345_v63  ;;  %v1595_v18 = vpop.f32.mrb[9].mxu1 }
 0x17b   :  { %v1652_v40 = vmul.f32 %v2378_v2, %v3293_v46  ;;  %v2404_v53 = vadd.f32 %v3265_v4, %v1595_v18  ;;  %v2346_v5 = vpop.f32.mrb[10].mxu1  ;;  %v1674_v39 = vadd.f32 %v3299_v31, %v1651_v10 }
 0x17c   :  { %v1650_v52 = vmul.f32 %v2382_v6, %v3293_v46  ;;  %v1659_v50 = vmul.f32 %v2401_v56, %v3293_v46  ;;  %v2407_v29 = vadd.f32 %v2406_v51, %v2346_v5  ;;  %v1598_v3 = vpop.f32.mrb[11].mxu1  ;;  %v1672_v8 = vadd.f32 %v3299_v31, %v1649_v1 }
 0x17d   :  { %v1675_v60 = vadd.f32 %v3299_v31, %v1652_v40  ;;  %v1657_v9 = vmul.f32 %v2404_v53, %v3293_v46  ;;  %v2410_v7 = vadd.f32 %v3269_v62, %v1598_v3 }
 0x17e   :  { %v1673_v43 = vadd.f32 %v3299_v31, %v1650_v52  ;;  %v2341_v4 = vpop.f32.mrb[68].mxu0  ;;  %v1660_v37 = vmul.f32 %v2407_v29, %v3293_v46  ;;  %v1682_v36 = vadd.f32 %v3299_v31, %v1659_v50 }
 0x17f   :  { %v1976_v27 = vpack.c.bf16 %v1675_v60, %v1674_v39  ;;  %v2386_v61 = vadd.f32 %v2385_v49, %v2341_v4  ;;  %v1579_v21 = vpop.f32.mrb[69].mxu0  ;;  %v1658_v20 = vmul.f32 %v2410_v7, %v3293_v46  ;;  %v1680_v44 = vadd.f32 %v3299_v31, %v1657_v9 }
 0x180   :  { %v1971_v14 = vpack.c.bf16 %v1673_v43, %v1672_v8  ;;  %v2390_v23 = vadd.f32 %v2389_v42, %v1579_v21  ;;  %v2342_v19 = vpop.f32.mrb[70].mxu0  ;;  %v1683_v35 = vadd.f32 %v3299_v31, %v1660_v37 }
 0x181   :  { %2008 = vst [vmem:[%s3366_s4 + $0x8] sm:$0xff] %v1976_v27   ;;  %v1655_v62 = vmul.f32 %v2386_v61, %v3293_v46  ;;  %v2394_v51 = vadd.f32 %v2393_v0, %v2342_v19  ;;  %v1582_v45 = vpop.f32.mrb[71].mxu0  ;;  %v1681_v49 = vadd.f32 %v3299_v31, %v1658_v20  ;;  %v2349_v26 = vpop.f32.mrb[12].mxu1 }
 0x182   :  { %1972 = vst [vmem:[%s3366_s4] sm:$0xff] %v1971_v14   ;;  %v1653_v54 = vmul.f32 %v2390_v23, %v3293_v46  ;;  %v2398_v42 = vadd.f32 %v3281_v13, %v1582_v45  ;;  %v1996_v38 = vpack.c.bf16 %v1683_v35, %v1682_v36  ;;  %v2413_v47 = vadd.f32 %v2412_v15, %v2349_v26  ;;  %v1611_v59 = vpop.f32.mrb[13].mxu1 }
 0x183   :  { %v1656_v33 = vmul.f32 %v2394_v51, %v3293_v46  ;;  %v1991_v0 = vpack.c.bf16 %v1681_v49, %v1680_v44  ;;  %v2416_v22 = vadd.f32 %v3284_v11, %v1611_v59  ;;  %v2350_v57 = vpop.f32.mrb[14].mxu1  ;;  %v1678_v28 = vadd.f32 %v3299_v31, %v1655_v62 }
 0x184   :  { %v1654_v12 = vmul.f32 %v2398_v42, %v3293_v46  ;;  %2012 = vst [vmem:[%s3366_s4 + $0x28] sm:$0xff] %v1996_v38   ;;  %v1663_v55 = vmul.f32 %v2413_v47, %v3293_v46  ;;  %v2419_v24 = vadd.f32 %v3288_v17, %v2350_v57  ;;  %v1614_v48 = vpop.f32.mrb[15].mxu1  ;;  %v1676_v11 = vadd.f32 %v3299_v31, %v1653_v54 }
 0x185   :  { %v1679_v13 = vadd.f32 %v3299_v31, %v1656_v33  ;;  %2011 = vst [vmem:[%s3366_s4 + $0x20] sm:$0xff] %v1991_v0   ;;  %v1661_v15 = vmul.f32 %v2416_v22, %v3293_v46  ;;  %v2422_v34 = vadd.f32 %v3286_v32, %v1614_v48 }
 0x186   :  { %v1677_v30 = vadd.f32 %v3299_v31, %v1654_v12  ;;  %v1664_v41 = vmul.f32 %v2419_v24, %v3293_v46  ;;  %v1686_v17 = vadd.f32 %v3299_v31, %v1663_v55 }
 0x187   :  { %v1986_v16 = vpack.c.bf16 %v1679_v13, %v1678_v28  ;;  %v1662_v10 = vmul.f32 %v2422_v34, %v3293_v46  ;;  %v1684_v58 = vadd.f32 %v3299_v31, %v1661_v15 }
 0x188   :  { %v1981_v25 = vpack.c.bf16 %v1677_v30, %v1676_v11  ;;  %v1687_v2 = vadd.f32 %v3299_v31, %v1664_v41 }
 0x189   :  { %2010 = vst [vmem:[%s3366_s4 + $0x18] sm:$0xff] %v1986_v16   ;;  %v1685_v32 = vadd.f32 %v3299_v31, %v1662_v10 }
 0x18a   :  { %2009 = vst [vmem:[%s3366_s4 + $0x10] sm:$0xff] %v1981_v25   ;;  %v2006_v63 = vpack.c.bf16 %v1687_v2, %v1686_v17 }
 0x18b   :  { %v2001_v1 = vpack.c.bf16 %v1685_v32, %v1684_v58 }
 0x18c   :  { %2014 = vst [vmem:[%s3366_s4 + $0x38] sm:$0xff] %v2006_v63  }
 0x18d   :  { %2013 = vst [vmem:[%s3366_s4 + $0x30] sm:$0xff] %v2001_v1  }

// kernel: _lambda_.5
= control target key start
LH: loop header
LB: loop body
LE: loop exit
PB: predicated region body
PF: predicated region fallthrough
CT: control target
= control target key end

     0   :  { %s3381_s1 = inlined_call_operand.vmem [shape: bf16[3,384,128], index: 1, kind: input, shape index: {}]   ;;  %s3382_s0 = inlined_call_operand.vmem [shape: bf16[2,10,10,128], index: 0, kind: input, shape index: {}]   ;;  %s3383_s2 = inlined_call_operand.vmem [shape: f32[1,128], index: 2, kind: input, shape index: {}]   ;;  %s3384_s3 = inlined_call_operand.vmem [shape: f32[1,128], index: 3, kind: input, shape index: {}]   ;;  %s3385_s4 = inlined_call_operand.vmem [shape: bf16[2,8,8,128], index: 4, kind: output, shape index: {}]  }
   0x1   :  { %v2463_v0 = vld [vmem:[%s3381_s1 + $0x100] sm:$0xff]   ;;  %v2466_v3 = vld [vmem:[%s3381_s1 + $0x108] sm:$0xff]   ;;  %v2469_v6 = vld [vmem:[%s3381_s1 + $0x110] sm:$0xff]  }
   0x2   :  { %v2464_v1 = vld [vmem:[%s3381_s1 + $0x140] sm:$0xff]   ;;  %2031 = vmatprep.subr.bf16.mxu0 %v2463_v0  ;;  %v2467_v4 = vld [vmem:[%s3381_s1 + $0x148] sm:$0xff]   ;;  %v2470_v7 = vld [vmem:[%s3381_s1 + $0x150] sm:$0xff]  }
   0x3   :  { %v2465_v2 = vld [vmem:[%s3381_s1 + $0xc0] sm:$0xff]   ;;  %2271 = vmatprep.subr.bf16.mxu1 %v2464_v1  ;;  %v2468_v5 = vld [vmem:[%s3381_s1 + $0xc8] sm:$0xff]   ;;  %v2471_v8 = vld [vmem:[%s3381_s1 + $0xd0] sm:$0xff]  }
   0x4   :  { %2032 = vmatpush3.bf16.msra.mxu0 %v2465_v2  ;;  %2272 = vmatpush3.bf16.msra.mxu1 %v2464_v1  ;;  %v2472_v9 = vld [vmem:[%s3381_s1 + $0x118] sm:$0xff]   ;;  %v2475_v12 = vld [vmem:[%s3381_s1 + $0x120] sm:$0xff]   ;;  %v2478_v15 = vld [vmem:[%s3381_s1 + $0x128] sm:$0xff]  }
   0x5   :  { %2033 = vmatprep.subr.bf16.mxu0 %v2466_v3  ;;  %2273 = vmatprep.subr.bf16.mxu1 %v2467_v4  ;;  %v2473_v10 = vld [vmem:[%s3381_s1 + $0x158] sm:$0xff]   ;;  %v2476_v13 = vld [vmem:[%s3381_s1 + $0x160] sm:$0xff]   ;;  %v2479_v16 = vld [vmem:[%s3381_s1 + $0x168] sm:$0xff]  }
   0x6   :  { %v2474_v11 = vld [vmem:[%s3381_s1 + $0xd8] sm:$0xff]   ;;  %v2477_v14 = vld [vmem:[%s3381_s1 + $0xe0] sm:$0xff]   ;;  %v2480_v17 = vld [vmem:[%s3381_s1 + $0xe8] sm:$0xff]  }
   0x7   :  { %v2481_v18 = vld [vmem:[%s3381_s1 + $0x130] sm:$0xff]   ;;  %v2484_v21 = vld [vmem:[%s3381_s1 + $0x138] sm:$0xff]   ;;  %v2670_v23 = vld [vmem:[%s3382_s0 + $0x8] sm:$0xf] }
   0x8   :  { %2034 = vmatpush3.bf16.msra.mxu0 %v2468_v5  ;;  %2274 = vmatpush3.bf16.msra.mxu1 %v2467_v4  ;;  %v2482_v19 = vld [vmem:[%s3381_s1 + $0x170] sm:$0xff]   ;;  %v2485_v22 = vld [vmem:[%s3381_s1 + $0x178] sm:$0xff]   ;;  %v21_v24 = vld [vmem:[%s3382_s0 + $0xc] sm:$0x1] }
   0x9   :  { %2035 = vmatprep.subr.bf16.mxu0 %v2469_v6  ;;  %2275 = vmatprep.subr.bf16.mxu1 %v2470_v7  ;;  %v2483_v20 = vld [vmem:[%s3381_s1 + $0xf0] sm:$0xff]   ;;  %v2684_v27 = vcombine.low %v2670_v23, %v21_v24  ;;  %v2689_v28 = vld [vmem:[%s3382_s0 + $0x18] sm:$0xf]  ;;  %v25_v29 = vld [vmem:[%s3382_s0 + $0x1c] sm:$0x1] }
   0xa   :  { %v2678_v25 = vld [vmem:[%s3382_s0 + $0x10] sm:$0xf]  ;;  %v23_v26 = vld [vmem:[%s3382_s0 + $0x14] sm:$0x1]  ;;  %v1743_v31 = vcombine.low %v2689_v28, %v25_v29  ;;  %v2699_v32 = vld [vmem:[%s3382_s0 + $0x20] sm:$0xf] }
   0xb   :  { %v1742_v30 = vcombine.low %v2678_v25, %v23_v26  ;;  %v27_v33 = vld [vmem:[%s3382_s0 + $0x24] sm:$0x1]  ;;  %v2486_v34 = vld [vmem:[%s3381_s1 + $0xf8] sm:$0xff]   ;;  %v146_v35 = vshrl.u32 %v2684_v27, 16  ;;  %v148_v36 = vshll.u32 %v2684_v27, 16  ;;  %v251_v37 = vrot.slane %v2684_v27, 1 }
   0xc   :  { %2036 = vmatpush3.bf16.msra.mxu0 %v2471_v8  ;;  %2276 = vmatpush3.bf16.msra.mxu1 %v2470_v7  ;;  %v2711_v38 = vcombine.low %v2699_v32, %v27_v33  ;;  %v253_v42 = vrot.slane %v1743_v31, 1  ;;  %v2492_v45 = vld [vmem:[%s3381_s1 + $0x40] sm:$0xff]   ;;  %v1806_v54 = vcombine.low %v2670_v23, %v2678_v25  ;;  %v2496_v56 = vld [vmem:[%s3381_s1 + $0x48] sm:$0xff]   ;;  %v160_v57 = vshrl.u32 %v1743_v31, 16  ;;  %v2757_v1 = vld [vmem:[%s3382_s0 + $0x30] sm:$0xf] }
   0xd   :  { %2037 = vmatprep.subr.bf16.mxu0 %v2472_v9  ;;  %2277 = vmatprep.subr.bf16.mxu1 %v2473_v10  ;;  %v153_v39 = vshrl.u32 %v1742_v30, 16  ;;  %v155_v40 = vshll.u32 %v1742_v30, 16  ;;  %v252_v41 = vrot.slane %v1742_v30, 1  ;;  %v150_v43 = vrot.slane %v148_v36, 1  ;;  %v2493_v46 = vld [vmem:[%s3381_s1 + $0x1c0] sm:$0xff]   ;;  %v2497_v62 = vld [vmem:[%s3381_s1 + $0x8] sm:$0xff]  }
   0xe   :  { %v254_v44 = vrot.slane %v2711_v38, 1  ;;  %v2494_v50 = vld [vmem:[%s3381_s1] sm:$0xff]   ;;  %v162_v58 = vshll.u32 %v1743_v31, 16  ;;  %v167_v59 = vshrl.u32 %v2711_v38, 16  ;;  %v169_v60 = vshll.u32 %v2711_v38, 16  ;;  %v2506_v29 = vld [vmem:[%s3381_s1 + $0x188] sm:$0xff]  }
   0xf   :  { %v157_v47 = vrot.slane %v155_v40, 1  ;;  %v1808_v48 = vcombine.low %v251_v37, %v252_v41  ;;  %v2722_v49 = vcombine.low %v252_v41, %v253_v42  ;;  %v2727_v51 = vor.u32 %v150_v43, %v146_v35  ;;  %v2495_v55 = vld [vmem:[%s3381_s1 + $0x180] sm:$0xff]   ;;  %v2749_v63 = vld [vmem:[%s3382_s0 + $0x28] sm:$0xf]  ;;  %v29_v0 = vld [vmem:[%s3382_s0 + $0x2c] sm:$0x1] }
  0x10   :  { %2038 = vmatpush3.bf16.msra.mxu0 %v2474_v11  ;;  %2278 = vmatpush3.bf16.msra.mxu1 %v2473_v10  ;;  %v1811_v52 = vcombine.low %v253_v42, %v254_v44  ;;  %v164_v2 = vrot.slane %v162_v58, 1  ;;  %v171_v3 = vrot.slane %v169_v60, 1  ;;  %v31_v4 = vld [vmem:[%s3382_s0 + $0x34] sm:$0x1]  ;;  %v1745_v5 = vcombine.low %v2749_v63, %v29_v0  ;;  %v2766_v6 = vld [vmem:[%s3382_s0 + $0x38] sm:$0xf] }
  0x11   :  { %2039 = vmatprep.subr.bf16.mxu0 %v2475_v12  ;;  %2279 = vmatprep.subr.bf16.mxu1 %v2476_v13  ;;  %v2729_v53 = vor.u32 %v157_v47, %v153_v39  ;;  %v1746_v7 = vcombine.low %v2757_v1, %v31_v4  ;;  %v33_v8 = vld [vmem:[%s3382_s0 + $0x3c] sm:$0x1]  ;;  %v2775_v9 = vld [vmem:[%s3382_s0 + $0x40] sm:$0xf]  ;;  %v35_v10 = vld [vmem:[%s3382_s0 + $0x44] sm:$0x1]  ;;  %v1809_v30 = vcombine.low %v2689_v28, %v2699_v32 }
  0x12   :  { %2287 = vmatprep.mubr.bf16.mxu1 %v1808_v48  ;;  %v2780_v11 = vor.u32 %v164_v2, %v160_v57  ;;  %v2782_v12 = vor.u32 %v171_v3, %v167_v59  ;;  %v2507_v31 = vld [vmem:[%s3381_s1 + $0x58] sm:$0xff]   ;;  %v174_v35 = vshrl.u32 %v1745_v5, 16  ;;  %v176_v36 = vshll.u32 %v1745_v5, 16  ;;  %v2859_v57 = vld [vmem:[%s3382_s0 + $0x70] sm:$0xf]  ;;  %v2514_v60 = vld [vmem:[%s3381_s1 + $0x60] sm:$0xff]  }
  0x13   :  { %v1807_v61 = vcombine.low %v2727_v51, %v2729_v53  ;;  %v181_v38 = vshrl.u32 %v1746_v7, 16  ;;  %v183_v39 = vshll.u32 %v1746_v7, 16  ;;  %v2820_v40 = vld [vmem:[%s3382_s0 + $0x58] sm:$0xf]  ;;  %v41_v41 = vld [vmem:[%s3382_s0 + $0x5c] sm:$0x1] }
  0x14   :  { %2040 = vmatpush3.bf16.msra.mxu0 %v2477_v14  ;;  %2280 = vmatpush3.bf16.msra.mxu1 %v2476_v13  ;;  %v255_v13 = vrot.slane %v1745_v5, 1  ;;  %v2785_v14 = vcombine.low %v2766_v6, %v33_v8  ;;  %v2508_v42 = vld [vmem:[%s3381_s1 + $0x18] sm:$0xff]   ;;  %v178_v43 = vrot.slane %v176_v36, 1  ;;  %v47_v58 = vld [vmem:[%s3382_s0 + $0x74] sm:$0x1]  ;;  %v2516_v5 = vld [vmem:[%s3381_s1 + $0x20] sm:$0xff]  }
  0x15   :  { %2041 = vmatprep.subr.bf16.mxu0 %v2478_v15  ;;  %2281 = vmatprep.subr.bf16.mxu1 %v2479_v16  ;;  %v2503_v15 = vld [vmem:[%s3381_s1 + $0x50] sm:$0xff]   ;;  %v185_v47 = vrot.slane %v183_v39, 1  ;;  %v2878_v2 = vcombine.low %v2859_v57, %v47_v58 }
  0x16   :  { %649 = vmatprep.mubr.bf16.mxu0 %v1807_v61  ;;  %v2517_v3 = vld [vmem:[%s3381_s1 + $0x190] sm:$0xff]  }
  0x18   :  { %2042 = vmatpush3.bf16.msra.mxu0 %v2480_v17  ;;  %2282 = vmatpush3.bf16.msra.mxu1 %v2479_v16  ;;  %v256_v16 = vrot.slane %v1746_v7, 1  ;;  %v2791_v17 = vcombine.low %v2775_v9, %v35_v10  ;;  %v1812_v10 = vcombine.low %v2749_v63, %v2757_v1 }
  0x19   :  { %2043 = vmatprep.subr.bf16.mxu0 %v2481_v18  ;;  %2283 = vmatprep.subr.bf16.mxu1 %v2482_v19  ;;  %v2504_v18 = vld [vmem:[%s3381_s1 + $0x1c8] sm:$0xff]  }
  0x1a   :  { %v1814_v24 = vcombine.low %v255_v13, %v256_v16  ;;  %v3387_v26 = vrot.slane %v2791_v17, 1 }
  0x1c   :  { %2044 = vmatpush3.bf16.msra.mxu0 %v2483_v20  ;;  %2284 = vmatpush3.bf16.msra.mxu1 %v2482_v19  ;;  %v1810_v19 = vcombine.low %v2780_v11, %v2782_v12  ;;  %v257_v20 = vrot.slane %v2785_v14, 1 }
  0x1d   :  { %2045 = vmatprep.subr.bf16.mxu0 %v2484_v21  ;;  %2285 = vmatprep.subr.bf16.mxu1 %v2485_v22  ;;  %v2505_v21 = vld [vmem:[%s3381_s1 + $0x10] sm:$0xff]  }
  0x1e   :  { %v2813_v33 = vcombine.low %v256_v16, %v257_v20 }
  0x20   :  { %2046 = vmatpush3.bf16.msra.mxu0 %v2486_v34  ;;  %2286 = vmatpush3.bf16.msra.mxu1 %v2485_v22  ;;  %v2802_v22 = vcombine.low %v254_v44, %v255_v13  ;;  %v1817_v34 = vcombine.low %v257_v20, %v3387_v26  ;;  %v2831_v44 = vld [vmem:[%s3382_s0 + $0x60] sm:$0xf]  ;;  %v262_v13 = vrot.slane %v2878_v2, 1  ;;  %v188_v20 = vshrl.u32 %v2785_v14, 16 }
  0x21   :  { %2111 = vmatprep.subr.bf16.mxu1 %v2492_v45  ;;  %2191 = vmatprep.subr.bf16.mxu0 %v2493_v46  ;;  %v43_v45 = vld [vmem:[%s3382_s0 + $0x64] sm:$0x1]  ;;  %v2837_v46 = vcombine.low %v2820_v40, %v41_v41 }
  0x22   :  { %v2840_v48 = vcombine.low %v2831_v44, %v43_v45  ;;  %v2943_v45 = vld [vmem:[%s3382_s0 + $0x90] sm:$0xf] }
  0x23   :  { %2288 = vmatmul.mubr.bf16.vlgmr.msra.gmra.mrb[0].mxu1 %v1811_v52  ;;  %650 = vmatmul.mubr.bf16.vlgmr.msra.gmra.mrb[0].mxu0 %v1806_v54  ;;  %v45_v52 = vld [vmem:[%s3382_s0 + $0x6c] sm:$0x1]  ;;  %v2515_v54 = vld [vmem:[%s3381_s1 + $0x1d0] sm:$0xff]  }
  0x24   :  { %2112 = vmatpush3.bf16.msra.mxu1 %v2494_v50  ;;  %2192 = vmatpush3.bf16.msra.mxu0 %v2495_v55  ;;  %v2845_v50 = vld [vmem:[%s3382_s0 + $0x68] sm:$0xf]  ;;  %v2853_v55 = vor.u32 %v178_v43, %v174_v35  ;;  %v260_v0 = vrot.slane %v2840_v48, 1  ;;  %v53_v43 = vld [vmem:[%s3382_s0 + $0x8c] sm:$0x1] }
  0x25   :  { %2113 = vmatprep.subr.bf16.mxu1 %v2496_v56  ;;  %2193 = vmatprep.subr.bf16.mxu0 %v2504_v18  ;;  %v259_v56 = vrot.slane %v2837_v46, 1  ;;  %v2865_v59 = vcombine.low %v2845_v50, %v45_v52  ;;  %v2872_v61 = vcombine.low %v2831_v44, %v2845_v50 }
  0x26   :  { %657 = vmatprep.mubr.bf16.mxu0 %v1810_v19  ;;  %2291 = vmatprep.mubr.bf16.mxu1 %v1814_v24  ;;  %v2519_v19 = vld [vmem:[%s3381_s1 + $0x28] sm:$0xff]   ;;  %v357_v24 = vshrl.u32 %v2791_v17, 16 }
  0x27   :  { %v261_v4 = vrot.slane %v2865_v59, 1  ;;  %v1820_v8 = vcombine.low %v259_v56, %v260_v0 }
  0x28   :  { %2114 = vmatpush3.bf16.msra.mxu1 %v2497_v62  ;;  %2194 = vmatpush3.bf16.msra.mxu0 %v2506_v29  ;;  %v2874_v62 = vor.u32 %v185_v47, %v181_v38  ;;  %v359_v29 = vshll.u32 %v2791_v17, 16  ;;  %v55_v47 = vld [vmem:[%s3382_s0 + $0x94] sm:$0x1] }
  0x29   :  { %2115 = vmatprep.subr.bf16.mxu1 %v2503_v15  ;;  %2195 = vmatprep.subr.bf16.mxu0 %v2515_v54  ;;  %v2518_v15 = vld [vmem:[%s3381_s1 + $0x68] sm:$0xff]   ;;  %v2897_v16 = vcombine.low %v260_v0, %v261_v4  ;;  %v1823_v18 = vcombine.low %v261_v4, %v262_v13  ;;  %v2525_v4 = vld [vmem:[%s3381_s1 + $0x70] sm:$0xff]  }
  0x2a   :  { %v1813_v7 = vcombine.low %v2853_v55, %v2874_v62  ;;  %v361_v38 = vrot.slane %v359_v29, 1 }
  0x2b   :  { %2292 = vmatmul.mubr.bf16.gmra.mrb[4].mxu1 %v1817_v34  ;;  %658 = vmatmul.mubr.bf16.gmra.mrb[4].mxu0 %v1809_v30  ;;  %v2909_v30 = vld [vmem:[%s3382_s0 + $0x78] sm:$0xf]  ;;  %v2917_v34 = vld [vmem:[%s3382_s0 + $0x80] sm:$0xf] }
  0x2c   :  { %2116 = vmatpush3.bf16.msra.mxu1 %v2505_v21  ;;  %2196 = vmatpush3.bf16.msra.mxu0 %v2517_v3  ;;  %v190_v21 = vshll.u32 %v2785_v14, 16  ;;  %v51_v14 = vld [vmem:[%s3382_s0 + $0x84] sm:$0x1]  ;;  %v2924_v35 = vcombine.low %v2859_v57, %v2909_v30 }
  0x2d   :  { %2117 = vmatprep.subr.bf16.mxu1 %v2507_v31  ;;  %665 = vmatprep.mubr.bf16.mxu0 %v1813_v7  ;;  %v49_v31 = vld [vmem:[%s3382_s0 + $0x7c] sm:$0x1]  ;;  %v2930_v41 = vcombine.low %v2917_v34, %v51_v14  ;;  %v1815_v7 = vcombine.low %v2766_v6, %v2775_v9  ;;  %v202_v14 = vshrl.u32 %v2837_v46, 16 }
  0x2e   :  { %2295 = vmatprep.mubr.bf16.mxu1 %v1820_v8  ;;  %v192_v36 = vrot.slane %v190_v21, 1  ;;  %v2927_v39 = vcombine.low %v2909_v30, %v49_v31 }
  0x2f   :  { %v264_v3 = vrot.slane %v2930_v41, 1 }
  0x30   :  { %2118 = vmatpush3.bf16.msra.mxu1 %v2508_v42  ;;  %v2935_v42 = vld [vmem:[%s3382_s0 + $0x88] sm:$0xf]  ;;  %v2955_v58 = vor.u32 %v192_v36, %v188_v20  ;;  %v263_v0 = vrot.slane %v2927_v39, 1 }
  0x31   :  { %2119 = vmatprep.subr.bf16.mxu1 %v2514_v60  ;;  %v2949_v52 = vcombine.low %v2935_v42, %v53_v43  ;;  %v2953_v54 = vcombine.low %v2917_v34, %v2935_v42  ;;  %v2957_v60 = vor.u32 %v361_v38, %v357_v24  ;;  %v2528_v24 = vld [vmem:[%s3381_s1 + $0x198] sm:$0xff]   ;;  %v209_v43 = vshrl.u32 %v2840_v48, 16 }
  0x32   :  { %v1826_v20 = vcombine.low %v263_v0, %v264_v3  ;;  %v2982_v29 = vcombine.low %v262_v13, %v263_v0  ;;  %v2530_v38 = vld [vmem:[%s3381_s1 + $0x38] sm:$0xff]   ;;  %v204_v13 = vshll.u32 %v2837_v46, 16  ;;  %v18_v0 = vld [vmem:[%s3382_s0] sm:$0xf] }
  0x33   :  { %666 = vmatmul.mubr.bf16.gmra.mrb[8].mxu0 %v1812_v10  ;;  %2296 = vmatmul.mubr.bf16.gmra.mrb[8].mxu1 %v1823_v18  ;;  %v265_v8 = vrot.slane %v2949_v52, 1  ;;  %v2971_v10 = vcombine.low %v2943_v45, %v55_v47  ;;  %v1816_v18 = vcombine.low %v2955_v58, %v2957_v60  ;;  %v211_v47 = vshll.u32 %v2840_v48, 16  ;;  %v2534_v48 = vld [vmem:[%s3381_s1 + $0x80] sm:$0xff]  }
  0x34   :  { %2120 = vmatpush3.bf16.msra.mxu1 %v2516_v5  ;;  %v2526_v5 = vld [vmem:[%s3381_s1 + $0x1d8] sm:$0xff]   ;;  %2299 = vmatprep.mubr.bf16.mxu1 %v1826_v20 }
  0x35   :  { %2121 = vmatprep.subr.bf16.mxu1 %v2518_v15  ;;  %v2527_v15 = vld [vmem:[%s3381_s1 + $0x30] sm:$0xff]   ;;  %2197 = vmatprep.subr.bf16.mxu0 %v2526_v5  ;;  %v3386_v21 = vrot.slane %v2971_v10, 1  ;;  %v2984_v31 = vcombine.low %v264_v3, %v265_v8  ;;  %v19_v3 = vld [vmem:[%s3382_s0 + $0x4] sm:$0x1]  ;;  %v213_v5 = vrot.slane %v211_v47, 1  ;;  %v218_v47 = vshll.u32 %v2865_v59, 16 }
  0x36   :  { %673 = vmatprep.mubr.bf16.mxu0 %v1816_v18  ;;  %2198 = vmatpush3.bf16.msra.mxu0 %v2528_v24 }
  0x37   :  { %v1829_v36 = vcombine.low %v265_v8, %v3386_v21  ;;  %v2535_v8 = vld [vmem:[%s3381_s1 + $0x1e0] sm:$0xff]   ;;  %v3016_v20 = vor.u32 %v213_v5, %v209_v43  ;;  %v220_v5 = vrot.slane %v218_v47, 1  ;;  %v230_v21 = vshrl.u32 %v2927_v39, 16 }
  0x38   :  { %2122 = vmatpush3.bf16.msra.mxu1 %v2519_v19  ;;  %v2529_v19 = vld [vmem:[%s3381_s1 + $0x78] sm:$0xff]   ;;  %2199 = vmatprep.subr.bf16.mxu0 %v2535_v8 }
  0x39   :  { %2123 = vmatprep.subr.bf16.mxu1 %v2525_v4  ;;  %v206_v4 = vrot.slane %v204_v13, 1  ;;  %v216_v13 = vshrl.u32 %v2865_v59, 16  ;;  %v1854_v59 = vcombine.low %v18_v0, %v2670_v23  ;;  %v237_v23 = vshrl.u32 %v2930_v41, 16 }
  0x3b   :  { %674 = vmatmul.mubr.bf16.gmra.mrb[12].mxu0 %v1815_v7  ;;  %2300 = vmatmul.mubr.bf16.gmra.mrb[12].mxu1 %v1829_v36  ;;  %v3004_v7 = vcombine.low %v18_v0, %v19_v3  ;;  %v3014_v18 = vor.u32 %v206_v4, %v202_v14  ;;  %v2536_v36 = vld [vmem:[%s3381_s1 + $0x1a0] sm:$0xff]   ;;  %v225_v14 = vshll.u32 %v2878_v2, 16  ;;  %v2540_v4 = vld [vmem:[%s3381_s1 + $0x1e8] sm:$0xff]   ;;  %v239_v0 = vshll.u32 %v2930_v41, 16  ;;  %v2546_v41 = vld [vmem:[%s3381_s1 + $0x1b0] sm:$0xff]  }
  0x3c   :  { %2124 = vmatpush3.bf16.msra.mxu1 %v2527_v15  ;;  %v1818_v15 = vcombine.low %v2820_v40, %v2831_v44  ;;  %v223_v44 = vshrl.u32 %v2878_v2, 16  ;;  %2200 = vmatpush3.bf16.msra.mxu0 %v2536_v36  ;;  %v2541_v2 = vld [vmem:[%s3381_s1 + $0x1a8] sm:$0xff]   ;;  %v3038_v36 = vor.u32 %v220_v5, %v216_v13  ;;  %v366_v5 = vshll.u32 %v2971_v10, 16 }
  0x3d   :  { %2125 = vmatprep.subr.bf16.mxu1 %v2529_v19  ;;  %v139_v24 = vshrl.u32 %v3004_v7, 16  ;;  %v141_v19 = vshll.u32 %v3004_v7, 16  ;;  %v1819_v43 = vcombine.low %v3014_v18, %v3016_v20  ;;  %2201 = vmatprep.subr.bf16.mxu0 %v2540_v4  ;;  %v2544_v4 = vld [vmem:[%s3381_s1 + $0x90] sm:$0xff]  }
  0x3f   :  { %v143_v3 = vrot.slane %v141_v19, 1  ;;  %681 = vmatprep.mubr.bf16.mxu0 %v1819_v43  ;;  %v232_v19 = vshll.u32 %v2927_v39, 16  ;;  %v1821_v43 = vcombine.low %v2845_v50, %v2859_v57  ;;  %v368_v57 = vrot.slane %v366_v5, 1 }
  0x40   :  { %2126 = vmatpush3.bf16.msra.mxu1 %v2530_v38  ;;  %v227_v38 = vrot.slane %v225_v14, 1  ;;  %v3050_v14 = vcombine.low %v2729_v53, %v2780_v11  ;;  %2202 = vmatpush3.bf16.msra.mxu0 %v2541_v2  ;;  %v244_v53 = vshrl.u32 %v2949_v52, 16  ;;  %v246_v11 = vshll.u32 %v2949_v52, 16 }
  0x41   :  { %2303 = vmatprep.subr.bf16.mxu1 %v2534_v48  ;;  %v144_v8 = vor.u32 %v143_v3, %v139_v24  ;;  %v2539_v24 = vld [vmem:[%s3381_s1 + $0x88] sm:$0xff]   ;;  %v234_v39 = vrot.slane %v232_v19, 1  ;;  %v1857_v2 = vcombine.low %v2678_v25, %v2689_v28  ;;  %v1861_v19 = vcombine.low %v2782_v12, %v2853_v55  ;;  %v2549_v25 = vld [vmem:[%s3381_s1 + $0x98] sm:$0xff]  }
  0x42   :  { %v3040_v26 = vor.u32 %v227_v38, %v223_v44  ;;  %v241_v44 = vrot.slane %v239_v0, 1  ;;  %v248_v52 = vrot.slane %v246_v11, 1  ;;  %v364_v38 = vshrl.u32 %v2971_v10, 16  ;;  %v2564_v11 = vld [vmem:[%s3381_s1 + $0xb8] sm:$0xff]  }
  0x43   :  { %682 = vmatmul.mubr.bf16.gmra.mrb[16].mxu0 %v1818_v15  ;;  %v1855_v47 = vcombine.low %v144_v8, %v2727_v51  ;;  %v2545_v15 = vld [vmem:[%s3381_s1 + $0x1f0] sm:$0xff]   ;;  %v3060_v51 = vor.u32 %v234_v39, %v230_v21  ;;  %v2550_v21 = vld [vmem:[%s3381_s1 + $0x1f8] sm:$0xff]   ;;  %v1824_v28 = vcombine.low %v2909_v30, %v2917_v34  ;;  %v1864_v30 = vcombine.low %v2874_v62, %v2955_v58  ;;  %v37_v58 = vld [vmem:[%s3382_s0 + $0x4c] sm:$0x1] }
  0x44   :  { %v1822_v13 = vcombine.low %v3038_v36, %v3040_v26  ;;  %2203 = vmatprep.subr.bf16.mxu0 %v2545_v15  ;;  %v3066_v3 = vor.u32 %v241_v44, %v237_v23  ;;  %v2551_v8 = vld [vmem:[%s3381_s1 + $0x1b8] sm:$0xff]   ;;  %v3097_v23 = vld [vmem:[%s3381_s1 + $0x200] sm:$0xff]   ;;  %v3099_v0 = vor.u32 %v248_v52, %v244_v53  ;;  %v1860_v15 = vcombine.low %v2699_v32, %v2749_v63  ;;  %v2557_v44 = vld [vmem:[%s3381_s1 + $0xa8] sm:$0xff]  }
  0x45   :  { %1035 = vmatprep.mubr.bf16.mxu1 %v1855_v47  ;;  %2204 = vmatpush3.bf16.msra.mxu0 %v2546_v41  ;;  %v3101_v47 = vor.u32 %v368_v57, %v364_v38  ;;  %v1827_v41 = vcombine.low %v2935_v42, %v2943_v45  ;;  %v2560_v32 = vld [vmem:[%s3381_s1 + $0xb0] sm:$0xff]   ;;  %v1863_v63 = vcombine.low %v2757_v1, %v2766_v6  ;;  %v36_v42 = vld [vmem:[%s3382_s0 + $0x48] sm:$0xf]  ;;  %v2567_v52 = vld [vmem:[%s3381_s1 + $0x220] sm:$0xff]   ;;  %v250_v57 = vrot.slane %v3004_v7, 1 }
  0x46   :  { %1036 = vmatmul.mubr.bf16.vlgmr.msra.gmra.mrb[16].mxu1 %v1854_v59  ;;  %689 = vmatprep.mubr.bf16.mxu0 %v1822_v13  ;;  %v1825_v50 = vcombine.low %v3060_v51, %v3066_v3  ;;  %v3085_v59 = vld [vmem:[%s3382_s0 + $0x50] sm:$0xf]  ;;  %v3144_v1 = vcombine.low %v36_v42, %v37_v58  ;;  %v3149_v6 = vld [vmem:[%s3381_s1 + $0x208] sm:$0xff]   ;;  %v1873_v5 = vcombine.low %v3040_v26, %v3060_v51 }
  0x47   :  { %2304 = vmatpush3.bf16.msra.mxu1 %v2534_v48  ;;  %1043 = vmatprep.mubr.bf16.mxu1 %v3050_v14  ;;  %v39_v48 = vld [vmem:[%s3382_s0 + $0x54] sm:$0x1]  ;;  %v1828_v12 = vcombine.low %v3099_v0, %v3101_v47  ;;  %v2568_v26 = vld [vmem:[%s3381_s1 + $0x228] sm:$0xff]   ;;  %v1876_v51 = vcombine.low %v3066_v3, %v3099_v0  ;;  %v2572_v3 = vld [vmem:[%s3381_s1 + $0x238] sm:$0xff]  }
  0x48   :  { %2305 = vmatprep.subr.bf16.mxu1 %v2539_v24  ;;  %2205 = vmatprep.subr.bf16.mxu0 %v2550_v21  ;;  %v3104_v39 = vcombine.low %v3085_v59, %v39_v48 }
  0x49   :  { %2206 = vmatpush3.bf16.msra.mxu0 %v2551_v8  ;;  %v1856_v8 = vcombine.low %v250_v57, %v251_v37 }
  0x4a   :  { %2335 = vmatprep.subr.bf16.mxu0 %v3097_v23  ;;  %v197_v55 = vshll.u32 %v3104_v39, 16  ;;  %v195_v34 = vshrl.u32 %v3104_v39, 16  ;;  %v258_v37 = vrot.slane %v3104_v39, 1 }
  0x4b   :  { %690 = vmatmul.mubr.bf16.gmra.mrb[20].mxu0 %v1821_v43  ;;  %2306 = vmatpush3.bf16.msra.mxu1 %v2539_v24  ;;  %v2554_v24 = vld [vmem:[%s3381_s1 + $0xa0] sm:$0xff]   ;;  %v1210_v43 = vshll.u32 %v3144_v1, 16 }
  0x4c   :  { %697 = vmatprep.mubr.bf16.mxu0 %v1825_v50  ;;  %2307 = vmatprep.subr.bf16.mxu1 %v2544_v4  ;;  %v199_v13 = vrot.slane %v197_v55, 1  ;;  %v2569_v50 = vld [vmem:[%s3381_s1 + $0x230] sm:$0xff]  }
  0x4e   :  { %1044 = vmatmul.mubr.bf16.gmra.mrb[20].mxu1 %v1857_v2  ;;  %v200_v53 = vor.u32 %v199_v13, %v195_v34 }
  0x4f   :  { %1051 = vmatprep.mubr.bf16.mxu1 %v1861_v19  ;;  %2308 = vmatpush3.bf16.msra.mxu1 %v2544_v4  ;;  %v3161_v4 = vld [vmem:[%s3381_s1 + $0x210] sm:$0xff]  }
  0x50   :  { %2309 = vmatprep.subr.bf16.mxu1 %v2549_v25  ;;  %v1867_v62 = vcombine.low %v200_v53, %v3014_v18  ;;  %v1866_v18 = vcombine.low %v3085_v59, %v2820_v40  ;;  %v1208_v40 = vshrl.u32 %v3144_v1, 16  ;;  %v56_v59 = vld [vmem:[%s3382_s0 + $0x98] sm:$0xf] }
  0x51   :  { %v1955_v46 = vcombine.low %v2943_v45, %v56_v59 }
  0x53   :  { %698 = vmatmul.mubr.bf16.gmra.mrb[24].mxu0 %v1824_v28  ;;  %2310 = vmatpush3.bf16.msra.mxu1 %v2549_v25 }
  0x54   :  { %705 = vmatprep.mubr.bf16.mxu0 %v1828_v12  ;;  %2311 = vmatprep.subr.bf16.mxu1 %v2554_v24 }
  0x56   :  { %1052 = vmatmul.mubr.bf16.gmra.mrb[24].mxu1 %v1860_v15 }
  0x57   :  { %1059 = vmatprep.mubr.bf16.mxu1 %v1864_v30  ;;  %2312 = vmatpush3.bf16.msra.mxu1 %v2554_v24 }
  0x58   :  { %2313 = vmatprep.subr.bf16.mxu1 %v2557_v44 }
  0x5b   :  { %706 = vmatmul.mubr.bf16.gmra.mrb[28].mxu0 %v1827_v41  ;;  %2314 = vmatpush3.bf16.msra.mxu1 %v2557_v44 }
  0x5c   :  { %1464 = vmatprep.mubr.bf16.mxu0 %v3050_v14  ;;  %2315 = vmatprep.subr.bf16.mxu1 %v2560_v32  ;;  %v1870_v14 = vcombine.low %v3016_v20, %v3038_v36  ;;  %v1212_v20 = vrot.slane %v1210_v43, 1  ;;  %v2566_v36 = vld [vmem:[%s3381_s1 + $0x218] sm:$0xff]  }
  0x5e   :  { %1060 = vmatmul.mubr.bf16.gmra.mrb[28].mxu1 %v1863_v63  ;;  %v1213_v21 = vor.u32 %v1212_v20, %v1208_v40 }
  0x5f   :  { %1067 = vmatprep.mubr.bf16.mxu1 %v1867_v62  ;;  %2316 = vmatpush3.bf16.msra.mxu1 %v2560_v32 }
  0x60   :  { %2317 = vmatprep.subr.bf16.mxu1 %v2564_v11  ;;  %v1953_v38 = vcombine.low %v2957_v60, %v1213_v21  ;;  %v1952_v60 = vcombine.low %v2775_v9, %v36_v42  ;;  %v57_v9 = vld [vmem:[%s3382_s0 + $0x9c] sm:$0x1] }
  0x61   :  { %v1903_v7 = vcombine.low %v56_v59, %v57_v9 }
  0x63   :  { %1465 = vmatmul.mubr.bf16.vlgmr.msra.gmra.mrb[32].mxu0 %v1857_v2  ;;  %2318 = vmatpush3.bf16.msra.mxu1 %v2564_v11  ;;  %v1217_v27 = vshll.u32 %v1903_v7, 16  ;;  %v1215_v48 = vshrl.u32 %v1903_v7, 16 }
  0x64   :  { %2336 = vmatpush3.bf16.msra.mxu0 %v3097_v23  ;;  %1472 = vmatprep.mubr.bf16.mxu0 %v1861_v19 }
  0x65   :  { %2337 = vmatprep.subr.bf16.mxu0 %v3149_v6  ;;  %2367 = vmatprep.subr.bf16.mxu1 %v3097_v23  ;;  %v1219_v2 = vrot.slane %v1217_v27, 1 }
  0x66   :  { %1068 = vmatmul.mubr.bf16.gmra.mrb[32].mxu1 %v1866_v18 }
  0x67   :  { %1075 = vmatprep.mubr.bf16.mxu1 %v1870_v14  ;;  %v1220_v19 = vor.u32 %v1219_v2, %v1215_v48 }
  0x68   :  { %2338 = vmatpush3.bf16.msra.mxu0 %v3149_v6 }
  0x69   :  { %2339 = vmatprep.subr.bf16.mxu0 %v3161_v4 }
  0x6b   :  { %1473 = vmatmul.mubr.bf16.gmra.mrb[36].mxu0 %v1860_v15 }
  0x6c   :  { %1480 = vmatprep.mubr.bf16.mxu0 %v1864_v30  ;;  %2340 = vmatpush3.bf16.msra.mxu0 %v3161_v4 }
  0x6d   :  { %2341 = vmatprep.subr.bf16.mxu0 %v2566_v36 }
  0x6e   :  { %1076 = vmatmul.mubr.bf16.gmra.mrb[36].mxu1 %v2872_v61 }
  0x6f   :  { %1083 = vmatprep.mubr.bf16.mxu1 %v1873_v5 }
  0x70   :  { %2342 = vmatpush3.bf16.msra.mxu0 %v2566_v36 }
  0x71   :  { %2343 = vmatprep.subr.bf16.mxu0 %v2567_v52 }
  0x73   :  { %1481 = vmatmul.mubr.bf16.gmra.mrb[40].mxu0 %v1863_v63 }
  0x74   :  { %1488 = vmatprep.mubr.bf16.mxu0 %v1953_v38  ;;  %2344 = vmatpush3.bf16.msra.mxu0 %v2567_v52 }
  0x75   :  { %2345 = vmatprep.subr.bf16.mxu0 %v2568_v26 }
  0x76   :  { %1084 = vmatmul.mubr.bf16.gmra.mrb[40].mxu1 %v2924_v35 }
  0x77   :  { %1091 = vmatprep.mubr.bf16.mxu1 %v1876_v51 }
  0x78   :  { %2346 = vmatpush3.bf16.msra.mxu0 %v2568_v26 }
  0x79   :  { %2347 = vmatprep.subr.bf16.mxu0 %v2569_v50 }
  0x7b   :  { %1489 = vmatmul.mubr.bf16.gmra.mrb[44].mxu0 %v1952_v60 }
  0x7c   :  { %1496 = vmatprep.mubr.bf16.mxu0 %v1870_v14  ;;  %2348 = vmatpush3.bf16.msra.mxu0 %v2569_v50 }
  0x7d   :  { %2349 = vmatprep.subr.bf16.mxu0 %v2572_v3 }
  0x7e   :  { %1092 = vmatmul.mubr.bf16.gmra.mrb[44].mxu1 %v2953_v54 }
  0x7f   :  { %2319 = vmatprep.mubr.bf16.mxu1 %v1856_v8 }
  0x80   :  { %2350 = vmatpush3.bf16.msra.mxu0 %v2572_v3 }
  0x83   :  { %1497 = vmatmul.mubr.bf16.gmra.mrb[48].mxu0 %v2872_v61  ;;  %v1868_v61 = vcombine.low %v258_v37, %v259_v56  ;;  %v1221_v56 = vrot.slane %v3144_v1, 1 }
  0x84   :  { %1504 = vmatprep.mubr.bf16.mxu0 %v1873_v5 }
  0x86   :  { %2320 = vmatmul.mubr.bf16.vlgmr.msra.gmra.mrb[0].mxu1 %v2722_v49 }
  0x87   :  { %2375 = vmatpush3.bf16.msra.mxu1 %v3097_v23  ;;  %2323 = vmatprep.mubr.bf16.mxu1 %v2802_v22  ;;  %v1956_v23 = vcombine.low %v3101_v47, %v1220_v19 }
  0x88   :  { %2368 = vmatprep.subr.bf16.mxu1 %v3149_v6 }
  0x8b   :  { %1505 = vmatmul.mubr.bf16.gmra.mrb[52].mxu0 %v2924_v35  ;;  %2376 = vmatpush3.bf16.msra.mxu1 %v3149_v6  ;;  %v3388_v35 = vrot.slane %v2791_v17, 1 }
  0x8c   :  { %1512 = vmatprep.mubr.bf16.mxu0 %v1876_v51  ;;  %2369 = vmatprep.subr.bf16.mxu1 %v3161_v4 }
  0x8d   :  { %v1954_v45 = vcombine.low %v3388_v35, %v1221_v56 }
  0x8e   :  { %2324 = vmatmul.mubr.bf16.gmra.mrb[4].mxu1 %v2813_v33 }
  0x8f   :  { %2377 = vmatpush3.bf16.msra.mxu1 %v3161_v4  ;;  %2327 = vmatprep.mubr.bf16.mxu1 %v1868_v61 }
  0x90   :  { %2370 = vmatprep.subr.bf16.mxu1 %v2566_v36 }
  0x93   :  { %1513 = vmatmul.mubr.bf16.gmra.mrb[56].mxu0 %v2953_v54  ;;  %2378 = vmatpush3.bf16.msra.mxu1 %v2566_v36  ;;  %v3389_v54 = vrot.slane %v2971_v10, 1 }
  0x94   :  { %1520 = vmatprep.mubr.bf16.mxu0 %v1956_v23  ;;  %2371 = vmatprep.subr.bf16.mxu1 %v2567_v52 }
  0x96   :  { %2328 = vmatmul.mubr.bf16.gmra.mrb[8].mxu1 %v2897_v16 }
  0x97   :  { %2379 = vmatpush3.bf16.msra.mxu1 %v2567_v52  ;;  %2331 = vmatprep.mubr.bf16.mxu1 %v2982_v29 }
  0x98   :  { %2372 = vmatprep.subr.bf16.mxu1 %v2568_v26 }
  0x9b   :  { %1521 = vmatmul.mubr.bf16.gmra.mrb[60].mxu0 %v1955_v46  ;;  %2380 = vmatpush3.bf16.msra.mxu1 %v2568_v26 }
  0x9c   :  { %2351 = vmatprep.mubr.bf16.mxu0 %v2722_v49  ;;  %2373 = vmatprep.subr.bf16.mxu1 %v2569_v50  ;;  %v1222_v49 = vrot.slane %v1903_v7, 1 }
  0x9e   :  { %2332 = vmatmul.mubr.bf16.gmra.mrb[12].mxu1 %v2984_v31 }
  0x9f   :  { %2381 = vmatpush3.bf16.msra.mxu1 %v2569_v50  ;;  %2359 = vmatprep.mubr.bf16.mxu1 %v2897_v16  ;;  %v1957_v16 = vcombine.low %v3389_v54, %v1222_v49 }
  0xa0   :  { %2374 = vmatprep.subr.bf16.mxu1 %v2572_v3 }
  0xa3   :  { %2352 = vmatmul.mubr.bf16.vlgmr.msra.gmra.mrb[64].mxu0 %v2802_v22  ;;  %2382 = vmatpush3.bf16.msra.mxu1 %v2572_v3 }
  0xa4   :  { %2355 = vmatprep.mubr.bf16.mxu0 %v2813_v33 }
  0xa6   :  { %2360 = vmatmul.mubr.bf16.vlgmr.msra.gmra.mrb[8].mxu1 %v2982_v29 }
  0xa7   :  { %2363 = vmatprep.mubr.bf16.mxu1 %v2984_v31 }
  0xab   :  { %2356 = vmatmul.mubr.bf16.gmra.mrb[68].mxu0 %v1954_v45 }
  0xae   :  { %2364 = vmatmul.mubr.bf16.gmra.mrb[12].mxu1 %v1957_v16 }
  0xf6   :  { %v2047_v0 = vpop.f32.mrb[0].mxu0 }
  0xf7   :  { %v2048_v22 = vpop.f32.mrb[1].mxu0 }
  0xf8   :  { %v2049_v47 = vadd.f32 %v2048_v22, %v2047_v0  ;;  %v2050_v39 = vpop.f32.mrb[2].mxu0 }
  0xf9   :  { %v2051_v25 = vpop.f32.mrb[3].mxu0 }
  0xfa   :  { %v2052_v28 = vadd.f32 %v2051_v25, %v2050_v39 }
  0xfe   :  { %v2053_v33 = vpop.f32.mrb[4].mxu0 }
  0xff   :  { %v2054_v12 = vpop.f32.mrb[5].mxu0 }
 0x100   :  { %v2055_v29 = vadd.f32 %v2054_v12, %v2053_v33  ;;  %v2056_v55 = vpop.f32.mrb[6].mxu0 }
 0x101   :  { %v2057_v17 = vpop.f32.mrb[7].mxu0 }
 0x102   :  { %v2058_v24 = vadd.f32 %v2057_v17, %v2056_v55 }
 0x106   :  { %v2059_v15 = vpop.f32.mrb[8].mxu0 }
 0x107   :  { %v2060_v30 = vpop.f32.mrb[9].mxu0 }
 0x108   :  { %v2061_v31 = vadd.f32 %v2060_v30, %v2059_v15  ;;  %v2062_v34 = vpop.f32.mrb[10].mxu0 }
 0x109   :  { %v2063_v13 = vpop.f32.mrb[11].mxu0 }
 0x10a   :  { %v2064_v10 = vadd.f32 %v2063_v13, %v2062_v34 }
 0x10e   :  { %v2065_v44 = vpop.f32.mrb[12].mxu0 }
 0x10f   :  { %v2066_v41 = vpop.f32.mrb[13].mxu0 }
 0x110   :  { %v2067_v53 = vadd.f32 %v2066_v41, %v2065_v44  ;;  %v2068_v32 = vpop.f32.mrb[14].mxu0 }
 0x111   :  { %v2069_v63 = vpop.f32.mrb[15].mxu0 }
 0x112   :  { %v2070_v62 = vadd.f32 %v2069_v63, %v2068_v32 }
 0x116   :  { %v2071_v42 = vpop.f32.mrb[16].mxu0 }
 0x117   :  { %v2072_v58 = vpop.f32.mrb[17].mxu0 }
 0x118   :  { %v3231_v11 = vadd.f32 %v2072_v58, %v2071_v42  ;;  %v2074_v1 = vpop.f32.mrb[18].mxu0 }
 0x119   :  { %v2075_v6 = vpop.f32.mrb[19].mxu0  ;;  %v2127_v18 = vpop.f32.mrb[16].mxu1 }
 0x11a   :  { %v3233_v14 = vadd.f32 %v2075_v6, %v2074_v1  ;;  %v2128_v43 = vpop.f32.mrb[17].mxu1 }
 0x11b   :  { %v2129_v4 = vadd.f32 %v2128_v43, %v2127_v18  ;;  %v2130_v40 = vpop.f32.mrb[18].mxu1 }
 0x11c   :  { %v2131_v20 = vpop.f32.mrb[19].mxu1 }
 0x11d   :  { %v2132_v36 = vadd.f32 %v2131_v20, %v2130_v40  ;;  %v3235_v21 = vadd.f32 %v2129_v4, %v2049_v47 }
 0x11e   :  { %v2077_v5 = vpop.f32.mrb[20].mxu0 }
 0x11f   :  { %v2078_v52 = vpop.f32.mrb[21].mxu0  ;;  %v3239_v51 = vadd.f32 %v2132_v36, %v2052_v28 }
 0x120   :  { %v3237_v38 = vadd.f32 %v2078_v52, %v2077_v5  ;;  %v2080_v26 = vpop.f32.mrb[22].mxu0 }
 0x121   :  { %v2081_v50 = vpop.f32.mrb[23].mxu0  ;;  %v2133_v60 = vpop.f32.mrb[20].mxu1 }
 0x122   :  { %v3241_v57 = vadd.f32 %v2081_v50, %v2080_v26  ;;  %v2134_v3 = vpop.f32.mrb[21].mxu1 }
 0x123   :  { %v2135_v8 = vadd.f32 %v2134_v3, %v2133_v60  ;;  %v2136_v59 = vpop.f32.mrb[22].mxu1 }
 0x124   :  { %v2137_v9 = vpop.f32.mrb[23].mxu1 }
 0x125   :  { %v2138_v7 = vadd.f32 %v2137_v9, %v2136_v59  ;;  %v3243_v37 = vadd.f32 %v2135_v8, %v2055_v29 }
 0x126   :  { %v2083_v27 = vpop.f32.mrb[24].mxu0 }
 0x127   :  { %v2084_v48 = vpop.f32.mrb[25].mxu0  ;;  %v3247_v19 = vadd.f32 %v2138_v7, %v2058_v24 }
 0x128   :  { %v3245_v2 = vadd.f32 %v2084_v48, %v2083_v27  ;;  %v2086_v61 = vpop.f32.mrb[26].mxu0 }
 0x129   :  { %v2087_v23 = vpop.f32.mrb[27].mxu0  ;;  %v2139_v46 = vpop.f32.mrb[24].mxu1 }
 0x12a   :  { %v3249_v56 = vadd.f32 %v2087_v23, %v2086_v61  ;;  %v2140_v35 = vpop.f32.mrb[25].mxu1 }
 0x12b   :  { %v2141_v45 = vadd.f32 %v2140_v35, %v2139_v46  ;;  %v2142_v49 = vpop.f32.mrb[26].mxu1 }
 0x12c   :  { %v2143_v54 = vpop.f32.mrb[27].mxu1 }
 0x12d   :  { %v2144_v16 = vadd.f32 %v2143_v54, %v2142_v49  ;;  %v3251_v22 = vadd.f32 %v2141_v45, %v2061_v31 }
 0x12e   :  { %v2089_v0 = vpop.f32.mrb[28].mxu0 }
 0x12f   :  { %v2090_v47 = vpop.f32.mrb[29].mxu0  ;;  %v3255_v28 = vadd.f32 %v2144_v16, %v2064_v10 }
 0x130   :  { %v3253_v39 = vadd.f32 %v2090_v47, %v2089_v0  ;;  %v2092_v25 = vpop.f32.mrb[30].mxu0 }
 0x131   :  { %v2093_v33 = vpop.f32.mrb[31].mxu0  ;;  %v2145_v12 = vpop.f32.mrb[28].mxu1 }
 0x132   :  { %v3257_v29 = vadd.f32 %v2093_v33, %v2092_v25  ;;  %v2146_v55 = vpop.f32.mrb[29].mxu1 }
 0x133   :  { %v2147_v17 = vadd.f32 %v2146_v55, %v2145_v12  ;;  %v2148_v24 = vpop.f32.mrb[30].mxu1 }
 0x134   :  { %v2149_v15 = vpop.f32.mrb[31].mxu1 }
 0x135   :  { %v2150_v30 = vadd.f32 %v2149_v15, %v2148_v24  ;;  %v3259_v13 = vadd.f32 %v2147_v17, %v2067_v53 }
 0x136   :  { %v2207_v34 = vpop.f32.mrb[32].mxu0 }
 0x137   :  { %v2208_v31 = vpop.f32.mrb[33].mxu0  ;;  %v3263_v32 = vadd.f32 %v2150_v30, %v2070_v62 }
 0x138   :  { %v3261_v44 = vadd.f32 %v2208_v31, %v2207_v34  ;;  %v2210_v41 = vpop.f32.mrb[34].mxu0 }
 0x139   :  { %v2211_v10 = vpop.f32.mrb[35].mxu0  ;;  %v2151_v63 = vpop.f32.mrb[32].mxu1 }
 0x13a   :  { %v3265_v42 = vadd.f32 %v2211_v10, %v2210_v41  ;;  %v2152_v58 = vpop.f32.mrb[33].mxu1 }
 0x13b   :  { %v2153_v1 = vadd.f32 %v2152_v58, %v2151_v63  ;;  %v2154_v6 = vpop.f32.mrb[34].mxu1 }
 0x13c   :  { %v2155_v18 = vpop.f32.mrb[35].mxu1 }
 0x13d   :  { %v2418_v43 = vadd.f32 %v2153_v1, %v3231_v11  ;;  %v2156_v4 = vadd.f32 %v2155_v18, %v2154_v6 }
 0x13e   :  { %v2213_v40 = vpop.f32.mrb[36].mxu0 }
 0x13f   :  { %v2214_v53 = vpop.f32.mrb[37].mxu0  ;;  %v2424_v20 = vadd.f32 %v2156_v4, %v3233_v14 }
 0x140   :  { %v2215_v36 = vadd.f32 %v2214_v53, %v2213_v40  ;;  %v2216_v5 = vpop.f32.mrb[38].mxu0 }
 0x141   :  { %v2217_v52 = vpop.f32.mrb[39].mxu0  ;;  %v2157_v62 = vpop.f32.mrb[36].mxu1 }
 0x142   :  { %v2218_v26 = vadd.f32 %v2217_v52, %v2216_v5  ;;  %v2158_v50 = vpop.f32.mrb[37].mxu1 }
 0x143   :  { %v2159_v60 = vadd.f32 %v2158_v50, %v2157_v62  ;;  %v2160_v3 = vpop.f32.mrb[38].mxu1 }
 0x144   :  { %v2161_v8 = vpop.f32.mrb[39].mxu1 }
 0x145   :  { %v2415_v59 = vadd.f32 %v2159_v60, %v3237_v38  ;;  %v2162_v9 = vadd.f32 %v2161_v8, %v2160_v3 }
 0x146   :  { %v2219_v7 = vpop.f32.mrb[40].mxu0 }
 0x147   :  { %v2220_v27 = vpop.f32.mrb[41].mxu0  ;;  %v2421_v11 = vadd.f32 %v2162_v9, %v3241_v57 }
 0x148   :  { %v3271_v48 = vadd.f32 %v2220_v27, %v2219_v7  ;;  %v2222_v61 = vpop.f32.mrb[42].mxu0 }
 0x149   :  { %v2223_v14 = vpop.f32.mrb[43].mxu0  ;;  %v2163_v23 = vpop.f32.mrb[40].mxu1 }
 0x14a   :  { %v3273_v46 = vadd.f32 %v2223_v14, %v2222_v61  ;;  %v2164_v35 = vpop.f32.mrb[41].mxu1 }
 0x14b   :  { %v2165_v45 = vadd.f32 %v2164_v35, %v2163_v23  ;;  %v2166_v49 = vpop.f32.mrb[42].mxu1 }
 0x14c   :  { %v2167_v54 = vpop.f32.mrb[43].mxu1 }
 0x14d   :  { %v3276_v16 = vadd.f32 %v2165_v45, %v3245_v2  ;;  %v2168_v38 = vadd.f32 %v2167_v54, %v2166_v49 }
 0x14e   :  { %v2225_v0 = vpop.f32.mrb[44].mxu0 }
 0x14f   :  { %v2226_v47 = vpop.f32.mrb[45].mxu0  ;;  %v2436_v25 = vadd.f32 %v2168_v38, %v3249_v56 }
 0x150   :  { %v2227_v57 = vadd.f32 %v2226_v47, %v2225_v0  ;;  %v2228_v33 = vpop.f32.mrb[46].mxu0 }
 0x151   :  { %v2229_v12 = vpop.f32.mrb[47].mxu0  ;;  %v2169_v55 = vpop.f32.mrb[44].mxu1 }
 0x152   :  { %v2230_v17 = vadd.f32 %v2229_v12, %v2228_v33  ;;  %v2170_v24 = vpop.f32.mrb[45].mxu1 }
 0x153   :  { %v2171_v15 = vadd.f32 %v2170_v24, %v2169_v55  ;;  %v2172_v30 = vpop.f32.mrb[46].mxu1 }
 0x154   :  { %v2173_v34 = vpop.f32.mrb[47].mxu1 }
 0x155   :  { %v2427_v31 = vadd.f32 %v2171_v15, %v3253_v39  ;;  %v2174_v41 = vadd.f32 %v2173_v34, %v2172_v30 }
 0x156   :  { %v2231_v10 = vpop.f32.mrb[48].mxu0 }
 0x157   :  { %v2232_v2 = vpop.f32.mrb[49].mxu0  ;;  %v2433_v63 = vadd.f32 %v2174_v41, %v3257_v29 }
 0x158   :  { %v2233_v58 = vadd.f32 %v2232_v2, %v2231_v10  ;;  %v2234_v1 = vpop.f32.mrb[50].mxu0 }
 0x159   :  { %v2235_v6 = vpop.f32.mrb[51].mxu0  ;;  %v2321_v56 = vpop.f32.mrb[0].mxu1 }
 0x15a   :  { %v2236_v18 = vadd.f32 %v2235_v6, %v2234_v1  ;;  %v3281_v4 = vadd.f32 %v2418_v43, %v2233_v58  ;;  %v2384_v40 = vadd.f32 %v3243_v37, %v2321_v56  ;;  %v1134_v53 = vpop.f32.mrb[1].mxu1 }
 0x15b   :  { %v2388_v5 = vadd.f32 %v3235_v21, %v1134_v53  ;;  %v2322_v52 = vpop.f32.mrb[2].mxu1 }
 0x15c   :  { %v3285_v62 = vadd.f32 %v2424_v20, %v2236_v18  ;;  %v2392_v39 = vadd.f32 %v3247_v19, %v2322_v52  ;;  %v1137_v50 = vpop.f32.mrb[3].mxu1  ;;  %v2385_v60 = vadd.f32 %v2384_v40, %v2215_v36 }
 0x15d   :  { %v2396_v29 = vadd.f32 %v3239_v51, %v1137_v50  ;;  %v2389_v8 = vadd.f32 %v2388_v5, %v3261_v44 }
 0x15e   :  { %v2237_v3 = vpop.f32.mrb[52].mxu0  ;;  %v2393_v43 = vadd.f32 %v2392_v39, %v2218_v26 }
 0x15f   :  { %v2238_v9 = vpop.f32.mrb[53].mxu0  ;;  %v2397_v37 = vadd.f32 %v2396_v29, %v3265_v42 }
 0x160   :  { %v2239_v7 = vadd.f32 %v2238_v9, %v2237_v3  ;;  %v2240_v27 = vpop.f32.mrb[54].mxu0 }
 0x161   :  { %v2241_v61 = vpop.f32.mrb[55].mxu0  ;;  %v2325_v21 = vpop.f32.mrb[4].mxu1 }
 0x162   :  { %v2242_v14 = vadd.f32 %v2241_v61, %v2240_v27  ;;  %v2416_v20 = vadd.f32 %v2415_v59, %v2239_v7  ;;  %v2400_v23 = vadd.f32 %v3259_v13, %v2325_v21  ;;  %v1150_v19 = vpop.f32.mrb[5].mxu1 }
 0x163   :  { %v2404_v36 = vadd.f32 %v3251_v22, %v1150_v19  ;;  %v2326_v35 = vpop.f32.mrb[6].mxu1 }
 0x164   :  { %v2422_v51 = vadd.f32 %v2421_v11, %v2242_v14  ;;  %v2408_v45 = vadd.f32 %v3263_v32, %v2326_v35  ;;  %v1153_v44 = vpop.f32.mrb[7].mxu1  ;;  %v2401_v49 = vadd.f32 %v2400_v23, %v2227_v57 }
 0x165   :  { %v2412_v26 = vadd.f32 %v3255_v28, %v1153_v44  ;;  %v2405_v42 = vadd.f32 %v2404_v36, %v3271_v48 }
 0x166   :  { %v2243_v54 = vpop.f32.mrb[56].mxu0  ;;  %v3296_v0 = vadd.f32 %v2408_v45, %v2230_v17 }
 0x167   :  { %v2244_v38 = vpop.f32.mrb[57].mxu0  ;;  %v3299_v13 = vadd.f32 %v2412_v26, %v3273_v46  ;;  %v3311_v46 = vld [vmem:[%s3383_s2] ss:$0 sm:$0xff] }
 0x168   :  { %v2245_v59 = vadd.f32 %v2244_v38, %v2243_v54  ;;  %v2246_v47 = vpop.f32.mrb[58].mxu0 }
 0x169   :  { %v2247_v22 = vpop.f32.mrb[59].mxu0 }
 0x16a   :  { %v2248_v33 = vadd.f32 %v2247_v22, %v2246_v47  ;;  %v3302_v11 = vadd.f32 %v3276_v16, %v2245_v59 }
 0x16c   :  { %v3304_v32 = vadd.f32 %v2436_v25, %v2248_v33  ;;  %v3316_v25 = vld [vmem:[%s3384_s3] ss:$0 sm:$0xff] }
 0x16e   :  { %v2249_v57 = vpop.f32.mrb[60].mxu0 }
 0x16f   :  { %v2250_v28 = vpop.f32.mrb[61].mxu0 }
 0x170   :  { %v2251_v12 = vadd.f32 %v2250_v28, %v2249_v57  ;;  %v2252_v55 = vpop.f32.mrb[62].mxu0 }
 0x171   :  { %v2253_v48 = vpop.f32.mrb[63].mxu0 }
 0x172   :  { %v2254_v24 = vadd.f32 %v2253_v48, %v2252_v55  ;;  %v2428_v17 = vadd.f32 %v2427_v31, %v2251_v12 }
 0x174   :  { %v3306_v15 = vadd.f32 %v2433_v63, %v2254_v24 }
 0x176   :  { %v2353_v30 = vpop.f32.mrb[64].mxu0 }
 0x177   :  { %v2386_v34 = vadd.f32 %v2385_v60, %v2353_v30  ;;  %v1563_v16 = vpop.f32.mrb[65].mxu0 }
 0x178   :  { %v2390_v41 = vadd.f32 %v2389_v8, %v1563_v16  ;;  %v2354_v10 = vpop.f32.mrb[66].mxu0 }
 0x179   :  { %v1651_v2 = vmul.f32 %v2386_v34, %v3311_v46  ;;  %v2394_v31 = vadd.f32 %v2393_v43, %v2354_v10  ;;  %v1566_v63 = vpop.f32.mrb[67].mxu0  ;;  %v2361_v58 = vpop.f32.mrb[8].mxu1 }
 0x17a   :  { %v1649_v1 = vmul.f32 %v2390_v41, %v3311_v46  ;;  %v2398_v6 = vadd.f32 %v2397_v37, %v1566_v63  ;;  %v2417_v18 = vadd.f32 %v2416_v20, %v2361_v58  ;;  %v1595_v40 = vpop.f32.mrb[9].mxu1 }
 0x17b   :  { %v1674_v56 = vadd.f32 %v3316_v25, %v1651_v2  ;;  %v1652_v53 = vmul.f32 %v2394_v31, %v3311_v46  ;;  %v2420_v52 = vadd.f32 %v3281_v4, %v1595_v40  ;;  %v2362_v39 = vpop.f32.mrb[10].mxu1 }
 0x17c   :  { %v1672_v5 = vadd.f32 %v3316_v25, %v1649_v1  ;;  %v1650_v50 = vmul.f32 %v2398_v6, %v3311_v46  ;;  %v1659_v29 = vmul.f32 %v2417_v18, %v3311_v46  ;;  %v2423_v8 = vadd.f32 %v2422_v51, %v2362_v39  ;;  %v1598_v9 = vpop.f32.mrb[11].mxu1 }
 0x17d   :  { %v1690_v60 = vmax.f32 %v1674_v56, 0.0  ;;  %v1675_v3 = vadd.f32 %v3316_v25, %v1652_v53  ;;  %v1657_v7 = vmul.f32 %v2420_v52, %v3311_v46  ;;  %v2426_v37 = vadd.f32 %v3285_v62, %v1598_v9 }
 0x17e   :  { %v1688_v43 = vmax.f32 %v1672_v5, 0.0  ;;  %v1673_v27 = vadd.f32 %v3316_v25, %v1650_v50  ;;  %v2357_v61 = vpop.f32.mrb[68].mxu0  ;;  %v1682_v4 = vadd.f32 %v3316_v25, %v1659_v29  ;;  %v1660_v14 = vmul.f32 %v2423_v8, %v3311_v46 }
 0x17f   :  { %v1691_v21 = vmax.f32 %v1675_v3, 0.0  ;;  %v2402_v20 = vadd.f32 %v2401_v49, %v2357_v61  ;;  %v1579_v23 = vpop.f32.mrb[69].mxu0  ;;  %v1680_v19 = vadd.f32 %v3316_v25, %v1657_v7  ;;  %v1658_v35 = vmul.f32 %v2426_v37, %v3311_v46 }
 0x180   :  { %v1689_v36 = vmax.f32 %v1673_v27, 0.0  ;;  %v2406_v51 = vadd.f32 %v2405_v42, %v1579_v23  ;;  %v2358_v45 = vpop.f32.mrb[70].mxu0  ;;  %v1683_v26 = vadd.f32 %v3316_v25, %v1660_v14  ;;  %v1698_v38 = vmax.f32 %v1682_v4, 0.0 }
 0x181   :  { %v1992_v44 = vpack.c.bf16 %v1691_v21, %v1690_v60  ;;  %v1655_v62 = vmul.f32 %v2402_v20, %v3311_v46  ;;  %v1582_v54 = vpop.f32.mrb[71].mxu0  ;;  %v1696_v59 = vmax.f32 %v1680_v19, 0.0  ;;  %v1681_v22 = vadd.f32 %v3316_v25, %v1658_v35  ;;  %v2365_v49 = vpop.f32.mrb[12].mxu1 }
 0x182   :  { %v1987_v47 = vpack.c.bf16 %v1689_v36, %v1688_v43  ;;  %v1699_v33 = vmax.f32 %v1683_v26, 0.0  ;;  %v2429_v57 = vadd.f32 %v2428_v17, %v2365_v49  ;;  %v1653_v42 = vmul.f32 %v2406_v51, %v3311_v46  ;;  %v1611_v28 = vpop.f32.mrb[13].mxu1 }
 0x183   :  { %2024 = vst [vmem:[%s3385_s4 + $0x8] sm:$0xff] %v1992_v44   ;;  %v2410_v12 = vadd.f32 %v3296_v0, %v2358_v45  ;;  %v1697_v55 = vmax.f32 %v1681_v22, 0.0  ;;  %v1678_v48 = vadd.f32 %v3316_v25, %v1655_v62  ;;  %v2432_v24 = vadd.f32 %v3302_v11, %v1611_v28  ;;  %v2366_v30 = vpop.f32.mrb[14].mxu1 }
 0x184   :  { %1988 = vst [vmem:[%s3385_s4] sm:$0xff] %v1987_v47   ;;  %v2414_v34 = vadd.f32 %v3299_v13, %v1582_v54  ;;  %v2012_v16 = vpack.c.bf16 %v1699_v33, %v1698_v38  ;;  %v1663_v17 = vmul.f32 %v2429_v57, %v3311_v46  ;;  %v1614_v10 = vpop.f32.mrb[15].mxu1  ;;  %v2435_v31 = vadd.f32 %v3306_v15, %v2366_v30 }
 0x185   :  { %v1656_v41 = vmul.f32 %v2410_v12, %v3311_v46  ;;  %v2007_v2 = vpack.c.bf16 %v1697_v55, %v1696_v59  ;;  %v1661_v0 = vmul.f32 %v2432_v24, %v3311_v46  ;;  %v1676_v11 = vadd.f32 %v3316_v25, %v1653_v42 }
 0x186   :  { %2028 = vst [vmem:[%s3385_s4 + $0x28] sm:$0xff] %v2012_v16   ;;  %v1654_v13 = vmul.f32 %v2414_v34, %v3311_v46  ;;  %v2438_v58 = vadd.f32 %v3304_v32, %v1614_v10  ;;  %v1694_v1 = vmax.f32 %v1678_v48, 0.0  ;;  %v1686_v6 = vadd.f32 %v3316_v25, %v1663_v17 }
 0x187   :  { %v1679_v63 = vadd.f32 %v3316_v25, %v1656_v41  ;;  %2027 = vst [vmem:[%s3385_s4 + $0x20] sm:$0xff] %v2007_v2   ;;  %v1664_v15 = vmul.f32 %v2435_v31, %v3311_v46  ;;  %v1684_v56 = vadd.f32 %v3316_v25, %v1661_v0  ;;  %v1692_v52 = vmax.f32 %v1676_v11, 0.0 }
 0x188   :  { %v1677_v40 = vadd.f32 %v3316_v25, %v1654_v13  ;;  %v1662_v53 = vmul.f32 %v2438_v58, %v3311_v46  ;;  %v1702_v60 = vmax.f32 %v1686_v6, 0.0 }
 0x189   :  { %v1695_v18 = vmax.f32 %v1679_v63, 0.0  ;;  %v1687_v5 = vadd.f32 %v3316_v25, %v1664_v15  ;;  %v1700_v3 = vmax.f32 %v1684_v56, 0.0 }
 0x18a   :  { %v1693_v39 = vmax.f32 %v1677_v40, 0.0  ;;  %v1685_v50 = vadd.f32 %v3316_v25, %v1662_v53 }
 0x18b   :  { %v2002_v32 = vpack.c.bf16 %v1695_v18, %v1694_v1  ;;  %v1703_v29 = vmax.f32 %v1687_v5, 0.0 }
 0x18c   :  { %v1997_v8 = vpack.c.bf16 %v1693_v39, %v1692_v52  ;;  %v1701_v9 = vmax.f32 %v1685_v50, 0.0 }
 0x18d   :  { %2026 = vst [vmem:[%s3385_s4 + $0x18] sm:$0xff] %v2002_v32   ;;  %v2022_v43 = vpack.c.bf16 %v1703_v29, %v1702_v60 }
 0x18e   :  { %2025 = vst [vmem:[%s3385_s4 + $0x10] sm:$0xff] %v1997_v8   ;;  %v2017_v46 = vpack.c.bf16 %v1701_v9, %v1700_v3 }
 0x18f   :  { %2030 = vst [vmem:[%s3385_s4 + $0x38] sm:$0xff] %v2022_v43  }
 0x190   :  { %2029 = vst [vmem:[%s3385_s4 + $0x30] sm:$0xff] %v2017_v46  }

// kernel: _lambda_.7
= control target key start
LH: loop header
LB: loop body
LE: loop exit
PB: predicated region body
PF: predicated region fallthrough
CT: control target
= control target key end

     0   :  { %vm382_vm0 = vsmask.f32 7424  ;;  %s3519_s7 = smov 8   ;;  %vm831_vm1 = vcmask 1046528   ;;  %s3520_s18 = smov 16   ;;  %vm2089_vm2 = vcmask 1043456   ;;  %s5773_s0 = inlined_call_operand.vmem [shape: bf16[2,18,18,8], index: 0, kind: input, shape index: {}]   ;;  %s5774_s1 = inlined_call_operand.vmem [shape: bf16[72,128], index: 1, kind: input, shape index: {}]   ;;  %s5775_s2 = inlined_call_operand.vmem [shape: f32[1,128], index: 2, kind: input, shape index: {}]   ;;  %s5776_s3 = inlined_call_operand.vmem [shape: f32[1,128], index: 3, kind: input, shape index: {}]   ;;  %s5777_s4 = inlined_call_operand.vmem [shape: bf16[2,16,16,128], index: 4, kind: output, shape index: {}]  }
   0x1   :  { %v3555_v0 = vld [vmem:[%s5773_s0 + $0x18] sm:$0xff]   ;;  %v3560_v1 = vld [vmem:[%s5773_s0 + $0x20] ss:$0 sps:$4 sm:$0x11]   ;;  %v3581_v12 = vld [vmem:[%s5773_s0 + $0x24] sm:$0xff]   ;;  %s3521_s20 = smov 24  }
   0x2   :  { %v3565_v2 = vld [vmem:[%s5773_s0] sm:$0xff]   ;;  %v408_v3 = vshrl.u32 %v3555_v0, 16  ;;  %v410_v4 = vshll.u32 %v3555_v0, 16  ;;  %v415_v5 = vshll.u32 %v3560_v1, 16  ;;  %v420_v17 = vshrl.u32 %v3581_v12, 16  ;;  %v3593_v19 = vld [vmem:[%s5773_s0 + $0xc] sm:$0xff]  }
   0x3   :  { %v3573_v6 = vld [vmem:[%s5773_s0 + $0x8] ss:$0 sps:$4 sm:$0x11]   ;;  %v384_v7 = vshrl.u32 %v3565_v2, 16  ;;  %v386_v8 = vshll.u32 %v3565_v2, 16  ;;  %v422_v18 = vshll.u32 %v3581_v12, 16 }
   0x4   :  { %v412_v9 = vrot.slane %v410_v4, 1  ;;  %v417_v10 = vrot.slane %v415_v5, 1  ;;  %v391_v11 = vshll.u32 %v3573_v6, 16  ;;  %v3586_v14 = vld [vmem:[%s5773_s0 + $0x2c] ss:$0 sps:$4 sm:$0x11]  }
   0x5   :  { %v388_v13 = vrot.slane %v386_v8, 1  ;;  %v427_v21 = vshll.u32 %v3586_v14, 16  ;;  %v3599_v22 = vld [vmem:[%s5773_s0 + $0x14] ss:$0 sps:$4 sm:$0x11]   ;;  %v424_v24 = vrot.slane %v422_v18, 1 }
   0x6   :  { %v413_v15 = vor.u32 %v412_v9, %v408_v3  ;;  %v393_v16 = vrot.slane %v391_v11, 1  ;;  %v396_v25 = vshrl.u32 %v3593_v19, 16  ;;  %v398_v26 = vshll.u32 %v3593_v19, 16  ;;  %v3609_v27 = vld [vmem:[%s5773_s0 + $0x3c] sm:$0xff]   ;;  %v3626_v37 = vld [vmem:[%s5773_s0 + $0x30] sm:$0xff]   ;;  %v3652_v49 = vld [vmem:[%s5773_s0 + $0x48] sm:$0xff]  }
   0x7   :  { %v389_v20 = vor.u32 %v388_v13, %v384_v7  ;;  %v429_v29 = vrot.slane %v427_v21, 1  ;;  %v403_v30 = vshll.u32 %v3599_v22, 16  ;;  %v425_v31 = vor.u32 %v424_v24, %v420_v17  ;;  %v3619_v33 = vld [vmem:[%s5773_s0 + $0x44] ss:$0 sps:$4 sm:$0x11]   ;;  %v3644_v45 = vld [vmem:[%s5773_s0 + $0x54] sm:$0xff]  }
   0x8   :  { %v3602_v23 = vsel %vm382_vm0, %v413_v15, %v417_v10  ;;  %v400_v32 = vrot.slane %v398_v26, 1  ;;  %v444_v34 = vshrl.u32 %v3609_v27, 16  ;;  %v446_v35 = vshll.u32 %v3609_v27, 16  ;;  %v3637_v42 = vld [vmem:[%s5773_s0 + $0x38] ss:$0 sps:$4 sm:$0x11]  }
   0x9   :  { %5875 = vst [vmem:[#allocation2_spill] sm:$0xff] %v3602_v23  ;;  %771 = vrot.lane.b32.xlu1 %v3602_v23, %s3519_s7  ;;  %v394_v28 = vsel %vm382_vm0, %v389_v20, %v393_v16  ;;  %v405_v36 = vrot.slane %v403_v30, 1  ;;  %v3629_v38 = vsel %vm382_vm0, %v425_v31, %v429_v29  ;;  %v451_v41 = vshll.u32 %v3619_v33, 16  ;;  %v3660_v52 = vld [vmem:[%s5773_s0 + $0x5c] ss:$0 sps:$4 sm:$0x11]  }
   0xa   :  { %767 = vrot.lane.b32.xlu0 %v394_v28, %s3519_s7  ;;  %5876 = vst [vmem:[#allocation3_spill] sm:$0xff] %v3629_v38  ;;  %v401_v39 = vor.u32 %v400_v32, %v396_v25  ;;  %v448_v40 = vrot.slane %v446_v35, 1  ;;  %v432_v43 = vshrl.u32 %v3626_v37, 16  ;;  %v434_v44 = vshll.u32 %v3626_v37, 16  ;;  %v3675_v61 = vld [vmem:[%s5773_s0 + $0x6c] sm:$0xff]   ;;  %v3702_v20 = vld [vmem:[%s5773_s0 + $0x60] sm:$0xff]  }
   0xb   :  { %v453_v48 = vrot.slane %v451_v41, 1  ;;  %v439_v51 = vshll.u32 %v3637_v42, 16  ;;  %v468_v53 = vshrl.u32 %v3644_v45, 16  ;;  %v470_v55 = vshll.u32 %v3644_v45, 16  ;;  %v3714_v24 = vld [vmem:[%s5773_s0 + $0x84] sm:$0xff]   ;;  %s3522_s8 = smov 32  }
   0xc   :  { %v3647_v46 = vsel %vm382_vm0, %v401_v39, %v405_v36  ;;  %v449_v47 = vor.u32 %v448_v40, %v444_v34  ;;  %v436_v50 = vrot.slane %v434_v44, 1  ;;  %v456_v56 = vshrl.u32 %v3652_v49, 16  ;;  %v3680_v63 = vld [vmem:[%s5773_s0 + $0x50] ss:$0 sps:$4 sm:$0x11]   ;;  %v3737_v39 = vld [vmem:[%s5773_s0 + $0x78] sm:$0xff]  }
   0xd   :  { %773 = vrot.lane.b32.xlu1 %v3629_v38, %s3519_s7  ;;  %5877 = vst [vmem:[#allocation4_spill] sm:$0xff] %v3647_v46  ;;  %v441_v58 = vrot.slane %v439_v51, 1  ;;  %v475_v59 = vshll.u32 %v3660_v52, 16  ;;  %v458_v60 = vshll.u32 %v3652_v49, 16  ;;  %v472_v62 = vrot.slane %v470_v55, 1  ;;  %v3752_v51 = vld [vmem:[%s5773_s0 + $0x9c] sm:$0xff]  }
   0xe   :  { %769 = vrot.lane.b32.xlu0 %v3647_v46, %s3519_s7  ;;  %v3664_v54 = vsel %vm382_vm0, %v449_v47, %v453_v48  ;;  %v437_v57 = vor.u32 %v436_v50, %v432_v43  ;;  %v463_v8 = vshll.u32 %v3680_v63, 16  ;;  %v3691_v9 = vld [vmem:[%s5773_s0 + $0x74] ss:$0 sps:$4 sm:$0x11]   ;;  %v492_v10 = vshrl.u32 %v3675_v61, 16  ;;  %v3960_v23 = vld [vmem:[%s5773_s0 + $0x144] sm:$0xff]  }
   0xf   :  { %5878 = vst [vmem:[#allocation5_spill] sm:$0xff] %v3664_v54  ;;  %v477_v4 = vrot.slane %v475_v59, 1  ;;  %v460_v5 = vrot.slane %v458_v60, 1  ;;  %v473_v7 = vor.u32 %v472_v62, %v468_v53  ;;  %v494_v11 = vshll.u32 %v3675_v61, 16  ;;  %5897 = vst [vmem:[#allocation24_spill] sm:$0xff] %v3960_v23  ;;  %s3523_s11 = smov 40  }
  0x10   :  { %v3683_v3 = vsel %vm382_vm0, %v437_v57, %v441_v58  ;;  %v465_v16 = vrot.slane %v463_v8, 1  ;;  %v499_v18 = vshll.u32 %v3691_v9, 16  ;;  %v3709_v21 = vld [vmem:[%s5773_s0 + $0x68] ss:$0 sps:$4 sm:$0x11]   ;;  %v480_v29 = vshrl.u32 %v3702_v20, 16 }
  0x11   :  { %777 = vrot.lane.b32.xlu1 %v3664_v54, %s3519_s7  ;;  %5879 = vst [vmem:[#allocation6_spill] sm:$0xff] %v3683_v3  ;;  %v461_v13 = vor.u32 %v460_v5, %v456_v56  ;;  %v3696_v15 = vsel %vm382_vm0, %v473_v7, %v477_v4  ;;  %v496_v17 = vrot.slane %v494_v11, 1  ;;  %v482_v30 = vshll.u32 %v3702_v20, 16  ;;  %v3727_v32 = vld [vmem:[%s5773_s0 + $0x8c] ss:$0 sps:$4 sm:$0x11]  }
  0x12   :  { %775 = vrot.lane.b32.xlu0 %v3683_v3, %s3519_s7  ;;  %5880 = vst [vmem:[#allocation7_spill] sm:$0xff] %v3696_v15  ;;  %v501_v28 = vrot.slane %v499_v18, 1  ;;  %v487_v31 = vshll.u32 %v3709_v21, 16  ;;  %v516_v34 = vshrl.u32 %v3714_v24, 16  ;;  %v518_v36 = vshll.u32 %v3714_v24, 16  ;;  %v3768_v7 = vld [vmem:[%s5773_s0 + $0x90] sm:$0xff]  }
  0x13   :  { %v3717_v25 = vsel %vm382_vm0, %v461_v13, %v465_v16  ;;  %v497_v26 = vor.u32 %v496_v17, %v492_v10  ;;  %v484_v40 = vrot.slane %v482_v30, 1  ;;  %v523_v43 = vshll.u32 %v3727_v32, 16  ;;  %v3745_v44 = vld [vmem:[%s5773_s0 + $0x80] ss:$0 sps:$4 sm:$0x11]   ;;  %s3524_s16 = smov 48  }
  0x14   :  { %5881 = vst [vmem:[#allocation8_spill] sm:$0xff] %v3717_v25  ;;  %v489_v41 = vrot.slane %v487_v31, 1  ;;  %v520_v47 = vrot.slane %v518_v36, 1  ;;  %v504_v48 = vshrl.u32 %v3737_v39, 16  ;;  %v506_v50 = vshll.u32 %v3737_v39, 16  ;;  %v3796_v31 = vld [vmem:[%s5773_s0 + $0xa8] sm:$0xff]  }
  0x15   :  { %781 = vrot.lane.b32.xlu1 %v3696_v15, %s3519_s7  ;;  %v3731_v35 = vsel %vm382_vm0, %v497_v26, %v501_v28  ;;  %v485_v53 = vor.u32 %v484_v40, %v480_v29  ;;  %v525_v55 = vrot.slane %v523_v43, 1  ;;  %v511_v56 = vshll.u32 %v3745_v44, 16  ;;  %v3758_v59 = vld [vmem:[%s5773_s0 + $0xa4] ss:$0 sps:$4 sm:$0x11]   ;;  %v3788_v26 = vld [vmem:[%s5773_s0 + $0xb4] sm:$0xff]  }
  0x16   :  { %779 = vrot.lane.b32.xlu0 %v3717_v25, %s3519_s7  ;;  %5882 = vst [vmem:[#allocation9_spill] sm:$0xff] %v3731_v35  ;;  %v521_v57 = vor.u32 %v520_v47, %v516_v34  ;;  %v508_v58 = vrot.slane %v506_v50, 1  ;;  %v540_v60 = vshrl.u32 %v3752_v51, 16  ;;  %v542_v62 = vshll.u32 %v3752_v51, 16  ;;  %s3525_s21 = smov 56  }
  0x17   :  { %v3763_v4 = vsel %vm382_vm0, %v485_v53, %v489_v41  ;;  %v513_v5 = vrot.slane %v511_v56, 1  ;;  %v547_v13 = vshll.u32 %v3758_v59, 16  ;;  %v3781_v16 = vld [vmem:[%s5773_s0 + $0x98] ss:$0 sps:$4 sm:$0x11]   ;;  %v528_v17 = vshrl.u32 %v3768_v7, 16 }
  0x18   :  { %5883 = vst [vmem:[#allocation10_spill] sm:$0xff] %v3763_v4  ;;  %v3773_v8 = vsel %vm382_vm0, %v521_v57, %v525_v55  ;;  %v509_v10 = vor.u32 %v508_v58, %v504_v48  ;;  %v544_v11 = vrot.slane %v542_v62, 1  ;;  %v530_v18 = vshll.u32 %v3768_v7, 16  ;;  %v3802_v40 = vld [vmem:[%s5773_s0 + $0xbc] ss:$0 sps:$4 sm:$0x11]  }
  0x19   :  { %785 = vrot.lane.b32.xlu1 %v3731_v35, %s3519_s7  ;;  %5884 = vst [vmem:[#allocation11_spill] sm:$0xff] %v3773_v8  ;;  %v549_v30 = vrot.slane %v547_v13, 1  ;;  %v535_v36 = vshll.u32 %v3781_v16, 16  ;;  %v564_v41 = vshrl.u32 %v3788_v26, 16  ;;  %v566_v47 = vshll.u32 %v3788_v26, 16  ;;  %v3819_v57 = vld [vmem:[%s5773_s0 + $0xe4] sm:$0xff]  }
  0x1a   :  { %783 = vrot.lane.b32.xlu0 %v3763_v4, %s3519_s7  ;;  %v3791_v28 = vsel %vm382_vm0, %v509_v10, %v513_v5  ;;  %v545_v29 = vor.u32 %v544_v11, %v540_v60  ;;  %v532_v34 = vrot.slane %v530_v18, 1  ;;  %v552_v48 = vshrl.u32 %v3796_v31, 16  ;;  %v3824_v60 = vld [vmem:[%s5773_s0 + $0xb0] ss:$0 sps:$4 sm:$0x11]  }
  0x1b   :  { %5885 = vst [vmem:[#allocation12_spill] sm:$0xff] %v3791_v28  ;;  %v537_v53 = vrot.slane %v535_v36, 1  ;;  %v571_v55 = vshll.u32 %v3802_v40, 16  ;;  %v554_v56 = vshll.u32 %v3796_v31, 16  ;;  %v568_v58 = vrot.slane %v566_v47, 1 }
  0x1c   :  { %v3808_v43 = vsel %vm382_vm0, %v545_v29, %v549_v30  ;;  %v533_v50 = vor.u32 %v532_v34, %v528_v17  ;;  %v559_v13 = vshll.u32 %v3824_v60, 16  ;;  %v3835_v17 = vld [vmem:[%s5773_s0 + $0xec] ss:$0 sps:$4 sm:$0x11]   ;;  %v588_v18 = vshrl.u32 %v3819_v57, 16 }
  0x1d   :  { %789 = vrot.lane.b32.xlu1 %v3773_v8, %s3519_s7  ;;  %5886 = vst [vmem:[#allocation13_spill] sm:$0xff] %v3808_v43  ;;  %v573_v5 = vrot.slane %v571_v55, 1  ;;  %v556_v10 = vrot.slane %v554_v56, 1  ;;  %v569_v11 = vor.u32 %v568_v58, %v564_v41  ;;  %v590_v29 = vshll.u32 %v3819_v57, 16  ;;  %v3846_v41 = vld [vmem:[%s5773_s0 + $0xd8] sm:$0xff]  }
  0x1e   :  { %787 = vrot.lane.b32.xlu0 %v3791_v28, %s3519_s7  ;;  %v3827_v62 = vsel %vm382_vm0, %v533_v50, %v537_v53  ;;  %v561_v36 = vrot.slane %v559_v13, 1  ;;  %v595_v50 = vshll.u32 %v3835_v17, 16  ;;  %v3853_v53 = vld [vmem:[%s5773_s0 + $0xe0] ss:$0 sps:$4 sm:$0x11]   ;;  %v684_v46 = vshrl.u32 %v3960_v23, 16 }
  0x1f   :  { %5887 = vst [vmem:[#allocation14_spill] sm:$0xff] %v3827_v62  ;;  %v557_v30 = vor.u32 %v556_v10, %v552_v48  ;;  %v3840_v34 = vsel %vm382_vm0, %v569_v11, %v573_v5  ;;  %v592_v47 = vrot.slane %v590_v29, 1  ;;  %v3858_v48 = vld [vmem:[%s5773_s0 + $0xfc] sm:$0xff]   ;;  %v576_v5 = vshrl.u32 %v3846_v41, 16 }
  0x20   :  { %5888 = vst [vmem:[#allocation15_spill] sm:$0xff] %v3840_v34  ;;  %v597_v58 = vrot.slane %v595_v50, 1  ;;  %v578_v10 = vshll.u32 %v3846_v41, 16  ;;  %v583_v11 = vshll.u32 %v3853_v53, 16  ;;  %v612_v29 = vshrl.u32 %v3858_v48, 16 }
  0x21   :  { %793 = vrot.lane.b32.xlu1 %v3808_v43, %s3519_s7  ;;  %v3861_v55 = vsel %vm382_vm0, %v557_v30, %v561_v36  ;;  %v593_v56 = vor.u32 %v592_v47, %v588_v18  ;;  %v3871_v13 = vld [vmem:[%s5773_s0 + $0x104] ss:$0 sps:$4 sm:$0x11]   ;;  %v614_v18 = vshll.u32 %v3858_v48, 16  ;;  %v3881_v36 = vld [vmem:[%s5773_s0 + $0xf0] sm:$0xff]   ;;  %vm1468_vm3 = vcmask 64512  }
  0x22   :  { %791 = vrot.lane.b32.xlu0 %v3827_v62, %s3519_s7  ;;  %5889 = vst [vmem:[#allocation16_spill] sm:$0xff] %v3861_v55  ;;  %v580_v47 = vrot.slane %v578_v10, 1  ;;  %v585_v50 = vrot.slane %v583_v11, 1  ;;  %v602_v43 = vshll.u32 %v3881_v36, 16  ;;  %v3896_v62 = vld [vmem:[%s5773_s0 + $0x114] sm:$0xff]   ;;  %vm1533_vm4 = vcmask 130048  }
  0x23   :  { %v3875_v30 = vsel %vm382_vm0, %v593_v56, %v597_v58  ;;  %v616_v56 = vrot.slane %v614_v18, 1  ;;  %v600_v58 = vshrl.u32 %v3881_v36, 16  ;;  %v3902_v4 = vld [vmem:[%s5773_s0 + $0x11c] ss:$0 sps:$4 sm:$0x11]   ;;  %v636_v18 = vshrl.u32 %v3896_v62, 16 }
  0x24   :  { %5890 = vst [vmem:[#allocation17_spill] sm:$0xff] %v3875_v30  ;;  %v581_v8 = vor.u32 %v580_v47, %v576_v5  ;;  %v604_v35 = vrot.slane %v602_v43, 1  ;;  %v638_v15 = vshll.u32 %v3896_v62, 16  ;;  %v643_v47 = vshll.u32 %v3902_v4, 16 }
  0x25   :  { %797 = vrot.lane.b32.xlu1 %v3840_v34, %s3519_s7  ;;  %v619_v34 = vshll.u32 %v3871_v13, 16  ;;  %v617_v28 = vor.u32 %v616_v56, %v612_v29  ;;  %v3943_v3 = vld [vmem:[%s5773_s0 + $0x134] ss:$0 sps:$4 sm:$0x11]   ;;  %vm1663_vm5 = vcmask 261120   ;;  %vm1598_vm6 = vcmask 195584  }
  0x26   :  { %795 = vrot.lane.b32.xlu0 %v3861_v55, %s3519_s7  ;;  %v3889_v55 = vld [vmem:[%s5773_s0 + $0xf8] ss:$0 sps:$4 sm:$0x11]   ;;  %v586_v25 = vsel %vm382_vm0, %v581_v8, %v585_v50  ;;  %v605_v5 = vor.u32 %v604_v35, %v600_v58  ;;  %v640_v29 = vrot.slane %v638_v15, 1  ;;  %v3937_v58 = vld [vmem:[%s5773_s0 + $0x120] sm:$0xff]   ;;  %5895 = vst [vmem:[#allocation22_spill] sm:$0xff] %v3943_v3 }
  0x27   :  { %v621_v10 = vrot.slane %v619_v34, 1  ;;  %v607_v11 = vshll.u32 %v3889_v55, 16  ;;  %v3910_v34 = vld [vmem:[%s5773_s0 + $0x108] sm:$0xff]   ;;  %v3922_v8 = vld [vmem:[%s5773_s0 + $0x110] ss:$0 sps:$4 sm:$0x11]  }
  0x28   :  { %v624_v50 = vshrl.u32 %v3910_v34, 16  ;;  %v626_v56 = vshll.u32 %v3910_v34, 16  ;;  %v641_v35 = vor.u32 %v640_v29, %v636_v18  ;;  %5894 = vst [vmem:[#allocation21_spill] sm:$0xff] %v3937_v58  ;;  %vm1728_vm7 = vcmask 326656  }
  0x29   :  { %801 = vrot.lane.b32.xlu1 %v3875_v30, %s3519_s7  ;;  %v609_v54 = vrot.slane %v607_v11, 1  ;;  %v3914_v43 = vsel %vm382_vm0, %v617_v28, %v621_v10  ;;  %v645_v28 = vrot.slane %v643_v47, 1  ;;  %v631_v11 = vshll.u32 %v3922_v8, 16 }
  0x2a   :  { %799 = vrot.lane.b32.xlu0 %v586_v25, %s3519_s7  ;;  %5891 = vst [vmem:[#allocation18_spill] sm:$0xff] %v3914_v43  ;;  %v3929_v25 = vld [vmem:[%s5773_s0 + $0x12c] sm:$0xff]   ;;  %v628_v10 = vrot.slane %v626_v56, 1  ;;  %v667_v56 = vshll.u32 %v3943_v3, 16  ;;  %v686_v30 = vshll.u32 %v3960_v23, 16  ;;  %vm1793_vm8 = vcmask 392192  }
  0x2b   :  { %5892 = vst [vmem:[#allocation19_spill] sm:$0xff] %v3929_v25  ;;  %v3932_v15 = vsel %vm382_vm0, %v605_v5, %v609_v54  ;;  %v660_v38 = vshrl.u32 %v3929_v25, 16  ;;  %v3949_v54 = vsel %vm382_vm0, %v641_v35, %v645_v28  ;;  %v662_v18 = vshll.u32 %v3929_v25, 16  ;;  %v3965_v28 = vld [vmem:[%s5773_s0 + $0x128] ss:$0 sps:$4 sm:$0x11]  }
  0x2c   :  { %5893 = vst [vmem:[#allocation20_spill] sm:$0xff] %v3932_v15  ;;  %5896 = vst [vmem:[#allocation23_spill] sm:$0xff] %v3949_v54  ;;  %v648_v5 = vshrl.u32 %v3937_v58, 16  ;;  %v629_v29 = vor.u32 %v628_v10, %v624_v50  ;;  %v633_v47 = vrot.slane %v631_v11, 1  ;;  %v669_v50 = vrot.slane %v667_v56, 1 }
  0x2d   :  { %805 = vrot.lane.b32.xlu1 %v3914_v43, %s3519_s7  ;;  %v650_v43 = vshll.u32 %v3937_v58, 16  ;;  %v664_v35 = vrot.slane %v662_v18, 1  ;;  %5898 = vst [vmem:[#allocation25_spill] sm:$0xff] %v3965_v28  ;;  %v3976_v18 = vld [vmem:[%s5773_s0 + $0x14c] ss:$0 sps:$4 sm:$0x11]  }
  0x2e   :  { %803 = vrot.lane.b32.xlu0 %v3932_v15, %s3519_s7  ;;  %v3968_v15 = vsel %vm382_vm0, %v629_v29, %v633_v47  ;;  %5900 = vst [vmem:[#allocation27_spill] sm:$0xff] %v3976_v18  ;;  %v688_v47 = vrot.slane %v686_v30, 1  ;;  %v691_v56 = vshll.u32 %v3976_v18, 16  ;;  %vm1858_vm9 = vcmask 457728  }
  0x2f   :  { %5899 = vst [vmem:[#allocation26_spill] sm:$0xff] %v3968_v15  ;;  %v652_v10 = vrot.slane %v650_v43, 1  ;;  %v665_v11 = vor.u32 %v664_v35, %v660_v38  ;;  %v3987_v38 = vld [vmem:[%s5773_s0 + $0x138] sm:$0xff]   ;;  %v3994_v35 = vld [vmem:[%s5773_s0 + $0x140] ss:$0 sps:$4 sm:$0x11]  }
  0x30   :  { %5902 = vst [vmem:[#allocation29_spill] sm:$0xff] %v3987_v38  ;;  %5903 = vst [vmem:[#allocation30_spill] sm:$0xff] %v3994_v35  ;;  %vm1923_vm10 = vcmask 523264   ;;  %vm2024_vm11 = vcmask 588800  }
  0x31   :  { %809 = vrot.lane.b32.xlu1 %v3949_v54, %s3519_s7  ;;  %v655_v54 = vshll.u32 %v3965_v28, 16  ;;  %v653_v58 = vor.u32 %v652_v10, %v648_v5  ;;  %v3981_v29 = vsel %vm382_vm0, %v665_v11, %v669_v50  ;;  %v689_v5 = vor.u32 %v688_v47, %v684_v46  ;;  %v4043_v28 = vld [vmem:[%s5773_s0 + $0x17c] ss:$0 sps:$4 sm:$0x11]  }
  0x32   :  { %807 = vrot.lane.b32.xlu0 %v3968_v15, %s3519_s7  ;;  %5901 = vst [vmem:[#allocation28_spill] sm:$0xff] %v3981_v29  ;;  %v693_v50 = vrot.slane %v691_v56, 1  ;;  %v672_v10 = vshrl.u32 %v3987_v38, 16  ;;  %v674_v11 = vshll.u32 %v3987_v38, 16  ;;  %v4037_v38 = vld [vmem:[%s5773_s0 + $0x174] sm:$0xff]   ;;  %5909 = vst [vmem:[#allocation36_spill] sm:$0xff] %v4043_v28 }
  0x33   :  { %v657_v43 = vrot.slane %v655_v54, 1  ;;  %v3999_v54 = vld [vmem:[%s5773_s0 + $0x15c] sm:$0xff]   ;;  %v4012_v15 = vld [vmem:[%s5773_s0 + $0x164] ss:$0 sps:$4 sm:$0x11]  }
  0x34   :  { %5904 = vst [vmem:[#allocation31_spill] sm:$0xff] %v3999_v54  ;;  %5906 = vst [vmem:[#allocation33_spill] sm:$0xff] %v4012_v15  ;;  %v708_v18 = vshrl.u32 %v3999_v54, 16  ;;  %v710_v46 = vshll.u32 %v3999_v54, 16  ;;  %v676_v47 = vrot.slane %v674_v11, 1 }
  0x35   :  { %813 = vrot.lane.b32.xlu1 %v3981_v29, %s3519_s7  ;;  %v4002_v30 = vsel %vm382_vm0, %v653_v58, %v657_v43  ;;  %v679_v29 = vshll.u32 %v3994_v35, 16  ;;  %v4016_v58 = vsel %vm382_vm0, %v689_v5, %v693_v50  ;;  %v4022_v43 = vld [vmem:[%s5773_s0 + $0x150] sm:$0xff]   ;;  %v4030_v35 = vld [vmem:[%s5773_s0 + $0x158] ss:$0 sps:$4 sm:$0x11]  }
  0x36   :  { %5905 = vst [vmem:[#allocation32_spill] sm:$0xff] %v4002_v30  ;;  %811 = vrot.lane.b32.xlu0 %v4002_v30, %s3519_s7  ;;  %5907 = vst [vmem:[#allocation34_spill] sm:$0xff] %v4016_v58  ;;  %v715_v30 = vshll.u32 %v4012_v15, 16  ;;  %v712_v5 = vrot.slane %v710_v46, 1  ;;  %v696_v50 = vshrl.u32 %v4022_v43, 16  ;;  %v698_v54 = vshll.u32 %v4022_v43, 16 }
  0x37   :  { %5908 = vst [vmem:[#allocation35_spill] sm:$0xff] %v4022_v43  ;;  %v681_v56 = vrot.slane %v679_v29, 1  ;;  %v703_v29 = vshll.u32 %v4030_v35, 16  ;;  %v732_v46 = vshrl.u32 %v4037_v38, 16  ;;  %v734_v43 = vshll.u32 %v4037_v38, 16 }
  0x38   :  { %v717_v11 = vrot.slane %v715_v30, 1  ;;  %v713_v15 = vor.u32 %v712_v5, %v708_v18  ;;  %v700_v23 = vrot.slane %v698_v54, 1  ;;  %v4053_v30 = vld [vmem:[%s5773_s0 + $0x168] sm:$0xff]  }
  0x39   :  { %817 = vrot.lane.b32.xlu1 %v4016_v58, %s3519_s7  ;;  %v677_v58 = vor.u32 %v676_v47, %v672_v10  ;;  %v705_v25 = vrot.slane %v703_v29, 1  ;;  %5911 = vst [vmem:[#allocation38_spill] sm:$0xff] %v4053_v30  ;;  %v736_v10 = vrot.slane %v734_v43, 1  ;;  %v739_v47 = vshll.u32 %v4043_v28, 16 }
  0x3a   :  { %v4058_v18 = vsel %vm382_vm0, %v713_v15, %v717_v11  ;;  %v701_v54 = vor.u32 %v700_v23, %v696_v50  ;;  %v722_v5 = vshll.u32 %v4053_v30, 16  ;;  %v4073_v15 = vld [vmem:[%s5773_s0 + $0x18c] sm:$0xff]   ;;  %v4081_v11 = vld [vmem:[%s5773_s0 + $0x180] sm:$0xff]  }
  0x3b   :  { %v4048_v3 = vsel %vm382_vm0, %v677_v58, %v681_v56  ;;  %5912 = vst [vmem:[#allocation39_spill] sm:$0xff] %v4058_v18  ;;  %v4066_v58 = vld [vmem:[%s5773_s0 + $0x170] ss:$0 sps:$4 sm:$0x11]   ;;  %v720_v56 = vshrl.u32 %v4053_v30, 16  ;;  %5914 = vst [vmem:[#allocation41_spill] sm:$0xff] %v4073_v15  ;;  %v737_v43 = vor.u32 %v736_v10, %v732_v46 }
  0x3c   :  { %5910 = vst [vmem:[#allocation37_spill] sm:$0xff] %v4048_v3  ;;  %815 = vrot.lane.b32.xlu0 %v4048_v3, %s3519_s7  ;;  %5913 = vst [vmem:[#allocation40_spill] sm:$0xff] %v4066_v58  ;;  %v4076_v23 = vsel %vm382_vm0, %v701_v54, %v705_v25  ;;  %v741_v50 = vrot.slane %v739_v47, 1  ;;  %v724_v29 = vrot.slane %v722_v5, 1  ;;  %v756_v30 = vshrl.u32 %v4073_v15, 16 }
  0x3d   :  { %821 = vrot.lane.b32.xlu1 %v4058_v18, %s3519_s7  ;;  %5915 = vst [vmem:[#allocation42_spill] sm:$0xff] %v4076_v23  ;;  %5916 = vst [vmem:[#allocation43_spill] sm:$0xff] %v4081_v11  ;;  %v727_v18 = vshll.u32 %v4066_v58, 16  ;;  %v4087_v3 = vld [vmem:[%s5773_s0 + $0x194] ss:$0 sps:$4 sm:$0x11]  }
  0x3e   :  { %5917 = vst [vmem:[#allocation44_spill] sm:$0xff] %v4087_v3  ;;  %v4093_v25 = vsel %vm382_vm0, %v737_v43, %v741_v50  ;;  %v758_v46 = vshll.u32 %v4073_v15, 16  ;;  %v744_v54 = vshrl.u32 %v4081_v11, 16  ;;  %v725_v10 = vor.u32 %v724_v29, %v720_v56 }
  0x3f   :  { %5918 = vst [vmem:[#allocation45_spill] sm:$0xff] %v4093_v25  ;;  %v729_v47 = vrot.slane %v727_v18, 1  ;;  %v763_v5 = vshll.u32 %v4087_v3, 16  ;;  %v746_v58 = vshll.u32 %v4081_v11, 16  ;;  %v835_v29 = vrot.slane %v3593_v19, 1 }
  0x40   :  { %819 = vrot.lane.b32.xlu0 %v4076_v23, %s3519_s7  ;;  %v760_v28 = vrot.slane %v758_v46, 1  ;;  %v4104_v23 = vld [vmem:[%s5773_s0 + $0x188] ss:$0 sps:$4 sm:$0x11]   ;;  %v836_v46 = vrot.slane %v3599_v22, 1  ;;  %v832_v11 = vrot.slane %v3565_v2, 1 }
  0x41   :  { %825 = vrot.lane.b32.xlu1 %v4093_v25, %s3519_s7  ;;  %v4107_v43 = vsel %vm382_vm0, %v725_v10, %v729_v47  ;;  %v765_v50 = vrot.slane %v763_v5, 1  ;;  %v748_v15 = vrot.slane %v746_v58, 1  ;;  %v751_v18 = vshll.u32 %v4104_v23, 16 }
  0x42   :  { %v761_v56 = vor.u32 %v760_v28, %v756_v30  ;;  %v833_v58 = vrot.slane %v3573_v6, 1  ;;  %v4125_v19 = vsel %vm831_vm1, %v835_v29, %v836_v46  ;;  %v841_v22 = vrot.slane %v3581_v12, 1 }
  0x43   :  { %v749_v25 = vor.u32 %v748_v15, %v744_v54  ;;  %v753_v10 = vrot.slane %v751_v18, 1  ;;  %v842_v30 = vrot.slane %v3586_v14, 1  ;;  %v838_v6 = vrot.slane %v3555_v0, 1 }
  0x44   :  { %823 = vrot.lane.b32.xlu0 %v4107_v43, %s3519_s7  ;;  %v4116_v3 = vsel %vm382_vm0, %v761_v56, %v765_v50  ;;  %v834_v2 = vsel %vm831_vm1, %v832_v11, %v833_v58  ;;  %v839_v15 = vrot.slane %v3560_v1, 1  ;;  %v847_v12 = vrot.slane %v3609_v27, 1 }
  0x45   :  { %5919 = vst [vmem:[#allocation46_spill] sm:$0xff] %v4116_v3  ;;  %829 = vrot.lane.b32.xlu1 %v4116_v3, %s3519_s7  ;;  %v4122_v28 = vsel %vm382_vm0, %v749_v25, %v753_v10  ;;  %v4137_v25 = vsel %vm831_vm1, %v841_v22, %v842_v30  ;;  %v848_v14 = vrot.slane %v3619_v33, 1  ;;  %v844_v0 = vrot.slane %v3626_v37, 1 }
  0x46   :  { %5920 = vst [vmem:[#allocation47_spill] sm:$0xff] %v4122_v28  ;;  %v4143_v54 = vsel %vm831_vm1, %v838_v6, %v839_v15  ;;  %v845_v1 = vrot.slane %v3637_v42, 1  ;;  %v853_v47 = vrot.slane %v3644_v45, 1  ;;  %v854_v27 = vrot.slane %v3660_v52, 1 }
  0x47   :  { %v4150_v11 = vsel %vm831_vm1, %v847_v12, %v848_v14  ;;  %v850_v37 = vrot.slane %v3652_v49, 1  ;;  %v851_v42 = vrot.slane %v3680_v63, 1  ;;  %v859_v45 = vrot.slane %v3675_v61, 1 }
  0x48   :  { %827 = vrot.lane.b32.xlu0 %v4122_v28, %s3519_s7  ;;  %v4157_v33 = vsel %vm831_vm1, %v844_v0, %v845_v1  ;;  %v4164_v5 = vsel %vm831_vm1, %v853_v47, %v854_v27  ;;  %v860_v52 = vrot.slane %v3691_v9, 1  ;;  %v856_v56 = vrot.slane %v3702_v20, 1 }
  0x49   :  { %930 = vrot.lane.b32.xlu1 %v4125_v19, %s3520_s18  ;;  %v4171_v50 = vsel %vm831_vm1, %v850_v37, %v851_v42  ;;  %v857_v63 = vrot.slane %v3709_v21, 1  ;;  %v865_v29 = vrot.slane %v3714_v24, 1  ;;  %v866_v9 = vrot.slane %v3727_v32, 1 }
  0x4a   :  { %v4178_v18 = vsel %vm831_vm1, %v859_v45, %v860_v52  ;;  %v862_v10 = vrot.slane %v3737_v39, 1  ;;  %v863_v21 = vrot.slane %v3745_v44, 1  ;;  %v871_v22 = vrot.slane %v3752_v51, 1 }
  0x4b   :  { %v4185_v46 = vsel %vm831_vm1, %v856_v56, %v857_v63  ;;  %v4192_v58 = vsel %vm831_vm1, %v865_v29, %v866_v9  ;;  %v872_v32 = vrot.slane %v3758_v59, 1  ;;  %v869_v44 = vrot.slane %v3781_v16, 1 }
  0x4c   :  { %928 = vrot.lane.b32.xlu0 %v834_v2, %s3520_s18  ;;  %v4199_v30 = vsel %vm831_vm1, %v862_v10, %v863_v21  ;;  %v868_v2 = vrot.slane %v3768_v7, 1  ;;  %v877_v15 = vrot.slane %v3788_v26, 1  ;;  %v878_v59 = vrot.slane %v3802_v40, 1  ;;  %v5925_v21 = vld [vmem:[#allocation19_spill] sm:$0xff] }
  0x4d   :  { %934 = vrot.lane.b32.xlu1 %v4137_v25, %s3520_s18  ;;  %v4206_v6 = vsel %vm831_vm1, %v871_v22, %v872_v32  ;;  %v874_v14 = vrot.slane %v3796_v31, 1  ;;  %v875_v16 = vrot.slane %v3824_v60, 1  ;;  %v883_v1 = vrot.slane %v3819_v57, 1 }
  0x4e   :  { %5921 = vst [vmem:[#allocation48_spill] sm:$0xff] %v4206_v6  ;;  %v4213_v12 = vsel %vm831_vm1, %v868_v2, %v869_v44  ;;  %v4220_v0 = vsel %vm831_vm1, %v877_v15, %v878_v59  ;;  %v884_v40 = vrot.slane %v3835_v17, 1  ;;  %v880_v27 = vrot.slane %v3846_v41, 1  ;;  %v5928_v59 = vld [vmem:[#allocation25_spill] sm:$0xff] }
  0x4f   :  { %5922 = vst [vmem:[#allocation49_spill] sm:$0xff] %v4213_v12  ;;  %5923 = vst [vmem:[#allocation50_spill] sm:$0xff] %v4220_v0  ;;  %v4227_v47 = vsel %vm831_vm1, %v874_v14, %v875_v16  ;;  %v881_v60 = vrot.slane %v3853_v53, 1  ;;  %v889_v42 = vrot.slane %v3858_v48, 1  ;;  %v890_v17 = vrot.slane %v3871_v13, 1 }
  0x50   :  { %932 = vrot.lane.b32.xlu0 %v4143_v54, %s3520_s18  ;;  %5924 = vst [vmem:[#allocation51_spill] sm:$0xff] %v4227_v47  ;;  %v4234_v37 = vsel %vm831_vm1, %v883_v1, %v884_v40  ;;  %v886_v52 = vrot.slane %v3881_v36, 1  ;;  %v887_v41 = vrot.slane %v3889_v55, 1  ;;  %v895_v56 = vrot.slane %v3896_v62, 1  ;;  %v5929_v40 = vld [vmem:[#allocation24_spill] sm:$0xff] }
  0x51   :  { %938 = vrot.lane.b32.xlu1 %v4150_v11, %s3520_s18  ;;  %v882_v45 = vsel %vm831_vm1, %v880_v27, %v881_v60  ;;  %v4246_v53 = vsel %vm831_vm1, %v889_v42, %v890_v17  ;;  %v896_v63 = vrot.slane %v3902_v4, 1  ;;  %v892_v29 = vrot.slane %v3910_v34, 1  ;;  %v5926_v4 = vld [vmem:[#allocation22_spill] sm:$0xff]  ;;  %v5930_v60 = vld [vmem:[#allocation27_spill] sm:$0xff] }
  0x52   :  { %v4252_v13 = vsel %vm831_vm1, %v886_v52, %v887_v41  ;;  %v893_v9 = vrot.slane %v3922_v8, 1  ;;  %v901_v22 = vrot.slane %v5925_v21, 1  ;;  %v902_v32 = vrot.slane %v5926_v4, 1  ;;  %v5927_v8 = vld [vmem:[#allocation21_spill] sm:$0xff] }
  0x53   :  { %v4261_v10 = vsel %vm831_vm1, %v895_v56, %v896_v63  ;;  %v898_v15 = vrot.slane %v5927_v8, 1  ;;  %v899_v14 = vrot.slane %v5928_v59, 1  ;;  %v907_v27 = vrot.slane %v5929_v40, 1  ;;  %v5931_v52 = vld [vmem:[#allocation29_spill] sm:$0xff]  ;;  %v5932_v56 = vld [vmem:[#allocation30_spill] sm:$0xff] }
  0x54   :  { %936 = vrot.lane.b32.xlu0 %v4157_v33, %s3520_s18  ;;  %v4270_v44 = vsel %vm831_vm1, %v892_v29, %v893_v9  ;;  %v4279_v1 = vsel %vm831_vm1, %v901_v22, %v902_v32  ;;  %v908_v42 = vrot.slane %v5930_v60, 1  ;;  %v904_v41 = vrot.slane %v5931_v52, 1  ;;  %v5934_v22 = vld [vmem:[#allocation31_spill] sm:$0xff]  ;;  %v5935_v32 = vld [vmem:[#allocation33_spill] sm:$0xff] }
  0x55   :  { %942 = vrot.lane.b32.xlu1 %v4164_v5, %s3520_s18  ;;  %v905_v63 = vrot.slane %v5932_v56, 1  ;;  %v913_v4 = vrot.slane %v5934_v22, 1  ;;  %v914_v59 = vrot.slane %v5935_v32, 1  ;;  %v911_v60 = vrot.slane %v4030_v35, 1  ;;  %v5937_v22 = vld [vmem:[#allocation36_spill] sm:$0xff]  ;;  %v5939_v35 = vld [vmem:[#allocation38_spill] sm:$0xff] }
  0x56   :  { %v4297_v9 = vsel %vm831_vm1, %v907_v27, %v908_v42  ;;  %v919_v42 = vrot.slane %v4037_v38, 1  ;;  %v920_v32 = vrot.slane %v5937_v22, 1  ;;  %v5942_v38 = vld [vmem:[#allocation41_spill] sm:$0xff]  ;;  %v5943_v22 = vld [vmem:[#allocation44_spill] sm:$0xff] }
  0x57   :  { %v4313_v27 = vsel %vm831_vm1, %v913_v4, %v914_v59  ;;  %v925_v59 = vrot.slane %v5942_v38, 1 }
  0x58   :  { %940 = vrot.lane.b32.xlu0 %v4171_v50, %s3520_s18  ;;  %v4329_v4 = vsel %vm831_vm1, %v919_v42, %v920_v32 }
  0x59   :  { %946 = vrot.lane.b32.xlu1 %v4178_v18, %s3520_s18  ;;  %5941 = vst [vmem:[#allocation21_spill] sm:$0xff] %v4329_v4 }
  0x5c   :  { %944 = vrot.lane.b32.xlu0 %v4185_v46, %s3520_s18 }
  0x5d   :  { %950 = vrot.lane.b32.xlu1 %v4192_v58, %s3520_s18 }
  0x60   :  { %948 = vrot.lane.b32.xlu0 %v4199_v30, %s3520_s18 }
  0x61   :  { %954 = vrot.lane.b32.xlu1 %v4206_v6, %s3520_s18 }
  0x64   :  { %952 = vrot.lane.b32.xlu0 %v4213_v12, %s3520_s18  ;;  %v6021_v12 = vld [vmem:[#allocation37_spill] sm:$0xff] }
  0x65   :  { %958 = vrot.lane.b32.xlu1 %v4220_v0, %s3520_s18  ;;  %v5940_v0 = vld [vmem:[#allocation40_spill] sm:$0xff] }
  0x66   :  { %v917_v3 = vrot.slane %v5940_v0, 1  ;;  %v5947_v0 = vld [vmem:[#allocation43_spill] sm:$0xff] }
  0x68   :  { %956 = vrot.lane.b32.xlu0 %v4227_v47, %s3520_s18  ;;  %v926_v47 = vrot.slane %v5943_v22, 1  ;;  %v4385_v22 = vld [vmem:[%s5773_s0 + $0x30] sm:$0xff]  }
  0x69   :  { %962 = vrot.lane.b32.xlu1 %v4234_v37, %s3520_s18 }
  0x6a   :  { %v4347_v42 = vsel %vm831_vm1, %v925_v59, %v926_v47  ;;  %v4367_v47 = vld [vmem:[%s5773_s0 + $0x18] sm:$0xff]  }
  0x6b   :  { %5948 = vst [vmem:[#allocation29_spill] sm:$0xff] %v4347_v42 }
  0x6c   :  { %960 = vrot.lane.b32.xlu0 %v882_v45, %s3520_s18  ;;  %v4288_v45 = vsel %vm831_vm1, %v898_v15, %v899_v14  ;;  %v4304_v15 = vsel %vm831_vm1, %v904_v41, %v905_v63  ;;  %v5936_v14 = vld [vmem:[#allocation35_spill] sm:$0xff] }
  0x6d   :  { %966 = vrot.lane.b32.xlu1 %v4246_v53, %s3520_s18  ;;  %v910_v40 = vrot.slane %v5936_v14, 1  ;;  %v916_v14 = vrot.slane %v5939_v35, 1  ;;  %v922_v35 = vrot.slane %v5947_v0, 1  ;;  %v4392_v0 = vld [vmem:[%s5773_s0 + $0x24] sm:$0xff]  }
  0x6f   :  { %v4322_v63 = vsel %vm831_vm1, %v910_v40, %v911_v60  ;;  %v4340_v60 = vsel %vm831_vm1, %v916_v14, %v917_v3  ;;  %v4376_v14 = vld [vmem:[%s5773_s0 + $0xc] sm:$0xff]  }
  0x70   :  { %964 = vrot.lane.b32.xlu0 %v4252_v13, %s3520_s18  ;;  %5946 = vst [vmem:[#allocation27_spill] sm:$0xff] %v4340_v60 }
  0x71   :  { %970 = vrot.lane.b32.xlu1 %v4261_v10, %s3520_s18 }
  0x74   :  { %968 = vrot.lane.b32.xlu0 %v4270_v44, %s3520_s18 }
  0x75   :  { %974 = vrot.lane.b32.xlu1 %v4279_v1, %s3520_s18 }
  0x78   :  { %972 = vrot.lane.b32.xlu0 %v4288_v45, %s3520_s18 }
  0x79   :  { %978 = vrot.lane.b32.xlu1 %v4297_v9, %s3520_s18 }
  0x7b   :  { %v4258_v55 = vpop.permute.xlu1 %771 }
  0x7c   :  { %v4265_v2 = vpop.permute.xlu0 %767  ;;  %976 = vrot.lane.b32.xlu0 %v4304_v15, %s3520_s18 }
  0x7d   :  { %982 = vrot.lane.b32.xlu1 %v4313_v27, %s3520_s18 }
  0x7f   :  { %v4276_v16 = vpop.permute.xlu1 %773 }
  0x80   :  { %v4285_v17 = vpop.permute.xlu0 %769  ;;  %980 = vrot.lane.b32.xlu0 %v4322_v63, %s3520_s18 }
  0x81   :  { %986 = vrot.lane.b32.xlu1 %v4329_v4, %s3520_s18 }
  0x83   :  { %v4294_v29 = vpop.permute.xlu1 %777 }
  0x84   :  { %5933 = vst [vmem:[#allocation19_spill] sm:$0xff] %v4294_v29  ;;  %v4308_v56 = vpop.permute.xlu0 %775  ;;  %984 = vrot.lane.b32.xlu0 %v4340_v60, %s3520_s18 }
  0x85   :  { %990 = vrot.lane.b32.xlu1 %v4347_v42, %s3520_s18  ;;  %v5973_v42 = vld [vmem:[#allocation20_spill] sm:$0xff] }
  0x87   :  { %v4319_v41 = vpop.permute.xlu1 %781 }
  0x88   :  { %5938 = vst [vmem:[#allocation22_spill] sm:$0xff] %v4319_v41  ;;  %v4333_v28 = vpop.permute.xlu0 %779  ;;  %v923_v41 = vrot.slane %v4104_v23, 1 }
  0x89   :  { %5944 = vst [vmem:[#allocation25_spill] sm:$0xff] %v4333_v28  ;;  %1004 = vrot.lane.b32.xlu1 %v4367_v47, %s3521_s20 }
  0x8a   :  { %v4352_v32 = vsel %vm831_vm1, %v922_v35, %v923_v41 }
  0x8b   :  { %v4337_v40 = vpop.permute.xlu1 %785  ;;  %5949 = vst [vmem:[#allocation30_spill] sm:$0xff] %v4352_v32  ;;  %988 = vrot.lane.b32.xlu0 %v4352_v32, %s3520_s18 }
  0x8c   :  { %5945 = vst [vmem:[#allocation24_spill] sm:$0xff] %v4337_v40  ;;  %v4354_v38 = vpop.permute.xlu0 %783 }
  0x8d   :  { %5950 = vst [vmem:[#allocation31_spill] sm:$0xff] %v4354_v38  ;;  %1008 = vrot.lane.b32.xlu1 %v4385_v22, %s3521_s20 }
  0x8f   :  { %v4358_v3 = vpop.permute.xlu1 %789  ;;  %1002 = vrot.lane.b32.xlu0 %v4376_v14, %s3521_s20 }
  0x90   :  { %5951 = vst [vmem:[#allocation33_spill] sm:$0xff] %v4358_v3  ;;  %v4362_v23 = vpop.permute.xlu0 %787 }
  0x91   :  { %5952 = vst [vmem:[#allocation35_spill] sm:$0xff] %v4362_v23  ;;  %1012 = vrot.lane.b32.xlu1 %v3652_v49, %s3521_s20 }
  0x93   :  { %v4371_v41 = vpop.permute.xlu1 %793  ;;  %1006 = vrot.lane.b32.xlu0 %v4392_v0, %s3521_s20 }
  0x94   :  { %5953 = vst [vmem:[#allocation36_spill] sm:$0xff] %v4371_v41  ;;  %v4380_v59 = vpop.permute.xlu0 %791 }
  0x95   :  { %5954 = vst [vmem:[#allocation38_spill] sm:$0xff] %v4380_v59  ;;  %v4405_v59 = vld [vmem:[%s5773_s0 + $0x3c] sm:$0xff]   ;;  %1016 = vrot.lane.b32.xlu1 %v3702_v20, %s3521_s20 }
  0x96   :  { %5957 = vst [vmem:[#allocation44_spill] sm:$0xff] %v4405_v59 }
  0x97   :  { %v4396_v35 = vpop.permute.xlu1 %797  ;;  %1010 = vrot.lane.b32.xlu0 %v4405_v59, %s3521_s20 }
  0x98   :  { %5955 = vst [vmem:[#allocation40_spill] sm:$0xff] %v4396_v35  ;;  %v4400_v41 = vpop.permute.xlu0 %795  ;;  %v4416_v35 = vld [vmem:[%s5773_s0 + $0x54] sm:$0xff]  }
  0x99   :  { %5956 = vst [vmem:[#allocation41_spill] sm:$0xff] %v4400_v41  ;;  %5958 = vst [vmem:[#allocation43_spill] sm:$0xff] %v4416_v35  ;;  %1020 = vrot.lane.b32.xlu1 %v3737_v39, %s3521_s20  ;;  %v4443_v39 = vld [vmem:[%s5773_s0 + $0xc0] sm:$0xff]  }
  0x9a   :  { %5960 = vst [vmem:[#allocation53_spill] sm:$0xff] %v4443_v39 }
  0x9b   :  { %v4409_v3 = vpop.permute.xlu1 %801  ;;  %1014 = vrot.lane.b32.xlu0 %v4416_v35, %s3521_s20 }
  0x9c   :  { %v4420_v49 = vpop.permute.xlu0 %799 }
  0x9d   :  { %1024 = vrot.lane.b32.xlu1 %v3768_v7, %s3521_s20 }
  0x9f   :  { %v4424_v41 = vpop.permute.xlu1 %805  ;;  %1018 = vrot.lane.b32.xlu0 %v3675_v61, %s3521_s20 }
  0xa0   :  { %v4428_v23 = vpop.permute.xlu0 %803 }
  0xa1   :  { %1028 = vrot.lane.b32.xlu1 %v3796_v31, %s3521_s20 }
  0xa3   :  { %v4432_v20 = vpop.permute.xlu1 %809  ;;  %1022 = vrot.lane.b32.xlu0 %v3714_v24, %s3521_s20 }
  0xa4   :  { %5959 = vst [vmem:[#allocation52_spill] sm:$0xff] %v4432_v20  ;;  %v4436_v40 = vpop.permute.xlu0 %807 }
  0xa5   :  { %1032 = vrot.lane.b32.xlu1 %v4443_v39, %s3521_s20 }
  0xa7   :  { %1026 = vrot.lane.b32.xlu0 %v3752_v51, %s3521_s20  ;;  %v4447_v61 = vpop.permute.xlu1 %813 }
  0xa8   :  { %5961 = vst [vmem:[#allocation54_spill] sm:$0xff] %v4447_v61  ;;  %v4451_v7 = vpop.permute.xlu0 %811 }
  0xa9   :  { %5962 = vst [vmem:[#allocation55_spill] sm:$0xff] %v4451_v7  ;;  %1036 = vrot.lane.b32.xlu1 %v3881_v36, %s3521_s20 }
  0xab   :  { %1030 = vrot.lane.b32.xlu0 %v3788_v26, %s3521_s20  ;;  %v4455_v24 = vpop.permute.xlu1 %817 }
  0xac   :  { %5963 = vst [vmem:[#allocation56_spill] sm:$0xff] %v4455_v24  ;;  %v5969_v24 = vld [vmem:[#allocation17_spill] sm:$0xff] }
  0xad   :  { %1040 = vrot.lane.b32.xlu1 %v3910_v34, %s3521_s20 }
  0xae   :  { %v4461_v31 = vpop.permute.xlu0 %815 }
  0xaf   :  { %1034 = vrot.lane.b32.xlu0 %v3819_v57, %s3521_s20  ;;  %5964 = vst [vmem:[#allocation57_spill] sm:$0xff] %v4461_v31  ;;  %v4465_v51 = vpop.permute.xlu1 %821 }
  0xb0   :  { %5965 = vst [vmem:[#allocation58_spill] sm:$0xff] %v4465_v51  ;;  %v5970_v51 = vld [vmem:[#allocation4_spill] sm:$0xff] }
  0xb1   :  { %1044 = vrot.lane.b32.xlu1 %v5927_v8, %s3521_s20 }
  0xb2   :  { %v4469_v38 = vpop.permute.xlu0 %819 }
  0xb3   :  { %1038 = vrot.lane.b32.xlu0 %v3858_v48, %s3521_s20  ;;  %5966 = vst [vmem:[#allocation59_spill] sm:$0xff] %v4469_v38  ;;  %v4473_v26 = vpop.permute.xlu1 %825 }
  0xb4   :  { %5967 = vst [vmem:[#allocation60_spill] sm:$0xff] %v4473_v26  ;;  %v3474_v26 = vld [vmem:[%s5774_s1] sm:$0xff]  }
  0xb5   :  { %1128 = vrot.lane.b32.xlu1 %v5969_v24, %s3522_s8  ;;  %3315 = vmatprep.subr.bf16.mxu0 %v3474_v26 }
  0xb6   :  { %v4477_v57 = vpop.permute.xlu0 %823  ;;  %3389 = vmatprep.subr.bf16.mxu1 %v3474_v26  ;;  %3316 = vmatpush3.bf16.msra.mxu0 %v3474_v26 }
  0xb7   :  { %1042 = vrot.lane.b32.xlu0 %v3896_v62, %s3521_s20  ;;  %5968 = vst [vmem:[#allocation61_spill] sm:$0xff] %v4477_v57  ;;  %v4483_v31 = vpop.permute.xlu1 %829  ;;  %v5974_v57 = vld [vmem:[#allocation2_spill] sm:$0xff]  ;;  %3394 = vmatpush3.bf16.msra.mxu1 %v3474_v26 }
  0xb8   :  { %5971 = vst [vmem:[#allocation17_spill] sm:$0xff] %v4483_v31 }
  0xb9   :  { %1130 = vrot.lane.b32.xlu1 %v5973_v42, %s3522_s8 }
  0xba   :  { %v4485_v38 = vpop.permute.xlu0 %827 }
  0xbb   :  { %1096 = vrot.lane.b32.xlu0 %v5970_v51, %s3522_s8  ;;  %5972 = vst [vmem:[#allocation4_spill] sm:$0xff] %v4485_v38  ;;  %v4494_v39 = vpop.permute.xlu1 %930  ;;  %v3475_v51 = vld [vmem:[%s5774_s1 + $0x8] sm:$0xff]  }
  0xbc   :  { %3317 = vmatprep.subr.bf16.mxu0 %v3475_v51  ;;  %3390 = vmatprep.subr.bf16.mxu1 %v3475_v51 }
  0xbd   :  { %1198 = vrot.lane.b32.xlu1 %v4234_v37, %s3523_s11  ;;  %3318 = vmatpush3.bf16.msra.mxu0 %v3475_v51  ;;  %v3476_v37 = vld [vmem:[%s5774_s1 + $0x10] sm:$0xff]  }
  0xbe   :  { %v4496_v24 = vpop.permute.xlu0 %928  ;;  %3395 = vmatpush3.bf16.msra.mxu1 %v3475_v51  ;;  %3319 = vmatprep.subr.bf16.mxu0 %v3476_v37  ;;  %v3477_v51 = vld [vmem:[%s5774_s1 + $0x18] sm:$0xff]  }
  0xbf   :  { %1098 = vrot.lane.b32.xlu0 %v5974_v57, %s3522_s8  ;;  %v4505_v38 = vpop.permute.xlu1 %934  ;;  %3391 = vmatprep.subr.bf16.mxu1 %v3476_v37 }
  0xc1   :  { %1200 = vrot.lane.b32.xlu1 %v4252_v13, %s3523_s11  ;;  %3320 = vmatpush3.bf16.msra.mxu0 %v3476_v37 }
  0xc2   :  { %v4507_v31 = vpop.permute.xlu0 %932  ;;  %3396 = vmatpush3.bf16.msra.mxu1 %v3476_v37  ;;  %3321 = vmatprep.subr.bf16.mxu0 %v3477_v51 }
  0xc3   :  { %1166 = vrot.lane.b32.xlu0 %v4125_v19, %s3523_s11  ;;  %v4516_v26 = vpop.permute.xlu1 %938  ;;  %3392 = vmatprep.subr.bf16.mxu1 %v3477_v51 }
  0xc4   :  { %5975 = vst [vmem:[#allocation20_spill] sm:$0xff] %v4516_v26 }
  0xc5   :  { %1272 = vrot.lane.b32.xlu1 %v3881_v36, %s3524_s16  ;;  %3322 = vmatpush3.bf16.msra.mxu0 %v3477_v51  ;;  %v3478_v36 = vld [vmem:[%s5774_s1 + $0x20] ss:$0 sps:$4 sm:$0xff]   ;;  %s3526_s1 = smov 64  }
  0xc6   :  { %v4518_v19 = vpop.permute.xlu0 %936  ;;  %3397 = vmatpush3.bf16.msra.mxu1 %v3477_v51  ;;  %3399 = vmatprep.subr.msk.bf16.mxu0 %vm2089_vm2, %v3478_v36 }
  0xc7   :  { %1168 = vrot.lane.b32.xlu0 %v4143_v54, %s3523_s11  ;;  %v4527_v32 = vpop.permute.xlu1 %942  ;;  %3400 = vmatprep.subr.msk.bf16.mxu1 %vm2089_vm2, %v3478_v36 }
  0xc8   :  { %5976 = vst [vmem:[#allocation2_spill] sm:$0xff] %v4527_v32  ;;  %v2091_v32 = vsel %vm2089_vm2, %v3478_v36, 0  ;;  %v5983_v36 = vld [vmem:[#allocation3_spill] sm:$0xff] }
  0xc9   :  { %1274 = vrot.lane.b32.xlu1 %v3858_v48, %s3524_s16  ;;  %3324 = vmatpush3.bf16.msra.mxu0 %v2091_v32 }
  0xca   :  { %v4529_v61 = vpop.permute.xlu0 %940  ;;  %3398 = vmatpush3.bf16.msra.mxu1 %v2091_v32 }
  0xcb   :  { %1240 = vrot.lane.b32.xlu0 %v4367_v47, %s3524_s16  ;;  %5977 = vst [vmem:[#allocation62_spill] sm:$0xff] %v4529_v61  ;;  %v4538_v37 = vpop.permute.xlu1 %946 }
  0xcc   :  { %5978 = vst [vmem:[#allocation63_spill] sm:$0xff] %v4538_v37  ;;  %v5982_v37 = vld [vmem:[#allocation18_spill] sm:$0xff] }
  0xcd   :  { %1366 = vrot.lane.b32.xlu1 %v5973_v42, %s3525_s21 }
  0xce   :  { %v4540_v28 = vpop.permute.xlu0 %944 }
  0xcf   :  { %1242 = vrot.lane.b32.xlu0 %v4392_v0, %s3524_s16  ;;  %5979 = vst [vmem:[#allocation64_spill] sm:$0xff] %v4540_v28  ;;  %v4546_v48 = vpop.permute.xlu1 %950 }
  0xd0   :  { %5980 = vst [vmem:[#allocation65_spill] sm:$0xff] %v4546_v48 }
  0xd1   :  { %1368 = vrot.lane.b32.xlu1 %v5982_v37, %s3525_s21 }
  0xd2   :  { %v4548_v51 = vpop.permute.xlu0 %948 }
  0xd3   :  { %1334 = vrot.lane.b32.xlu0 %v5974_v57, %s3525_s21  ;;  %5981 = vst [vmem:[#allocation66_spill] sm:$0xff] %v4548_v51  ;;  %v4554_v61 = vpop.permute.xlu1 %954 }
  0xd4   :  { %5984 = vst [vmem:[#allocation18_spill] sm:$0xff] %v4554_v61 }
  0xd5   :  { %1436 = vrot.lane.b32.xlu1 %v4252_v13, %s3526_s1 }
  0xd6   :  { %v4556_v28 = vpop.permute.xlu0 %952 }
  0xd7   :  { %1336 = vrot.lane.b32.xlu0 %v5983_v36, %s3525_s21  ;;  %5985 = vst [vmem:[#allocation3_spill] sm:$0xff] %v4556_v28  ;;  %v4562_v42 = vpop.permute.xlu1 %958 }
  0xd8   :  { %5986 = vst [vmem:[#allocation67_spill] sm:$0xff] %v4562_v42  ;;  %v5988_v42 = vld [vmem:[#allocation26_spill] sm:$0xff] }
  0xd9   :  { %1438 = vrot.lane.b32.xlu1 %v4246_v53, %s3526_s1 }
  0xda   :  { %v4564_v32 = vpop.permute.xlu0 %956 }
  0xdb   :  { %1404 = vrot.lane.b32.xlu0 %v4143_v54, %s3526_s1  ;;  %5987 = vst [vmem:[#allocation68_spill] sm:$0xff] %v4564_v32  ;;  %v4570_v57 = vpop.permute.xlu1 %962  ;;  %v5989_v32 = vld [vmem:[#allocation6_spill] sm:$0xff] }
  0xdd   :  { %1132 = vrot.lane.b32.xlu1 %v5982_v37, %s3522_s8 }
  0xde   :  { %v4572_v61 = vpop.permute.xlu0 %960 }
  0xdf   :  { %1406 = vrot.lane.b32.xlu0 %v4137_v25, %s3526_s1  ;;  %v4578_v54 = vpop.permute.xlu1 %966 }
  0xe1   :  { %1134 = vrot.lane.b32.xlu1 %v5988_v42, %s3522_s8 }
  0xe2   :  { %v4580_v13 = vpop.permute.xlu0 %964 }
  0xe3   :  { %1100 = vrot.lane.b32.xlu0 %v5983_v36, %s3522_s8  ;;  %v4586_v28 = vpop.permute.xlu1 %970 }
  0xe4   :  { %5990 = vst [vmem:[#allocation26_spill] sm:$0xff] %v4586_v28  ;;  %v3493_v28 = vld [vmem:[%s5773_s0 + $0xd8] sm:$0xff]  }
  0xe5   :  { %1202 = vrot.lane.b32.xlu1 %v4246_v53, %s3523_s11 }
  0xe6   :  { %v4588_v48 = vpop.permute.xlu0 %968 }
  0xe7   :  { %1102 = vrot.lane.b32.xlu0 %v5989_v32, %s3522_s8  ;;  %v4594_v37 = vpop.permute.xlu1 %974 }
  0xe8   :  { %5991 = vst [vmem:[#allocation6_spill] sm:$0xff] %v4594_v37 }
  0xe9   :  { %1204 = vrot.lane.b32.xlu1 %v4270_v44, %s3523_s11 }
  0xea   :  { %v4596_v36 = vpop.permute.xlu0 %972 }
  0xeb   :  { %1170 = vrot.lane.b32.xlu0 %v4137_v25, %s3523_s11  ;;  %5992 = vst [vmem:[#allocation69_spill] sm:$0xff] %v4596_v36  ;;  %v4602_v51 = vpop.permute.xlu1 %978  ;;  %v6008_v36 = vld [vmem:[#allocation8_spill] sm:$0xff] }
  0xec   :  { %5993 = vst [vmem:[#allocation70_spill] sm:$0xff] %v4602_v51 }
  0xed   :  { %1276 = vrot.lane.b32.xlu1 %v3910_v34, %s3524_s16 }
  0xee   :  { %v4604_v7 = vpop.permute.xlu0 %976 }
  0xef   :  { %1172 = vrot.lane.b32.xlu0 %v4157_v33, %s3523_s11  ;;  %5994 = vst [vmem:[#allocation71_spill] sm:$0xff] %v4604_v7  ;;  %v4610_v25 = vpop.permute.xlu1 %982 }
  0xf0   :  { %5995 = vst [vmem:[#allocation72_spill] sm:$0xff] %v4610_v25 }
  0xf1   :  { %1278 = vrot.lane.b32.xlu1 %v3896_v62, %s3524_s16  ;;  %v6002_v62 = vld [vmem:[#allocation5_spill] sm:$0xff] }
  0xf2   :  { %v4612_v53 = vpop.permute.xlu0 %980 }
  0xf3   :  { %1244 = vrot.lane.b32.xlu0 %v4385_v22, %s3524_s16  ;;  %5996 = vst [vmem:[#allocation73_spill] sm:$0xff] %v4612_v53  ;;  %v4618_v37 = vpop.permute.xlu1 %986  ;;  %v6001_v53 = vld [vmem:[#allocation23_spill] sm:$0xff] }
  0xf4   :  { %5997 = vst [vmem:[#allocation74_spill] sm:$0xff] %v4618_v37 }
  0xf5   :  { %1370 = vrot.lane.b32.xlu1 %v5988_v42, %s3525_s21 }
  0xf6   :  { %v4620_v51 = vpop.permute.xlu0 %984 }
  0xf7   :  { %1246 = vrot.lane.b32.xlu0 %v4405_v59, %s3524_s16  ;;  %5998 = vst [vmem:[#allocation75_spill] sm:$0xff] %v4620_v51  ;;  %v4626_v34 = vpop.permute.xlu1 %990  ;;  %v6007_v51 = vld [vmem:[#allocation32_spill] sm:$0xff] }
  0xf8   :  { %5999 = vst [vmem:[#allocation76_spill] sm:$0xff] %v4626_v34 }
  0xf9   :  { %1372 = vrot.lane.b32.xlu1 %v6001_v53, %s3525_s21 }
  0xfb   :  { %1338 = vrot.lane.b32.xlu0 %v5989_v32, %s3525_s21  ;;  %v4634_v7 = vpop.permute.xlu1 %1004 }
  0xfd   :  { %v4628_v25 = vpop.permute.xlu0 %988  ;;  %1440 = vrot.lane.b32.xlu1 %v4270_v44, %s3526_s1 }
  0xfe   :  { %6000 = vst [vmem:[#allocation77_spill] sm:$0xff] %v4628_v25 }
  0xff   :  { %1340 = vrot.lane.b32.xlu0 %v6002_v62, %s3525_s21  ;;  %v4642_v42 = vpop.permute.xlu1 %1008 }
 0x101   :  { %v4636_v37 = vpop.permute.xlu0 %1002  ;;  %1442 = vrot.lane.b32.xlu1 %v4261_v10, %s3526_s1 }
 0x103   :  { %1408 = vrot.lane.b32.xlu0 %v4157_v33, %s3526_s1  ;;  %v4650_v25 = vpop.permute.xlu1 %1012 }
 0x104   :  { %6003 = vst [vmem:[#allocation23_spill] sm:$0xff] %v4650_v25 }
 0x105   :  { %v4644_v32 = vpop.permute.xlu0 %1006  ;;  %1136 = vrot.lane.b32.xlu1 %v6001_v53, %s3522_s8 }
 0x107   :  { %1410 = vrot.lane.b32.xlu0 %v4150_v11, %s3526_s1  ;;  %v4658_v33 = vpop.permute.xlu1 %1016 }
 0x108   :  { %6005 = vst [vmem:[#allocation78_spill] sm:$0xff] %v4658_v33 }
 0x109   :  { %v4652_v34 = vpop.permute.xlu0 %1010  ;;  %1138 = vrot.lane.b32.xlu1 %v6007_v51, %s3522_s8 }
 0x10a   :  { %6004 = vst [vmem:[#allocation5_spill] sm:$0xff] %v4652_v34  ;;  %v3494_v34 = vld [vmem:[%s5773_s0] sm:$0xff]  }
 0x10b   :  { %1104 = vrot.lane.b32.xlu0 %v6002_v62, %s3522_s8  ;;  %v4666_v6 = vpop.permute.xlu1 %1020  ;;  %v1470_v20 = vsel %vm1468_vm3, %v3494_v34, %v4265_v2  ;;  %v3496_v2 = vld [vmem:[%s5773_s0 + $0xe4] sm:$0xff]  }
 0x10c   :  { %6009 = vst [vmem:[#allocation32_spill] sm:$0xff] %v4666_v6 }
 0x10d   :  { %v4660_v44 = vpop.permute.xlu0 %1014  ;;  %1206 = vrot.lane.b32.xlu1 %v4261_v10, %s3523_s11 }
 0x10e   :  { %6006 = vst [vmem:[#allocation79_spill] sm:$0xff] %v4660_v44 }
 0x10f   :  { %1106 = vrot.lane.b32.xlu0 %v6008_v36, %s3522_s8  ;;  %v4674_v53 = vpop.permute.xlu1 %1024 }
 0x110   :  { %6011 = vst [vmem:[#allocation80_spill] sm:$0xff] %v4674_v53 }
 0x111   :  { %v4668_v4 = vpop.permute.xlu0 %1018  ;;  %1208 = vrot.lane.b32.xlu1 %v4288_v45, %s3523_s11 }
 0x112   :  { %6010 = vst [vmem:[#allocation8_spill] sm:$0xff] %v4668_v4 }
 0x113   :  { %1174 = vrot.lane.b32.xlu0 %v4150_v11, %s3523_s11  ;;  %v4682_v33 = vpop.permute.xlu1 %1028  ;;  %v4691_v11 = vld [vmem:[%s5773_s0 + $0x48] sm:$0xff]  }
 0x114   :  { %6013 = vst [vmem:[#allocation82_spill] sm:$0xff] %v4682_v33  ;;  %6015 = vst [vmem:[#allocation84_spill] sm:$0xff] %v4691_v11 }
 0x115   :  { %v4676_v62 = vpop.permute.xlu0 %1022  ;;  %1280 = vrot.lane.b32.xlu1 %v5927_v8, %s3524_s16 }
 0x116   :  { %6012 = vst [vmem:[#allocation81_spill] sm:$0xff] %v4676_v62  ;;  %v6019_v62 = vld [vmem:[#allocation7_spill] sm:$0xff] }
 0x117   :  { %1176 = vrot.lane.b32.xlu0 %v4171_v50, %s3523_s11  ;;  %v4695_v10 = vpop.permute.xlu1 %1032 }
 0x118   :  { %6016 = vst [vmem:[#allocation85_spill] sm:$0xff] %v4695_v10 }
 0x119   :  { %v4684_v6 = vpop.permute.xlu0 %1026  ;;  %1282 = vrot.lane.b32.xlu1 %v5925_v21, %s3524_s16 }
 0x11a   :  { %6014 = vst [vmem:[#allocation83_spill] sm:$0xff] %v4684_v6 }
 0x11b   :  { %1248 = vrot.lane.b32.xlu0 %v4691_v11, %s3524_s16  ;;  %v4703_v33 = vpop.permute.xlu1 %1036 }
 0x11d   :  { %v4697_v53 = vpop.permute.xlu0 %1030  ;;  %1374 = vrot.lane.b32.xlu1 %v6007_v51, %s3525_s21 }
 0x11e   :  { %6017 = vst [vmem:[#allocation86_spill] sm:$0xff] %v4697_v53  ;;  %v6018_v53 = vld [vmem:[#allocation28_spill] sm:$0xff] }
 0x11f   :  { %1250 = vrot.lane.b32.xlu0 %v4416_v35, %s3524_s16  ;;  %v4709_v6 = vpop.permute.xlu1 %1040 }
 0x121   :  { %v1035_v8 = vpop.permute.xlu0 %1034  ;;  %1376 = vrot.lane.b32.xlu1 %v6018_v53, %s3525_s21 }
 0x123   :  { %1342 = vrot.lane.b32.xlu0 %v6008_v36, %s3525_s21  ;;  %v4717_v4 = vpop.permute.xlu1 %1044 }
 0x124   :  { %6020 = vst [vmem:[#allocation28_spill] sm:$0xff] %v4717_v4  ;;  %v6022_v4 = vld [vmem:[#allocation10_spill] sm:$0xff] }
 0x125   :  { %v4711_v10 = vpop.permute.xlu0 %1038  ;;  %1444 = vrot.lane.b32.xlu1 %v4288_v45, %s3526_s1 }
 0x127   :  { %1344 = vrot.lane.b32.xlu0 %v6019_v62, %s3525_s21  ;;  %v1129_v51 = vpop.permute.xlu1 %1128 }
 0x129   :  { %v4719_v35 = vpop.permute.xlu0 %1042  ;;  %1446 = vrot.lane.b32.xlu1 %v4279_v1, %s3526_s1 }
 0x12b   :  { %1412 = vrot.lane.b32.xlu0 %v4171_v50, %s3526_s1  ;;  %v1131_v44 = vpop.permute.xlu1 %1130 }
 0x12d   :  { %v1097_v36 = vpop.permute.xlu0 %1096  ;;  %1048 = vrot.lane.b32.xlu1 %v5931_v52, %s3521_s20 }
 0x12f   :  { %1414 = vrot.lane.b32.xlu0 %v4164_v5, %s3526_s1  ;;  %v1199_v45 = vpop.permute.xlu1 %1198 }
 0x131   :  { %v4729_v11 = vpop.permute.xlu0 %1098  ;;  %1140 = vrot.lane.b32.xlu1 %v6018_v53, %s3522_s8 }
 0x133   :  { %1046 = vrot.lane.b32.xlu0 %v5925_v21, %s3521_s20  ;;  %v1201_v50 = vpop.permute.xlu1 %1200 }
 0x135   :  { %v1167_v25 = vpop.permute.xlu0 %1166  ;;  %1142 = vrot.lane.b32.xlu1 %v6021_v12, %s3522_s8 }
 0x137   :  { %1108 = vrot.lane.b32.xlu0 %v6019_v62, %s3522_s8  ;;  %v1273_v59 = vpop.permute.xlu1 %1272 }
 0x139   :  { %v4739_v26 = vpop.permute.xlu0 %1168  ;;  %1210 = vrot.lane.b32.xlu1 %v4279_v1, %s3523_s11  ;;  %v1502_v1 = vsel %vm1468_vm3, %v3493_v28, %v4420_v49  ;;  %v4771_v49 = vld [vmem:[%s5773_s0 + $0x60] sm:$0xff]  }
 0x13a   :  { %v1567_v60 = vsel %vm1533_vm4, %v1502_v1, %v4572_v61  ;;  %6023 = vst [vmem:[#allocation7_spill] sm:$0xff] %v4771_v49  ;;  %v1535_v61 = vsel %vm1533_vm4, %v1470_v20, %v4496_v24  ;;  %v4789_v20 = vld [vmem:[%s5773_s0 + $0x144] sm:$0xff]  }
 0x13b   :  { %1110 = vrot.lane.b32.xlu0 %v6022_v4, %s3522_s8  ;;  %v1275_v21 = vpop.permute.xlu1 %1274  ;;  %v1632_v28 = vsel %vm1598_vm6, %v1567_v60, %v1035_v8  ;;  %v1504_v60 = vsel %vm1468_vm3, %v3496_v2, %v4409_v3  ;;  %v1600_v34 = vsel %vm1598_vm6, %v1535_v61, %v4636_v37  ;;  %v1472_v37 = vsel %vm1468_vm3, %v4376_v14, %v4285_v17 }
 0x13c   :  { %v1697_v1 = vsel %vm1663_vm5, %v1632_v28, %v1129_v51  ;;  %v1569_v24 = vsel %vm1533_vm4, %v1504_v60, %v4570_v57  ;;  %v1665_v3 = vsel %vm1663_vm5, %v1600_v34, %v1097_v36  ;;  %v4807_v57 = vld [vmem:[%s5773_s0 + $0x6c] sm:$0xff]   ;;  %v1537_v36 = vsel %vm1533_vm4, %v1472_v37, %v4494_v39  ;;  %v6024_v34 = vld [vmem:[#allocation34_spill] sm:$0xff] }
 0x13d   :  { %v1241_v29 = vpop.permute.xlu0 %1240  ;;  %1212 = vrot.lane.b32.xlu1 %v4304_v15, %s3523_s11  ;;  %v1762_v8 = vsel %vm1728_vm7, %v1697_v1, %v1199_v45  ;;  %v1634_v45 = vsel %vm1598_vm6, %v1569_v24, %v4703_v33  ;;  %v1730_v28 = vsel %vm1728_vm7, %v1665_v3, %v1167_v25  ;;  %v1602_v33 = vsel %vm1598_vm6, %v1537_v36, %v4634_v7 }
 0x13e   :  { %v1827_v51 = vsel %vm1793_vm8, %v1762_v8, %v1273_v59  ;;  %v1699_v17 = vsel %vm1663_vm5, %v1634_v45, %v1131_v44  ;;  %v1795_v14 = vsel %vm1793_vm8, %v1730_v28, %v1241_v29  ;;  %v1667_v39 = vsel %vm1663_vm5, %v1602_v33, %v4729_v11  ;;  %v6026_v28 = vld [vmem:[#allocation42_spill] sm:$0xff] }
 0x13f   :  { %1178 = vrot.lane.b32.xlu0 %v4164_v5, %s3523_s11  ;;  %v1367_v62 = vpop.permute.xlu1 %1366  ;;  %v1732_v7 = vsel %vm1728_vm7, %v1667_v39, %v4739_v26 }
 0x140   :  { %v1892_v61 = vsel %vm1858_vm9, %v1827_v51, %v1367_v62  ;;  %v1764_v62 = vsel %vm1728_vm7, %v1699_v17, %v1201_v50  ;;  %v4854_v51 = vld [vmem:[%s5773_s0 + $0x150] sm:$0xff]  }
 0x141   :  { %v1243_v53 = vpop.permute.xlu0 %1242  ;;  %1284 = vrot.lane.b32.xlu1 %v5931_v52, %s3524_s16  ;;  %v1829_v29 = vsel %vm1793_vm8, %v1764_v62, %v1275_v21 }
 0x143   :  { %1180 = vrot.lane.b32.xlu0 %v4185_v46, %s3523_s11  ;;  %v1369_v52 = vpop.permute.xlu1 %1368 }
 0x144   :  { %v1894_v50 = vsel %vm1858_vm9, %v1829_v29, %v1369_v52  ;;  %v6025_v52 = vld [vmem:[#allocation9_spill] sm:$0xff] }
 0x145   :  { %v1335_v5 = vpop.permute.xlu0 %1334  ;;  %1286 = vrot.lane.b32.xlu1 %v4789_v20, %s3524_s16 }
 0x146   :  { %v1860_v1 = vsel %vm1858_vm9, %v1795_v14, %v1335_v5  ;;  %v1797_v5 = vsel %vm1793_vm8, %v1732_v7, %v1243_v53  ;;  %v3500_v14 = vld [vmem:[%s5773_s0 + $0xf0] sm:$0xff]  }
 0x147   :  { %1252 = vrot.lane.b32.xlu0 %v4771_v49, %s3524_s16  ;;  %v1437_v59 = vpop.permute.xlu1 %1436 }
 0x148   :  { %v1957_v25 = vsel %vm1923_vm10, %v1892_v61, %v1437_v59  ;;  %v6027_v61 = vld [vmem:[#allocation12_spill] sm:$0xff] }
 0x149   :  { %v1337_v49 = vpop.permute.xlu0 %1336  ;;  %1378 = vrot.lane.b32.xlu1 %v6021_v12, %s3525_s21  ;;  %3357 = vmatprep.mubr.msk.bf16.mxu1 %vm2024_vm11, %v1957_v25  ;;  %v1506_v25 = vsel %vm1468_vm3, %v3500_v14, %v4428_v23 }
 0x14a   :  { %v1862_v11 = vsel %vm1858_vm9, %v1797_v5, %v1337_v49  ;;  %v1571_v62 = vsel %vm1533_vm4, %v1506_v25, %v4580_v13  ;;  %v3501_v13 = vld [vmem:[%s5773_s0 + $0xfc] sm:$0xff]  }
 0x14b   :  { %1254 = vrot.lane.b32.xlu0 %v4807_v57, %s3524_s16  ;;  %v1439_v12 = vpop.permute.xlu1 %1438  ;;  %v1508_v39 = vsel %vm1468_vm3, %v3501_v13, %v4424_v41  ;;  %v1476_v41 = vsel %vm1468_vm3, %v4392_v0, %v4276_v16  ;;  %v3506_v13 = vld [vmem:[%s5773_s0 + $0x108] sm:$0xff]  }
 0x14c   :  { %v1959_v60 = vsel %vm1923_vm10, %v1894_v50, %v1439_v12  ;;  %v4915_v12 = vld [vmem:[%s5773_s0 + $0x78] sm:$0xff]   ;;  %v1541_v5 = vsel %vm1533_vm4, %v1476_v41, %v4505_v38 }
 0x14d   :  { %v1405_v2 = vpop.permute.xlu0 %1404  ;;  %1380 = vrot.lane.b32.xlu1 %v6024_v34, %s3525_s21  ;;  %3358 = vmatmul.mubr.msk.bf16.vlgmr.msra.gmra.mrb[0].mxu1 %vm2024_vm11, %v1959_v60  ;;  %v1606_v60 = vsel %vm1598_vm6, %v1541_v5, %v4642_v42  ;;  %v6035_v5 = vld [vmem:[#allocation19_spill] sm:$0xff] }
 0x14e   :  { %v1925_v44 = vsel %vm1923_vm10, %v1860_v1, %v1405_v2 }
 0x14f   :  { %1346 = vrot.lane.b32.xlu0 %v6022_v4, %s3525_s21  ;;  %3325 = vmatprep.mubr.msk.bf16.mxu0 %vm2024_vm11, %v1925_v44  ;;  %v1133_v4 = vpop.permute.xlu1 %1132 }
 0x151   :  { %v1407_v21 = vpop.permute.xlu0 %1406  ;;  %1448 = vrot.lane.b32.xlu1 %v4304_v15, %s3526_s1 }
 0x152   :  { %v1927_v26 = vsel %vm1923_vm10, %v1862_v11, %v1407_v21 }
 0x153   :  { %1348 = vrot.lane.b32.xlu0 %v6025_v52, %s3525_s21  ;;  %3326 = vmatmul.mubr.msk.bf16.vlgmr.msra.gmra.mrb[0].mxu0 %vm2024_vm11, %v1927_v26  ;;  %v1135_v53 = vpop.permute.xlu1 %1134  ;;  %v4931_v26 = vld [vmem:[%s5773_s0 + $0x15c] sm:$0xff]  }
 0x155   :  { %v1101_v8 = vpop.permute.xlu0 %1100  ;;  %1450 = vrot.lane.b32.xlu1 %v4297_v9, %s3526_s1 }
 0x157   :  { %1416 = vrot.lane.b32.xlu0 %v4185_v46, %s3526_s1  ;;  %v1203_v24 = vpop.permute.xlu1 %1202 }
 0x159   :  { %v1103_v49 = vpop.permute.xlu0 %1102  ;;  %1052 = vrot.lane.b32.xlu1 %v4854_v51, %s3521_s20 }
 0x15a   :  { %v1671_v38 = vsel %vm1663_vm5, %v1606_v60, %v1103_v49 }
 0x15b   :  { %1418 = vrot.lane.b32.xlu0 %v4178_v18, %s3526_s1  ;;  %v1205_v46 = vpop.permute.xlu1 %1204 }
 0x15d   :  { %v1171_v3 = vpop.permute.xlu0 %1170  ;;  %1144 = vrot.lane.b32.xlu1 %v6024_v34, %s3522_s8 }
 0x15f   :  { %1050 = vrot.lane.b32.xlu0 %v4789_v20, %s3521_s20  ;;  %v1277_v37 = vpop.permute.xlu1 %1276 }
 0x161   :  { %v1173_v15 = vpop.permute.xlu0 %1172  ;;  %1146 = vrot.lane.b32.xlu1 %v6026_v28, %s3522_s8 }
 0x163   :  { %1112 = vrot.lane.b32.xlu0 %v6025_v52, %s3522_s8  ;;  %v1279_v59 = vpop.permute.xlu1 %1278 }
 0x165   :  { %v1245_v45 = vpop.permute.xlu0 %1244  ;;  %1214 = vrot.lane.b32.xlu1 %v4297_v9, %s3523_s11  ;;  %v1474_v9 = vsel %vm1468_vm3, %v4367_v47, %v4258_v55 }
 0x166   :  { %v1539_v23 = vsel %vm1533_vm4, %v1474_v9, %v4507_v31  ;;  %v1573_v31 = vsel %vm1533_vm4, %v1508_v39, %v4578_v54  ;;  %v4974_v9 = vld [vmem:[%s5773_s0 + $0x168] sm:$0xff]   ;;  %v1510_v39 = vsel %vm1468_vm3, %v3506_v13, %v4436_v40 }
 0x167   :  { %1114 = vrot.lane.b32.xlu0 %v6027_v61, %s3522_s8  ;;  %v1371_v17 = vpop.permute.xlu1 %1370  ;;  %v1604_v55 = vsel %vm1598_vm6, %v1539_v23, %v4644_v32  ;;  %v1638_v32 = vsel %vm1598_vm6, %v1573_v31, %v4709_v6  ;;  %v6030_v23 = vld [vmem:[#allocation14_spill] sm:$0xff] }
 0x168   :  { %v1669_v29 = vsel %vm1663_vm5, %v1604_v55, %v1101_v8  ;;  %v1703_v16 = vsel %vm1663_vm5, %v1638_v32, %v1135_v53  ;;  %v4944_v53 = vld [vmem:[%s5773_s0 + $0x84] sm:$0xff]  }
 0x169   :  { %v1247_v36 = vpop.permute.xlu0 %1246  ;;  %1216 = vrot.lane.b32.xlu1 %v4322_v63, %s3523_s11  ;;  %v1734_v7 = vsel %vm1728_vm7, %v1669_v29, %v1171_v3  ;;  %v1768_v11 = vsel %vm1728_vm7, %v1703_v16, %v1205_v46  ;;  %v6036_v16 = vld [vmem:[#allocation44_spill] sm:$0xff] }
 0x16a   :  { %v1799_v6 = vsel %vm1793_vm8, %v1734_v7, %v1245_v45  ;;  %v1833_v52 = vsel %vm1793_vm8, %v1768_v11, %v1279_v59  ;;  %v6034_v7 = vld [vmem:[#allocation26_spill] sm:$0xff] }
 0x16b   :  { %1182 = vrot.lane.b32.xlu0 %v4178_v18, %s3523_s11  ;;  %v1636_v18 = vsel %vm1598_vm6, %v1571_v62, %v4711_v10  ;;  %v1373_v1 = vpop.permute.xlu1 %1372 }
 0x16c   :  { %v1701_v2 = vsel %vm1663_vm5, %v1636_v18, %v1133_v4  ;;  %v1736_v4 = vsel %vm1728_vm7, %v1671_v38, %v1173_v15  ;;  %v1898_v8 = vsel %vm1858_vm9, %v1833_v52, %v1373_v1  ;;  %v6039_v52 = vld [vmem:[#allocation20_spill] sm:$0xff] }
 0x16d   :  { %v1339_v33 = vpop.permute.xlu0 %1338  ;;  %v1766_v47 = vsel %vm1728_vm7, %v1701_v2, %v1203_v24  ;;  %1288 = vrot.lane.b32.xlu1 %v4854_v51, %s3524_s16  ;;  %v1801_v49 = vsel %vm1793_vm8, %v1736_v4, %v1247_v36  ;;  %v6028_v36 = vld [vmem:[#allocation39_spill] sm:$0xff] }
 0x16e   :  { %v1831_v44 = vsel %vm1793_vm8, %v1766_v47, %v1277_v37  ;;  %v1864_v21 = vsel %vm1858_vm9, %v1799_v6, %v1339_v33  ;;  %v1575_v47 = vsel %vm1533_vm4, %v1510_v39, %v4588_v48  ;;  %v6031_v48 = vld [vmem:[#allocation52_spill] sm:$0xff]  ;;  %v1480_v6 = vsel %vm1468_vm3, %v6036_v16, %v6035_v5 }
 0x16f   :  { %1184 = vrot.lane.b32.xlu0 %v4199_v30, %s3523_s11  ;;  %v1896_v50 = vsel %vm1858_vm9, %v1831_v44, %v1371_v17  ;;  %v1441_v54 = vpop.permute.xlu1 %1440  ;;  %v6029_v17 = vld [vmem:[#allocation11_spill] sm:$0xff]  ;;  %v1640_v31 = vsel %vm1598_vm6, %v1575_v47, %v4719_v35  ;;  %v6041_v47 = vld [vmem:[#allocation45_spill] sm:$0xff] }
 0x170   :  { %v1961_v0 = vsel %vm1923_vm10, %v1896_v50, %v1441_v54 }
 0x171   :  { %v1341_v10 = vpop.permute.xlu0 %1340  ;;  %1290 = vrot.lane.b32.xlu1 %v4931_v26, %s3524_s16  ;;  %3361 = vmatprep.mubr.msk.bf16.mxu1 %vm2024_vm11, %v1961_v0  ;;  %v6037_v0 = vld [vmem:[#allocation28_spill] sm:$0xff] }
 0x172   :  { %v1866_v46 = vsel %vm1858_vm9, %v1801_v49, %v1341_v10  ;;  %v1478_v10 = vsel %vm1468_vm3, %v4385_v22, %v4308_v56  ;;  %v6032_v56 = vld [vmem:[#allocation5_spill] sm:$0xff]  ;;  %v6040_v49 = vld [vmem:[#allocation23_spill] sm:$0xff] }
 0x173   :  { %1256 = vrot.lane.b32.xlu0 %v4915_v12, %s3524_s16  ;;  %v1443_v24 = vpop.permute.xlu1 %1442  ;;  %v1543_v40 = vsel %vm1533_vm4, %v1478_v10, %v4518_v19  ;;  %v6042_v10 = vld [vmem:[#allocation13_spill] sm:$0xff] }
 0x174   :  { %v1963_v3 = vsel %vm1923_vm10, %v1898_v8, %v1443_v24  ;;  %v1608_v22 = vsel %vm1598_vm6, %v1543_v40, %v6032_v56 }
 0x175   :  { %v1409_v34 = vpop.permute.xlu0 %1408  ;;  %1382 = vrot.lane.b32.xlu1 %v6026_v28, %s3525_s21  ;;  %3362 = vmatmul.mubr.msk.bf16.gmra.mrb[4].mxu1 %vm2024_vm11, %v1963_v3 }
 0x176   :  { %v1929_v42 = vsel %vm1923_vm10, %v1864_v21, %v1409_v34  ;;  %v6038_v34 = vld [vmem:[#allocation49_spill] sm:$0xff] }
 0x177   :  { %1258 = vrot.lane.b32.xlu0 %v4944_v53, %s3524_s16  ;;  %3329 = vmatprep.mubr.msk.bf16.mxu0 %vm2024_vm11, %v1929_v42  ;;  %v1137_v45 = vpop.permute.xlu1 %1136  ;;  %v1545_v42 = vsel %vm1533_vm4, %v1480_v6, %v6039_v52  ;;  %v6048_v6 = vld [vmem:[#allocation69_spill] sm:$0xff]  ;;  %v6051_v52 = vld [vmem:[#allocation62_spill] sm:$0xff] }
 0x178   :  { %v1705_v44 = vsel %vm1663_vm5, %v1640_v31, %v1137_v45  ;;  %v1610_v3 = vsel %vm1598_vm6, %v1545_v42, %v6040_v49 }
 0x179   :  { %v1411_v15 = vpop.permute.xlu0 %1410  ;;  %1384 = vrot.lane.b32.xlu1 %v6028_v36, %s3525_s21 }
 0x17a   :  { %v1931_v37 = vsel %vm1923_vm10, %v1866_v46, %v1411_v15 }
 0x17b   :  { %1350 = vrot.lane.b32.xlu0 %v6027_v61, %s3525_s21  ;;  %3330 = vmatmul.mubr.msk.bf16.gmra.mrb[4].mxu0 %vm2024_vm11, %v1931_v37  ;;  %v1139_v14 = vpop.permute.xlu1 %1138 }
 0x17d   :  { %v1105_v59 = vpop.permute.xlu0 %1104  ;;  %1452 = vrot.lane.b32.xlu1 %v4322_v63, %s3526_s1 }
 0x17e   :  { %v1673_v50 = vsel %vm1663_vm5, %v1608_v22, %v1105_v59 }
 0x17f   :  { %1352 = vrot.lane.b32.xlu0 %v6029_v17, %s3525_s21  ;;  %v1207_v28 = vpop.permute.xlu1 %1206 }
 0x180   :  { %v1770_v35 = vsel %vm1728_vm7, %v1705_v44, %v1207_v28  ;;  %v5050_v28 = vld [vmem:[%s5773_s0 + $0x90] sm:$0xff]  }
 0x181   :  { %v1107_v25 = vpop.permute.xlu0 %1106  ;;  %1454 = vrot.lane.b32.xlu1 %v4313_v27, %s3526_s1  ;;  %v6044_v44 = vld [vmem:[#allocation48_spill] sm:$0xff] }
 0x182   :  { %v1675_v45 = vsel %vm1663_vm5, %v1610_v3, %v1107_v25  ;;  %v6053_v3 = vld [vmem:[#allocation79_spill] sm:$0xff] }
 0x183   :  { %1420 = vrot.lane.b32.xlu0 %v4199_v30, %s3526_s1  ;;  %v1209_v33 = vpop.permute.xlu1 %1208 }
 0x185   :  { %v1175_v61 = vpop.permute.xlu0 %1174  ;;  %1056 = vrot.lane.b32.xlu1 %v4974_v9, %s3521_s20 }
 0x186   :  { %v1738_v11 = vsel %vm1728_vm7, %v1673_v50, %v1175_v61  ;;  %v3512_v50 = vld [vmem:[%s5773_s0 + $0x120] sm:$0xff]  }
 0x187   :  { %1422 = vrot.lane.b32.xlu0 %v4192_v58, %s3526_s1  ;;  %v1281_v30 = vpop.permute.xlu1 %1280 }
 0x188   :  { %v1835_v54 = vsel %vm1793_vm8, %v1770_v35, %v1281_v30 }
 0x189   :  { %v1177_v62 = vpop.permute.xlu0 %1176  ;;  %1148 = vrot.lane.b32.xlu1 %v6028_v36, %s3522_s8 }
 0x18b   :  { %1054 = vrot.lane.b32.xlu0 %v4931_v26, %s3521_s20  ;;  %v1283_v18 = vpop.permute.xlu1 %1282 }
 0x18d   :  { %v1249_v63 = vpop.permute.xlu0 %1248  ;;  %1150 = vrot.lane.b32.xlu1 %v4107_v43, %s3522_s8 }
 0x18e   :  { %v1803_v8 = vsel %vm1793_vm8, %v1738_v11, %v1249_v63  ;;  %v5061_v63 = vld [vmem:[%s5773_s0 + $0x174] sm:$0xff]  }
 0x18f   :  { %1116 = vrot.lane.b32.xlu0 %v6029_v17, %s3522_s8  ;;  %v1375_v2 = vpop.permute.xlu1 %1374  ;;  %v1740_v17 = vsel %vm1728_vm7, %v1675_v45, %v1177_v62  ;;  %v6050_v11 = vld [vmem:[#allocation84_spill] sm:$0xff]  ;;  %v6054_v45 = vld [vmem:[#allocation30_spill] sm:$0xff] }
 0x190   :  { %v1900_v21 = vsel %vm1858_vm9, %v1835_v54, %v1375_v2  ;;  %v6047_v54 = vld [vmem:[#allocation55_spill] sm:$0xff] }
 0x191   :  { %v1251_v1 = vpop.permute.xlu0 %1250  ;;  %1218 = vrot.lane.b32.xlu1 %v4313_v27, %s3523_s11  ;;  %v3507_v27 = vld [vmem:[%s5773_s0 + $0x114] sm:$0xff]   ;;  %v1514_v5 = vsel %vm1468_vm3, %v3512_v50, %v6047_v54 }
 0x192   :  { %v1512_v41 = vsel %vm1468_vm3, %v3507_v27, %v6031_v48  ;;  %v1805_v25 = vsel %vm1793_vm8, %v1740_v17, %v1251_v1  ;;  %v5070_v1 = vld [vmem:[%s5773_s0 + $0x9c] sm:$0xff]  }
 0x193   :  { %1118 = vrot.lane.b32.xlu0 %v6030_v23, %s3522_s8  ;;  %v1377_v29 = vpop.permute.xlu1 %1376  ;;  %v1577_v19 = vsel %vm1533_vm4, %v1512_v41, %v6034_v7  ;;  %v5094_v41 = vld [vmem:[%s5773_s0 + $0x180] sm:$0xff]   ;;  %v6046_v7 = vld [vmem:[#allocation16_spill] sm:$0xff] }
 0x194   :  { %v1642_v60 = vsel %vm1598_vm6, %v1577_v19, %v6037_v0  ;;  %v1579_v0 = vsel %vm1533_vm4, %v1514_v5, %v6048_v6 }
 0x195   :  { %v1343_v55 = vpop.permute.xlu0 %1342  ;;  %v1707_v4 = vsel %vm1663_vm5, %v1642_v60, %v1139_v14  ;;  %v6049_v60 = vld [vmem:[#allocation25_spill] sm:$0xff] }
 0x196   :  { %v1772_v46 = vsel %vm1728_vm7, %v1707_v4, %v1209_v33  ;;  %v1868_v15 = vsel %vm1858_vm9, %v1803_v8, %v1343_v55  ;;  %v3513_v8 = vld [vmem:[%s5773_s0 + $0x12c] sm:$0xff]  }
 0x197   :  { %1186 = vrot.lane.b32.xlu0 %v4192_v58, %s3523_s11  ;;  %v6033_v58 = vld [vmem:[#allocation27_spill] sm:$0xff]  ;;  %v1445_v38 = vpop.permute.xlu1 %1444  ;;  %v1837_v59 = vsel %vm1793_vm8, %v1772_v46, %v1283_v18 }
 0x198   :  { %1220 = vrot.lane.b32.xlu1 %v6033_v58, %s3523_s11  ;;  %v1965_v24 = vsel %vm1923_vm10, %v1900_v21, %v1445_v38  ;;  %v1902_v14 = vsel %vm1858_vm9, %v1837_v59, %v1377_v29  ;;  %v1482_v21 = vsel %vm1468_vm3, %v6050_v11, %v6049_v60  ;;  %v6055_v59 = vld [vmem:[#allocation6_spill] sm:$0xff] }
 0x199   :  { %v1345_v32 = vpop.permute.xlu0 %1344  ;;  %3365 = vmatprep.mubr.msk.bf16.mxu1 %vm2024_vm11, %v1965_v24  ;;  %v1547_v42 = vsel %vm1533_vm4, %v1482_v21, %v6051_v52  ;;  %v6052_v24 = vld [vmem:[#allocation54_spill] sm:$0xff] }
 0x19a   :  { %v1870_v30 = vsel %vm1858_vm9, %v1805_v25, %v1345_v32  ;;  %v1516_v49 = vsel %vm1468_vm3, %v3513_v8, %v6052_v24  ;;  %v1612_v46 = vsel %vm1598_vm6, %v1547_v42, %v6053_v3  ;;  %v6057_v25 = vld [vmem:[#allocation43_spill] sm:$0xff]  ;;  %v6061_v52 = vld [vmem:[#allocation46_spill] sm:$0xff]  ;;  %v5206_v42 = vld [vmem:[%s5773_s0 + $0x198] sm:$0xff]  }
 0x19b   :  { %1188 = vrot.lane.b32.xlu0 %v6038_v34, %s3523_s11  ;;  %v1447_v61 = vpop.permute.xlu1 %1446  ;;  %v1087_v24 = vshll.u32 %v5206_v42, 16  ;;  %v3481_v3 = vld [vmem:[%s5773_s0 + $0xc8] ss:$0 sps:$4 sm:$0x11]  }
 0x19c   :  { %1292 = vrot.lane.b32.xlu1 %v4974_v9, %s3524_s16  ;;  %v1967_v33 = vsel %vm1923_vm10, %v1902_v14, %v1447_v61  ;;  %v6056_v61 = vld [vmem:[#allocation22_spill] sm:$0xff] }
 0x19d   :  { %v1413_v37 = vpop.permute.xlu0 %1412  ;;  %3366 = vmatmul.mubr.msk.bf16.gmra.mrb[8].mxu1 %vm2024_vm11, %v1967_v33  ;;  %v1484_v33 = vsel %vm1468_vm3, %v6057_v25, %v6056_v61  ;;  %v5238_v25 = vld [vmem:[%s5773_s0 + $0xc0] sm:$0xff]  }
 0x19e   :  { %v1933_v36 = vsel %vm1923_vm10, %v1868_v15, %v1413_v37 }
 0x19f   :  { %1260 = vrot.lane.b32.xlu0 %v5050_v28, %s3524_s16  ;;  %3333 = vmatprep.mubr.msk.bf16.mxu0 %vm2024_vm11, %v1933_v36  ;;  %v1049_v2 = vpop.permute.xlu1 %1048  ;;  %v1581_v36 = vsel %vm1533_vm4, %v1516_v49, %v6055_v59  ;;  %v1085_v59 = vshrl.u32 %v5206_v42, 16 }
 0x1a0   :  { %1294 = vrot.lane.b32.xlu1 %v5061_v63, %s3524_s16 }
 0x1a1   :  { %v1415_v62 = vpop.permute.xlu0 %1414 }
 0x1a2   :  { %v1935_v18 = vsel %vm1923_vm10, %v1870_v30, %v1415_v62  ;;  %v1646_v30 = vsel %vm1598_vm6, %v1581_v36, %v1049_v2  ;;  %v1089_v36 = vrot.slane %v1087_v24, 1 }
 0x1a3   :  { %1262 = vrot.lane.b32.xlu0 %v5070_v1, %s3524_s16  ;;  %3334 = vmatmul.mubr.msk.bf16.gmra.mrb[8].mxu0 %vm2024_vm11, %v1935_v18  ;;  %v1141_v39 = vpop.permute.xlu1 %1140 }
 0x1a4   :  { %1386 = vrot.lane.b32.xlu1 %v4107_v43, %s3525_s21 }
 0x1a5   :  { %v1047_v13 = vpop.permute.xlu0 %1046 }
 0x1a7   :  { %1354 = vrot.lane.b32.xlu0 %v6030_v23, %s3525_s21  ;;  %v1143_v31 = vpop.permute.xlu1 %1142  ;;  %v6043_v23 = vld [vmem:[#allocation21_spill] sm:$0xff] }
 0x1a8   :  { %1388 = vrot.lane.b32.xlu1 %v6041_v47, %s3525_s21 }
 0x1a9   :  { %v1109_v55 = vpop.permute.xlu0 %1108 }
 0x1aa   :  { %v1677_v17 = vsel %vm1663_vm5, %v1612_v46, %v1109_v55  ;;  %v1711_v55 = vsel %vm1663_vm5, %v1646_v30, %v1143_v31  ;;  %v6063_v46 = vld [vmem:[#allocation53_spill] sm:$0xff] }
 0x1ab   :  { %1356 = vrot.lane.b32.xlu0 %v6042_v10, %s3525_s21  ;;  %v1211_v43 = vpop.permute.xlu1 %1210 }
 0x1ac   :  { %1456 = vrot.lane.b32.xlu1 %v6033_v58, %s3526_s1  ;;  %v6045_v58 = vld [vmem:[#allocation47_spill] sm:$0xff] }
 0x1ad   :  { %v1111_v29 = vpop.permute.xlu0 %1110 }
 0x1af   :  { %1424 = vrot.lane.b32.xlu0 %v6038_v34, %s3526_s1  ;;  %v1213_v27 = vpop.permute.xlu1 %1212  ;;  %v1644_v34 = vsel %vm1598_vm6, %v1579_v0, %v1047_v13  ;;  %v6058_v13 = vld [vmem:[#allocation51_spill] sm:$0xff] }
 0x1b0   :  { %1458 = vrot.lane.b32.xlu1 %v6043_v23, %s3526_s1  ;;  %v1709_v4 = vsel %vm1663_vm5, %v1644_v34, %v1141_v39  ;;  %v5179_v0 = vld [vmem:[%s5773_s0 + $0x18c] sm:$0xff]  }
 0x1b1   :  { %v1179_v40 = vpop.permute.xlu0 %1178  ;;  %v1774_v15 = vsel %vm1728_vm7, %v1709_v4, %v1211_v43  ;;  %v6062_v4 = vld [vmem:[#allocation15_spill] sm:$0xff] }
 0x1b2   :  { %v1742_v62 = vsel %vm1728_vm7, %v1677_v17, %v1179_v40  ;;  %v1776_v40 = vsel %vm1728_vm7, %v1711_v55, %v1213_v27  ;;  %v5168_v27 = vld [vmem:[%s5773_s0 + $0xa8] sm:$0xff]  }
 0x1b3   :  { %1426 = vrot.lane.b32.xlu0 %v6044_v44, %s3526_s1  ;;  %v1285_v56 = vpop.permute.xlu1 %1284 }
 0x1b4   :  { %1060 = vrot.lane.b32.xlu1 %v5094_v41, %s3521_s20  ;;  %v1839_v14 = vsel %vm1793_vm8, %v1774_v15, %v1285_v56  ;;  %v1075_v15 = vshll.u32 %v6063_v46, 16  ;;  %v6070_v46 = vld [vmem:[#allocation24_spill] sm:$0xff] }
 0x1b5   :  { %v1181_v48 = vpop.permute.xlu0 %1180 }
 0x1b6   :  { %v1077_v30 = vrot.slane %v1075_v15, 1  ;;  %v1488_v15 = vsel %vm1468_vm3, %v4807_v57, %v6070_v46 }
 0x1b7   :  { %1058 = vrot.lane.b32.xlu0 %v5061_v63, %s3521_s20  ;;  %v1287_v35 = vpop.permute.xlu1 %1286 }
 0x1b8   :  { %1152 = vrot.lane.b32.xlu1 %v6041_v47, %s3522_s8  ;;  %v6059_v47 = vld [vmem:[#allocation2_spill] sm:$0xff]  ;;  %v1841_v31 = vsel %vm1793_vm8, %v1776_v40, %v1287_v35 }
 0x1b9   :  { %v1253_v22 = vpop.permute.xlu0 %1252 }
 0x1ba   :  { %v1807_v43 = vsel %vm1793_vm8, %v1742_v62, %v1253_v22  ;;  %v1080_v62 = vshll.u32 %v3481_v3, 16 }
 0x1bb   :  { %1120 = vrot.lane.b32.xlu0 %v6042_v10, %s3522_s8  ;;  %v1379_v19 = vpop.permute.xlu1 %1378  ;;  %v1549_v10 = vsel %vm1533_vm4, %v1484_v33, %v6059_v47  ;;  %v1073_v33 = vshrl.u32 %v5238_v25, 16 }
 0x1bc   :  { %1154 = vrot.lane.b32.xlu1 %v6045_v58, %s3522_s8  ;;  %v1904_v18 = vsel %vm1858_vm9, %v1839_v14, %v1379_v19  ;;  %v6065_v14 = vld [vmem:[#allocation50_spill] sm:$0xff]  ;;  %v1082_v55 = vrot.slane %v1080_v62, 1 }
 0x1bd   :  { %v1255_v32 = vpop.permute.xlu0 %1254 }
 0x1bf   :  { %1122 = vrot.lane.b32.xlu0 %v6046_v7, %s3522_s8  ;;  %v1381_v38 = vpop.permute.xlu1 %1380 }
 0x1c0   :  { %1222 = vrot.lane.b32.xlu1 %v6043_v23, %s3523_s11  ;;  %v1906_v5 = vsel %vm1858_vm9, %v1841_v31, %v1381_v38  ;;  %v1160_v31 = vrot.slane %v5238_v25, 1 }
 0x1c1   :  { %v1347_v16 = vpop.permute.xlu0 %1346 }
 0x1c2   :  { %v1872_v56 = vsel %vm1858_vm9, %v1807_v43, %v1347_v16 }
 0x1c3   :  { %1190 = vrot.lane.b32.xlu0 %v6044_v44, %s3523_s11  ;;  %v1449_v39 = vpop.permute.xlu1 %1448  ;;  %v6060_v44 = vld [vmem:[#allocation78_spill] sm:$0xff] }
 0x1c4   :  { %1224 = vrot.lane.b32.xlu1 %v6054_v45, %s3523_s11  ;;  %v1969_v23 = vsel %vm1923_vm10, %v1904_v18, %v1449_v39  ;;  %v1614_v2 = vsel %vm1598_vm6, %v1549_v10, %v6060_v44  ;;  %v1078_v10 = vor.u32 %v1077_v30, %v1073_v33  ;;  %v6072_v33 = vld [vmem:[#allocation56_spill] sm:$0xff] }
 0x1c5   :  { %v1349_v37 = vpop.permute.xlu0 %1348  ;;  %3369 = vmatprep.mubr.msk.bf16.mxu1 %vm2024_vm11, %v1969_v23  ;;  %v1679_v50 = vsel %vm1663_vm5, %v1614_v2, %v1111_v29  ;;  %v6073_v30 = vld [vmem:[#allocation8_spill] sm:$0xff] }
 0x1c6   :  { %v1744_v54 = vsel %vm1728_vm7, %v1679_v50, %v1181_v48  ;;  %v5255_v2 = vsel %vm382_vm0, %v1078_v10, %v1082_v55  ;;  %v6075_v55 = vld [vmem:[#allocation70_spill] sm:$0xff] }
 0x1c7   :  { %1192 = vrot.lane.b32.xlu0 %v6058_v13, %s3523_s11  ;;  %v1451_v16 = vpop.permute.xlu1 %1450  ;;  %v1809_v29 = vsel %vm1793_vm8, %v1744_v54, %v1255_v32  ;;  %v5188_v32 = vld [vmem:[%s5773_s0 + $0xb4] sm:$0xff]  }
 0x1c8   :  { %1296 = vrot.lane.b32.xlu1 %v5094_v41, %s3524_s16  ;;  %v1971_v35 = vsel %vm1923_vm10, %v1906_v5, %v1451_v16  ;;  %v1874_v6 = vsel %vm1858_vm9, %v1809_v29, %v1349_v37  ;;  %v3518_v54 = vld [vmem:[%s5773_s0 + $0x138] sm:$0xff]  }
 0x1c9   :  { %v1417_v19 = vpop.permute.xlu0 %1416  ;;  %3370 = vmatmul.mubr.msk.bf16.gmra.mrb[12].mxu1 %vm2024_vm11, %v1971_v35  ;;  %v6066_v5 = vld [vmem:[#allocation57_spill] sm:$0xff]  ;;  %v5275_v35 = vld [vmem:[%s5773_s0 + $0x1a4] sm:$0xff]  }
 0x1ca   :  { %v1937_v22 = vsel %vm1923_vm10, %v1872_v56, %v1417_v19  ;;  %v1163_v56 = vrot.slane %v5206_v42, 1  ;;  %v1518_v16 = vsel %vm1468_vm3, %v3518_v54, %v6066_v5 }
 0x1cb   :  { %1264 = vrot.lane.b32.xlu0 %v5168_v27, %s3524_s16  ;;  %3337 = vmatprep.mubr.msk.bf16.mxu0 %vm2024_vm11, %v1937_v22  ;;  %v5193_v11 = vpop.permute.xlu1 %1052  ;;  %v1161_v22 = vrot.slane %v3481_v3, 1 }
 0x1cc   :  { %1298 = vrot.lane.b32.xlu1 %v5179_v0, %s3524_s16 }
 0x1cd   :  { %v1419_v48 = vpop.permute.xlu0 %1418 }
 0x1ce   :  { %v1939_v60 = vsel %vm1923_vm10, %v1874_v6, %v1419_v48  ;;  %v6067_v6 = vld [vmem:[#allocation71_spill] sm:$0xff] }
 0x1cf   :  { %1266 = vrot.lane.b32.xlu0 %v5188_v32, %s3524_s16  ;;  %3338 = vmatmul.mubr.msk.bf16.gmra.mrb[12].mxu0 %vm2024_vm11, %v1939_v60  ;;  %v1145_v34 = vpop.permute.xlu1 %1144  ;;  %v1583_v48 = vsel %vm1533_vm4, %v1518_v16, %v6067_v6 }
 0x1d0   :  { %1390 = vrot.lane.b32.xlu1 %v6045_v58, %s3525_s21 }
 0x1d1   :  { %v1051_v21 = vpop.permute.xlu0 %1050 }
 0x1d2   :  { %v1648_v24 = vsel %vm1598_vm6, %v1583_v48, %v1051_v21  ;;  %v5300_v21 = vld [vmem:[%s5773_s0 + $0xcc] sm:$0xff]  }
 0x1d3   :  { %1358 = vrot.lane.b32.xlu0 %v6046_v7, %s3525_s21  ;;  %v5210_v8 = vpop.permute.xlu1 %1146  ;;  %v3480_v7 = vld [vmem:[%s5773_s0 + $0x1a0] ss:$0 sps:$4 sm:$0x11]  }
 0x1d4   :  { %1392 = vrot.lane.b32.xlu1 %v6061_v52, %s3525_s21  ;;  %v1092_v17 = vshll.u32 %v3480_v7, 16  ;;  %v1164_v19 = vrot.slane %v3480_v7, 1 }
 0x1d5   :  { %v5199_v38 = vpop.permute.xlu0 %1112 }
 0x1d6   :  { %v1094_v39 = vrot.slane %v1092_v17, 1  ;;  %v5280_v60 = vsel %vm831_vm1, %v1163_v56, %v1164_v19  ;;  %v5295_v17 = vsel %vm831_vm1, %v1160_v31, %v1161_v22  ;;  %v6076_v31 = vld [vmem:[#allocation32_spill] sm:$0xff] }
 0x1d7   :  { %1360 = vrot.lane.b32.xlu0 %v6062_v4, %s3525_s21  ;;  %v1215_v49 = vpop.permute.xlu1 %1214 }
 0x1d8   :  { %1460 = vrot.lane.b32.xlu1 %v6054_v45, %s3526_s1  ;;  %v6064_v45 = vld [vmem:[#allocation29_spill] sm:$0xff] }
 0x1d9   :  { %v5212_v58 = vpop.permute.xlu0 %1114 }
 0x1db   :  { %1428 = vrot.lane.b32.xlu0 %v6058_v13, %s3526_s1  ;;  %v5233_v61 = vpop.permute.xlu1 %1216  ;;  %v1090_v13 = vor.u32 %v1089_v36, %v1085_v59  ;;  %v1713_v36 = vsel %vm1663_vm5, %v1648_v24, %v1145_v34  ;;  %v1325_v34 = vshll.u32 %v5275_v35, 16 }
 0x1dc   :  { %1462 = vrot.lane.b32.xlu1 %v6064_v45, %s3526_s1  ;;  %v1778_v62 = vsel %vm1728_vm7, %v1713_v36, %v1215_v49  ;;  %v5321_v49 = vld [vmem:[%s5773_s0 + $0x1ac] ss:$0 sps:$4 sm:$0x11]  }
 0x1dd   :  { %v5226_v37 = vpop.permute.xlu0 %1182  ;;  %v5250_v23 = vsel %vm382_vm0, %v1090_v13, %v1094_v39  ;;  %v6074_v39 = vld [vmem:[#allocation63_spill] sm:$0xff] }
 0x1de   :  { %v1553_v10 = vsel %vm1533_vm4, %v1488_v15, %v6074_v39 }
 0x1df   :  { %1430 = vrot.lane.b32.xlu0 %v6065_v14, %s3526_s1  ;;  %v1289_v47 = vpop.permute.xlu1 %1288  ;;  %v1618_v22 = vsel %vm1598_vm6, %v1553_v10, %v6076_v31 }
 0x1e0   :  { %1064 = vrot.lane.b32.xlu1 %v5206_v42, %s3521_s20  ;;  %v1843_v19 = vsel %vm1793_vm8, %v1778_v62, %v1289_v47 }
 0x1e1   :  { %v5241_v18 = vpop.permute.xlu0 %1184 }
 0x1e3   :  { %1062 = vrot.lane.b32.xlu0 %v5179_v0, %s3521_s20  ;;  %v1291_v44 = vpop.permute.xlu1 %1290 }
 0x1e4   :  { %1156 = vrot.lane.b32.xlu1 %v6061_v52, %s3522_s8  ;;  %v6068_v52 = vld [vmem:[#allocation31_spill] sm:$0xff] }
 0x1e5   :  { %v1257_v43 = vpop.permute.xlu0 %1256 }
 0x1e7   :  { %1124 = vrot.lane.b32.xlu0 %v6062_v4, %s3522_s8  ;;  %v1383_v50 = vpop.permute.xlu1 %1382  ;;  %v6069_v4 = vld [vmem:[#allocation7_spill] sm:$0xff] }
 0x1e8   :  { %1158 = vrot.lane.b32.xlu1 %v5250_v23, %s3522_s8  ;;  %v1486_v7 = vsel %vm1468_vm3, %v6069_v4, %v6068_v52  ;;  %v1908_v16 = vsel %vm1858_vm9, %v1843_v19, %v1383_v50  ;;  %v1313_v52 = vshll.u32 %v5300_v21, 16 }
 0x1e9   :  { %v5257_v40 = vpop.permute.xlu0 %1258 }
 0x1eb   :  { %1126 = vrot.lane.b32.xlu0 %v5255_v2, %s3522_s8  ;;  %v1385_v3 = vpop.permute.xlu1 %1384 }
 0x1ec   :  { %1226 = vrot.lane.b32.xlu1 %v6064_v45, %s3523_s11  ;;  %v6071_v45 = vld [vmem:[#allocation64_spill] sm:$0xff] }
 0x1ed   :  { %v1351_v29 = vpop.permute.xlu0 %1350  ;;  %v1551_v59 = vsel %vm1533_vm4, %v1486_v7, %v6071_v45  ;;  %v1683_v7 = vsel %vm1663_vm5, %v1618_v22, %v5212_v58  ;;  %v1311_v45 = vshrl.u32 %v5300_v21, 16 }
 0x1ee   :  { %v1616_v57 = vsel %vm1598_vm6, %v1551_v59, %v6073_v30  ;;  %v1315_v59 = vrot.slane %v1313_v52, 1 }
 0x1ef   :  { %1194 = vrot.lane.b32.xlu0 %v6065_v14, %s3523_s11  ;;  %v1520_v14 = vsel %vm1468_vm3, %v4789_v20, %v6072_v33  ;;  %v1681_v20 = vsel %vm1663_vm5, %v1616_v57, %v5199_v38  ;;  %v1453_v38 = vpop.permute.xlu1 %1452 }
 0x1f0   :  { %1228 = vrot.lane.b32.xlu1 %v5280_v60, %s3523_s11  ;;  %v1585_v56 = vsel %vm1533_vm4, %v1520_v14, %v6075_v55  ;;  %v1746_v5 = vsel %vm1728_vm7, %v1681_v20, %v5226_v37  ;;  %v1973_v48 = vsel %vm1923_vm10, %v1908_v16, %v1453_v38  ;;  %v1316_v30 = vor.u32 %v1315_v59, %v1311_v45  ;;  %v6083_v45 = vld [vmem:[#allocation72_spill] sm:$0xff]  ;;  %v6084_v59 = vld [vmem:[#allocation33_spill] sm:$0xff] }
 0x1f1   :  { %v1353_v13 = vpop.permute.xlu0 %1352  ;;  %v1650_v54 = vsel %vm1598_vm6, %v1585_v56, %v5193_v11  ;;  %v1811_v6 = vsel %vm1793_vm8, %v1746_v5, %v1257_v43  ;;  %v3485_v11 = vld [vmem:[%s5773_s0 + $0xd4] ss:$0 sps:$4 sm:$0x11]   ;;  %3373 = vmatprep.mubr.msk.bf16.mxu1 %vm2024_vm11, %v1973_v48  ;;  %v1327_v43 = vrot.slane %v1325_v34, 1  ;;  %v1401_v55 = vrot.slane %v5275_v35, 1 }
 0x1f2   :  { %v1715_v47 = vsel %vm1663_vm5, %v1650_v54, %v5210_v8  ;;  %v1876_v50 = vsel %vm1858_vm9, %v1811_v6, %v1351_v29  ;;  %v1323_v8 = vshrl.u32 %v5275_v35, 16  ;;  %v1748_v29 = vsel %vm1728_vm7, %v1683_v7, %v5241_v18  ;;  %v6077_v6 = vld [vmem:[#allocation59_spill] sm:$0xff] }
 0x1f3   :  { %1196 = vrot.lane.b32.xlu0 %v5295_v17, %s3523_s11  ;;  %v1780_v37 = vsel %vm1728_vm7, %v1715_v47, %v5233_v61  ;;  %v1330_v61 = vshll.u32 %v5321_v49, 16  ;;  %v1813_v58 = vsel %vm1793_vm8, %v1748_v29, %v5257_v40  ;;  %v1318_v36 = vshll.u32 %v3485_v11, 16 }
 0x1f4   :  { %1300 = vrot.lane.b32.xlu1 %v5206_v42, %s3524_s16  ;;  %v1845_v24 = vsel %vm1793_vm8, %v1780_v37, %v1291_v44  ;;  %v1455_v42 = vpop.permute.xlu1 %1454  ;;  %v1878_v33 = vsel %vm1858_vm9, %v1813_v58, %v1353_v13  ;;  %v1402_v56 = vrot.slane %v5321_v49, 1  ;;  %v1399_v19 = vrot.slane %v3485_v11, 1  ;;  %v6078_v11 = vld [vmem:[#allocation73_spill] sm:$0xff]  ;;  %v6079_v37 = vld [vmem:[#allocation35_spill] sm:$0xff] }
 0x1f5   :  { %v1421_v4 = vpop.permute.xlu0 %1420  ;;  %v1910_v15 = vsel %vm1858_vm9, %v1845_v24, %v1385_v3  ;;  %v1328_v3 = vor.u32 %v1327_v43, %v1323_v8  ;;  %v1332_v14 = vrot.slane %v1330_v61, 1  ;;  %v1320_v57 = vrot.slane %v1318_v36, 1  ;;  %v6080_v43 = vld [vmem:[#allocation66_spill] sm:$0xff]  ;;  %v6082_v61 = vld [vmem:[#allocation81_spill] sm:$0xff] }
 0x1f6   :  { %v1941_v46 = vsel %vm1923_vm10, %v1876_v50, %v1421_v4  ;;  %v1975_v44 = vsel %vm1923_vm10, %v1910_v15, %v1455_v42  ;;  %v1522_v48 = vsel %vm1468_vm3, %v4854_v51, %v6077_v6  ;;  %v1490_v50 = vsel %vm1468_vm3, %v4915_v12, %v6079_v37 }
 0x1f7   :  { %1268 = vrot.lane.b32.xlu0 %v5238_v25, %s3524_s16  ;;  %3341 = vmatprep.mubr.msk.bf16.mxu0 %vm2024_vm11, %v1941_v46  ;;  %v1333_v13 = vsel %vm382_vm0, %v1328_v3, %v1332_v14  ;;  %v1321_v39 = vsel %vm382_vm0, %v1316_v30, %v1320_v57  ;;  %v1587_v52 = vsel %vm1533_vm4, %v1522_v48, %v6078_v11  ;;  %v6081_v46 = vld [vmem:[#allocation58_spill] sm:$0xff]  ;;  %v6085_v3 = vld [vmem:[#allocation65_spill] sm:$0xff] }
 0x1f8   :  { %1302 = vrot.lane.b32.xlu1 %v5275_v35, %s3524_s16  ;;  %3374 = vmatmul.mubr.msk.bf16.gmra.mrb[16].mxu1 %vm2024_vm11, %v1975_v44  ;;  %v1057_v40 = vpop.permute.xlu1 %1056  ;;  %v1555_v7 = vsel %vm1533_vm4, %v1490_v50, %v6080_v43  ;;  %v1524_v51 = vsel %vm1468_vm3, %v4931_v26, %v6081_v46  ;;  %v1492_v36 = vsel %vm1468_vm3, %v4944_v53, %v6084_v59 }
 0x1f9   :  { %v1423_v18 = vpop.permute.xlu0 %1422  ;;  %v1620_v29 = vsel %vm1598_vm6, %v1555_v7, %v6082_v61  ;;  %v1589_v12 = vsel %vm1533_vm4, %v1524_v51, %v6083_v45  ;;  %v1557_v14 = vsel %vm1533_vm4, %v1492_v36, %v6085_v3 }
 0x1fa   :  { %v1943_v25 = vsel %vm1923_vm10, %v1878_v33, %v1423_v18  ;;  %v1654_v33 = vsel %vm1598_vm6, %v1589_v12, %v1057_v40 }
 0x1fb   :  { %1270 = vrot.lane.b32.xlu0 %v5300_v21, %s3524_s16  ;;  %3342 = vmatmul.mubr.msk.bf16.gmra.mrb[16].mxu0 %vm2024_vm11, %v1943_v25 }
 0x1fc   :  { %1394 = vrot.lane.b32.xlu1 %v5250_v23, %s3525_s21  ;;  %v1149_v34 = vpop.permute.xlu1 %1148  ;;  %v1398_v23 = vrot.slane %v5300_v21, 1 }
 0x1fd   :  { %v1055_v62 = vpop.permute.xlu0 %1054 }
 0x1fe   :  { %v1400_v35 = vsel %vm831_vm1, %v1398_v23, %v1399_v19  ;;  %v1652_v4 = vsel %vm1598_vm6, %v1587_v52, %v1055_v62 }
 0x1ff   :  { %1362 = vrot.lane.b32.xlu0 %v5255_v2, %s3525_s21  ;;  %v1403_v2 = vsel %vm831_vm1, %v1401_v55, %v1402_v56  ;;  %v1717_v24 = vsel %vm1663_vm5, %v1652_v4, %v1149_v34 }
 0x200   :  { %1396 = vrot.lane.b32.xlu1 %v1333_v13, %s3525_s21  ;;  %v1151_v20 = vpop.permute.xlu1 %1150  ;;  %v6086_v13 = vld [vmem:[#allocation80_spill] sm:$0xff] }
 0x201   :  { %v1117_v10 = vpop.permute.xlu0 %1116  ;;  %v1719_v30 = vsel %vm1663_vm5, %v1654_v33, %v1151_v20  ;;  %v1622_v34 = vsel %vm1598_vm6, %v1557_v14, %v6086_v13  ;;  %v5433_v20 = vld [vmem:[%s5775_s2] ss:$0 sm:$0xff] }
 0x202   :  { %v1685_v58 = vsel %vm1663_vm5, %v1620_v29, %v1117_v10 }
 0x203   :  { %1364 = vrot.lane.b32.xlu0 %v1321_v39, %s3525_s21 }
 0x204   :  { %1464 = vrot.lane.b32.xlu1 %v5280_v60, %s3526_s1  ;;  %v1219_v22 = vpop.permute.xlu1 %1218 }
 0x205   :  { %v1119_v31 = vpop.permute.xlu0 %1118  ;;  %v1782_v15 = vsel %vm1728_vm7, %v1717_v24, %v1219_v22 }
 0x206   :  { %v1687_v10 = vsel %vm1663_vm5, %v1622_v34, %v1119_v31 }
 0x207   :  { %1432 = vrot.lane.b32.xlu0 %v5295_v17, %s3526_s1 }
 0x208   :  { %1466 = vrot.lane.b32.xlu1 %v1403_v2, %s3526_s1 }
 0x209   :  { %v1187_v54 = vpop.permute.xlu0 %1186 }
 0x20a   :  { %v1221_v49 = vpop.permute.xlu1 %1220  ;;  %v1750_v26 = vsel %vm1728_vm7, %v1685_v58, %v1187_v54 }
 0x20b   :  { %1434 = vrot.lane.b32.xlu0 %v1400_v35, %s3526_s1  ;;  %v1784_v53 = vsel %vm1728_vm7, %v1719_v30, %v1221_v49 }
 0x20d   :  { %v1189_v21 = vpop.permute.xlu0 %1188 }
 0x20e   :  { %v1293_v5 = vpop.permute.xlu1 %1292  ;;  %v1752_v23 = vsel %vm1728_vm7, %v1687_v10, %v1189_v21  ;;  %v6087_v10 = vld [vmem:[#allocation61_spill] sm:$0xff] }
 0x20f   :  { %v1847_v44 = vsel %vm1793_vm8, %v1782_v15, %v1293_v5 }
 0x211   :  { %v1261_v16 = vpop.permute.xlu0 %1260 }
 0x212   :  { %v1295_v38 = vpop.permute.xlu1 %1294  ;;  %v1815_v57 = vsel %vm1793_vm8, %v1750_v26, %v1261_v16 }
 0x213   :  { %v1849_v55 = vsel %vm1793_vm8, %v1784_v53, %v1295_v38 }
 0x215   :  { %v1263_v47 = vpop.permute.xlu0 %1262 }
 0x216   :  { %v1387_v60 = vpop.permute.xlu1 %1386  ;;  %v1817_v22 = vsel %vm1793_vm8, %v1752_v23, %v1263_v47  ;;  %v6088_v23 = vld [vmem:[#allocation75_spill] sm:$0xff] }
 0x217   :  { %v1912_v18 = vsel %vm1858_vm9, %v1847_v44, %v1387_v60  ;;  %v5447_v60 = vld [vmem:[%s5776_s3] ss:$0 sm:$0xff] }
 0x219   :  { %v1355_v17 = vpop.permute.xlu0 %1354 }
 0x21a   :  { %v1389_v8 = vpop.permute.xlu1 %1388  ;;  %v1880_v40 = vsel %vm1858_vm9, %v1815_v57, %v1355_v17 }
 0x21b   :  { %v1914_v19 = vsel %vm1858_vm9, %v1849_v55, %v1389_v8  ;;  %v1526_v55 = vsel %vm1468_vm3, %v4974_v9, %v6087_v10 }
 0x21d   :  { %v1357_v42 = vpop.permute.xlu0 %1356 }
 0x21e   :  { %v1457_v25 = vpop.permute.xlu1 %1456  ;;  %v1882_v54 = vsel %vm1858_vm9, %v1817_v22, %v1357_v42 }
 0x21f   :  { %v1977_v62 = vsel %vm1923_vm10, %v1912_v18, %v1457_v25 }
 0x220   :  { %3377 = vmatprep.mubr.msk.bf16.mxu1 %vm2024_vm11, %v1977_v62  ;;  %v3359_v35 = vpop.f32.mrb[0].mxu1 }
 0x221   :  { %v1425_v39 = vpop.permute.xlu0 %1424  ;;  %v2423_v5 = vmul.f32 %v3359_v35, %v5433_v20  ;;  %v2255_v16 = vpop.f32.mrb[1].mxu1 }
 0x222   :  { %v1945_v56 = vsel %vm1923_vm10, %v1880_v40, %v1425_v39  ;;  %v1459_v2 = vpop.permute.xlu1 %1458  ;;  %v2421_v47 = vmul.f32 %v5433_v20, %v2255_v16  ;;  %v3360_v6 = vpop.f32.mrb[2].mxu1  ;;  %v6091_v16 = vld [vmem:[#allocation60_spill] sm:$0xff] }
 0x223   :  { %3345 = vmatprep.mubr.msk.bf16.mxu0 %vm2024_vm11, %v1945_v56  ;;  %v1979_v31 = vsel %vm1923_vm10, %v1914_v19, %v1459_v2  ;;  %v2424_v11 = vmul.f32 %v3360_v6, %v5433_v20  ;;  %v2258_v4 = vpop.f32.mrb[3].mxu1  ;;  %v2494_v8 = vadd.f32 %v5447_v60, %v2423_v5  ;;  %v1591_v19 = vsel %vm1533_vm4, %v1526_v55, %v6088_v23  ;;  %v6089_v2 = vld [vmem:[#allocation38_spill] sm:$0xff] }
 0x224   :  { %3378 = vmatmul.mubr.msk.bf16.gmra.mrb[20].mxu1 %vm2024_vm11, %v1979_v31  ;;  %v2422_v46 = vmul.f32 %v5433_v20, %v2258_v4  ;;  %v2492_v61 = vadd.f32 %v5447_v60, %v2421_v47  ;;  %v1494_v22 = vsel %vm1468_vm3, %v5050_v28, %v6089_v2  ;;  %v1528_v9 = vsel %vm1468_vm3, %v5061_v63, %v6091_v16  ;;  %v6095_v4 = vld [vmem:[#allocation18_spill] sm:$0xff] }
 0x225   :  { %v1427_v49 = vpop.permute.xlu0 %1426  ;;  %v2495_v7 = vadd.f32 %v5447_v60, %v2424_v11 }
 0x226   :  { %v1947_v21 = vsel %vm1923_vm10, %v1882_v54, %v1427_v49  ;;  %v3327_v38 = vpop.f32.mrb[0].mxu0  ;;  %v1061_v52 = vpop.permute.xlu1 %1060  ;;  %v2493_v12 = vadd.f32 %v5447_v60, %v2422_v46  ;;  %v6090_v54 = vld [vmem:[#allocation3_spill] sm:$0xff]  ;;  %v6096_v46 = vld [vmem:[#allocation82_spill] sm:$0xff] }
 0x227   :  { %v2391_v48 = vmul.f32 %v3327_v38, %v5433_v20  ;;  %v2127_v17 = vpop.f32.mrb[1].mxu0  ;;  %3346 = vmatmul.mubr.msk.bf16.gmra.mrb[20].mxu0 %vm2024_vm11, %v1947_v21  ;;  %v3175_v45 = vpack.c.bf16 %v2495_v7, %v2494_v8  ;;  %v1559_v49 = vsel %vm1533_vm4, %v1494_v22, %v6090_v54  ;;  %v6092_v21 = vld [vmem:[#allocation83_spill] sm:$0xff] }
 0x228   :  { %v2389_v37 = vmul.f32 %v5433_v20, %v2127_v17  ;;  %v3328_v50 = vpop.f32.mrb[2].mxu0  ;;  %v3170_v33 = vpack.c.bf16 %v2493_v12, %v2492_v61  ;;  %v1624_v38 = vsel %vm1598_vm6, %v1559_v49, %v6092_v21  ;;  %v6094_v17 = vld [vmem:[#allocation74_spill] sm:$0xff] }
 0x229   :  { %v2392_v43 = vmul.f32 %v3328_v50, %v5433_v20  ;;  %v2130_v24 = vpop.f32.mrb[3].mxu0  ;;  %v1059_v51 = vpop.permute.xlu0 %1058  ;;  %v2462_v15 = vadd.f32 %v5447_v60, %v2391_v48  ;;  %3263 = vst [vmem:[%s5777_s4 + $0x88] sm:$0xff] %v3175_v45   ;;  %v6093_v48 = vld [vmem:[#allocation36_spill] sm:$0xff]  ;;  %v1593_v11 = vsel %vm1533_vm4, %v1528_v9, %v6094_v17 }
 0x22a   :  { %v2390_v29 = vmul.f32 %v5433_v20, %v2130_v24  ;;  %v1153_v58 = vpop.permute.xlu1 %1152  ;;  %v2460_v44 = vadd.f32 %v5447_v60, %v2389_v37  ;;  %3262 = vst [vmem:[%s5777_s4 + $0x80] sm:$0xff] %v3170_v33   ;;  %v1656_v31 = vsel %vm1598_vm6, %v1591_v19, %v1059_v51  ;;  %v1496_v28 = vsel %vm1468_vm3, %v5070_v1, %v6093_v48 }
 0x22b   :  { %v2463_v42 = vadd.f32 %v5447_v60, %v2392_v43  ;;  %v1721_v5 = vsel %vm1663_vm5, %v1656_v31, %v1153_v58  ;;  %v1561_v63 = vsel %vm1533_vm4, %v1496_v28, %v6095_v4  ;;  %v1658_v8 = vsel %vm1598_vm6, %v1593_v11, %v1061_v52 }
 0x22c   :  { %v2461_v59 = vadd.f32 %v5447_v60, %v2390_v29  ;;  %v1626_v1 = vsel %vm1598_vm6, %v1561_v63, %v6096_v46 }
 0x22d   :  { %v3095_v36 = vpack.c.bf16 %v2463_v42, %v2462_v15  ;;  %v1121_v26 = vpop.permute.xlu0 %1120 }
 0x22e   :  { %v3090_v18 = vpack.c.bf16 %v2461_v59, %v2460_v44  ;;  %v1155_v25 = vpop.permute.xlu1 %1154  ;;  %v1689_v37 = vsel %vm1663_vm5, %v1624_v38, %v1121_v26 }
 0x22f   :  { %3247 = vst [vmem:[%s5777_s4 + $0x8] sm:$0xff] %v3095_v36   ;;  %v1723_v51 = vsel %vm1663_vm5, %v1658_v8, %v1155_v25 }
 0x230   :  { %3091 = vst [vmem:[%s5777_s4] sm:$0xff] %v3090_v18  }
 0x231   :  { %v1123_v3 = vpop.permute.xlu0 %1122 }
 0x232   :  { %v1223_v14 = vpop.permute.xlu1 %1222  ;;  %v1691_v42 = vsel %vm1663_vm5, %v1626_v1, %v1123_v3 }
 0x233   :  { %v1786_v47 = vsel %vm1728_vm7, %v1721_v5, %v1223_v14 }
 0x235   :  { %v1191_v30 = vpop.permute.xlu0 %1190 }
 0x236   :  { %v1225_v57 = vpop.permute.xlu1 %1224  ;;  %v1754_v43 = vsel %vm1728_vm7, %v1689_v37, %v1191_v30 }
 0x237   :  { %v1788_v45 = vsel %vm1728_vm7, %v1723_v51, %v1225_v57 }
 0x239   :  { %v1193_v62 = vpop.permute.xlu0 %1192 }
 0x23a   :  { %v1297_v13 = vpop.permute.xlu1 %1296  ;;  %v1756_v59 = vsel %vm1728_vm7, %v1691_v42, %v1193_v62  ;;  %v6098_v42 = vld [vmem:[#allocation17_spill] sm:$0xff] }
 0x23b   :  { %v1851_v50 = vsel %vm1793_vm8, %v1786_v47, %v1297_v13 }
 0x23d   :  { %v1265_v34 = vpop.permute.xlu0 %1264 }
 0x23e   :  { %v1299_v53 = vpop.permute.xlu1 %1298  ;;  %v1819_v61 = vsel %vm1793_vm8, %v1754_v43, %v1265_v34 }
 0x23f   :  { %v1853_v36 = vsel %vm1793_vm8, %v1788_v45, %v1299_v53  ;;  %v1532_v45 = vsel %vm1468_vm3, %v5179_v0, %v6098_v42 }
 0x241   :  { %v1267_v40 = vpop.permute.xlu0 %1266 }
 0x242   :  { %v1391_v39 = vpop.permute.xlu1 %1390  ;;  %v1821_v3 = vsel %vm1793_vm8, %v1756_v59, %v1267_v40 }
 0x243   :  { %v1916_v7 = vsel %vm1858_vm9, %v1851_v50, %v1391_v39 }
 0x245   :  { %v1359_v56 = vpop.permute.xlu0 %1358 }
 0x246   :  { %v1393_v35 = vpop.permute.xlu1 %1392  ;;  %v1884_v52 = vsel %vm1858_vm9, %v1819_v61, %v1359_v56 }
 0x247   :  { %v1918_v14 = vsel %vm1858_vm9, %v1853_v36, %v1393_v35  ;;  %v6101_v36 = vld [vmem:[#allocation68_spill] sm:$0xff] }
 0x248   :  { %v3363_v15 = vpop.f32.mrb[4].mxu1 }
 0x249   :  { %v1361_v6 = vpop.permute.xlu0 %1360  ;;  %v2427_v58 = vmul.f32 %v3363_v15, %v5433_v20  ;;  %v2271_v44 = vpop.f32.mrb[5].mxu1 }
 0x24a   :  { %v1461_v24 = vpop.permute.xlu1 %1460  ;;  %v2425_v18 = vmul.f32 %v5433_v20, %v2271_v44  ;;  %v3364_v25 = vpop.f32.mrb[6].mxu1  ;;  %v1886_v34 = vsel %vm1858_vm9, %v1821_v3, %v1361_v6  ;;  %v6100_v44 = vld [vmem:[#allocation40_spill] sm:$0xff]  ;;  %v6104_v3 = vld [vmem:[#allocation67_spill] sm:$0xff] }
 0x24b   :  { %v1981_v29 = vsel %vm1923_vm10, %v1916_v7, %v1461_v24  ;;  %v2428_v13 = vmul.f32 %v3364_v25, %v5433_v20  ;;  %v2274_v55 = vpop.f32.mrb[7].mxu1  ;;  %v2498_v40 = vadd.f32 %v5447_v60, %v2427_v58  ;;  %v1500_v59 = vsel %vm1468_vm3, %v5188_v32, %v6100_v44 }
 0x24c   :  { %3381 = vmatprep.mubr.msk.bf16.mxu1 %vm2024_vm11, %v1981_v29  ;;  %v2426_v2 = vmul.f32 %v5433_v20, %v2274_v55  ;;  %v2496_v31 = vadd.f32 %v5447_v60, %v2425_v18  ;;  %v6097_v29 = vld [vmem:[#allocation41_spill] sm:$0xff]  ;;  %v1565_v0 = vsel %vm1533_vm4, %v1500_v59, %v6104_v3 }
 0x24d   :  { %v1429_v12 = vpop.permute.xlu0 %1428  ;;  %v2499_v23 = vadd.f32 %v5447_v60, %v2428_v13  ;;  %v1498_v15 = vsel %vm1468_vm3, %v5168_v27, %v6097_v29  ;;  %v6103_v27 = vld [vmem:[#allocation77_spill] sm:$0xff] }
 0x24e   :  { %v1949_v33 = vsel %vm1923_vm10, %v1884_v52, %v1429_v12  ;;  %v3331_v26 = vpop.f32.mrb[4].mxu0  ;;  %v1463_v62 = vpop.permute.xlu1 %1462  ;;  %v2497_v9 = vadd.f32 %v5447_v60, %v2426_v2  ;;  %v6099_v52 = vld [vmem:[#allocation4_spill] sm:$0xff]  ;;  %v6106_v13 = vld [vmem:[#allocation85_spill] sm:$0xff] }
 0x24f   :  { %v2395_v30 = vmul.f32 %v3331_v26, %v5433_v20  ;;  %v2143_v57 = vpop.f32.mrb[5].mxu0  ;;  %3349 = vmatprep.mubr.msk.bf16.mxu0 %vm2024_vm11, %v1949_v33  ;;  %v1983_v10 = vsel %vm1923_vm10, %v1918_v14, %v1463_v62  ;;  %v3185_v16 = vpack.c.bf16 %v2499_v23, %v2498_v40  ;;  %v1530_v12 = vsel %vm1468_vm3, %v5094_v41, %v6099_v52  ;;  %v6102_v26 = vld [vmem:[#allocation76_spill] sm:$0xff]  ;;  %v6105_v14 = vld [vmem:[#allocation86_spill] sm:$0xff] }
 0x250   :  { %v2393_v53 = vmul.f32 %v5433_v20, %v2143_v57  ;;  %v3332_v39 = vpop.f32.mrb[6].mxu0  ;;  %3382 = vmatmul.mubr.msk.bf16.gmra.mrb[24].mxu1 %vm2024_vm11, %v1983_v10  ;;  %v3180_v48 = vpack.c.bf16 %v2497_v9, %v2496_v31  ;;  %v1563_v33 = vsel %vm1533_vm4, %v1498_v15, %v6101_v36  ;;  %v1597_v18 = vsel %vm1533_vm4, %v1532_v45, %v6102_v26 }
 0x251   :  { %v2396_v56 = vmul.f32 %v3332_v39, %v5433_v20  ;;  %v2146_v19 = vpop.f32.mrb[7].mxu0  ;;  %v1431_v22 = vpop.permute.xlu0 %1430  ;;  %v2466_v49 = vadd.f32 %v5447_v60, %v2395_v30  ;;  %3265 = vst [vmem:[%s5777_s4 + $0x98] sm:$0xff] %v3185_v16   ;;  %v1595_v25 = vsel %vm1533_vm4, %v1530_v12, %v6103_v27  ;;  %v1628_v41 = vsel %vm1598_vm6, %v1563_v33, %v6105_v14 }
 0x252   :  { %v2394_v35 = vmul.f32 %v5433_v20, %v2146_v19  ;;  %v1951_v54 = vsel %vm1923_vm10, %v1886_v34, %v1431_v22  ;;  %v1065_v21 = vpop.permute.xlu1 %1064  ;;  %v2464_v38 = vadd.f32 %v5447_v60, %v2393_v53  ;;  %3264 = vst [vmem:[%s5777_s4 + $0x90] sm:$0xff] %v3180_v48   ;;  %v1630_v62 = vsel %vm1598_vm6, %v1565_v0, %v6106_v13 }
 0x253   :  { %v2467_v5 = vadd.f32 %v5447_v60, %v2396_v56  ;;  %3350 = vmatmul.mubr.msk.bf16.gmra.mrb[24].mxu0 %vm2024_vm11, %v1951_v54  ;;  %v1662_v30 = vsel %vm1598_vm6, %v1597_v18, %v1065_v21 }
 0x254   :  { %v2465_v47 = vadd.f32 %v5447_v60, %v2394_v35 }
 0x255   :  { %v3105_v6 = vpack.c.bf16 %v2467_v5, %v2466_v49  ;;  %v1063_v28 = vpop.permute.xlu0 %1062 }
 0x256   :  { %v3100_v17 = vpack.c.bf16 %v2465_v47, %v2464_v38  ;;  %v1157_v11 = vpop.permute.xlu1 %1156  ;;  %v1660_v57 = vsel %vm1598_vm6, %v1595_v25, %v1063_v28 }
 0x257   :  { %3249 = vst [vmem:[%s5777_s4 + $0x18] sm:$0xff] %v3105_v6   ;;  %v1725_v34 = vsel %vm1663_vm5, %v1660_v57, %v1157_v11 }
 0x258   :  { %3248 = vst [vmem:[%s5777_s4 + $0x10] sm:$0xff] %v3100_v17  }
 0x259   :  { %v1125_v37 = vpop.permute.xlu0 %1124 }
 0x25a   :  { %v1159_v50 = vpop.permute.xlu1 %1158  ;;  %v1693_v53 = vsel %vm1663_vm5, %v1628_v41, %v1125_v37 }
 0x25b   :  { %v1727_v39 = vsel %vm1663_vm5, %v1662_v30, %v1159_v50 }
 0x25d   :  { %v1127_v4 = vpop.permute.xlu0 %1126 }
 0x25e   :  { %v1227_v63 = vpop.permute.xlu1 %1226  ;;  %v1695_v55 = vsel %vm1663_vm5, %v1630_v62, %v1127_v4 }
 0x25f   :  { %v1790_v40 = vsel %vm1728_vm7, %v1725_v34, %v1227_v63 }
 0x261   :  { %v1195_v8 = vpop.permute.xlu0 %1194 }
 0x262   :  { %v1229_v43 = vpop.permute.xlu1 %1228  ;;  %v1758_v56 = vsel %vm1728_vm7, %v1693_v53, %v1195_v8 }
 0x263   :  { %v1792_v22 = vsel %vm1728_vm7, %v1727_v39, %v1229_v43 }
 0x265   :  { %v1197_v7 = vpop.permute.xlu0 %1196 }
 0x266   :  { %v1301_v24 = vpop.permute.xlu1 %1300  ;;  %v1760_v31 = vsel %vm1728_vm7, %v1695_v55, %v1197_v7 }
 0x267   :  { %v1855_v35 = vsel %vm1793_vm8, %v1790_v40, %v1301_v24 }
 0x269   :  { %v1269_v46 = vpop.permute.xlu0 %1268 }
 0x26a   :  { %v1303_v1 = vpop.permute.xlu1 %1302  ;;  %v1823_v16 = vsel %vm1793_vm8, %v1758_v56, %v1269_v46 }
 0x26b   :  { %v1857_v48 = vsel %vm1793_vm8, %v1792_v22, %v1303_v1 }
 0x26d   :  { %v1271_v51 = vpop.permute.xlu0 %1270 }
 0x26e   :  { %v1395_v61 = vpop.permute.xlu1 %1394 }
 0x26f   :  { %v1920_v9 = vsel %vm1858_vm9, %v1855_v35, %v1395_v61 }
 0x270   :  { %v3367_v10 = vpop.f32.mrb[8].mxu1 }
 0x271   :  { %v1363_v58 = vpop.permute.xlu0 %1362  ;;  %v2431_v19 = vmul.f32 %v3367_v10, %v5433_v20  ;;  %v2287_v2 = vpop.f32.mrb[9].mxu1 }
 0x272   :  { %v1397_v32 = vpop.permute.xlu1 %1396  ;;  %v2429_v49 = vmul.f32 %v5433_v20, %v2287_v2  ;;  %v3368_v5 = vpop.f32.mrb[10].mxu1  ;;  %v1888_v28 = vsel %vm1858_vm9, %v1823_v16, %v1363_v58  ;;  %v1825_v58 = vsel %vm1793_vm8, %v1760_v31, %v1271_v51 }
 0x273   :  { %v2432_v47 = vmul.f32 %v3368_v5, %v5433_v20  ;;  %v2290_v50 = vpop.f32.mrb[11].mxu1  ;;  %v2502_v4 = vadd.f32 %v5447_v60, %v2431_v19  ;;  %v1922_v46 = vsel %vm1858_vm9, %v1857_v48, %v1397_v32 }
 0x274   :  { %v2430_v7 = vmul.f32 %v5433_v20, %v2290_v50  ;;  %v2500_v1 = vadd.f32 %v5447_v60, %v2429_v49 }
 0x275   :  { %v1365_v23 = vpop.permute.xlu0 %1364  ;;  %v2503_v8 = vadd.f32 %v5447_v60, %v2432_v47 }
 0x276   :  { %v3335_v54 = vpop.f32.mrb[8].mxu0  ;;  %v1465_v6 = vpop.permute.xlu1 %1464  ;;  %v2501_v52 = vadd.f32 %v5447_v60, %v2430_v7  ;;  %v1890_v33 = vsel %vm1858_vm9, %v1825_v58, %v1365_v23 }
 0x277   :  { %v2399_v21 = vmul.f32 %v3335_v54, %v5433_v20  ;;  %v2159_v38 = vpop.f32.mrb[9].mxu0  ;;  %v1985_v37 = vsel %vm1923_vm10, %v1920_v9, %v1465_v6  ;;  %v3195_v45 = vpack.c.bf16 %v2503_v8, %v2502_v4 }
 0x278   :  { %v2397_v17 = vmul.f32 %v5433_v20, %v2159_v38  ;;  %v3336_v11 = vpop.f32.mrb[10].mxu0  ;;  %3385 = vmatprep.mubr.msk.bf16.mxu1 %vm2024_vm11, %v1985_v37  ;;  %v3190_v18 = vpack.c.bf16 %v2501_v52, %v2500_v1 }
 0x279   :  { %v2400_v63 = vmul.f32 %v3336_v11, %v5433_v20  ;;  %v2162_v43 = vpop.f32.mrb[11].mxu0  ;;  %v1433_v24 = vpop.permute.xlu0 %1432  ;;  %v2470_v15 = vadd.f32 %v5447_v60, %v2399_v21  ;;  %3267 = vst [vmem:[%s5777_s4 + $0xa8] sm:$0xff] %v3195_v45  }
 0x27a   :  { %v2398_v61 = vmul.f32 %v5433_v20, %v2162_v43  ;;  %v1953_v29 = vsel %vm1923_vm10, %v1888_v28, %v1433_v24  ;;  %v1467_v12 = vpop.permute.xlu1 %1466  ;;  %v2468_v44 = vadd.f32 %v5447_v60, %v2397_v17  ;;  %3266 = vst [vmem:[%s5777_s4 + $0xa0] sm:$0xff] %v3190_v18  }
 0x27b   :  { %v2471_v42 = vadd.f32 %v5447_v60, %v2400_v63  ;;  %3353 = vmatprep.mubr.msk.bf16.mxu0 %vm2024_vm11, %v1953_v29  ;;  %v1987_v36 = vsel %vm1923_vm10, %v1922_v46, %v1467_v12 }
 0x27c   :  { %v2469_v59 = vadd.f32 %v5447_v60, %v2398_v61  ;;  %3386 = vmatmul.mubr.msk.bf16.gmra.mrb[28].mxu1 %vm2024_vm11, %v1987_v36 }
 0x27d   :  { %v3115_v26 = vpack.c.bf16 %v2471_v42, %v2470_v15  ;;  %v1435_v27 = vpop.permute.xlu0 %1434 }
 0x27e   :  { %v3110_v25 = vpack.c.bf16 %v2469_v59, %v2468_v44  ;;  %v1955_v51 = vsel %vm1923_vm10, %v1890_v33, %v1435_v27 }
 0x27f   :  { %3251 = vst [vmem:[%s5777_s4 + $0x28] sm:$0xff] %v3115_v26   ;;  %3354 = vmatmul.mubr.msk.bf16.gmra.mrb[28].mxu0 %vm2024_vm11, %v1955_v51 }
 0x280   :  { %3250 = vst [vmem:[%s5777_s4 + $0x20] sm:$0xff] %v3110_v25  }
 0x29c   :  { %v3371_v3 = vpop.f32.mrb[12].mxu1 }
 0x29d   :  { %v2435_v0 = vmul.f32 %v3371_v3, %v5433_v20  ;;  %v2303_v14 = vpop.f32.mrb[13].mxu1 }
 0x29e   :  { %v2433_v30 = vmul.f32 %v5433_v20, %v2303_v14  ;;  %v3372_v57 = vpop.f32.mrb[14].mxu1 }
 0x29f   :  { %v2436_v62 = vmul.f32 %v3372_v57, %v5433_v20  ;;  %v2306_v34 = vpop.f32.mrb[15].mxu1  ;;  %v2506_v55 = vadd.f32 %v5447_v60, %v2435_v0 }
 0x2a0   :  { %v2434_v10 = vmul.f32 %v5433_v20, %v2306_v34  ;;  %v2504_v19 = vadd.f32 %v5447_v60, %v2433_v30 }
 0x2a1   :  { %v2507_v56 = vadd.f32 %v5447_v60, %v2436_v62 }
 0x2a2   :  { %v3339_v41 = vpop.f32.mrb[12].mxu0  ;;  %v2505_v22 = vadd.f32 %v5447_v60, %v2434_v10 }
 0x2a3   :  { %v2403_v32 = vmul.f32 %v3339_v41, %v5433_v20  ;;  %v2175_v13 = vpop.f32.mrb[13].mxu0  ;;  %v3205_v54 = vpack.c.bf16 %v2507_v56, %v2506_v55 }
 0x2a4   :  { %v2401_v53 = vmul.f32 %v5433_v20, %v2175_v13  ;;  %v3340_v39 = vpop.f32.mrb[14].mxu0  ;;  %v3200_v16 = vpack.c.bf16 %v2505_v22, %v2504_v19 }
 0x2a5   :  { %v2404_v40 = vmul.f32 %v3340_v39, %v5433_v20  ;;  %v2178_v23 = vpop.f32.mrb[15].mxu0  ;;  %v2474_v31 = vadd.f32 %v5447_v60, %v2403_v32  ;;  %3269 = vst [vmem:[%s5777_s4 + $0xb8] sm:$0xff] %v3205_v54  }
 0x2a6   :  { %v2402_v2 = vmul.f32 %v5433_v20, %v2178_v23  ;;  %v2472_v49 = vadd.f32 %v5447_v60, %v2401_v53  ;;  %3268 = vst [vmem:[%s5777_s4 + $0xb0] sm:$0xff] %v3200_v16  }
 0x2a7   :  { %v2475_v35 = vadd.f32 %v5447_v60, %v2404_v40 }
 0x2a8   :  { %v2473_v5 = vadd.f32 %v5447_v60, %v2402_v2 }
 0x2a9   :  { %v3125_v9 = vpack.c.bf16 %v2475_v35, %v2474_v31 }
 0x2aa   :  { %v3120_v21 = vpack.c.bf16 %v2473_v5, %v2472_v49 }
 0x2ab   :  { %3253 = vst [vmem:[%s5777_s4 + $0x38] sm:$0xff] %v3125_v9  }
 0x2ac   :  { %3252 = vst [vmem:[%s5777_s4 + $0x30] sm:$0xff] %v3120_v21  }
 0x2cb   :  { %v3375_v38 = vpop.f32.mrb[16].mxu1 }
 0x2cc   :  { %v2439_v47 = vmul.f32 %v3375_v38, %v5433_v20  ;;  %v2319_v6 = vpop.f32.mrb[17].mxu1 }
 0x2cd   :  { %v2437_v28 = vmul.f32 %v5433_v20, %v2319_v6  ;;  %v3376_v17 = vpop.f32.mrb[18].mxu1 }
 0x2ce   :  { %v3343_v48 = vpop.f32.mrb[16].mxu0  ;;  %v2440_v50 = vmul.f32 %v3376_v17, %v5433_v20  ;;  %v2322_v4 = vpop.f32.mrb[19].mxu1  ;;  %v2510_v7 = vadd.f32 %v5447_v60, %v2439_v47 }
 0x2cf   :  { %v2407_v11 = vmul.f32 %v3343_v48, %v5433_v20  ;;  %v2191_v37 = vpop.f32.mrb[17].mxu0  ;;  %v2438_v43 = vmul.f32 %v5433_v20, %v2322_v4  ;;  %v2508_v61 = vadd.f32 %v5447_v60, %v2437_v28 }
 0x2d0   :  { %v2405_v63 = vmul.f32 %v5433_v20, %v2191_v37  ;;  %v3344_v8 = vpop.f32.mrb[18].mxu0  ;;  %v2511_v46 = vadd.f32 %v5447_v60, %v2440_v50 }
 0x2d1   :  { %v2408_v24 = vmul.f32 %v3344_v8, %v5433_v20  ;;  %v2194_v1 = vpop.f32.mrb[19].mxu0  ;;  %v2509_v15 = vadd.f32 %v5447_v60, %v2438_v43  ;;  %v2478_v42 = vadd.f32 %v5447_v60, %v2407_v11 }
 0x2d2   :  { %v2406_v29 = vmul.f32 %v5433_v20, %v2194_v1  ;;  %v3215_v52 = vpack.c.bf16 %v2511_v46, %v2510_v7  ;;  %v2476_v12 = vadd.f32 %v5447_v60, %v2405_v63 }
 0x2d3   :  { %v2479_v45 = vadd.f32 %v5447_v60, %v2408_v24  ;;  %v3210_v44 = vpack.c.bf16 %v2509_v15, %v2508_v61 }
 0x2d4   :  { %v2477_v58 = vadd.f32 %v5447_v60, %v2406_v29  ;;  %3271 = vst [vmem:[%s5777_s4 + $0xc8] sm:$0xff] %v3215_v52  }
 0x2d5   :  { %v3135_v59 = vpack.c.bf16 %v2479_v45, %v2478_v42  ;;  %3270 = vst [vmem:[%s5777_s4 + $0xc0] sm:$0xff] %v3210_v44  }
 0x2d6   :  { %v3130_v36 = vpack.c.bf16 %v2477_v58, %v2476_v12 }
 0x2d7   :  { %3255 = vst [vmem:[%s5777_s4 + $0x48] sm:$0xff] %v3135_v59  }
 0x2d8   :  { %3254 = vst [vmem:[%s5777_s4 + $0x40] sm:$0xff] %v3130_v36  }
 0x2f7   :  { %v3379_v33 = vpop.f32.mrb[20].mxu1 }
 0x2f8   :  { %v2443_v26 = vmul.f32 %v3379_v33, %v5433_v20  ;;  %v2335_v18 = vpop.f32.mrb[21].mxu1 }
 0x2f9   :  { %v2441_v25 = vmul.f32 %v5433_v20, %v2335_v18  ;;  %v3380_v51 = vpop.f32.mrb[22].mxu1 }
 0x2fa   :  { %v3347_v27 = vpop.f32.mrb[20].mxu0  ;;  %v2444_v14 = vmul.f32 %v3380_v51, %v5433_v20  ;;  %v2338_v41 = vpop.f32.mrb[23].mxu1  ;;  %v2514_v13 = vadd.f32 %v5447_v60, %v2443_v26 }
 0x2fb   :  { %v2411_v3 = vmul.f32 %v3347_v27, %v5433_v20  ;;  %v2207_v0 = vpop.f32.mrb[21].mxu0  ;;  %v2442_v32 = vmul.f32 %v5433_v20, %v2338_v41  ;;  %v2512_v39 = vadd.f32 %v5447_v60, %v2441_v25 }
 0x2fc   :  { %v2409_v30 = vmul.f32 %v5433_v20, %v2207_v0  ;;  %v3348_v57 = vpop.f32.mrb[22].mxu0  ;;  %v2515_v34 = vadd.f32 %v5447_v60, %v2444_v14 }
 0x2fd   :  { %v2412_v62 = vmul.f32 %v3348_v57, %v5433_v20  ;;  %v2210_v53 = vpop.f32.mrb[23].mxu0  ;;  %v2513_v55 = vadd.f32 %v5447_v60, %v2442_v32  ;;  %v2482_v40 = vadd.f32 %v5447_v60, %v2411_v3 }
 0x2fe   :  { %v2410_v10 = vmul.f32 %v5433_v20, %v2210_v53  ;;  %v3225_v23 = vpack.c.bf16 %v2515_v34, %v2514_v13  ;;  %v2480_v19 = vadd.f32 %v5447_v60, %v2409_v30 }
 0x2ff   :  { %v2483_v56 = vadd.f32 %v5447_v60, %v2412_v62  ;;  %v3220_v22 = vpack.c.bf16 %v2513_v55, %v2512_v39 }
 0x300   :  { %v2481_v2 = vadd.f32 %v5447_v60, %v2410_v10  ;;  %3273 = vst [vmem:[%s5777_s4 + $0xd8] sm:$0xff] %v3225_v23  }
 0x301   :  { %v3145_v31 = vpack.c.bf16 %v2483_v56, %v2482_v40  ;;  %3272 = vst [vmem:[%s5777_s4 + $0xd0] sm:$0xff] %v3220_v22  }
 0x302   :  { %v3140_v35 = vpack.c.bf16 %v2481_v2, %v2480_v19 }
 0x303   :  { %3257 = vst [vmem:[%s5777_s4 + $0x58] sm:$0xff] %v3145_v31  }
 0x304   :  { %3256 = vst [vmem:[%s5777_s4 + $0x50] sm:$0xff] %v3140_v35  }
 0x323   :  { %v3383_v54 = vpop.f32.mrb[24].mxu1 }
 0x324   :  { %v2447_v49 = vmul.f32 %v3383_v54, %v5433_v20  ;;  %v2351_v5 = vpop.f32.mrb[25].mxu1 }
 0x325   :  { %v2445_v9 = vmul.f32 %v5433_v20, %v2351_v5  ;;  %v3384_v21 = vpop.f32.mrb[26].mxu1 }
 0x326   :  { %v3351_v16 = vpop.f32.mrb[24].mxu0  ;;  %v2448_v6 = vmul.f32 %v3384_v21, %v5433_v20  ;;  %v2354_v48 = vpop.f32.mrb[27].mxu1  ;;  %v2518_v37 = vadd.f32 %v5447_v60, %v2447_v49 }
 0x327   :  { %v2415_v38 = vmul.f32 %v3351_v16, %v5433_v20  ;;  %v2223_v47 = vpop.f32.mrb[25].mxu0  ;;  %v2446_v11 = vmul.f32 %v5433_v20, %v2354_v48  ;;  %v2516_v8 = vadd.f32 %v5447_v60, %v2445_v9 }
 0x328   :  { %v2413_v28 = vmul.f32 %v5433_v20, %v2223_v47  ;;  %v3352_v17 = vpop.f32.mrb[26].mxu0  ;;  %v2519_v4 = vadd.f32 %v5447_v60, %v2448_v6 }
 0x329   :  { %v2416_v50 = vmul.f32 %v3352_v17, %v5433_v20  ;;  %v2226_v63 = vpop.f32.mrb[27].mxu0  ;;  %v2517_v7 = vadd.f32 %v5447_v60, %v2446_v11  ;;  %v2486_v24 = vadd.f32 %v5447_v60, %v2415_v38 }
 0x32a   :  { %v2414_v43 = vmul.f32 %v5433_v20, %v2226_v63  ;;  %v3235_v1 = vpack.c.bf16 %v2519_v4, %v2518_v37  ;;  %v2484_v61 = vadd.f32 %v5447_v60, %v2413_v28 }
 0x32b   :  { %v2487_v46 = vadd.f32 %v5447_v60, %v2416_v50  ;;  %v3230_v15 = vpack.c.bf16 %v2517_v7, %v2516_v8 }
 0x32c   :  { %v2485_v29 = vadd.f32 %v5447_v60, %v2414_v43  ;;  %3275 = vst [vmem:[%s5777_s4 + $0xe8] sm:$0xff] %v3235_v1  }
 0x32d   :  { %v3155_v42 = vpack.c.bf16 %v2487_v46, %v2486_v24  ;;  %3274 = vst [vmem:[%s5777_s4 + $0xe0] sm:$0xff] %v3230_v15  }
 0x32e   :  { %v3150_v45 = vpack.c.bf16 %v2485_v29, %v2484_v61 }
 0x32f   :  { %3259 = vst [vmem:[%s5777_s4 + $0x68] sm:$0xff] %v3155_v42  }
 0x330   :  { %3258 = vst [vmem:[%s5777_s4 + $0x60] sm:$0xff] %v3150_v45  }
 0x34f   :  { %v3387_v52 = vpop.f32.mrb[28].mxu1 }
 0x350   :  { %v2451_v12 = vmul.f32 %v3387_v52, %v5433_v20  ;;  %v2367_v58 = vpop.f32.mrb[29].mxu1 }
 0x351   :  { %v2449_v59 = vmul.f32 %v5433_v20, %v2367_v58  ;;  %v3388_v36 = vpop.f32.mrb[30].mxu1 }
 0x352   :  { %v3355_v44 = vpop.f32.mrb[28].mxu0  ;;  %v2452_v18 = vmul.f32 %v3388_v36, %v5433_v20  ;;  %v2370_v27 = vpop.f32.mrb[31].mxu1  ;;  %v2522_v0 = vadd.f32 %v5447_v60, %v2451_v12 }
 0x353   :  { %v2419_v33 = vmul.f32 %v3355_v44, %v5433_v20  ;;  %v2239_v26 = vpop.f32.mrb[29].mxu0  ;;  %v2450_v3 = vmul.f32 %v5433_v20, %v2370_v27  ;;  %v2520_v57 = vadd.f32 %v5447_v60, %v2449_v59 }
 0x354   :  { %v2417_v25 = vmul.f32 %v5433_v20, %v2239_v26  ;;  %v3356_v51 = vpop.f32.mrb[30].mxu0  ;;  %v2523_v41 = vadd.f32 %v5447_v60, %v2452_v18 }
 0x355   :  { %v2420_v14 = vmul.f32 %v3356_v51, %v5433_v20  ;;  %v2242_v30 = vpop.f32.mrb[31].mxu0  ;;  %v2521_v13 = vadd.f32 %v5447_v60, %v2450_v3  ;;  %v2490_v62 = vadd.f32 %v5447_v60, %v2419_v33 }
 0x356   :  { %v2418_v32 = vmul.f32 %v5433_v20, %v2242_v30  ;;  %v3245_v53 = vpack.c.bf16 %v2523_v41, %v2522_v0  ;;  %v2488_v39 = vadd.f32 %v5447_v60, %v2417_v25 }
 0x357   :  { %v2491_v34 = vadd.f32 %v5447_v60, %v2420_v14  ;;  %v3240_v55 = vpack.c.bf16 %v2521_v13, %v2520_v57 }
 0x358   :  { %v2489_v10 = vadd.f32 %v5447_v60, %v2418_v32  ;;  %3277 = vst [vmem:[%s5777_s4 + $0xf8] sm:$0xff] %v3245_v53  }
 0x359   :  { %v3165_v40 = vpack.c.bf16 %v2491_v34, %v2490_v62  ;;  %3276 = vst [vmem:[%s5777_s4 + $0xf0] sm:$0xff] %v3240_v55  }
 0x35a   :  { %v3160_v56 = vpack.c.bf16 %v2489_v10, %v2488_v39 }
 0x35b   :  { %3261 = vst [vmem:[%s5777_s4 + $0x78] sm:$0xff] %v3165_v40  }
 0x35c   :  { %3260 = vst [vmem:[%s5777_s4 + $0x70] sm:$0xff] %v3160_v56  }

</bundles_post_ra>
